<compile_context>
chip_gen: v6e
topology: v6e:2x2x1
jax: 0.10.0
libtpu: 0.0.40
codegen_flags: <defaults>
</compile_context>

<pallas_src>
import functools

import jax
import jax.numpy as jnp
from jax.experimental import pallas as pl
from jax.experimental.pallas import tpu as pltpu

# ResNet18 architecture constants (static, never passed through jit).
LAYER_CHANNELS = [64, 128, 256, 512]
LAYER_STRIDES = [1, 2, 2, 2]


def _round_up(x, m):
    return (x + m - 1) // m * m


def _choose_tk(kp, max_tk=1024):
    """Largest multiple of 128 that divides kp and is <= max_tk."""
    best = 128
    for t in range(128, min(max_tk, kp) + 1, 128):
        if kp % t == 0:
            best = t
    return best


# ----------------------------------------------------------------------------
# Pallas kernels
# ----------------------------------------------------------------------------

def _matmul_kernel(*refs, apply_relu, has_res):
    """K-tiled matmul: acc (+)= a @ b; epilogue adds bias (+residual) and ReLU."""
    if has_res:
        a_ref, b_ref, bias_ref, res_ref, o_ref, acc_ref = refs
    else:
        a_ref, b_ref, bias_ref, o_ref, acc_ref = refs
        res_ref = None
    k = pl.program_id(2)

    prod = jnp.dot(a_ref[...], b_ref[...], preferred_element_type=jnp.float32)

    @pl.when(k == 0)
    def _():
        acc_ref[...] = prod          # direct write: no zero-init store+reload

    @pl.when(k > 0)
    def _():
        acc_ref[...] += prod

    @pl.when(k == pl.num_programs(2) - 1)
    def _():
        acc = acc_ref[...] + bias_ref[...]
        if has_res:
            acc = acc + res_ref[...].astype(jnp.float32)
        if apply_relu:
            acc = jnp.maximum(acc, 0.0)
        o_ref[...] = acc.astype(o_ref.dtype)


def matmul_bias(a, w_p, bias_p, residual=None, relu=False, tm=256, max_tk=1024):
    """Returns padded (Mp, Np) bf16 = act(a @ w_p + bias_p (+ residual)).

    a: (M, K) bf16 activations / patches.
    w_p: (Kp, Np) bf16 pre-padded folded weights (Kp, Np multiples of 128).
    bias_p: (1, Np) f32.  residual: optional (M, Np) bf16, fused in epilogue.
    Padded channel columns stay exactly zero (zero weight cols + zero bias).
    """
    M, K = a.shape
    Kp, Np = w_p.shape
    TM = min(tm, _round_up(M, 16))          # 16: bf16 sublane packing
    Mp = _round_up(M, TM)
    TK = _choose_tk(Kp, max_tk)
    TN = 256 if (Np >= 256 and Np % 256 == 0) else 128
    nk = Kp // TK

    a_p = a.astype(jnp.bfloat16)
    if Mp != M or Kp != K:
        a_p = jnp.pad(a_p, ((0, Mp - M), (0, Kp - K)))

    args = [a_p, w_p, bias_p]
    in_specs = [
        pl.BlockSpec((TM, TK), lambda i, j, k: (i, k)),
        pl.BlockSpec((TK, TN), lambda i, j, k: (k, j)),
        pl.BlockSpec((1, TN), lambda i, j, k: (0, j)),
    ]
    has_res = residual is not None
    if has_res:
        r_p = residual.astype(jnp.bfloat16)
        if Mp != M:
            r_p = jnp.pad(r_p, ((0, Mp - M), (0, 0)))
        args.append(r_p)
        in_specs.append(pl.BlockSpec((TM, TN), lambda i, j, k: (i, j)))

    out = pl.pallas_call(
        functools.partial(_matmul_kernel, apply_relu=relu, has_res=has_res),
        out_shape=jax.ShapeDtypeStruct((Mp, Np), jnp.bfloat16),
        grid_spec=pltpu.PrefetchScalarGridSpec(
            num_scalar_prefetch=0,
            grid=(Mp // TM, Np // TN, nk),
            in_specs=in_specs,
            out_specs=pl.BlockSpec((TM, TN), lambda i, j, k: (i, j)),
            scratch_shapes=[pltpu.VMEM((TM, TN), jnp.float32)],
        ),
        compiler_params=pltpu.CompilerParams(
            dimension_semantics=("parallel", "parallel", "arbitrary")),
    )(*args)
    return out                               # (Mp, Np) bf16, caller slices rows


def _head_kernel(x_ref, w1_ref, b1_ref, w2_ref, b2_ref, o_ref):
    """Global avgpool -> Linear(512,512)+ReLU -> Linear(512,Ncls), one kernel."""
    feat = jnp.mean(x_ref[...].astype(jnp.float32), axis=1)          # (Nb, C)
    h = jnp.dot(feat.astype(jnp.bfloat16), w1_ref[...],
                preferred_element_type=jnp.float32) + b1_ref[...]
    h = jnp.maximum(h, 0.0)
    out = jnp.dot(h.astype(jnp.bfloat16), w2_ref[...],
                  preferred_element_type=jnp.float32) + b2_ref[...]
    o_ref[...] = out.astype(o_ref.dtype)


def head_forward(x_nhwc, hp, num_classes):
    n, h, w, c = x_nhwc.shape                       # c == 512 (no extra padding)
    nb = _round_up(n, 16)                           # bf16 sublane-friendly rows
    xr = jnp.pad(x_nhwc.reshape(n, h * w, c), ((0, nb - n), (0, 0), (0, 0)))
    ncp = hp["w2"].shape[1]
    out = pl.pallas_call(
        _head_kernel,
        out_shape=jax.ShapeDtypeStruct((nb, ncp), jnp.float32),
        grid=(1,),
        in_specs=[
            pl.BlockSpec((nb, h * w, c), lambda i: (0, 0, 0)),
            pl.BlockSpec((c, c), lambda i: (0, 0)),
            pl.BlockSpec((1, c), lambda i: (0, 0)),
            pl.BlockSpec((c, ncp), lambda i: (0, 0)),
            pl.BlockSpec((1, ncp), lambda i: (0, 0)),
        ],
        out_specs=pl.BlockSpec((nb, ncp), lambda i: (0, 0)),
    )(xr, hp["w1"], hp["b1"], hp["w2"], hp["b2"])
    return out[:n, :num_classes]


# ----------------------------------------------------------------------------
# Plain-JAX glue: im2col patch extraction (bf16), maxpool (XLA-fused max tree)
# ----------------------------------------------------------------------------

def _im2col(x, kh, kw, stride, pad):
    """NHWC -> ((N*Ho*Wo, kh*kw*Cin), (N, Ho, Wo)), PyTorch conv semantics."""
    xp = jnp.pad(x, ((0, 0), (pad, pad), (pad, pad), (0, 0)))
    n, hp, wp, c = xp.shape
    ho = (hp - kh) // stride + 1
    wo = (wp - kw) // stride + 1
    views = []
    for dy in range(kh):
        for dx in range(kw):
            views.append(xp[:, dy:dy + stride * ho:stride,
                            dx:dx + stride * wo:stride, :])
    patches = jnp.stack(views, axis=-2)               # (N, Ho, Wo, kh*kw, C)
    return patches.reshape(n * ho * wo, kh * kw * c), (n, ho, wo)


def maxpool_3x3_s2_p1(x):
    """3x3/stride2/pad1 maxpool as a jnp.maximum tree (fused by XLA)."""
    n, h, w, c = x.shape
    pad_val = jnp.finfo(x.dtype).min
    xp = jnp.pad(x, ((0, 0), (1, 1), (1, 1), (0, 0)), constant_values=pad_val)
    ho = (h + 2 - 3) // 2 + 1
    wo = (w + 2 - 3) // 2 + 1
    out = None
    for dy in range(3):
        for dx in range(3):
            v = xp[:, dy:dy + 2 * ho:2, dx:dx + 2 * wo:2, :]
            out = v if out is None else jnp.maximum(out, v)
    return out


# ----------------------------------------------------------------------------
# Conv + folded BN (+ fused residual / ReLU) building blocks
# ----------------------------------------------------------------------------

def conv_bn(x_nhwc, p, kh, kw, stride, pad, relu, residual=None):
    patches, (n, ho, wo) = _im2col(x_nhwc, kh, kw, stride, pad)
    out = matmul_bias(patches, p["wmat"], p["bias"],
                      residual=residual, relu=relu)      # Pallas MXU matmul
    M = n * ho * wo
    Np = p["wmat"].shape[1]
    return out[:M].reshape(n, ho, wo, Np)                # keep channels padded


def basic_block(x, blk, stride):
    if "down" in blk:
        identity = conv_bn(x, blk["down"], 1, 1, stride, 0, relu=False)
    else:
        identity = x
    out = conv_bn(x, blk["conv1"], 3, 3, stride, 1, relu=True)
    n, ho, wo, cp = identity.shape
    # Residual add + ReLU fused into the conv2 matmul epilogue (bf16 residual).
    out = conv_bn(out, blk["conv2"], 3, 3, 1, 1, relu=True,
                  residual=identity.reshape(n * ho * wo, cp))
    return out


# ----------------------------------------------------------------------------
# Parameter init (torch-shaped) and one-time folding / padding / bf16 cast
# ----------------------------------------------------------------------------

def _conv_bn_params(key, cout, cin, kh, kw):
    k1, k2, k3, k4, k5 = jax.random.split(key, 5)
    return dict(
        w=jax.random.normal(k1, (cout, cin, kh, kw), jnp.float32) * 0.05,
        gamma=1.0 + 0.1 * jax.random.normal(k2, (cout,), jnp.float32),
        beta=0.1 * jax.random.normal(k3, (cout,), jnp.float32),
        mean=0.1 * jax.random.normal(k4, (cout,), jnp.float32),
        var=1.0 + 0.1 * jnp.abs(jax.random.normal(k5, (cout,), jnp.float32)),
    )


def init_params(key, num_classes):
    keys = iter(jax.random.split(key, 64))
    params = {"conv1": _conv_bn_params(next(keys), 64, 3, 7, 7)}
    layers = []
    for cin, cout, stride in [(64, 64, 1), (64, 128, 2),
                              (128, 256, 2), (256, 512, 2)]:
        b0 = {"conv1": _conv_bn_params(next(keys), cout, cin, 3, 3),
              "conv2": _conv_bn_params(next(keys), cout, cout, 3, 3)}
        if stride != 1 or cin != cout:
            b0["down"] = _conv_bn_params(next(keys), cout, cin, 1, 1)
        b1 = {"conv1": _conv_bn_params(next(keys), cout, cout, 3, 3),
              "conv2": _conv_bn_params(next(keys), cout, cout, 3, 3)}
        layers.append([b0, b1])
    params["layers"] = layers
    params["add_w"] = jax.random.normal(next(keys), (512, 512), jnp.float32) * 0.02
    params["add_b"] = jax.random.normal(next(keys), (512,), jnp.float32) * 0.02
    params["fc_w"] = jax.random.normal(next(keys), (num_classes, 512), jnp.float32) * 0.02
    params["fc_b"] = jax.random.normal(next(keys), (num_classes,), jnp.float32) * 0.02
    return params


def _fold_conv_bn(p, pad_cin_to_lanes=True, eps=1e-5):
    """Fold eval-mode BN into conv weight matrix + bias; pad K/N, cast bf16.

    The input-channel dim is padded to a multiple of 128 (zeros) so the folded
    weights match the lane-padded activations produced by the previous layer.
    """
    w = p["w"]                                          # (cout, cin, kh, kw)
    cout, cin, kh, kw = w.shape
    scale = p["gamma"] / jnp.sqrt(p["var"] + eps)
    w_t = jnp.transpose(w, (2, 3, 1, 0))                # (kh, kw, cin, cout)
    cin_p = _round_up(cin, 128) if pad_cin_to_lanes else cin
    if cin_p != cin:
        w_t = jnp.pad(w_t, ((0, 0), (0, 0), (0, cin_p - cin), (0, 0)))
    wmat = w_t.reshape(kh * kw * cin_p, cout) * scale[None, :]
    bias = p["beta"] - p["mean"] * scale
    K = wmat.shape[0]
    Kp = _round_up(K, 128)
    Np = _round_up(cout, 128)
    return {
        "wmat": jnp.pad(wmat, ((0, Kp - K), (0, Np - cout))).astype(jnp.bfloat16),
        "bias": jnp.pad(bias, (0, Np - cout)).reshape(1, Np).astype(jnp.float32),
    }


def fold_params(raw):
    """One-time (outside jit) BN folding, transposes, lane padding, bf16 cast."""
    p = {"conv1": _fold_conv_bn(raw["conv1"], pad_cin_to_lanes=False),
         "layers": []}
    for blocks in raw["layers"]:
        fblocks = []
        for blk in blocks:
            fb = {"conv1": _fold_conv_bn(blk["conv1"]),
                  "conv2": _fold_conv_bn(blk["conv2"])}
            if "down" in blk:
                fb["down"] = _fold_conv_bn(blk["down"])
            fblocks.append(fb)
        p["layers"].append(fblocks)
    nc = raw["fc_w"].shape[0]
    ncp = _round_up(nc, 128)
    p["head"] = dict(
        w1=raw["add_w"].T.astype(jnp.bfloat16),                       # (512,512)
        b1=raw["add_b"].reshape(1, -1).astype(jnp.float32),
        w2=jnp.pad(raw["fc_w"].T, ((0, 0), (0, ncp - nc))).astype(jnp.bfloat16),
        b2=jnp.pad(raw["fc_b"], (0, ncp - nc)).reshape(1, ncp).astype(jnp.float32),
    )
    return p


# ----------------------------------------------------------------------------
# Forward pass (matches the PyTorch ResNet module, eval-mode BatchNorm)
# ----------------------------------------------------------------------------

def resnet_forward(params, x_nchw, *, num_classes):
    # NCHW -> NHWC, cast to bf16 BEFORE any patch extraction.
    x = jnp.transpose(x_nchw, (0, 2, 3, 1)).astype(jnp.bfloat16)
    x = conv_bn(x, params["conv1"], 7, 7, stride=2, pad=3, relu=True)
    x = maxpool_3x3_s2_p1(x)
    for li, blocks in enumerate(params["layers"]):
        x = basic_block(x, blocks[0], LAYER_STRIDES[li])
        x = basic_block(x, blocks[1], 1)
    # avgpool + flatten + Linear(512,512) + ReLU + Linear(512,num_classes)
    return head_forward(x, params["head"], num_classes)


if __name__ == "__main__":
    num_classes = 10
    key = jax.random.PRNGKey(0)
    k_par, k_x = jax.random.split(key)
    raw_params = init_params(k_par, num_classes)
    params = fold_params(raw_params)          # BN folding etc. done once, outside jit
    # ResNet18 needs 3 input channels; 32x32 is the smallest spatial size that
    # survives the /32 downsampling (layer4 output is 1x1 spatial).
    x = jax.random.normal(k_x, (2, 3, 32, 32), jnp.float32)

    fwd = jax.jit(resnet_forward, static_argnames="num_classes")
    out = jax.block_until_ready(fwd(params, x, num_classes=num_classes))
    assert out.shape == (2, num_classes) and out.dtype == jnp.float32
    assert bool(jnp.all(jnp.isfinite(out)))
    print("KERNEL_OK")
</pallas_src>

<mosaic_0001>
module attributes {stable_mosaic.version = 11 : i64} {
  func.func @_matmul_kernel(%arg0: i32, %arg1: i32, %arg2: i32, %arg3: memref<256x256xbf16, #tpu.memory_space<vmem>>, %arg4: memref<256x128xbf16, #tpu.memory_space<vmem>>, %arg5: memref<1x128xf32, #tpu.memory_space<vmem>>, %arg6: memref<256x128xbf16, #tpu.memory_space<vmem>>, %arg7: memref<256x128xf32, #tpu.memory_space<vmem>>) attributes {dimension_semantics = [#tpu.dimension_semantics<parallel>, #tpu.dimension_semantics<parallel>, #tpu.dimension_semantics<arbitrary>], iteration_bounds = array<i64: 2, 1, 1>, scalar_prefetch = 0 : i64, scratch_operands = 1 : i64, tpu.core_type = #tpu.core_type<tc>, window_params = [{transform_indices = @transform_0, window_bounds = array<i64: 256, 256>}, {transform_indices = @transform_1, window_bounds = array<i64: 256, 128>}, {transform_indices = @transform_2, window_bounds = array<i64: 1, 128>}, {transform_indices = @transform_3, window_bounds = array<i64: 256, 128>}]} {
    %c0 = arith.constant 0 : index
    %c0_0 = arith.constant 0 : index
    %0 = vector.load %arg3[%c0, %c0_0] : memref<256x256xbf16, #tpu.memory_space<vmem>>, vector<256x256xbf16>
    %c0_1 = arith.constant 0 : index
    %c0_2 = arith.constant 0 : index
    %1 = vector.load %arg4[%c0_1, %c0_2] : memref<256x128xbf16, #tpu.memory_space<vmem>>, vector<256x128xbf16>
    %cst = arith.constant dense<0.000000e+00> : vector<256x128xf32>
    %2 = tpu.matmul %0, %1, %cst {dimension_numbers = #tpu.dot_dimension_numbers<[1], [0], [0], [1], [0, 0, 1, 1], [], []>} : vector<256x256xbf16>, vector<256x128xbf16>, vector<256x128xf32> -> vector<256x128xf32>
    %c0_i32 = arith.constant 0 : i32
    %3 = arith.cmpi eq, %arg2, %c0_i32 : i32
    %4 = arith.extui %3 : i1 to i32
    %c0_i32_3 = arith.constant 0 : i32
    %5 = arith.cmpi ne, %4, %c0_i32_3 : i32
    scf.if %5 {
      %c0_8 = arith.constant 0 : index
      %c0_9 = arith.constant 0 : index
      %12 = vector.load %arg7[%c0_8, %c0_9] : memref<256x128xf32, #tpu.memory_space<vmem>>, vector<256x128xf32>
      tpu.vector_store %arg7[%c0_8, %c0_9], %2 {strides = array<i32>} : memref<256x128xf32, #tpu.memory_space<vmem>>, vector<256x128xf32>,
    } else {
    }
    %c0_i32_4 = arith.constant 0 : i32
    %6 = arith.cmpi sgt, %arg2, %c0_i32_4 : i32
    %7 = arith.extui %6 : i1 to i32
    %c0_i32_5 = arith.constant 0 : i32
    %8 = arith.cmpi ne, %7, %c0_i32_5 : i32
    scf.if %8 {
      %c0_8 = arith.constant 0 : index
      %c0_9 = arith.constant 0 : index
      %12 = vector.load %arg7[%c0_8, %c0_9] : memref<256x128xf32, #tpu.memory_space<vmem>>, vector<256x128xf32>
      %13 = arith.addf %12, %2 : vector<256x128xf32>
      %c0_10 = arith.constant 0 : index
      %c0_11 = arith.constant 0 : index
      %14 = vector.load %arg7[%c0_10, %c0_11] : memref<256x128xf32, #tpu.memory_space<vmem>>, vector<256x128xf32>
      tpu.vector_store %arg7[%c0_10, %c0_11], %13 {strides = array<i32>} : memref<256x128xf32, #tpu.memory_space<vmem>>, vector<256x128xf32>,
    } else {
    }
    %c0_i32_6 = arith.constant 0 : i32
    %9 = arith.cmpi eq, %arg2, %c0_i32_6 : i32
    %10 = arith.extui %9 : i1 to i32
    %c0_i32_7 = arith.constant 0 : i32
    %11 = arith.cmpi ne, %10, %c0_i32_7 : i32
    scf.if %11 {
      %c0_8 = arith.constant 0 : index
      %c0_9 = arith.constant 0 : index
      %12 = vector.load %arg7[%c0_8, %c0_9] : memref<256x128xf32, #tpu.memory_space<vmem>>, vector<256x128xf32>
      %c0_10 = arith.constant 0 : index
      %c0_11 = arith.constant 0 : index
      %13 = vector.load %arg5[%c0_10, %c0_11] : memref<1x128xf32, #tpu.memory_space<vmem>>, vector<1x128xf32>
      %14 = vector.broadcast %13 : vector<1x128xf32> to vector<256x128xf32>
      %15 = arith.addf %12, %14 : vector<256x128xf32>
      %cst_12 = arith.constant 0.000000e+00 : f32
      %16 = vector.broadcast %cst_12 : f32 to vector<256x128xf32>
      %17 = arith.maximumf %15, %16 : vector<256x128xf32>
      %18 = arith.truncf %17 : vector<256x128xf32> to vector<256x128xbf16>
      %c0_13 = arith.constant 0 : index
      %c0_14 = arith.constant 0 : index
      %19 = vector.load %arg6[%c0_13, %c0_14] : memref<256x128xbf16, #tpu.memory_space<vmem>>, vector<256x128xbf16>
      tpu.vector_store %arg6[%c0_13, %c0_14], %18 {strides = array<i32>} : memref<256x128xbf16, #tpu.memory_space<vmem>>, vector<256x128xbf16>,
    } else {
    }
    return
  }
  func.func @transform_0(%arg0: i32, %arg1: i32, %arg2: i32) -> (i32, i32) {
    %c0_i32 = arith.constant 0 : i32
    return %arg0, %arg2 : i32, i32
  }
  func.func @transform_1(%arg0: i32, %arg1: i32, %arg2: i32) -> (i32, i32) {
    %c0_i32 = arith.constant 0 : i32
    return %arg2, %arg1 : i32, i32
  }
  func.func @transform_2(%arg0: i32, %arg1: i32, %arg2: i32) -> (i32, i32) {
    %c0_i32 = arith.constant 0 : i32
    %c0_i32_0 = arith.constant 0 : i32
    return %c0_i32, %arg1 : i32, i32
  }
  func.func @transform_3(%arg0: i32, %arg1: i32, %arg2: i32) -> (i32, i32) {
    %c0_i32 = arith.constant 0 : i32
    return %arg0, %arg1 : i32, i32
  }
}

module attributes {stable_mosaic.version = 11 : i64} {
  func.func @_matmul_kernel(%arg0: i32, %arg1: i32, %arg2: i32, %arg3: memref<128x384xbf16, #tpu.memory_space<vmem>>, %arg4: memref<384x128xbf16, #tpu.memory_space<vmem>>, %arg5: memref<1x128xf32, #tpu.memory_space<vmem>>, %arg6: memref<128x128xbf16, #tpu.memory_space<vmem>>, %arg7: memref<128x128xf32, #tpu.memory_space<vmem>>) attributes {dimension_semantics = [#tpu.dimension_semantics<parallel>, #tpu.dimension_semantics<parallel>, #tpu.dimension_semantics<arbitrary>], iteration_bounds = array<i64: 1, 1, 3>, scalar_prefetch = 0 : i64, scratch_operands = 1 : i64, tpu.core_type = #tpu.core_type<tc>, window_params = [{transform_indices = @transform_0, window_bounds = array<i64: 128, 384>}, {transform_indices = @transform_1, window_bounds = array<i64: 384, 128>}, {transform_indices = @transform_2, window_bounds = array<i64: 1, 128>}, {transform_indices = @transform_3, window_bounds = array<i64: 128, 128>}]} {
    %c0 = arith.constant 0 : index
    %c0_0 = arith.constant 0 : index
    %0 = vector.load %arg3[%c0, %c0_0] : memref<128x384xbf16, #tpu.memory_space<vmem>>, vector<128x384xbf16>
    %c0_1 = arith.constant 0 : index
    %c0_2 = arith.constant 0 : index
    %1 = vector.load %arg4[%c0_1, %c0_2] : memref<384x128xbf16, #tpu.memory_space<vmem>>, vector<384x128xbf16>
    %cst = arith.constant dense<0.000000e+00> : vector<128x128xf32>
    %2 = tpu.matmul %0, %1, %cst {dimension_numbers = #tpu.dot_dimension_numbers<[1], [0], [0], [1], [0, 0, 1, 1], [], []>} : vector<128x384xbf16>, vector<384x128xbf16>, vector<128x128xf32> -> vector<128x128xf32>
    %c0_i32 = arith.constant 0 : i32
    %3 = arith.cmpi eq, %arg2, %c0_i32 : i32
    %4 = arith.extui %3 : i1 to i32
    %c0_i32_3 = arith.constant 0 : i32
    %5 = arith.cmpi ne, %4, %c0_i32_3 : i32
    scf.if %5 {
      %c0_7 = arith.constant 0 : index
      %c0_8 = arith.constant 0 : index
      %12 = vector.load %arg7[%c0_7, %c0_8] : memref<128x128xf32, #tpu.memory_space<vmem>>, vector<128x128xf32>
      tpu.vector_store %arg7[%c0_7, %c0_8], %2 {strides = array<i32>} : memref<128x128xf32, #tpu.memory_space<vmem>>, vector<128x128xf32>,
    } else {
    }
    %c0_i32_4 = arith.constant 0 : i32
    %6 = arith.cmpi sgt, %arg2, %c0_i32_4 : i32
    %7 = arith.extui %6 : i1 to i32
    %c0_i32_5 = arith.constant 0 : i32
    %8 = arith.cmpi ne, %7, %c0_i32_5 : i32
    scf.if %8 {
      %c0_7 = arith.constant 0 : index
      %c0_8 = arith.constant 0 : index
      %12 = vector.load %arg7[%c0_7, %c0_8] : memref<128x128xf32, #tpu.memory_space<vmem>>, vector<128x128xf32>
      %13 = arith.addf %12, %2 : vector<128x128xf32>
      %c0_9 = arith.constant 0 : index
      %c0_10 = arith.constant 0 : index
      %14 = vector.load %arg7[%c0_9, %c0_10] : memref<128x128xf32, #tpu.memory_space<vmem>>, vector<128x128xf32>
      tpu.vector_store %arg7[%c0_9, %c0_10], %13 {strides = array<i32>} : memref<128x128xf32, #tpu.memory_space<vmem>>, vector<128x128xf32>,
    } else {
    }
    %c2_i32 = arith.constant 2 : i32
    %9 = arith.cmpi eq, %arg2, %c2_i32 : i32
    %10 = arith.extui %9 : i1 to i32
    %c0_i32_6 = arith.constant 0 : i32
    %11 = arith.cmpi ne, %10, %c0_i32_6 : i32
    scf.if %11 {
      %c0_7 = arith.constant 0 : index
      %c0_8 = arith.constant 0 : index
      %12 = vector.load %arg7[%c0_7, %c0_8] : memref<128x128xf32, #tpu.memory_space<vmem>>, vector<128x128xf32>
      %c0_9 = arith.constant 0 : index
      %c0_10 = arith.constant 0 : index
      %13 = vector.load %arg5[%c0_9, %c0_10] : memref<1x128xf32, #tpu.memory_space<vmem>>, vector<1x128xf32>
      %14 = vector.broadcast %13 : vector<1x128xf32> to vector<128x128xf32>
      %15 = arith.addf %12, %14 : vector<128x128xf32>
      %cst_11 = arith.constant 0.000000e+00 : f32
      %16 = vector.broadcast %cst_11 : f32 to vector<128x128xf32>
      %17 = arith.maximumf %15, %16 : vector<128x128xf32>
      %18 = arith.truncf %17 : vector<128x128xf32> to vector<128x128xbf16>
      %c0_12 = arith.constant 0 : index
      %c0_13 = arith.constant 0 : index
      %19 = vector.load %arg6[%c0_12, %c0_13] : memref<128x128xbf16, #tpu.memory_space<vmem>>, vector<128x128xbf16>
      tpu.vector_store %arg6[%c0_12, %c0_13], %18 {strides = array<i32>} : memref<128x128xbf16, #tpu.memory_space<vmem>>, vector<128x128xbf16>,
    } else {
    }
    return
  }
  func.func @transform_0(%arg0: i32, %arg1: i32, %arg2: i32) -> (i32, i32) {
    %c0_i32 = arith.constant 0 : i32
    return %arg0, %arg2 : i32, i32
  }
  func.func @transform_1(%arg0: i32, %arg1: i32, %arg2: i32) -> (i32, i32) {
    %c0_i32 = arith.constant 0 : i32
    return %arg2, %arg1 : i32, i32
  }
  func.func @transform_2(%arg0: i32, %arg1: i32, %arg2: i32) -> (i32, i32) {
    %c0_i32 = arith.constant 0 : i32
    %c0_i32_0 = arith.constant 0 : i32
    return %c0_i32, %arg1 : i32, i32
  }
  func.func @transform_3(%arg0: i32, %arg1: i32, %arg2: i32) -> (i32, i32) {
    %c0_i32 = arith.constant 0 : i32
    return %arg0, %arg1 : i32, i32
  }
}

module attributes {stable_mosaic.version = 11 : i64} {
  func.func @_matmul_kernel(%arg0: i32, %arg1: i32, %arg2: i32, %arg3: memref<128x384xbf16, #tpu.memory_space<vmem>>, %arg4: memref<384x128xbf16, #tpu.memory_space<vmem>>, %arg5: memref<1x128xf32, #tpu.memory_space<vmem>>, %arg6: memref<128x128xbf16, #tpu.memory_space<vmem>>, %arg7: memref<128x128xbf16, #tpu.memory_space<vmem>>, %arg8: memref<128x128xf32, #tpu.memory_space<vmem>>) attributes {dimension_semantics = [#tpu.dimension_semantics<parallel>, #tpu.dimension_semantics<parallel>, #tpu.dimension_semantics<arbitrary>], iteration_bounds = array<i64: 1, 1, 3>, scalar_prefetch = 0 : i64, scratch_operands = 1 : i64, tpu.core_type = #tpu.core_type<tc>, window_params = [{transform_indices = @transform_0, window_bounds = array<i64: 128, 384>}, {transform_indices = @transform_1, window_bounds = array<i64: 384, 128>}, {transform_indices = @transform_2, window_bounds = array<i64: 1, 128>}, {transform_indices = @transform_3, window_bounds = array<i64: 128, 128>}, {transform_indices = @transform_4, window_bounds = array<i64: 128, 128>}]} {
    %c0 = arith.constant 0 : index
    %c0_0 = arith.constant 0 : index
    %0 = vector.load %arg3[%c0, %c0_0] : memref<128x384xbf16, #tpu.memory_space<vmem>>, vector<128x384xbf16>
    %c0_1 = arith.constant 0 : index
    %c0_2 = arith.constant 0 : index
    %1 = vector.load %arg4[%c0_1, %c0_2] : memref<384x128xbf16, #tpu.memory_space<vmem>>, vector<384x128xbf16>
    %cst = arith.constant dense<0.000000e+00> : vector<128x128xf32>
    %2 = tpu.matmul %0, %1, %cst {dimension_numbers = #tpu.dot_dimension_numbers<[1], [0], [0], [1], [0, 0, 1, 1], [], []>} : vector<128x384xbf16>, vector<384x128xbf16>, vector<128x128xf32> -> vector<128x128xf32>
    %c0_i32 = arith.constant 0 : i32
    %3 = arith.cmpi eq, %arg2, %c0_i32 : i32
    %4 = arith.extui %3 : i1 to i32
    %c0_i32_3 = arith.constant 0 : i32
    %5 = arith.cmpi ne, %4, %c0_i32_3 : i32
    scf.if %5 {
      %c0_7 = arith.constant 0 : index
      %c0_8 = arith.constant 0 : index
      %12 = vector.load %arg8[%c0_7, %c0_8] : memref<128x128xf32, #tpu.memory_space<vmem>>, vector<128x128xf32>
      tpu.vector_store %arg8[%c0_7, %c0_8], %2 {strides = array<i32>} : memref<128x128xf32, #tpu.memory_space<vmem>>, vector<128x128xf32>,
    } else {
    }
    %c0_i32_4 = arith.constant 0 : i32
    %6 = arith.cmpi sgt, %arg2, %c0_i32_4 : i32
    %7 = arith.extui %6 : i1 to i32
    %c0_i32_5 = arith.constant 0 : i32
    %8 = arith.cmpi ne, %7, %c0_i32_5 : i32
    scf.if %8 {
      %c0_7 = arith.constant 0 : index
      %c0_8 = arith.constant 0 : index
      %12 = vector.load %arg8[%c0_7, %c0_8] : memref<128x128xf32, #tpu.memory_space<vmem>>, vector<128x128xf32>
      %13 = arith.addf %12, %2 : vector<128x128xf32>
      %c0_9 = arith.constant 0 : index
      %c0_10 = arith.constant 0 : index
      %14 = vector.load %arg8[%c0_9, %c0_10] : memref<128x128xf32, #tpu.memory_space<vmem>>, vector<128x128xf32>
      tpu.vector_store %arg8[%c0_9, %c0_10], %13 {strides = array<i32>} : memref<128x128xf32, #tpu.memory_space<vmem>>, vector<128x128xf32>,
    } else {
    }
    %c2_i32 = arith.constant 2 : i32
    %9 = arith.cmpi eq, %arg2, %c2_i32 : i32
    %10 = arith.extui %9 : i1 to i32
    %c0_i32_6 = arith.constant 0 : i32
    %11 = arith.cmpi ne, %10, %c0_i32_6 : i32
    scf.if %11 {
      %c0_7 = arith.constant 0 : index
      %c0_8 = arith.constant 0 : index
      %12 = vector.load %arg8[%c0_7, %c0_8] : memref<128x128xf32, #tpu.memory_space<vmem>>, vector<128x128xf32>
      %c0_9 = arith.constant 0 : index
      %c0_10 = arith.constant 0 : index
      %13 = vector.load %arg5[%c0_9, %c0_10] : memref<1x128xf32, #tpu.memory_space<vmem>>, vector<1x128xf32>
      %14 = vector.broadcast %13 : vector<1x128xf32> to vector<128x128xf32>
      %15 = arith.addf %12, %14 : vector<128x128xf32>
      %c0_11 = arith.constant 0 : index
      %c0_12 = arith.constant 0 : index
      %16 = vector.load %arg6[%c0_11, %c0_12] : memref<128x128xbf16, #tpu.memory_space<vmem>>, vector<128x128xbf16>
      %17 = arith.extf %16 : vector<128x128xbf16> to vector<128x128xf32>
      %18 = arith.addf %15, %17 : vector<128x128xf32>
      %cst_13 = arith.constant 0.000000e+00 : f32
      %19 = vector.broadcast %cst_13 : f32 to vector<128x128xf32>
      %20 = arith.maximumf %18, %19 : vector<128x128xf32>
      %21 = arith.truncf %20 : vector<128x128xf32> to vector<128x128xbf16>
      %c0_14 = arith.constant 0 : index
      %c0_15 = arith.constant 0 : index
      %22 = vector.load %arg7[%c0_14, %c0_15] : memref<128x128xbf16, #tpu.memory_space<vmem>>, vector<128x128xbf16>
      tpu.vector_store %arg7[%c0_14, %c0_15], %21 {strides = array<i32>} : memref<128x128xbf16, #tpu.memory_space<vmem>>, vector<128x128xbf16>,
    } else {
    }
    return
  }
  func.func @transform_0(%arg0: i32, %arg1: i32, %arg2: i32) -> (i32, i32) {
    %c0_i32 = arith.constant 0 : i32
    return %arg0, %arg2 : i32, i32
  }
  func.func @transform_1(%arg0: i32, %arg1: i32, %arg2: i32) -> (i32, i32) {
    %c0_i32 = arith.constant 0 : i32
    return %arg2, %arg1 : i32, i32
  }
  func.func @transform_2(%arg0: i32, %arg1: i32, %arg2: i32) -> (i32, i32) {
    %c0_i32 = arith.constant 0 : i32
    %c0_i32_0 = arith.constant 0 : i32
    return %c0_i32, %arg1 : i32, i32
  }
  func.func @transform_3(%arg0: i32, %arg1: i32, %arg2: i32) -> (i32, i32) {
    %c0_i32 = arith.constant 0 : i32
    return %arg0, %arg1 : i32, i32
  }
  func.func @transform_4(%arg0: i32, %arg1: i32, %arg2: i32) -> (i32, i32) {
    %c0_i32 = arith.constant 0 : i32
    return %arg0, %arg1 : i32, i32
  }
}

module attributes {stable_mosaic.version = 11 : i64} {
  func.func @_matmul_kernel(%arg0: i32, %arg1: i32, %arg2: i32, %arg3: memref<32x384xbf16, #tpu.memory_space<vmem>>, %arg4: memref<384x128xbf16, #tpu.memory_space<vmem>>, %arg5: memref<1x128xf32, #tpu.memory_space<vmem>>, %arg6: memref<32x128xbf16, #tpu.memory_space<vmem>>, %arg7: memref<32x128xf32, #tpu.memory_space<vmem>>) attributes {dimension_semantics = [#tpu.dimension_semantics<parallel>, #tpu.dimension_semantics<parallel>, #tpu.dimension_semantics<arbitrary>], iteration_bounds = array<i64: 1, 1, 3>, scalar_prefetch = 0 : i64, scratch_operands = 1 : i64, tpu.core_type = #tpu.core_type<tc>, window_params = [{transform_indices = @transform_0, window_bounds = array<i64: 32, 384>}, {transform_indices = @transform_1, window_bounds = array<i64: 384, 128>}, {transform_indices = @transform_2, window_bounds = array<i64: 1, 128>}, {transform_indices = @transform_3, window_bounds = array<i64: 32, 128>}]} {
    %c0 = arith.constant 0 : index
    %c0_0 = arith.constant 0 : index
    %0 = vector.load %arg3[%c0, %c0_0] : memref<32x384xbf16, #tpu.memory_space<vmem>>, vector<32x384xbf16>
    %c0_1 = arith.constant 0 : index
    %c0_2 = arith.constant 0 : index
    %1 = vector.load %arg4[%c0_1, %c0_2] : memref<384x128xbf16, #tpu.memory_space<vmem>>, vector<384x128xbf16>
    %cst = arith.constant dense<0.000000e+00> : vector<32x128xf32>
    %2 = tpu.matmul %0, %1, %cst {dimension_numbers = #tpu.dot_dimension_numbers<[1], [0], [0], [1], [0, 0, 1, 1], [], []>} : vector<32x384xbf16>, vector<384x128xbf16>, vector<32x128xf32> -> vector<32x128xf32>
    %c0_i32 = arith.constant 0 : i32
    %3 = arith.cmpi eq, %arg2, %c0_i32 : i32
    %4 = arith.extui %3 : i1 to i32
    %c0_i32_3 = arith.constant 0 : i32
    %5 = arith.cmpi ne, %4, %c0_i32_3 : i32
    scf.if %5 {
      %c0_7 = arith.constant 0 : index
      %c0_8 = arith.constant 0 : index
      %12 = vector.load %arg7[%c0_7, %c0_8] : memref<32x128xf32, #tpu.memory_space<vmem>>, vector<32x128xf32>
      tpu.vector_store %arg7[%c0_7, %c0_8], %2 {strides = array<i32>} : memref<32x128xf32, #tpu.memory_space<vmem>>, vector<32x128xf32>,
    } else {
    }
    %c0_i32_4 = arith.constant 0 : i32
    %6 = arith.cmpi sgt, %arg2, %c0_i32_4 : i32
    %7 = arith.extui %6 : i1 to i32
    %c0_i32_5 = arith.constant 0 : i32
    %8 = arith.cmpi ne, %7, %c0_i32_5 : i32
    scf.if %8 {
      %c0_7 = arith.constant 0 : index
      %c0_8 = arith.constant 0 : index
      %12 = vector.load %arg7[%c0_7, %c0_8] : memref<32x128xf32, #tpu.memory_space<vmem>>, vector<32x128xf32>
      %13 = arith.addf %12, %2 : vector<32x128xf32>
      %c0_9 = arith.constant 0 : index
      %c0_10 = arith.constant 0 : index
      %14 = vector.load %arg7[%c0_9, %c0_10] : memref<32x128xf32, #tpu.memory_space<vmem>>, vector<32x128xf32>
      tpu.vector_store %arg7[%c0_9, %c0_10], %13 {strides = array<i32>} : memref<32x128xf32, #tpu.memory_space<vmem>>, vector<32x128xf32>,
    } else {
    }
    %c2_i32 = arith.constant 2 : i32
    %9 = arith.cmpi eq, %arg2, %c2_i32 : i32
    %10 = arith.extui %9 : i1 to i32
    %c0_i32_6 = arith.constant 0 : i32
    %11 = arith.cmpi ne, %10, %c0_i32_6 : i32
    scf.if %11 {
      %c0_7 = arith.constant 0 : index
      %c0_8 = arith.constant 0 : index
      %12 = vector.load %arg7[%c0_7, %c0_8] : memref<32x128xf32, #tpu.memory_space<vmem>>, vector<32x128xf32>
      %c0_9 = arith.constant 0 : index
      %c0_10 = arith.constant 0 : index
      %13 = vector.load %arg5[%c0_9, %c0_10] : memref<1x128xf32, #tpu.memory_space<vmem>>, vector<1x128xf32>
      %14 = vector.broadcast %13 : vector<1x128xf32> to vector<32x128xf32>
      %15 = arith.addf %12, %14 : vector<32x128xf32>
      %cst_11 = arith.constant 0.000000e+00 : f32
      %16 = vector.broadcast %cst_11 : f32 to vector<32x128xf32>
      %17 = arith.maximumf %15, %16 : vector<32x128xf32>
      %18 = arith.truncf %17 : vector<32x128xf32> to vector<32x128xbf16>
      %c0_12 = arith.constant 0 : index
      %c0_13 = arith.constant 0 : index
      %19 = vector.load %arg6[%c0_12, %c0_13] : memref<32x128xbf16, #tpu.memory_space<vmem>>, vector<32x128xbf16>
      tpu.vector_store %arg6[%c0_12, %c0_13], %18 {strides = array<i32>} : memref<32x128xbf16, #tpu.memory_space<vmem>>, vector<32x128xbf16>,
    } else {
    }
    return
  }
  func.func @transform_0(%arg0: i32, %arg1: i32, %arg2: i32) -> (i32, i32) {
    %c0_i32 = arith.constant 0 : i32
    return %arg0, %arg2 : i32, i32
  }
  func.func @transform_1(%arg0: i32, %arg1: i32, %arg2: i32) -> (i32, i32) {
    %c0_i32 = arith.constant 0 : i32
    return %arg2, %arg1 : i32, i32
  }
  func.func @transform_2(%arg0: i32, %arg1: i32, %arg2: i32) -> (i32, i32) {
    %c0_i32 = arith.constant 0 : i32
    %c0_i32_0 = arith.constant 0 : i32
    return %c0_i32, %arg1 : i32, i32
  }
  func.func @transform_3(%arg0: i32, %arg1: i32, %arg2: i32) -> (i32, i32) {
    %c0_i32 = arith.constant 0 : i32
    return %arg0, %arg1 : i32, i32
  }
}

module attributes {stable_mosaic.version = 11 : i64} {
  func.func @_matmul_kernel(%arg0: i32, %arg1: i32, %arg2: i32, %arg3: memref<32x384xbf16, #tpu.memory_space<vmem>>, %arg4: memref<384x128xbf16, #tpu.memory_space<vmem>>, %arg5: memref<1x128xf32, #tpu.memory_space<vmem>>, %arg6: memref<32x128xbf16, #tpu.memory_space<vmem>>, %arg7: memref<32x128xbf16, #tpu.memory_space<vmem>>, %arg8: memref<32x128xf32, #tpu.memory_space<vmem>>) attributes {dimension_semantics = [#tpu.dimension_semantics<parallel>, #tpu.dimension_semantics<parallel>, #tpu.dimension_semantics<arbitrary>], iteration_bounds = array<i64: 1, 1, 3>, scalar_prefetch = 0 : i64, scratch_operands = 1 : i64, tpu.core_type = #tpu.core_type<tc>, window_params = [{transform_indices = @transform_0, window_bounds = array<i64: 32, 384>}, {transform_indices = @transform_1, window_bounds = array<i64: 384, 128>}, {transform_indices = @transform_2, window_bounds = array<i64: 1, 128>}, {transform_indices = @transform_3, window_bounds = array<i64: 32, 128>}, {transform_indices = @transform_4, window_bounds = array<i64: 32, 128>}]} {
    %c0 = arith.constant 0 : index
    %c0_0 = arith.constant 0 : index
    %0 = vector.load %arg3[%c0, %c0_0] : memref<32x384xbf16, #tpu.memory_space<vmem>>, vector<32x384xbf16>
    %c0_1 = arith.constant 0 : index
    %c0_2 = arith.constant 0 : index
    %1 = vector.load %arg4[%c0_1, %c0_2] : memref<384x128xbf16, #tpu.memory_space<vmem>>, vector<384x128xbf16>
    %cst = arith.constant dense<0.000000e+00> : vector<32x128xf32>
    %2 = tpu.matmul %0, %1, %cst {dimension_numbers = #tpu.dot_dimension_numbers<[1], [0], [0], [1], [0, 0, 1, 1], [], []>} : vector<32x384xbf16>, vector<384x128xbf16>, vector<32x128xf32> -> vector<32x128xf32>
    %c0_i32 = arith.constant 0 : i32
    %3 = arith.cmpi eq, %arg2, %c0_i32 : i32
    %4 = arith.extui %3 : i1 to i32
    %c0_i32_3 = arith.constant 0 : i32
    %5 = arith.cmpi ne, %4, %c0_i32_3 : i32
    scf.if %5 {
      %c0_7 = arith.constant 0 : index
      %c0_8 = arith.constant 0 : index
      %12 = vector.load %arg8[%c0_7, %c0_8] : memref<32x128xf32, #tpu.memory_space<vmem>>, vector<32x128xf32>
      tpu.vector_store %arg8[%c0_7, %c0_8], %2 {strides = array<i32>} : memref<32x128xf32, #tpu.memory_space<vmem>>, vector<32x128xf32>,
    } else {
    }
    %c0_i32_4 = arith.constant 0 : i32
    %6 = arith.cmpi sgt, %arg2, %c0_i32_4 : i32
    %7 = arith.extui %6 : i1 to i32
    %c0_i32_5 = arith.constant 0 : i32
    %8 = arith.cmpi ne, %7, %c0_i32_5 : i32
    scf.if %8 {
      %c0_7 = arith.constant 0 : index
      %c0_8 = arith.constant 0 : index
      %12 = vector.load %arg8[%c0_7, %c0_8] : memref<32x128xf32, #tpu.memory_space<vmem>>, vector<32x128xf32>
      %13 = arith.addf %12, %2 : vector<32x128xf32>
      %c0_9 = arith.constant 0 : index
      %c0_10 = arith.constant 0 : index
      %14 = vector.load %arg8[%c0_9, %c0_10] : memref<32x128xf32, #tpu.memory_space<vmem>>, vector<32x128xf32>
      tpu.vector_store %arg8[%c0_9, %c0_10], %13 {strides = array<i32>} : memref<32x128xf32, #tpu.memory_space<vmem>>, vector<32x128xf32>,
    } else {
    }
    %c2_i32 = arith.constant 2 : i32
    %9 = arith.cmpi eq, %arg2, %c2_i32 : i32
    %10 = arith.extui %9 : i1 to i32
    %c0_i32_6 = arith.constant 0 : i32
    %11 = arith.cmpi ne, %10, %c0_i32_6 : i32
    scf.if %11 {
      %c0_7 = arith.constant 0 : index
      %c0_8 = arith.constant 0 : index
      %12 = vector.load %arg8[%c0_7, %c0_8] : memref<32x128xf32, #tpu.memory_space<vmem>>, vector<32x128xf32>
      %c0_9 = arith.constant 0 : index
      %c0_10 = arith.constant 0 : index
      %13 = vector.load %arg5[%c0_9, %c0_10] : memref<1x128xf32, #tpu.memory_space<vmem>>, vector<1x128xf32>
      %14 = vector.broadcast %13 : vector<1x128xf32> to vector<32x128xf32>
      %15 = arith.addf %12, %14 : vector<32x128xf32>
      %c0_11 = arith.constant 0 : index
      %c0_12 = arith.constant 0 : index
      %16 = vector.load %arg6[%c0_11, %c0_12] : memref<32x128xbf16, #tpu.memory_space<vmem>>, vector<32x128xbf16>
      %17 = arith.extf %16 : vector<32x128xbf16> to vector<32x128xf32>
      %18 = arith.addf %15, %17 : vector<32x128xf32>
      %cst_13 = arith.constant 0.000000e+00 : f32
      %19 = vector.broadcast %cst_13 : f32 to vector<32x128xf32>
      %20 = arith.maximumf %18, %19 : vector<32x128xf32>
      %21 = arith.truncf %20 : vector<32x128xf32> to vector<32x128xbf16>
      %c0_14 = arith.constant 0 : index
      %c0_15 = arith.constant 0 : index
      %22 = vector.load %arg7[%c0_14, %c0_15] : memref<32x128xbf16, #tpu.memory_space<vmem>>, vector<32x128xbf16>
      tpu.vector_store %arg7[%c0_14, %c0_15], %21 {strides = array<i32>} : memref<32x128xbf16, #tpu.memory_space<vmem>>, vector<32x128xbf16>,
    } else {
    }
    return
  }
  func.func @transform_0(%arg0: i32, %arg1: i32, %arg2: i32) -> (i32, i32) {
    %c0_i32 = arith.constant 0 : i32
    return %arg0, %arg2 : i32, i32
  }
  func.func @transform_1(%arg0: i32, %arg1: i32, %arg2: i32) -> (i32, i32) {
    %c0_i32 = arith.constant 0 : i32
    return %arg2, %arg1 : i32, i32
  }
  func.func @transform_2(%arg0: i32, %arg1: i32, %arg2: i32) -> (i32, i32) {
    %c0_i32 = arith.constant 0 : i32
    %c0_i32_0 = arith.constant 0 : i32
    return %c0_i32, %arg1 : i32, i32
  }
  func.func @transform_3(%arg0: i32, %arg1: i32, %arg2: i32) -> (i32, i32) {
    %c0_i32 = arith.constant 0 : i32
    return %arg0, %arg1 : i32, i32
  }
  func.func @transform_4(%arg0: i32, %arg1: i32, %arg2: i32) -> (i32, i32) {
    %c0_i32 = arith.constant 0 : i32
    return %arg0, %arg1 : i32, i32
  }
}

module attributes {stable_mosaic.version = 11 : i64} {
  func.func @_matmul_kernel(%arg0: i32, %arg1: i32, %arg2: i32, %arg3: memref<32x128xbf16, #tpu.memory_space<vmem>>, %arg4: memref<128x128xbf16, #tpu.memory_space<vmem>>, %arg5: memref<1x128xf32, #tpu.memory_space<vmem>>, %arg6: memref<32x128xbf16, #tpu.memory_space<vmem>>, %arg7: memref<32x128xf32, #tpu.memory_space<vmem>>) attributes {dimension_semantics = [#tpu.dimension_semantics<parallel>, #tpu.dimension_semantics<parallel>, #tpu.dimension_semantics<arbitrary>], iteration_bounds = array<i64: 1, 1, 1>, scalar_prefetch = 0 : i64, scratch_operands = 1 : i64, tpu.core_type = #tpu.core_type<tc>, window_params = [{transform_indices = @transform_0, window_bounds = array<i64: 32, 128>}, {transform_indices = @transform_1, window_bounds = array<i64: 128, 128>}, {transform_indices = @transform_2, window_bounds = array<i64: 1, 128>}, {transform_indices = @transform_3, window_bounds = array<i64: 32, 128>}]} {
    %c0 = arith.constant 0 : index
    %c0_0 = arith.constant 0 : index
    %0 = vector.load %arg3[%c0, %c0_0] : memref<32x128xbf16, #tpu.memory_space<vmem>>, vector<32x128xbf16>
    %c0_1 = arith.constant 0 : index
    %c0_2 = arith.constant 0 : index
    %1 = vector.load %arg4[%c0_1, %c0_2] : memref<128x128xbf16, #tpu.memory_space<vmem>>, vector<128x128xbf16>
    %cst = arith.constant dense<0.000000e+00> : vector<32x128xf32>
    %2 = tpu.matmul %0, %1, %cst {dimension_numbers = #tpu.dot_dimension_numbers<[1], [0], [0], [1], [0, 0, 1, 1], [], []>} : vector<32x128xbf16>, vector<128x128xbf16>, vector<32x128xf32> -> vector<32x128xf32>
    %c0_i32 = arith.constant 0 : i32
    %3 = arith.cmpi eq, %arg2, %c0_i32 : i32
    %4 = arith.extui %3 : i1 to i32
    %c0_i32_3 = arith.constant 0 : i32
    %5 = arith.cmpi ne, %4, %c0_i32_3 : i32
    scf.if %5 {
      %c0_8 = arith.constant 0 : index
      %c0_9 = arith.constant 0 : index
      %12 = vector.load %arg7[%c0_8, %c0_9] : memref<32x128xf32, #tpu.memory_space<vmem>>, vector<32x128xf32>
      tpu.vector_store %arg7[%c0_8, %c0_9], %2 {strides = array<i32>} : memref<32x128xf32, #tpu.memory_space<vmem>>, vector<32x128xf32>,
    } else {
    }
    %c0_i32_4 = arith.constant 0 : i32
    %6 = arith.cmpi sgt, %arg2, %c0_i32_4 : i32
    %7 = arith.extui %6 : i1 to i32
    %c0_i32_5 = arith.constant 0 : i32
    %8 = arith.cmpi ne, %7, %c0_i32_5 : i32
    scf.if %8 {
      %c0_8 = arith.constant 0 : index
      %c0_9 = arith.constant 0 : index
      %12 = vector.load %arg7[%c0_8, %c0_9] : memref<32x128xf32, #tpu.memory_space<vmem>>, vector<32x128xf32>
      %13 = arith.addf %12, %2 : vector<32x128xf32>
      %c0_10 = arith.constant 0 : index
      %c0_11 = arith.constant 0 : index
      %14 = vector.load %arg7[%c0_10, %c0_11] : memref<32x128xf32, #tpu.memory_space<vmem>>, vector<32x128xf32>
      tpu.vector_store %arg7[%c0_10, %c0_11], %13 {strides = array<i32>} : memref<32x128xf32, #tpu.memory_space<vmem>>, vector<32x128xf32>,
    } else {
    }
    %c0_i32_6 = arith.constant 0 : i32
    %9 = arith.cmpi eq, %arg2, %c0_i32_6 : i32
    %10 = arith.extui %9 : i1 to i32
    %c0_i32_7 = arith.constant 0 : i32
    %11 = arith.cmpi ne, %10, %c0_i32_7 : i32
    scf.if %11 {
      %c0_8 = arith.constant 0 : index
      %c0_9 = arith.constant 0 : index
      %12 = vector.load %arg7[%c0_8, %c0_9] : memref<32x128xf32, #tpu.memory_space<vmem>>, vector<32x128xf32>
      %c0_10 = arith.constant 0 : index
      %c0_11 = arith.constant 0 : index
      %13 = vector.load %arg5[%c0_10, %c0_11] : memref<1x128xf32, #tpu.memory_space<vmem>>, vector<1x128xf32>
      %14 = vector.broadcast %13 : vector<1x128xf32> to vector<32x128xf32>
      %15 = arith.addf %12, %14 : vector<32x128xf32>
      %16 = arith.truncf %15 : vector<32x128xf32> to vector<32x128xbf16>
      %c0_12 = arith.constant 0 : index
      %c0_13 = arith.constant 0 : index
      %17 = vector.load %arg6[%c0_12, %c0_13] : memref<32x128xbf16, #tpu.memory_space<vmem>>, vector<32x128xbf16>
      tpu.vector_store %arg6[%c0_12, %c0_13], %16 {strides = array<i32>} : memref<32x128xbf16, #tpu.memory_space<vmem>>, vector<32x128xbf16>,
    } else {
    }
    return
  }
  func.func @transform_0(%arg0: i32, %arg1: i32, %arg2: i32) -> (i32, i32) {
    %c0_i32 = arith.constant 0 : i32
    return %arg0, %arg2 : i32, i32
  }
  func.func @transform_1(%arg0: i32, %arg1: i32, %arg2: i32) -> (i32, i32) {
    %c0_i32 = arith.constant 0 : i32
    return %arg2, %arg1 : i32, i32
  }
  func.func @transform_2(%arg0: i32, %arg1: i32, %arg2: i32) -> (i32, i32) {
    %c0_i32 = arith.constant 0 : i32
    %c0_i32_0 = arith.constant 0 : i32
    return %c0_i32, %arg1 : i32, i32
  }
  func.func @transform_3(%arg0: i32, %arg1: i32, %arg2: i32) -> (i32, i32) {
    %c0_i32 = arith.constant 0 : i32
    return %arg0, %arg1 : i32, i32
  }
}

module attributes {stable_mosaic.version = 11 : i64} {
  func.func @_matmul_kernel(%arg0: i32, %arg1: i32, %arg2: i32, %arg3: memref<16x384xbf16, #tpu.memory_space<vmem>>, %arg4: memref<384x256xbf16, #tpu.memory_space<vmem>>, %arg5: memref<1x256xf32, #tpu.memory_space<vmem>>, %arg6: memref<16x256xbf16, #tpu.memory_space<vmem>>, %arg7: memref<16x256xf32, #tpu.memory_space<vmem>>) attributes {dimension_semantics = [#tpu.dimension_semantics<parallel>, #tpu.dimension_semantics<parallel>, #tpu.dimension_semantics<arbitrary>], iteration_bounds = array<i64: 1, 1, 3>, scalar_prefetch = 0 : i64, scratch_operands = 1 : i64, tpu.core_type = #tpu.core_type<tc>, window_params = [{transform_indices = @transform_0, window_bounds = array<i64: 16, 384>}, {transform_indices = @transform_1, window_bounds = array<i64: 384, 256>}, {transform_indices = @transform_2, window_bounds = array<i64: 1, 256>}, {transform_indices = @transform_3, window_bounds = array<i64: 16, 256>}]} {
    %c0 = arith.constant 0 : index
    %c0_0 = arith.constant 0 : index
    %0 = vector.load %arg3[%c0, %c0_0] : memref<16x384xbf16, #tpu.memory_space<vmem>>, vector<16x384xbf16>
    %c0_1 = arith.constant 0 : index
    %c0_2 = arith.constant 0 : index
    %1 = vector.load %arg4[%c0_1, %c0_2] : memref<384x256xbf16, #tpu.memory_space<vmem>>, vector<384x256xbf16>
    %cst = arith.constant dense<0.000000e+00> : vector<16x256xf32>
    %2 = tpu.matmul %0, %1, %cst {dimension_numbers = #tpu.dot_dimension_numbers<[1], [0], [0], [1], [0, 0, 1, 1], [], []>} : vector<16x384xbf16>, vector<384x256xbf16>, vector<16x256xf32> -> vector<16x256xf32>
    %c0_i32 = arith.constant 0 : i32
    %3 = arith.cmpi eq, %arg2, %c0_i32 : i32
    %4 = arith.extui %3 : i1 to i32
    %c0_i32_3 = arith.constant 0 : i32
    %5 = arith.cmpi ne, %4, %c0_i32_3 : i32
    scf.if %5 {
      %c0_7 = arith.constant 0 : index
      %c0_8 = arith.constant 0 : index
      %12 = vector.load %arg7[%c0_7, %c0_8] : memref<16x256xf32, #tpu.memory_space<vmem>>, vector<16x256xf32>
      tpu.vector_store %arg7[%c0_7, %c0_8], %2 {strides = array<i32>} : memref<16x256xf32, #tpu.memory_space<vmem>>, vector<16x256xf32>,
    } else {
    }
    %c0_i32_4 = arith.constant 0 : i32
    %6 = arith.cmpi sgt, %arg2, %c0_i32_4 : i32
    %7 = arith.extui %6 : i1 to i32
    %c0_i32_5 = arith.constant 0 : i32
    %8 = arith.cmpi ne, %7, %c0_i32_5 : i32
    scf.if %8 {
      %c0_7 = arith.constant 0 : index
      %c0_8 = arith.constant 0 : index
      %12 = vector.load %arg7[%c0_7, %c0_8] : memref<16x256xf32, #tpu.memory_space<vmem>>, vector<16x256xf32>
      %13 = arith.addf %12, %2 : vector<16x256xf32>
      %c0_9 = arith.constant 0 : index
      %c0_10 = arith.constant 0 : index
      %14 = vector.load %arg7[%c0_9, %c0_10] : memref<16x256xf32, #tpu.memory_space<vmem>>, vector<16x256xf32>
      tpu.vector_store %arg7[%c0_9, %c0_10], %13 {strides = array<i32>} : memref<16x256xf32, #tpu.memory_space<vmem>>, vector<16x256xf32>,
    } else {
    }
    %c2_i32 = arith.constant 2 : i32
    %9 = arith.cmpi eq, %arg2, %c2_i32 : i32
    %10 = arith.extui %9 : i1 to i32
    %c0_i32_6 = arith.constant 0 : i32
    %11 = arith.cmpi ne, %10, %c0_i32_6 : i32
    scf.if %11 {
      %c0_7 = arith.constant 0 : index
      %c0_8 = arith.constant 0 : index
      %12 = vector.load %arg7[%c0_7, %c0_8] : memref<16x256xf32, #tpu.memory_space<vmem>>, vector<16x256xf32>
      %c0_9 = arith.constant 0 : index
      %c0_10 = arith.constant 0 : index
      %13 = vector.load %arg5[%c0_9, %c0_10] : memref<1x256xf32, #tpu.memory_space<vmem>>, vector<1x256xf32>
      %14 = vector.broadcast %13 : vector<1x256xf32> to vector<16x256xf32>
      %15 = arith.addf %12, %14 : vector<16x256xf32>
      %cst_11 = arith.constant 0.000000e+00 : f32
      %16 = vector.broadcast %cst_11 : f32 to vector<16x256xf32>
      %17 = arith.maximumf %15, %16 : vector<16x256xf32>
      %18 = arith.truncf %17 : vector<16x256xf32> to vector<16x256xbf16>
      %c0_12 = arith.constant 0 : index
      %c0_13 = arith.constant 0 : index
      %19 = vector.load %arg6[%c0_12, %c0_13] : memref<16x256xbf16, #tpu.memory_space<vmem>>, vector<16x256xbf16>
      tpu.vector_store %arg6[%c0_12, %c0_13], %18 {strides = array<i32>} : memref<16x256xbf16, #tpu.memory_space<vmem>>, vector<16x256xbf16>,
    } else {
    }
    return
  }
  func.func @transform_0(%arg0: i32, %arg1: i32, %arg2: i32) -> (i32, i32) {
    %c0_i32 = arith.constant 0 : i32
    return %arg0, %arg2 : i32, i32
  }
  func.func @transform_1(%arg0: i32, %arg1: i32, %arg2: i32) -> (i32, i32) {
    %c0_i32 = arith.constant 0 : i32
    return %arg2, %arg1 : i32, i32
  }
  func.func @transform_2(%arg0: i32, %arg1: i32, %arg2: i32) -> (i32, i32) {
    %c0_i32 = arith.constant 0 : i32
    %c0_i32_0 = arith.constant 0 : i32
    return %c0_i32, %arg1 : i32, i32
  }
  func.func @transform_3(%arg0: i32, %arg1: i32, %arg2: i32) -> (i32, i32) {
    %c0_i32 = arith.constant 0 : i32
    return %arg0, %arg1 : i32, i32
  }
}

module attributes {stable_mosaic.version = 11 : i64} {
  func.func @_matmul_kernel(%arg0: i32, %arg1: i32, %arg2: i32, %arg3: memref<16x128xbf16, #tpu.memory_space<vmem>>, %arg4: memref<128x256xbf16, #tpu.memory_space<vmem>>, %arg5: memref<1x256xf32, #tpu.memory_space<vmem>>, %arg6: memref<16x256xbf16, #tpu.memory_space<vmem>>, %arg7: memref<16x256xf32, #tpu.memory_space<vmem>>) attributes {dimension_semantics = [#tpu.dimension_semantics<parallel>, #tpu.dimension_semantics<parallel>, #tpu.dimension_semantics<arbitrary>], iteration_bounds = array<i64: 1, 1, 1>, scalar_prefetch = 0 : i64, scratch_operands = 1 : i64, tpu.core_type = #tpu.core_type<tc>, window_params = [{transform_indices = @transform_0, window_bounds = array<i64: 16, 128>}, {transform_indices = @transform_1, window_bounds = array<i64: 128, 256>}, {transform_indices = @transform_2, window_bounds = array<i64: 1, 256>}, {transform_indices = @transform_3, window_bounds = array<i64: 16, 256>}]} {
    %c0 = arith.constant 0 : index
    %c0_0 = arith.constant 0 : index
    %0 = vector.load %arg3[%c0, %c0_0] : memref<16x128xbf16, #tpu.memory_space<vmem>>, vector<16x128xbf16>
    %c0_1 = arith.constant 0 : index
    %c0_2 = arith.constant 0 : index
    %1 = vector.load %arg4[%c0_1, %c0_2] : memref<128x256xbf16, #tpu.memory_space<vmem>>, vector<128x256xbf16>
    %cst = arith.constant dense<0.000000e+00> : vector<16x256xf32>
    %2 = tpu.matmul %0, %1, %cst {dimension_numbers = #tpu.dot_dimension_numbers<[1], [0], [0], [1], [0, 0, 1, 1], [], []>} : vector<16x128xbf16>, vector<128x256xbf16>, vector<16x256xf32> -> vector<16x256xf32>
    %c0_i32 = arith.constant 0 : i32
    %3 = arith.cmpi eq, %arg2, %c0_i32 : i32
    %4 = arith.extui %3 : i1 to i32
    %c0_i32_3 = arith.constant 0 : i32
    %5 = arith.cmpi ne, %4, %c0_i32_3 : i32
    scf.if %5 {
      %c0_8 = arith.constant 0 : index
      %c0_9 = arith.constant 0 : index
      %12 = vector.load %arg7[%c0_8, %c0_9] : memref<16x256xf32, #tpu.memory_space<vmem>>, vector<16x256xf32>
      tpu.vector_store %arg7[%c0_8, %c0_9], %2 {strides = array<i32>} : memref<16x256xf32, #tpu.memory_space<vmem>>, vector<16x256xf32>,
    } else {
    }
    %c0_i32_4 = arith.constant 0 : i32
    %6 = arith.cmpi sgt, %arg2, %c0_i32_4 : i32
    %7 = arith.extui %6 : i1 to i32
    %c0_i32_5 = arith.constant 0 : i32
    %8 = arith.cmpi ne, %7, %c0_i32_5 : i32
    scf.if %8 {
      %c0_8 = arith.constant 0 : index
      %c0_9 = arith.constant 0 : index
      %12 = vector.load %arg7[%c0_8, %c0_9] : memref<16x256xf32, #tpu.memory_space<vmem>>, vector<16x256xf32>
      %13 = arith.addf %12, %2 : vector<16x256xf32>
      %c0_10 = arith.constant 0 : index
      %c0_11 = arith.constant 0 : index
      %14 = vector.load %arg7[%c0_10, %c0_11] : memref<16x256xf32, #tpu.memory_space<vmem>>, vector<16x256xf32>
      tpu.vector_store %arg7[%c0_10, %c0_11], %13 {strides = array<i32>} : memref<16x256xf32, #tpu.memory_space<vmem>>, vector<16x256xf32>,
    } else {
    }
    %c0_i32_6 = arith.constant 0 : i32
    %9 = arith.cmpi eq, %arg2, %c0_i32_6 : i32
    %10 = arith.extui %9 : i1 to i32
    %c0_i32_7 = arith.constant 0 : i32
    %11 = arith.cmpi ne, %10, %c0_i32_7 : i32
    scf.if %11 {
      %c0_8 = arith.constant 0 : index
      %c0_9 = arith.constant 0 : index
      %12 = vector.load %arg7[%c0_8, %c0_9] : memref<16x256xf32, #tpu.memory_space<vmem>>, vector<16x256xf32>
      %c0_10 = arith.constant 0 : index
      %c0_11 = arith.constant 0 : index
      %13 = vector.load %arg5[%c0_10, %c0_11] : memref<1x256xf32, #tpu.memory_space<vmem>>, vector<1x256xf32>
      %14 = vector.broadcast %13 : vector<1x256xf32> to vector<16x256xf32>
      %15 = arith.addf %12, %14 : vector<16x256xf32>
      %16 = arith.truncf %15 : vector<16x256xf32> to vector<16x256xbf16>
      %c0_12 = arith.constant 0 : index
      %c0_13 = arith.constant 0 : index
      %17 = vector.load %arg6[%c0_12, %c0_13] : memref<16x256xbf16, #tpu.memory_space<vmem>>, vector<16x256xbf16>
      tpu.vector_store %arg6[%c0_12, %c0_13], %16 {strides = array<i32>} : memref<16x256xbf16, #tpu.memory_space<vmem>>, vector<16x256xbf16>,
    } else {
    }
    return
  }
  func.func @transform_0(%arg0: i32, %arg1: i32, %arg2: i32) -> (i32, i32) {
    %c0_i32 = arith.constant 0 : i32
    return %arg0, %arg2 : i32, i32
  }
  func.func @transform_1(%arg0: i32, %arg1: i32, %arg2: i32) -> (i32, i32) {
    %c0_i32 = arith.constant 0 : i32
    return %arg2, %arg1 : i32, i32
  }
  func.func @transform_2(%arg0: i32, %arg1: i32, %arg2: i32) -> (i32, i32) {
    %c0_i32 = arith.constant 0 : i32
    %c0_i32_0 = arith.constant 0 : i32
    return %c0_i32, %arg1 : i32, i32
  }
  func.func @transform_3(%arg0: i32, %arg1: i32, %arg2: i32) -> (i32, i32) {
    %c0_i32 = arith.constant 0 : i32
    return %arg0, %arg1 : i32, i32
  }
}

module attributes {stable_mosaic.version = 11 : i64} {
  func.func @_matmul_kernel(%arg0: i32, %arg1: i32, %arg2: i32, %arg3: memref<16x768xbf16, #tpu.memory_space<vmem>>, %arg4: memref<768x256xbf16, #tpu.memory_space<vmem>>, %arg5: memref<1x256xf32, #tpu.memory_space<vmem>>, %arg6: memref<16x256xbf16, #tpu.memory_space<vmem>>, %arg7: memref<16x256xf32, #tpu.memory_space<vmem>>) attributes {dimension_semantics = [#tpu.dimension_semantics<parallel>, #tpu.dimension_semantics<parallel>, #tpu.dimension_semantics<arbitrary>], iteration_bounds = array<i64: 1, 1, 3>, scalar_prefetch = 0 : i64, scratch_operands = 1 : i64, tpu.core_type = #tpu.core_type<tc>, window_params = [{transform_indices = @transform_0, window_bounds = array<i64: 16, 768>}, {transform_indices = @transform_1, window_bounds = array<i64: 768, 256>}, {transform_indices = @transform_2, window_bounds = array<i64: 1, 256>}, {transform_indices = @transform_3, window_bounds = array<i64: 16, 256>}]} {
    %c0 = arith.constant 0 : index
    %c0_0 = arith.constant 0 : index
    %0 = vector.load %arg3[%c0, %c0_0] : memref<16x768xbf16, #tpu.memory_space<vmem>>, vector<16x768xbf16>
    %c0_1 = arith.constant 0 : index
    %c0_2 = arith.constant 0 : index
    %1 = vector.load %arg4[%c0_1, %c0_2] : memref<768x256xbf16, #tpu.memory_space<vmem>>, vector<768x256xbf16>
    %cst = arith.constant dense<0.000000e+00> : vector<16x256xf32>
    %2 = tpu.matmul %0, %1, %cst {dimension_numbers = #tpu.dot_dimension_numbers<[1], [0], [0], [1], [0, 0, 1, 1], [], []>} : vector<16x768xbf16>, vector<768x256xbf16>, vector<16x256xf32> -> vector<16x256xf32>
    %c0_i32 = arith.constant 0 : i32
    %3 = arith.cmpi eq, %arg2, %c0_i32 : i32
    %4 = arith.extui %3 : i1 to i32
    %c0_i32_3 = arith.constant 0 : i32
    %5 = arith.cmpi ne, %4, %c0_i32_3 : i32
    scf.if %5 {
      %c0_7 = arith.constant 0 : index
      %c0_8 = arith.constant 0 : index
      %12 = vector.load %arg7[%c0_7, %c0_8] : memref<16x256xf32, #tpu.memory_space<vmem>>, vector<16x256xf32>
      tpu.vector_store %arg7[%c0_7, %c0_8], %2 {strides = array<i32>} : memref<16x256xf32, #tpu.memory_space<vmem>>, vector<16x256xf32>,
    } else {
    }
    %c0_i32_4 = arith.constant 0 : i32
    %6 = arith.cmpi sgt, %arg2, %c0_i32_4 : i32
    %7 = arith.extui %6 : i1 to i32
    %c0_i32_5 = arith.constant 0 : i32
    %8 = arith.cmpi ne, %7, %c0_i32_5 : i32
    scf.if %8 {
      %c0_7 = arith.constant 0 : index
      %c0_8 = arith.constant 0 : index
      %12 = vector.load %arg7[%c0_7, %c0_8] : memref<16x256xf32, #tpu.memory_space<vmem>>, vector<16x256xf32>
      %13 = arith.addf %12, %2 : vector<16x256xf32>
      %c0_9 = arith.constant 0 : index
      %c0_10 = arith.constant 0 : index
      %14 = vector.load %arg7[%c0_9, %c0_10] : memref<16x256xf32, #tpu.memory_space<vmem>>, vector<16x256xf32>
      tpu.vector_store %arg7[%c0_9, %c0_10], %13 {strides = array<i32>} : memref<16x256xf32, #tpu.memory_space<vmem>>, vector<16x256xf32>,
    } else {
    }
    %c2_i32 = arith.constant 2 : i32
    %9 = arith.cmpi eq, %arg2, %c2_i32 : i32
    %10 = arith.extui %9 : i1 to i32
    %c0_i32_6 = arith.constant 0 : i32
    %11 = arith.cmpi ne, %10, %c0_i32_6 : i32
    scf.if %11 {
      %c0_7 = arith.constant 0 : index
      %c0_8 = arith.constant 0 : index
      %12 = vector.load %arg7[%c0_7, %c0_8] : memref<16x256xf32, #tpu.memory_space<vmem>>, vector<16x256xf32>
      %c0_9 = arith.constant 0 : index
      %c0_10 = arith.constant 0 : index
      %13 = vector.load %arg5[%c0_9, %c0_10] : memref<1x256xf32, #tpu.memory_space<vmem>>, vector<1x256xf32>
      %14 = vector.broadcast %13 : vector<1x256xf32> to vector<16x256xf32>
      %15 = arith.addf %12, %14 : vector<16x256xf32>
      %cst_11 = arith.constant 0.000000e+00 : f32
      %16 = vector.broadcast %cst_11 : f32 to vector<16x256xf32>
      %17 = arith.maximumf %15, %16 : vector<16x256xf32>
      %18 = arith.truncf %17 : vector<16x256xf32> to vector<16x256xbf16>
      %c0_12 = arith.constant 0 : index
      %c0_13 = arith.constant 0 : index
      %19 = vector.load %arg6[%c0_12, %c0_13] : memref<16x256xbf16, #tpu.memory_space<vmem>>, vector<16x256xbf16>
      tpu.vector_store %arg6[%c0_12, %c0_13], %18 {strides = array<i32>} : memref<16x256xbf16, #tpu.memory_space<vmem>>, vector<16x256xbf16>,
    } else {
    }
    return
  }
  func.func @transform_0(%arg0: i32, %arg1: i32, %arg2: i32) -> (i32, i32) {
    %c0_i32 = arith.constant 0 : i32
    return %arg0, %arg2 : i32, i32
  }
  func.func @transform_1(%arg0: i32, %arg1: i32, %arg2: i32) -> (i32, i32) {
    %c0_i32 = arith.constant 0 : i32
    return %arg2, %arg1 : i32, i32
  }
  func.func @transform_2(%arg0: i32, %arg1: i32, %arg2: i32) -> (i32, i32) {
    %c0_i32 = arith.constant 0 : i32
    %c0_i32_0 = arith.constant 0 : i32
    return %c0_i32, %arg1 : i32, i32
  }
  func.func @transform_3(%arg0: i32, %arg1: i32, %arg2: i32) -> (i32, i32) {
    %c0_i32 = arith.constant 0 : i32
    return %arg0, %arg1 : i32, i32
  }
}

module attributes {stable_mosaic.version = 11 : i64} {
  func.func @_matmul_kernel(%arg0: i32, %arg1: i32, %arg2: i32, %arg3: memref<16x768xbf16, #tpu.memory_space<vmem>>, %arg4: memref<768x256xbf16, #tpu.memory_space<vmem>>, %arg5: memref<1x256xf32, #tpu.memory_space<vmem>>, %arg6: memref<16x256xbf16, #tpu.memory_space<vmem>>, %arg7: memref<16x256xbf16, #tpu.memory_space<vmem>>, %arg8: memref<16x256xf32, #tpu.memory_space<vmem>>) attributes {dimension_semantics = [#tpu.dimension_semantics<parallel>, #tpu.dimension_semantics<parallel>, #tpu.dimension_semantics<arbitrary>], iteration_bounds = array<i64: 1, 1, 3>, scalar_prefetch = 0 : i64, scratch_operands = 1 : i64, tpu.core_type = #tpu.core_type<tc>, window_params = [{transform_indices = @transform_0, window_bounds = array<i64: 16, 768>}, {transform_indices = @transform_1, window_bounds = array<i64: 768, 256>}, {transform_indices = @transform_2, window_bounds = array<i64: 1, 256>}, {transform_indices = @transform_3, window_bounds = array<i64: 16, 256>}, {transform_indices = @transform_4, window_bounds = array<i64: 16, 256>}]} {
    %c0 = arith.constant 0 : index
    %c0_0 = arith.constant 0 : index
    %0 = vector.load %arg3[%c0, %c0_0] : memref<16x768xbf16, #tpu.memory_space<vmem>>, vector<16x768xbf16>
    %c0_1 = arith.constant 0 : index
    %c0_2 = arith.constant 0 : index
    %1 = vector.load %arg4[%c0_1, %c0_2] : memref<768x256xbf16, #tpu.memory_space<vmem>>, vector<768x256xbf16>
    %cst = arith.constant dense<0.000000e+00> : vector<16x256xf32>
    %2 = tpu.matmul %0, %1, %cst {dimension_numbers = #tpu.dot_dimension_numbers<[1], [0], [0], [1], [0, 0, 1, 1], [], []>} : vector<16x768xbf16>, vector<768x256xbf16>, vector<16x256xf32> -> vector<16x256xf32>
    %c0_i32 = arith.constant 0 : i32
    %3 = arith.cmpi eq, %arg2, %c0_i32 : i32
    %4 = arith.extui %3 : i1 to i32
    %c0_i32_3 = arith.constant 0 : i32
    %5 = arith.cmpi ne, %4, %c0_i32_3 : i32
    scf.if %5 {
      %c0_7 = arith.constant 0 : index
      %c0_8 = arith.constant 0 : index
      %12 = vector.load %arg8[%c0_7, %c0_8] : memref<16x256xf32, #tpu.memory_space<vmem>>, vector<16x256xf32>
      tpu.vector_store %arg8[%c0_7, %c0_8], %2 {strides = array<i32>} : memref<16x256xf32, #tpu.memory_space<vmem>>, vector<16x256xf32>,
    } else {
    }
    %c0_i32_4 = arith.constant 0 : i32
    %6 = arith.cmpi sgt, %arg2, %c0_i32_4 : i32
    %7 = arith.extui %6 : i1 to i32
    %c0_i32_5 = arith.constant 0 : i32
    %8 = arith.cmpi ne, %7, %c0_i32_5 : i32
    scf.if %8 {
      %c0_7 = arith.constant 0 : index
      %c0_8 = arith.constant 0 : index
      %12 = vector.load %arg8[%c0_7, %c0_8] : memref<16x256xf32, #tpu.memory_space<vmem>>, vector<16x256xf32>
      %13 = arith.addf %12, %2 : vector<16x256xf32>
      %c0_9 = arith.constant 0 : index
      %c0_10 = arith.constant 0 : index
      %14 = vector.load %arg8[%c0_9, %c0_10] : memref<16x256xf32, #tpu.memory_space<vmem>>, vector<16x256xf32>
      tpu.vector_store %arg8[%c0_9, %c0_10], %13 {strides = array<i32>} : memref<16x256xf32, #tpu.memory_space<vmem>>, vector<16x256xf32>,
    } else {
    }
    %c2_i32 = arith.constant 2 : i32
    %9 = arith.cmpi eq, %arg2, %c2_i32 : i32
    %10 = arith.extui %9 : i1 to i32
    %c0_i32_6 = arith.constant 0 : i32
    %11 = arith.cmpi ne, %10, %c0_i32_6 : i32
    scf.if %11 {
      %c0_7 = arith.constant 0 : index
      %c0_8 = arith.constant 0 : index
      %12 = vector.load %arg8[%c0_7, %c0_8] : memref<16x256xf32, #tpu.memory_space<vmem>>, vector<16x256xf32>
      %c0_9 = arith.constant 0 : index
      %c0_10 = arith.constant 0 : index
      %13 = vector.load %arg5[%c0_9, %c0_10] : memref<1x256xf32, #tpu.memory_space<vmem>>, vector<1x256xf32>
      %14 = vector.broadcast %13 : vector<1x256xf32> to vector<16x256xf32>
      %15 = arith.addf %12, %14 : vector<16x256xf32>
      %c0_11 = arith.constant 0 : index
      %c0_12 = arith.constant 0 : index
      %16 = vector.load %arg6[%c0_11, %c0_12] : memref<16x256xbf16, #tpu.memory_space<vmem>>, vector<16x256xbf16>
      %17 = arith.extf %16 : vector<16x256xbf16> to vector<16x256xf32>
      %18 = arith.addf %15, %17 : vector<16x256xf32>
      %cst_13 = arith.constant 0.000000e+00 : f32
      %19 = vector.broadcast %cst_13 : f32 to vector<16x256xf32>
      %20 = arith.maximumf %18, %19 : vector<16x256xf32>
      %21 = arith.truncf %20 : vector<16x256xf32> to vector<16x256xbf16>
      %c0_14 = arith.constant 0 : index
      %c0_15 = arith.constant 0 : index
      %22 = vector.load %arg7[%c0_14, %c0_15] : memref<16x256xbf16, #tpu.memory_space<vmem>>, vector<16x256xbf16>
      tpu.vector_store %arg7[%c0_14, %c0_15], %21 {strides = array<i32>} : memref<16x256xbf16, #tpu.memory_space<vmem>>, vector<16x256xbf16>,
    } else {
    }
    return
  }
  func.func @transform_0(%arg0: i32, %arg1: i32, %arg2: i32) -> (i32, i32) {
    %c0_i32 = arith.constant 0 : i32
    return %arg0, %arg2 : i32, i32
  }
  func.func @transform_1(%arg0: i32, %arg1: i32, %arg2: i32) -> (i32, i32) {
    %c0_i32 = arith.constant 0 : i32
    return %arg2, %arg1 : i32, i32
  }
  func.func @transform_2(%arg0: i32, %arg1: i32, %arg2: i32) -> (i32, i32) {
    %c0_i32 = arith.constant 0 : i32
    %c0_i32_0 = arith.constant 0 : i32
    return %c0_i32, %arg1 : i32, i32
  }
  func.func @transform_3(%arg0: i32, %arg1: i32, %arg2: i32) -> (i32, i32) {
    %c0_i32 = arith.constant 0 : i32
    return %arg0, %arg1 : i32, i32
  }
  func.func @transform_4(%arg0: i32, %arg1: i32, %arg2: i32) -> (i32, i32) {
    %c0_i32 = arith.constant 0 : i32
    return %arg0, %arg1 : i32, i32
  }
}

module attributes {stable_mosaic.version = 11 : i64} {
  func.func @_matmul_kernel(%arg0: i32, %arg1: i32, %arg2: i32, %arg3: memref<16x768xbf16, #tpu.memory_space<vmem>>, %arg4: memref<768x256xbf16, #tpu.memory_space<vmem>>, %arg5: memref<1x256xf32, #tpu.memory_space<vmem>>, %arg6: memref<16x256xbf16, #tpu.memory_space<vmem>>, %arg7: memref<16x256xf32, #tpu.memory_space<vmem>>) attributes {dimension_semantics = [#tpu.dimension_semantics<parallel>, #tpu.dimension_semantics<parallel>, #tpu.dimension_semantics<arbitrary>], iteration_bounds = array<i64: 1, 2, 3>, scalar_prefetch = 0 : i64, scratch_operands = 1 : i64, tpu.core_type = #tpu.core_type<tc>, window_params = [{transform_indices = @transform_0, window_bounds = array<i64: 16, 768>}, {transform_indices = @transform_1, window_bounds = array<i64: 768, 256>}, {transform_indices = @transform_2, window_bounds = array<i64: 1, 256>}, {transform_indices = @transform_3, window_bounds = array<i64: 16, 256>}]} {
    %c0 = arith.constant 0 : index
    %c0_0 = arith.constant 0 : index
    %0 = vector.load %arg3[%c0, %c0_0] : memref<16x768xbf16, #tpu.memory_space<vmem>>, vector<16x768xbf16>
    %c0_1 = arith.constant 0 : index
    %c0_2 = arith.constant 0 : index
    %1 = vector.load %arg4[%c0_1, %c0_2] : memref<768x256xbf16, #tpu.memory_space<vmem>>, vector<768x256xbf16>
    %cst = arith.constant dense<0.000000e+00> : vector<16x256xf32>
    %2 = tpu.matmul %0, %1, %cst {dimension_numbers = #tpu.dot_dimension_numbers<[1], [0], [0], [1], [0, 0, 1, 1], [], []>} : vector<16x768xbf16>, vector<768x256xbf16>, vector<16x256xf32> -> vector<16x256xf32>
    %c0_i32 = arith.constant 0 : i32
    %3 = arith.cmpi eq, %arg2, %c0_i32 : i32
    %4 = arith.extui %3 : i1 to i32
    %c0_i32_3 = arith.constant 0 : i32
    %5 = arith.cmpi ne, %4, %c0_i32_3 : i32
    scf.if %5 {
      %c0_7 = arith.constant 0 : index
      %c0_8 = arith.constant 0 : index
      %12 = vector.load %arg7[%c0_7, %c0_8] : memref<16x256xf32, #tpu.memory_space<vmem>>, vector<16x256xf32>
      tpu.vector_store %arg7[%c0_7, %c0_8], %2 {strides = array<i32>} : memref<16x256xf32, #tpu.memory_space<vmem>>, vector<16x256xf32>,
    } else {
    }
    %c0_i32_4 = arith.constant 0 : i32
    %6 = arith.cmpi sgt, %arg2, %c0_i32_4 : i32
    %7 = arith.extui %6 : i1 to i32
    %c0_i32_5 = arith.constant 0 : i32
    %8 = arith.cmpi ne, %7, %c0_i32_5 : i32
    scf.if %8 {
      %c0_7 = arith.constant 0 : index
      %c0_8 = arith.constant 0 : index
      %12 = vector.load %arg7[%c0_7, %c0_8] : memref<16x256xf32, #tpu.memory_space<vmem>>, vector<16x256xf32>
      %13 = arith.addf %12, %2 : vector<16x256xf32>
      %c0_9 = arith.constant 0 : index
      %c0_10 = arith.constant 0 : index
      %14 = vector.load %arg7[%c0_9, %c0_10] : memref<16x256xf32, #tpu.memory_space<vmem>>, vector<16x256xf32>
      tpu.vector_store %arg7[%c0_9, %c0_10], %13 {strides = array<i32>} : memref<16x256xf32, #tpu.memory_space<vmem>>, vector<16x256xf32>,
    } else {
    }
    %c2_i32 = arith.constant 2 : i32
    %9 = arith.cmpi eq, %arg2, %c2_i32 : i32
    %10 = arith.extui %9 : i1 to i32
    %c0_i32_6 = arith.constant 0 : i32
    %11 = arith.cmpi ne, %10, %c0_i32_6 : i32
    scf.if %11 {
      %c0_7 = arith.constant 0 : index
      %c0_8 = arith.constant 0 : index
      %12 = vector.load %arg7[%c0_7, %c0_8] : memref<16x256xf32, #tpu.memory_space<vmem>>, vector<16x256xf32>
      %c0_9 = arith.constant 0 : index
      %c0_10 = arith.constant 0 : index
      %13 = vector.load %arg5[%c0_9, %c0_10] : memref<1x256xf32, #tpu.memory_space<vmem>>, vector<1x256xf32>
      %14 = vector.broadcast %13 : vector<1x256xf32> to vector<16x256xf32>
      %15 = arith.addf %12, %14 : vector<16x256xf32>
      %cst_11 = arith.constant 0.000000e+00 : f32
      %16 = vector.broadcast %cst_11 : f32 to vector<16x256xf32>
      %17 = arith.maximumf %15, %16 : vector<16x256xf32>
      %18 = arith.truncf %17 : vector<16x256xf32> to vector<16x256xbf16>
      %c0_12 = arith.constant 0 : index
      %c0_13 = arith.constant 0 : index
      %19 = vector.load %arg6[%c0_12, %c0_13] : memref<16x256xbf16, #tpu.memory_space<vmem>>, vector<16x256xbf16>
      tpu.vector_store %arg6[%c0_12, %c0_13], %18 {strides = array<i32>} : memref<16x256xbf16, #tpu.memory_space<vmem>>, vector<16x256xbf16>,
    } else {
    }
    return
  }
  func.func @transform_0(%arg0: i32, %arg1: i32, %arg2: i32) -> (i32, i32) {
    %c0_i32 = arith.constant 0 : i32
    return %arg0, %arg2 : i32, i32
  }
  func.func @transform_1(%arg0: i32, %arg1: i32, %arg2: i32) -> (i32, i32) {
    %c0_i32 = arith.constant 0 : i32
    return %arg2, %arg1 : i32, i32
  }
  func.func @transform_2(%arg0: i32, %arg1: i32, %arg2: i32) -> (i32, i32) {
    %c0_i32 = arith.constant 0 : i32
    %c0_i32_0 = arith.constant 0 : i32
    return %c0_i32, %arg1 : i32, i32
  }
  func.func @transform_3(%arg0: i32, %arg1: i32, %arg2: i32) -> (i32, i32) {
    %c0_i32 = arith.constant 0 : i32
    return %arg0, %arg1 : i32, i32
  }
}

module attributes {stable_mosaic.version = 11 : i64} {
  func.func @_matmul_kernel(%arg0: i32, %arg1: i32, %arg2: i32, %arg3: memref<16x768xbf16, #tpu.memory_space<vmem>>, %arg4: memref<768x256xbf16, #tpu.memory_space<vmem>>, %arg5: memref<1x256xf32, #tpu.memory_space<vmem>>, %arg6: memref<16x256xbf16, #tpu.memory_space<vmem>>, %arg7: memref<16x256xbf16, #tpu.memory_space<vmem>>, %arg8: memref<16x256xf32, #tpu.memory_space<vmem>>) attributes {dimension_semantics = [#tpu.dimension_semantics<parallel>, #tpu.dimension_semantics<parallel>, #tpu.dimension_semantics<arbitrary>], iteration_bounds = array<i64: 1, 2, 6>, scalar_prefetch = 0 : i64, scratch_operands = 1 : i64, tpu.core_type = #tpu.core_type<tc>, window_params = [{transform_indices = @transform_0, window_bounds = array<i64: 16, 768>}, {transform_indices = @transform_1, window_bounds = array<i64: 768, 256>}, {transform_indices = @transform_2, window_bounds = array<i64: 1, 256>}, {transform_indices = @transform_3, window_bounds = array<i64: 16, 256>}, {transform_indices = @transform_4, window_bounds = array<i64: 16, 256>}]} {
    %c0 = arith.constant 0 : index
    %c0_0 = arith.constant 0 : index
    %0 = vector.load %arg3[%c0, %c0_0] : memref<16x768xbf16, #tpu.memory_space<vmem>>, vector<16x768xbf16>
    %c0_1 = arith.constant 0 : index
    %c0_2 = arith.constant 0 : index
    %1 = vector.load %arg4[%c0_1, %c0_2] : memref<768x256xbf16, #tpu.memory_space<vmem>>, vector<768x256xbf16>
    %cst = arith.constant dense<0.000000e+00> : vector<16x256xf32>
    %2 = tpu.matmul %0, %1, %cst {dimension_numbers = #tpu.dot_dimension_numbers<[1], [0], [0], [1], [0, 0, 1, 1], [], []>} : vector<16x768xbf16>, vector<768x256xbf16>, vector<16x256xf32> -> vector<16x256xf32>
    %c0_i32 = arith.constant 0 : i32
    %3 = arith.cmpi eq, %arg2, %c0_i32 : i32
    %4 = arith.extui %3 : i1 to i32
    %c0_i32_3 = arith.constant 0 : i32
    %5 = arith.cmpi ne, %4, %c0_i32_3 : i32
    scf.if %5 {
      %c0_7 = arith.constant 0 : index
      %c0_8 = arith.constant 0 : index
      %12 = vector.load %arg8[%c0_7, %c0_8] : memref<16x256xf32, #tpu.memory_space<vmem>>, vector<16x256xf32>
      tpu.vector_store %arg8[%c0_7, %c0_8], %2 {strides = array<i32>} : memref<16x256xf32, #tpu.memory_space<vmem>>, vector<16x256xf32>,
    } else {
    }
    %c0_i32_4 = arith.constant 0 : i32
    %6 = arith.cmpi sgt, %arg2, %c0_i32_4 : i32
    %7 = arith.extui %6 : i1 to i32
    %c0_i32_5 = arith.constant 0 : i32
    %8 = arith.cmpi ne, %7, %c0_i32_5 : i32
    scf.if %8 {
      %c0_7 = arith.constant 0 : index
      %c0_8 = arith.constant 0 : index
      %12 = vector.load %arg8[%c0_7, %c0_8] : memref<16x256xf32, #tpu.memory_space<vmem>>, vector<16x256xf32>
      %13 = arith.addf %12, %2 : vector<16x256xf32>
      %c0_9 = arith.constant 0 : index
      %c0_10 = arith.constant 0 : index
      %14 = vector.load %arg8[%c0_9, %c0_10] : memref<16x256xf32, #tpu.memory_space<vmem>>, vector<16x256xf32>
      tpu.vector_store %arg8[%c0_9, %c0_10], %13 {strides = array<i32>} : memref<16x256xf32, #tpu.memory_space<vmem>>, vector<16x256xf32>,
    } else {
    }
    %c5_i32 = arith.constant 5 : i32
    %9 = arith.cmpi eq, %arg2, %c5_i32 : i32
    %10 = arith.extui %9 : i1 to i32
    %c0_i32_6 = arith.constant 0 : i32
    %11 = arith.cmpi ne, %10, %c0_i32_6 : i32
    scf.if %11 {
      %c0_7 = arith.constant 0 : index
      %c0_8 = arith.constant 0 : index
      %12 = vector.load %arg8[%c0_7, %c0_8] : memref<16x256xf32, #tpu.memory_space<vmem>>, vector<16x256xf32>
      %c0_9 = arith.constant 0 : index
      %c0_10 = arith.constant 0 : index
      %13 = vector.load %arg5[%c0_9, %c0_10] : memref<1x256xf32, #tpu.memory_space<vmem>>, vector<1x256xf32>
      %14 = vector.broadcast %13 : vector<1x256xf32> to vector<16x256xf32>
      %15 = arith.addf %12, %14 : vector<16x256xf32>
      %c0_11 = arith.constant 0 : index
      %c0_12 = arith.constant 0 : index
      %16 = vector.load %arg6[%c0_11, %c0_12] : memref<16x256xbf16, #tpu.memory_space<vmem>>, vector<16x256xbf16>
      %17 = arith.extf %16 : vector<16x256xbf16> to vector<16x256xf32>
      %18 = arith.addf %15, %17 : vector<16x256xf32>
      %cst_13 = arith.constant 0.000000e+00 : f32
      %19 = vector.broadcast %cst_13 : f32 to vector<16x256xf32>
      %20 = arith.maximumf %18, %19 : vector<16x256xf32>
      %21 = arith.truncf %20 : vector<16x256xf32> to vector<16x256xbf16>
      %c0_14 = arith.constant 0 : index
      %c0_15 = arith.constant 0 : index
      %22 = vector.load %arg7[%c0_14, %c0_15] : memref<16x256xbf16, #tpu.memory_space<vmem>>, vector<16x256xbf16>
      tpu.vector_store %arg7[%c0_14, %c0_15], %21 {strides = array<i32>} : memref<16x256xbf16, #tpu.memory_space<vmem>>, vector<16x256xbf16>,
    } else {
    }
    return
  }
  func.func @transform_0(%arg0: i32, %arg1: i32, %arg2: i32) -> (i32, i32) {
    %c0_i32 = arith.constant 0 : i32
    return %arg0, %arg2 : i32, i32
  }
  func.func @transform_1(%arg0: i32, %arg1: i32, %arg2: i32) -> (i32, i32) {
    %c0_i32 = arith.constant 0 : i32
    return %arg2, %arg1 : i32, i32
  }
  func.func @transform_2(%arg0: i32, %arg1: i32, %arg2: i32) -> (i32, i32) {
    %c0_i32 = arith.constant 0 : i32
    %c0_i32_0 = arith.constant 0 : i32
    return %c0_i32, %arg1 : i32, i32
  }
  func.func @transform_3(%arg0: i32, %arg1: i32, %arg2: i32) -> (i32, i32) {
    %c0_i32 = arith.constant 0 : i32
    return %arg0, %arg1 : i32, i32
  }
  func.func @transform_4(%arg0: i32, %arg1: i32, %arg2: i32) -> (i32, i32) {
    %c0_i32 = arith.constant 0 : i32
    return %arg0, %arg1 : i32, i32
  }
}

module attributes {stable_mosaic.version = 11 : i64} {
  func.func @_matmul_kernel(%arg0: i32, %arg1: i32, %arg2: i32, %arg3: memref<16x256xbf16, #tpu.memory_space<vmem>>, %arg4: memref<256x256xbf16, #tpu.memory_space<vmem>>, %arg5: memref<1x256xf32, #tpu.memory_space<vmem>>, %arg6: memref<16x256xbf16, #tpu.memory_space<vmem>>, %arg7: memref<16x256xf32, #tpu.memory_space<vmem>>) attributes {dimension_semantics = [#tpu.dimension_semantics<parallel>, #tpu.dimension_semantics<parallel>, #tpu.dimension_semantics<arbitrary>], iteration_bounds = array<i64: 1, 2, 1>, scalar_prefetch = 0 : i64, scratch_operands = 1 : i64, tpu.core_type = #tpu.core_type<tc>, window_params = [{transform_indices = @transform_0, window_bounds = array<i64: 16, 256>}, {transform_indices = @transform_1, window_bounds = array<i64: 256, 256>}, {transform_indices = @transform_2, window_bounds = array<i64: 1, 256>}, {transform_indices = @transform_3, window_bounds = array<i64: 16, 256>}]} {
    %c0 = arith.constant 0 : index
    %c0_0 = arith.constant 0 : index
    %0 = vector.load %arg3[%c0, %c0_0] : memref<16x256xbf16, #tpu.memory_space<vmem>>, vector<16x256xbf16>
    %c0_1 = arith.constant 0 : index
    %c0_2 = arith.constant 0 : index
    %1 = vector.load %arg4[%c0_1, %c0_2] : memref<256x256xbf16, #tpu.memory_space<vmem>>, vector<256x256xbf16>
    %cst = arith.constant dense<0.000000e+00> : vector<16x256xf32>
    %2 = tpu.matmul %0, %1, %cst {dimension_numbers = #tpu.dot_dimension_numbers<[1], [0], [0], [1], [0, 0, 1, 1], [], []>} : vector<16x256xbf16>, vector<256x256xbf16>, vector<16x256xf32> -> vector<16x256xf32>
    %c0_i32 = arith.constant 0 : i32
    %3 = arith.cmpi eq, %arg2, %c0_i32 : i32
    %4 = arith.extui %3 : i1 to i32
    %c0_i32_3 = arith.constant 0 : i32
    %5 = arith.cmpi ne, %4, %c0_i32_3 : i32
    scf.if %5 {
      %c0_8 = arith.constant 0 : index
      %c0_9 = arith.constant 0 : index
      %12 = vector.load %arg7[%c0_8, %c0_9] : memref<16x256xf32, #tpu.memory_space<vmem>>, vector<16x256xf32>
      tpu.vector_store %arg7[%c0_8, %c0_9], %2 {strides = array<i32>} : memref<16x256xf32, #tpu.memory_space<vmem>>, vector<16x256xf32>,
    } else {
    }
    %c0_i32_4 = arith.constant 0 : i32
    %6 = arith.cmpi sgt, %arg2, %c0_i32_4 : i32
    %7 = arith.extui %6 : i1 to i32
    %c0_i32_5 = arith.constant 0 : i32
    %8 = arith.cmpi ne, %7, %c0_i32_5 : i32
    scf.if %8 {
      %c0_8 = arith.constant 0 : index
      %c0_9 = arith.constant 0 : index
      %12 = vector.load %arg7[%c0_8, %c0_9] : memref<16x256xf32, #tpu.memory_space<vmem>>, vector<16x256xf32>
      %13 = arith.addf %12, %2 : vector<16x256xf32>
      %c0_10 = arith.constant 0 : index
      %c0_11 = arith.constant 0 : index
      %14 = vector.load %arg7[%c0_10, %c0_11] : memref<16x256xf32, #tpu.memory_space<vmem>>, vector<16x256xf32>
      tpu.vector_store %arg7[%c0_10, %c0_11], %13 {strides = array<i32>} : memref<16x256xf32, #tpu.memory_space<vmem>>, vector<16x256xf32>,
    } else {
    }
    %c0_i32_6 = arith.constant 0 : i32
    %9 = arith.cmpi eq, %arg2, %c0_i32_6 : i32
    %10 = arith.extui %9 : i1 to i32
    %c0_i32_7 = arith.constant 0 : i32
    %11 = arith.cmpi ne, %10, %c0_i32_7 : i32
    scf.if %11 {
      %c0_8 = arith.constant 0 : index
      %c0_9 = arith.constant 0 : index
      %12 = vector.load %arg7[%c0_8, %c0_9] : memref<16x256xf32, #tpu.memory_space<vmem>>, vector<16x256xf32>
      %c0_10 = arith.constant 0 : index
      %c0_11 = arith.constant 0 : index
      %13 = vector.load %arg5[%c0_10, %c0_11] : memref<1x256xf32, #tpu.memory_space<vmem>>, vector<1x256xf32>
      %14 = vector.broadcast %13 : vector<1x256xf32> to vector<16x256xf32>
      %15 = arith.addf %12, %14 : vector<16x256xf32>
      %16 = arith.truncf %15 : vector<16x256xf32> to vector<16x256xbf16>
      %c0_12 = arith.constant 0 : index
      %c0_13 = arith.constant 0 : index
      %17 = vector.load %arg6[%c0_12, %c0_13] : memref<16x256xbf16, #tpu.memory_space<vmem>>, vector<16x256xbf16>
      tpu.vector_store %arg6[%c0_12, %c0_13], %16 {strides = array<i32>} : memref<16x256xbf16, #tpu.memory_space<vmem>>, vector<16x256xbf16>,
    } else {
    }
    return
  }
  func.func @transform_0(%arg0: i32, %arg1: i32, %arg2: i32) -> (i32, i32) {
    %c0_i32 = arith.constant 0 : i32
    return %arg0, %arg2 : i32, i32
  }
  func.func @transform_1(%arg0: i32, %arg1: i32, %arg2: i32) -> (i32, i32) {
    %c0_i32 = arith.constant 0 : i32
    return %arg2, %arg1 : i32, i32
  }
  func.func @transform_2(%arg0: i32, %arg1: i32, %arg2: i32) -> (i32, i32) {
    %c0_i32 = arith.constant 0 : i32
    %c0_i32_0 = arith.constant 0 : i32
    return %c0_i32, %arg1 : i32, i32
  }
  func.func @transform_3(%arg0: i32, %arg1: i32, %arg2: i32) -> (i32, i32) {
    %c0_i32 = arith.constant 0 : i32
    return %arg0, %arg1 : i32, i32
  }
}

module attributes {stable_mosaic.version = 11 : i64} {
  func.func @_matmul_kernel(%arg0: i32, %arg1: i32, %arg2: i32, %arg3: memref<16x768xbf16, #tpu.memory_space<vmem>>, %arg4: memref<768x256xbf16, #tpu.memory_space<vmem>>, %arg5: memref<1x256xf32, #tpu.memory_space<vmem>>, %arg6: memref<16x256xbf16, #tpu.memory_space<vmem>>, %arg7: memref<16x256xf32, #tpu.memory_space<vmem>>) attributes {dimension_semantics = [#tpu.dimension_semantics<parallel>, #tpu.dimension_semantics<parallel>, #tpu.dimension_semantics<arbitrary>], iteration_bounds = array<i64: 1, 2, 6>, scalar_prefetch = 0 : i64, scratch_operands = 1 : i64, tpu.core_type = #tpu.core_type<tc>, window_params = [{transform_indices = @transform_0, window_bounds = array<i64: 16, 768>}, {transform_indices = @transform_1, window_bounds = array<i64: 768, 256>}, {transform_indices = @transform_2, window_bounds = array<i64: 1, 256>}, {transform_indices = @transform_3, window_bounds = array<i64: 16, 256>}]} {
    %c0 = arith.constant 0 : index
    %c0_0 = arith.constant 0 : index
    %0 = vector.load %arg3[%c0, %c0_0] : memref<16x768xbf16, #tpu.memory_space<vmem>>, vector<16x768xbf16>
    %c0_1 = arith.constant 0 : index
    %c0_2 = arith.constant 0 : index
    %1 = vector.load %arg4[%c0_1, %c0_2] : memref<768x256xbf16, #tpu.memory_space<vmem>>, vector<768x256xbf16>
    %cst = arith.constant dense<0.000000e+00> : vector<16x256xf32>
    %2 = tpu.matmul %0, %1, %cst {dimension_numbers = #tpu.dot_dimension_numbers<[1], [0], [0], [1], [0, 0, 1, 1], [], []>} : vector<16x768xbf16>, vector<768x256xbf16>, vector<16x256xf32> -> vector<16x256xf32>
    %c0_i32 = arith.constant 0 : i32
    %3 = arith.cmpi eq, %arg2, %c0_i32 : i32
    %4 = arith.extui %3 : i1 to i32
    %c0_i32_3 = arith.constant 0 : i32
    %5 = arith.cmpi ne, %4, %c0_i32_3 : i32
    scf.if %5 {
      %c0_7 = arith.constant 0 : index
      %c0_8 = arith.constant 0 : index
      %12 = vector.load %arg7[%c0_7, %c0_8] : memref<16x256xf32, #tpu.memory_space<vmem>>, vector<16x256xf32>
      tpu.vector_store %arg7[%c0_7, %c0_8], %2 {strides = array<i32>} : memref<16x256xf32, #tpu.memory_space<vmem>>, vector<16x256xf32>,
    } else {
    }
    %c0_i32_4 = arith.constant 0 : i32
    %6 = arith.cmpi sgt, %arg2, %c0_i32_4 : i32
    %7 = arith.extui %6 : i1 to i32
    %c0_i32_5 = arith.constant 0 : i32
    %8 = arith.cmpi ne, %7, %c0_i32_5 : i32
    scf.if %8 {
      %c0_7 = arith.constant 0 : index
      %c0_8 = arith.constant 0 : index
      %12 = vector.load %arg7[%c0_7, %c0_8] : memref<16x256xf32, #tpu.memory_space<vmem>>, vector<16x256xf32>
      %13 = arith.addf %12, %2 : vector<16x256xf32>
      %c0_9 = arith.constant 0 : index
      %c0_10 = arith.constant 0 : index
      %14 = vector.load %arg7[%c0_9, %c0_10] : memref<16x256xf32, #tpu.memory_space<vmem>>, vector<16x256xf32>
      tpu.vector_store %arg7[%c0_9, %c0_10], %13 {strides = array<i32>} : memref<16x256xf32, #tpu.memory_space<vmem>>, vector<16x256xf32>,
    } else {
    }
    %c5_i32 = arith.constant 5 : i32
    %9 = arith.cmpi eq, %arg2, %c5_i32 : i32
    %10 = arith.extui %9 : i1 to i32
    %c0_i32_6 = arith.constant 0 : i32
    %11 = arith.cmpi ne, %10, %c0_i32_6 : i32
    scf.if %11 {
      %c0_7 = arith.constant 0 : index
      %c0_8 = arith.constant 0 : index
      %12 = vector.load %arg7[%c0_7, %c0_8] : memref<16x256xf32, #tpu.memory_space<vmem>>, vector<16x256xf32>
      %c0_9 = arith.constant 0 : index
      %c0_10 = arith.constant 0 : index
      %13 = vector.load %arg5[%c0_9, %c0_10] : memref<1x256xf32, #tpu.memory_space<vmem>>, vector<1x256xf32>
      %14 = vector.broadcast %13 : vector<1x256xf32> to vector<16x256xf32>
      %15 = arith.addf %12, %14 : vector<16x256xf32>
      %cst_11 = arith.constant 0.000000e+00 : f32
      %16 = vector.broadcast %cst_11 : f32 to vector<16x256xf32>
      %17 = arith.maximumf %15, %16 : vector<16x256xf32>
      %18 = arith.truncf %17 : vector<16x256xf32> to vector<16x256xbf16>
      %c0_12 = arith.constant 0 : index
      %c0_13 = arith.constant 0 : index
      %19 = vector.load %arg6[%c0_12, %c0_13] : memref<16x256xbf16, #tpu.memory_space<vmem>>, vector<16x256xbf16>
      tpu.vector_store %arg6[%c0_12, %c0_13], %18 {strides = array<i32>} : memref<16x256xbf16, #tpu.memory_space<vmem>>, vector<16x256xbf16>,
    } else {
    }
    return
  }
  func.func @transform_0(%arg0: i32, %arg1: i32, %arg2: i32) -> (i32, i32) {
    %c0_i32 = arith.constant 0 : i32
    return %arg0, %arg2 : i32, i32
  }
  func.func @transform_1(%arg0: i32, %arg1: i32, %arg2: i32) -> (i32, i32) {
    %c0_i32 = arith.constant 0 : i32
    return %arg2, %arg1 : i32, i32
  }
  func.func @transform_2(%arg0: i32, %arg1: i32, %arg2: i32) -> (i32, i32) {
    %c0_i32 = arith.constant 0 : i32
    %c0_i32_0 = arith.constant 0 : i32
    return %c0_i32, %arg1 : i32, i32
  }
  func.func @transform_3(%arg0: i32, %arg1: i32, %arg2: i32) -> (i32, i32) {
    %c0_i32 = arith.constant 0 : i32
    return %arg0, %arg1 : i32, i32
  }
}

module attributes {stable_mosaic.version = 11 : i64} {
  func.func @_head_kernel(%arg0: i32, %arg1: memref<16x1x512xbf16, #tpu.memory_space<vmem>>, %arg2: memref<512x512xbf16, #tpu.memory_space<vmem>>, %arg3: memref<1x512xf32, #tpu.memory_space<vmem>>, %arg4: memref<512x128xbf16, #tpu.memory_space<vmem>>, %arg5: memref<1x128xf32, #tpu.memory_space<vmem>>, %arg6: memref<16x128xf32, #tpu.memory_space<vmem>>) attributes {dimension_semantics = [#tpu.dimension_semantics<arbitrary>], iteration_bounds = array<i64: 1>, scalar_prefetch = 0 : i64, scratch_operands = 0 : i64, tpu.core_type = #tpu.core_type<tc>, window_params = [{pipeline_mode = #tpu.pipeline_mode<synchronous>, transform_indices = @transform_0, window_bounds = array<i64: 16, 1, 512>}, {pipeline_mode = #tpu.pipeline_mode<synchronous>, transform_indices = @transform_1, window_bounds = array<i64: 512, 512>}, {pipeline_mode = #tpu.pipeline_mode<synchronous>, transform_indices = @transform_2, window_bounds = array<i64: 1, 512>}, {pipeline_mode = #tpu.pipeline_mode<synchronous>, transform_indices = @transform_3, window_bounds = array<i64: 512, 128>}, {pipeline_mode = #tpu.pipeline_mode<synchronous>, transform_indices = @transform_4, window_bounds = array<i64: 1, 128>}, {pipeline_mode = #tpu.pipeline_mode<synchronous>, transform_indices = @transform_5, window_bounds = array<i64: 16, 128>}]} {
    %c0 = arith.constant 0 : index
    %c0_0 = arith.constant 0 : index
    %c0_1 = arith.constant 0 : index
    %0 = vector.load %arg1[%c0, %c0_0, %c0_1] : memref<16x1x512xbf16, #tpu.memory_space<vmem>>, vector<16x1x512xbf16>
    %1 = arith.extf %0 : vector<16x1x512xbf16> to vector<16x1x512xf32>
    %cst = arith.constant dense<0.000000e+00> : vector<16x512xf32>
    %2 = vector.multi_reduction <add>, %1, %cst [1] : vector<16x1x512xf32> to vector<16x512xf32>
    %cst_2 = arith.constant 1.000000e+00 : f32
    %3 = vector.broadcast %cst_2 : f32 to vector<16x512xf32>
    %4 = arith.divf %2, %3 : vector<16x512xf32>
    %5 = arith.truncf %4 : vector<16x512xf32> to vector<16x512xbf16>
    %c0_3 = arith.constant 0 : index
    %c0_4 = arith.constant 0 : index
    %6 = vector.load %arg2[%c0_3, %c0_4] : memref<512x512xbf16, #tpu.memory_space<vmem>>, vector<512x512xbf16>
    %cst_5 = arith.constant dense<0.000000e+00> : vector<16x512xf32>
    %7 = tpu.matmul %5, %6, %cst_5 {dimension_numbers = #tpu.dot_dimension_numbers<[1], [0], [0], [1], [0, 0, 1, 1], [], []>} : vector<16x512xbf16>, vector<512x512xbf16>, vector<16x512xf32> -> vector<16x512xf32>
    %c0_6 = arith.constant 0 : index
    %c0_7 = arith.constant 0 : index
    %8 = vector.load %arg3[%c0_6, %c0_7] : memref<1x512xf32, #tpu.memory_space<vmem>>, vector<1x512xf32>
    %9 = vector.broadcast %8 : vector<1x512xf32> to vector<16x512xf32>
    %10 = arith.addf %7, %9 : vector<16x512xf32>
    %cst_8 = arith.constant 0.000000e+00 : f32
    %11 = vector.broadcast %cst_8 : f32 to vector<16x512xf32>
    %12 = arith.maximumf %10, %11 : vector<16x512xf32>
    %13 = arith.truncf %12 : vector<16x512xf32> to vector<16x512xbf16>
    %c0_9 = arith.constant 0 : index
    %c0_10 = arith.constant 0 : index
    %14 = vector.load %arg4[%c0_9, %c0_10] : memref<512x128xbf16, #tpu.memory_space<vmem>>, vector<512x128xbf16>
    %cst_11 = arith.constant dense<0.000000e+00> : vector<16x128xf32>
    %15 = tpu.matmul %13, %14, %cst_11 {dimension_numbers = #tpu.dot_dimension_numbers<[1], [0], [0], [1], [0, 0, 1, 1], [], []>} : vector<16x512xbf16>, vector<512x128xbf16>, vector<16x128xf32> -> vector<16x128xf32>
    %c0_12 = arith.constant 0 : index
    %c0_13 = arith.constant 0 : index
    %16 = vector.load %arg5[%c0_12, %c0_13] : memref<1x128xf32, #tpu.memory_space<vmem>>, vector<1x128xf32>
    %17 = vector.broadcast %16 : vector<1x128xf32> to vector<16x128xf32>
    %18 = arith.addf %15, %17 : vector<16x128xf32>
    %c0_14 = arith.constant 0 : index
    %c0_15 = arith.constant 0 : index
    %19 = vector.load %arg6[%c0_14, %c0_15] : memref<16x128xf32, #tpu.memory_space<vmem>>, vector<16x128xf32>
    tpu.vector_store %arg6[%c0_14, %c0_15], %18 {strides = array<i32>} : memref<16x128xf32, #tpu.memory_space<vmem>>, vector<16x128xf32>,
    return
  }
  func.func @transform_0(%arg0: i32) -> (i32, i32, i32) {
    %c0_i32 = arith.constant 0 : i32
    %c0_i32_0 = arith.constant 0 : i32
    %c0_i32_1 = arith.constant 0 : i32
    %c0_i32_2 = arith.constant 0 : i32
    return %c0_i32, %c0_i32_0, %c0_i32_1 : i32, i32, i32
  }
  func.func @transform_1(%arg0: i32) -> (i32, i32) {
    %c0_i32 = arith.constant 0 : i32
    %c0_i32_0 = arith.constant 0 : i32
    %c0_i32_1 = arith.constant 0 : i32
    return %c0_i32, %c0_i32_0 : i32, i32
  }
  func.func @transform_2(%arg0: i32) -> (i32, i32) {
    %c0_i32 = arith.constant 0 : i32
    %c0_i32_0 = arith.constant 0 : i32
    %c0_i32_1 = arith.constant 0 : i32
    return %c0_i32, %c0_i32_0 : i32, i32
  }
  func.func @transform_3(%arg0: i32) -> (i32, i32) {
    %c0_i32 = arith.constant 0 : i32
    %c0_i32_0 = arith.constant 0 : i32
    %c0_i32_1 = arith.constant 0 : i32
    return %c0_i32, %c0_i32_0 : i32, i32
  }
  func.func @transform_4(%arg0: i32) -> (i32, i32) {
    %c0_i32 = arith.constant 0 : i32
    %c0_i32_0 = arith.constant 0 : i32
    %c0_i32_1 = arith.constant 0 : i32
    return %c0_i32, %c0_i32_0 : i32, i32
  }
  func.func @transform_5(%arg0: i32) -> (i32, i32) {
    %c0_i32 = arith.constant 0 : i32
    %c0_i32_0 = arith.constant 0 : i32
    %c0_i32_1 = arith.constant 0 : i32
    return %c0_i32, %c0_i32_0 : i32, i32
  }
}

</mosaic_0001>

<bundles_post_ra>
// kernel: resnet_forward.21
= control target key start
LH: loop header
LB: loop body
LE: loop exit
PB: predicated region body
PF: predicated region fallthrough
CT: control target
= control target key end

     0   :  { %s1748_s12 = smov 0   ;;  %s1750_s13 = smov 0   ;;  %s1922_s0 = inlined_call_operand.vmem [shape: bf16[512,256], index: 0, kind: input, shape index: {}]   ;;  %s1923_s1 = inlined_call_operand.vmem [shape: bf16[256,128], index: 1, kind: input, shape index: {}]   ;;  %s1924_s2 = inlined_call_operand.vmem [shape: f32[1,128], index: 2, kind: input, shape index: {}]   ;;  %s1925_s3 = inlined_call_operand.vmem [shape: bf16[512,128], index: 3, kind: output, shape index: {}]  }
   0x1   :  { %s1752_s14 = smov 0  }
   0x2 LB: > { %s32_s15 = sadd.s32 1, %s1722_s13  ;;  %p1271_p0 = scmp.ge.s32.totalorder %s1726_s14, 1  ;;  %s1726_s14 = sphi %s1752_s14, %s13_s14   ;;  %s1722_s13 = sphi %s1750_s13, %s1927_s13   ;;  %s1718_s12 = sphi %s1748_s12, %s1926_s12  }
   0x3   : > { %p34_p1 = scmp.ge.s32.totalorder %s32_s15, 2  ;;  %p191_p2 = scmp.lt.s32.totalorder %s1726_s14, 3 }
   0x5   : > { %s1929_s15 = smov (%p34_p1, %s32_s15), 0  ;;  %p192_p3 = pnand %p1271_p0, %p191_p2 }
   0x6   : > { %s1272_s18 = sshll.u32 (!%p192_p3), %s1718_s12, 5 }
   0x7   : > { %195 = sbr.rel (%p192_p3) target bundleno = 309 (0x135), region = 32  ;;  %p236_p4 = scmp.lt.s32.totalorder (!%p192_p3), %s1272_s18, 63 }
   0xc   : > { %v1640_v0 = vld [vmem:[%s1923_s1 + $0x78] sm:$0xff]   ;;  %v1642_v2 = vld [vmem:[%s1923_s1 + $0x70] sm:$0xff]   ;;  %v1644_v4 = vld [vmem:[%s1923_s1 + $0x68] sm:$0xff]   ;;  %s1931_s18 = smov (!%p236_p4, %s1272_s18), 63 }
   0xd   : > { %v1641_v1 = vld [vmem:[%s1923_s1 + $0x38] sm:$0xff]   ;;  %1488 = vmatprep.subr.bf16.mxu0 %v1640_v0  ;;  %1600 = vmatprep.subr.bf16.mxu1 %v1640_v0  ;;  %v1643_v3 = vld [vmem:[%s1923_s1 + $0x30] sm:$0xff]   ;;  %v1645_v5 = vld [vmem:[%s1923_s1 + $0x28] sm:$0xff]   ;;  %s1360_s6 = sshll.u32 %s1931_s18, 3  ;;  %s1276_s5 = sshll.u32 %s1931_s18, 2 }
   0xe   : > { %1489 = vmatpush3.bf16.msra.mxu0 %v1641_v1  ;;  %1608 = vmatpush3.bf16.msra.mxu1 %v1641_v1  ;;  %v1646_v6 = vld [vmem:[%s1923_s1 + $0x60] sm:$0xff]   ;;  %v1648_v8 = vld [vmem:[%s1923_s1 + $0x58] sm:$0xff]   ;;  %s1799_s11 = scalar_lea.vmem %s1922_s0, %s1360_s6  ;;  %v1650_v10 = vld [vmem:[%s1923_s1 + $0x50] sm:$0xff]   ;;  %s1867_s8 = scalar_lea.vmem %s1925_s3, %s1276_s5 }
   0xf   : > { %1490 = vmatprep.subr.bf16.mxu0 %v1642_v2  ;;  %1601 = vmatprep.subr.bf16.mxu1 %v1642_v2  ;;  %v1647_v7 = vld [vmem:[%s1923_s1 + $0x20] sm:$0xff]   ;;  %v1649_v9 = vld [vmem:[%s1923_s1 + $0x18] sm:$0xff]   ;;  %v1651_v13 = vld [vmem:[%s1923_s1 + $0x10] sm:$0xff]  }
  0x10   : > { %v1658_v11 = vld [vmem:[%s1799_s11 + $0x4] ss:$8 sps:$4 sm:$0xff]   ;;  %v1656_v18 = vld [vmem:[%s1799_s11] ss:$8 sps:$4 sm:$0xff]   ;;  %v1662_v20 = vld [vmem:[%s1799_s11 + $0x14] ss:$8 sps:$4 sm:$0xff]  }
  0x11   : > { %v1661_v12 = vld [vmem:[%s1799_s11 + $0x84] ss:$8 sps:$4 sm:$0xff]   ;;  %620 = vmatprep.mubr.bf16.mxu0 %v1658_v11  ;;  %v1659_v19 = vld [vmem:[%s1799_s11 + $0x80] ss:$8 sps:$4 sm:$0xff]   ;;  %v1664_v21 = vld [vmem:[%s1799_s11 + $0x94] ss:$8 sps:$4 sm:$0xff]  }
  0x12   : > { %1491 = vmatpush3.bf16.msra.mxu0 %v1643_v3  ;;  %1609 = vmatpush3.bf16.msra.mxu1 %v1643_v3  ;;  %v1652_v14 = vld [vmem:[%s1923_s1 + $0x48] sm:$0xff]   ;;  %v1654_v16 = vld [vmem:[%s1923_s1 + $0x40] sm:$0xff]   ;;  %v1666_v22 = vld [vmem:[%s1799_s11 + $0x10] ss:$8 sps:$4 sm:$0xff]  }
  0x13   : > { %1492 = vmatprep.subr.bf16.mxu0 %v1644_v4  ;;  %1602 = vmatprep.subr.bf16.mxu1 %v1644_v4  ;;  %v1653_v15 = vld [vmem:[%s1923_s1 + $0x8] sm:$0xff]   ;;  %v1655_v17 = vld [vmem:[%s1923_s1] sm:$0xff]   ;;  %v1667_v23 = vld [vmem:[%s1799_s11 + $0x90] ss:$8 sps:$4 sm:$0xff]  }
  0x14   : > { %684 = vmatprep.mubr.bf16.mxu1 %v1661_v12  ;;  %v1668_v24 = vld [vmem:[%s1799_s11 + $0x24] ss:$8 sps:$4 sm:$0xff]   ;;  %v1672_v26 = vld [vmem:[%s1799_s11 + $0x20] ss:$8 sps:$4 sm:$0xff]   ;;  %v1674_v28 = vld [vmem:[%s1799_s11 + $0x34] ss:$8 sps:$4 sm:$0xff]  }
  0x15   : > { %v1670_v25 = vld [vmem:[%s1799_s11 + $0xa4] ss:$8 sps:$4 sm:$0xff]   ;;  %v1673_v27 = vld [vmem:[%s1799_s11 + $0xa0] ss:$8 sps:$4 sm:$0xff]   ;;  %v1676_v29 = vld [vmem:[%s1799_s11 + $0xb4] ss:$8 sps:$4 sm:$0xff]  }
  0x16   : > { %1493 = vmatpush3.bf16.msra.mxu0 %v1645_v5  ;;  %1610 = vmatpush3.bf16.msra.mxu1 %v1645_v5  ;;  %v1678_v30 = vld [vmem:[%s1799_s11 + $0x30] ss:$8 sps:$4 sm:$0xff]   ;;  %v1680_v32 = vld [vmem:[%s1799_s11 + $0x44] ss:$8 sps:$4 sm:$0xff]   ;;  %v1684_v34 = vld [vmem:[%s1799_s11 + $0x40] ss:$8 sps:$4 sm:$0xff]  }
  0x17   : > { %1494 = vmatprep.subr.bf16.mxu0 %v1646_v6  ;;  %1603 = vmatprep.subr.bf16.mxu1 %v1646_v6  ;;  %v1679_v31 = vld [vmem:[%s1799_s11 + $0xb0] ss:$8 sps:$4 sm:$0xff]   ;;  %v1682_v33 = vld [vmem:[%s1799_s11 + $0xc4] ss:$8 sps:$4 sm:$0xff]   ;;  %v1685_v35 = vld [vmem:[%s1799_s11 + $0xc0] ss:$8 sps:$4 sm:$0xff]  }
  0x18   : > { %v1686_v36 = vld [vmem:[%s1799_s11 + $0x54] ss:$8 sps:$4 sm:$0xff]   ;;  %v1690_v38 = vld [vmem:[%s1799_s11 + $0x50] ss:$8 sps:$4 sm:$0xff]   ;;  %v1692_v40 = vld [vmem:[%s1799_s11 + $0x64] ss:$8 sps:$4 sm:$0xff]  }
  0x19   : > { %v1688_v37 = vld [vmem:[%s1799_s11 + $0xd4] ss:$8 sps:$4 sm:$0xff]   ;;  %v1691_v39 = vld [vmem:[%s1799_s11 + $0xd0] ss:$8 sps:$4 sm:$0xff]   ;;  %v1694_v41 = vld [vmem:[%s1799_s11 + $0xe4] ss:$8 sps:$4 sm:$0xff]  }
  0x1a   : > { %1495 = vmatpush3.bf16.msra.mxu0 %v1647_v7  ;;  %1611 = vmatpush3.bf16.msra.mxu1 %v1647_v7  ;;  %v1696_v42 = vld [vmem:[%s1799_s11 + $0x60] ss:$8 sps:$4 sm:$0xff]   ;;  %v1698_v44 = vld [vmem:[%s1799_s11 + $0x74] ss:$8 sps:$4 sm:$0xff]   ;;  %v1702_v46 = vld [vmem:[%s1799_s11 + $0x70] ss:$8 sps:$4 sm:$0xff]  }
  0x1b   : > { %1496 = vmatprep.subr.bf16.mxu0 %v1648_v8  ;;  %1604 = vmatprep.subr.bf16.mxu1 %v1648_v8  ;;  %v1697_v43 = vld [vmem:[%s1799_s11 + $0xe0] ss:$8 sps:$4 sm:$0xff]   ;;  %v1700_v45 = vld [vmem:[%s1799_s11 + $0xf4] ss:$8 sps:$4 sm:$0xff]   ;;  %v1703_v47 = vld [vmem:[%s1799_s11 + $0xf0] ss:$8 sps:$4 sm:$0xff]  }
  0x1c   : > { %v1857_v53 = vld [vmem:[%s1924_s2] ss:$0 sm:$0xff] }
  0x1e   : > { %1497 = vmatpush3.bf16.msra.mxu0 %v1649_v9  ;;  %1612 = vmatpush3.bf16.msra.mxu1 %v1649_v9 }
  0x1f   : > { %1498 = vmatprep.subr.bf16.mxu0 %v1650_v10  ;;  %1605 = vmatprep.subr.bf16.mxu1 %v1650_v10 }
  0x22   : > { %1499 = vmatpush3.bf16.msra.mxu0 %v1651_v13  ;;  %1613 = vmatpush3.bf16.msra.mxu1 %v1651_v13 }
  0x23   : > { %1500 = vmatprep.subr.bf16.mxu0 %v1652_v14  ;;  %1606 = vmatprep.subr.bf16.mxu1 %v1652_v14 }
  0x26   : > { %1501 = vmatpush3.bf16.msra.mxu0 %v1653_v15  ;;  %1614 = vmatpush3.bf16.msra.mxu1 %v1653_v15 }
  0x27   : > { %1502 = vmatprep.subr.bf16.mxu0 %v1654_v16  ;;  %1607 = vmatprep.subr.bf16.mxu1 %v1654_v16 }
  0x2a   : > { %1503 = vmatpush3.bf16.msra.mxu0 %v1655_v17  ;;  %1615 = vmatpush3.bf16.msra.mxu1 %v1655_v17 }
  0x2d   : > { %621 = vmatmul.mubr.bf16.vlgmr.msra.gmra.mxu0 %v1656_v18  ;;  %685 = vmatmul.mubr.bf16.vlgmr.msra.gmra.mxu1 %v1659_v19 }
  0x2e   : > { %628 = vmatprep.mubr.bf16.mxu0 %v1662_v20  ;;  %692 = vmatprep.mubr.bf16.mxu1 %v1664_v21 }
  0x35   : > { %629 = vmatmul.mubr.bf16.gmra.mxu0 %v1666_v22  ;;  %693 = vmatmul.mubr.bf16.gmra.mxu1 %v1667_v23 }
  0x36   : > { %636 = vmatprep.mubr.bf16.mxu0 %v1668_v24  ;;  %700 = vmatprep.mubr.bf16.mxu1 %v1670_v25 }
  0x3d   : > { %637 = vmatmul.mubr.bf16.gmra.mxu0 %v1672_v26  ;;  %701 = vmatmul.mubr.bf16.gmra.mxu1 %v1673_v27 }
  0x3e   : > { %644 = vmatprep.mubr.bf16.mxu0 %v1674_v28  ;;  %708 = vmatprep.mubr.bf16.mxu1 %v1676_v29 }
  0x45   : > { %645 = vmatmul.mubr.bf16.gmra.mxu0 %v1678_v30  ;;  %709 = vmatmul.mubr.bf16.gmra.mxu1 %v1679_v31 }
  0x46   : > { %652 = vmatprep.mubr.bf16.mxu0 %v1680_v32  ;;  %716 = vmatprep.mubr.bf16.mxu1 %v1682_v33 }
  0x4d   : > { %653 = vmatmul.mubr.bf16.gmra.mxu0 %v1684_v34  ;;  %717 = vmatmul.mubr.bf16.gmra.mxu1 %v1685_v35 }
  0x4e   : > { %660 = vmatprep.mubr.bf16.mxu0 %v1686_v36  ;;  %724 = vmatprep.mubr.bf16.mxu1 %v1688_v37 }
  0x55   : > { %661 = vmatmul.mubr.bf16.gmra.mxu0 %v1690_v38  ;;  %725 = vmatmul.mubr.bf16.gmra.mxu1 %v1691_v39 }
  0x56   : > { %668 = vmatprep.mubr.bf16.mxu0 %v1692_v40  ;;  %732 = vmatprep.mubr.bf16.mxu1 %v1694_v41 }
  0x5d   : > { %669 = vmatmul.mubr.bf16.gmra.mxu0 %v1696_v42  ;;  %733 = vmatmul.mubr.bf16.gmra.mxu1 %v1697_v43 }
  0x5e   : > { %676 = vmatprep.mubr.bf16.mxu0 %v1698_v44  ;;  %740 = vmatprep.mubr.bf16.mxu1 %v1700_v45 }
  0x65   : > { %677 = vmatmul.mubr.bf16.gmra.mxu0 %v1702_v46  ;;  %741 = vmatmul.mubr.bf16.gmra.mxu1 %v1703_v47 }
  0xed   : > { %v1504_v48 = vpop.f32.mrf.mxu0  ;;  %v1552_v49 = vpop.f32.mrf.mxu1 }
  0xef   : > { %v1505_v50 = vpop.f32.mrf.mxu0  ;;  %v1553_v51 = vpop.f32.mrf.mxu1 }
  0xf0   : > { %v1506_v52 = vadd.f32 %v1505_v50, %v1504_v48  ;;  %v1554_v54 = vadd.f32 %v1553_v51, %v1552_v49 }
  0xf1   : > { %v1507_v55 = vpop.f32.mrf.mxu0  ;;  %v1555_v56 = vpop.f32.mrf.mxu1 }
  0xf2   : > { %v927_v57 = vadd.f32 %v1506_v52, %v1857_v53  ;;  %v943_v58 = vadd.f32 %v1554_v54, %v1857_v53 }
  0xf3   : > { %v1508_v59 = vpop.f32.mrf.mxu0  ;;  %v1556_v60 = vpop.f32.mrf.mxu1 }
  0xf4   : > { %v1509_v61 = vadd.f32 %v1508_v59, %v1507_v55  ;;  %v1557_v62 = vadd.f32 %v1556_v60, %v1555_v56  ;;  %v959_v3 = vmax.f32 %v927_v57, 0.0  ;;  %v975_v4 = vmax.f32 %v943_v58, 0.0 }
  0xf5   : > { %v1510_v63 = vpop.f32.mrf.mxu0  ;;  %v1558_v0 = vpop.f32.mrf.mxu1 }
  0xf6   : > { %v928_v1 = vadd.f32 %v1509_v61, %v1857_v53  ;;  %v944_v2 = vadd.f32 %v1557_v62, %v1857_v53 }
  0xf7   : > { %v1511_v5 = vpop.f32.mrf.mxu0  ;;  %v1559_v6 = vpop.f32.mrf.mxu1 }
  0xf8   : > { %v960_v7 = vmax.f32 %v928_v1, 0.0  ;;  %v976_v8 = vmax.f32 %v944_v2, 0.0  ;;  %v1512_v9 = vadd.f32 %v1511_v5, %v1510_v63  ;;  %v1560_v10 = vadd.f32 %v1559_v6, %v1558_v0 }
  0xf9   : > { %v1513_v11 = vpop.f32.mrf.mxu0  ;;  %v1561_v12 = vpop.f32.mrf.mxu1 }
  0xfa   : > { %v1396_v13 = vpack.c.bf16 %v960_v7, %v959_v3  ;;  %v1436_v14 = vpack.c.bf16 %v976_v8, %v975_v4  ;;  %v929_v15 = vadd.f32 %v1512_v9, %v1857_v53  ;;  %v945_v16 = vadd.f32 %v1560_v10, %v1857_v53 }
  0xfb   : > { %v1514_v17 = vpop.f32.mrf.mxu0  ;;  %v1562_v18 = vpop.f32.mrf.mxu1 }
  0xfc   : > { %1397 = vst [vmem:[%s1867_s8] sm:$0xff] %v1396_v13   ;;  %1480 = vst [vmem:[%s1867_s8 + $0x40] sm:$0xff] %v1436_v14   ;;  %v1515_v19 = vadd.f32 %v1514_v17, %v1513_v11  ;;  %v1563_v20 = vadd.f32 %v1562_v18, %v1561_v12  ;;  %v961_v25 = vmax.f32 %v929_v15, 0.0  ;;  %v977_v26 = vmax.f32 %v945_v16, 0.0 }
  0xfd   : > { %v1516_v21 = vpop.f32.mrf.mxu0  ;;  %v1564_v22 = vpop.f32.mrf.mxu1 }
  0xfe   : > { %v930_v23 = vadd.f32 %v1515_v19, %v1857_v53  ;;  %v946_v24 = vadd.f32 %v1563_v20, %v1857_v53 }
  0xff   : > { %v1517_v27 = vpop.f32.mrf.mxu0  ;;  %v1565_v28 = vpop.f32.mrf.mxu1 }
 0x100   : > { %v962_v29 = vmax.f32 %v930_v23, 0.0  ;;  %v978_v30 = vmax.f32 %v946_v24, 0.0  ;;  %v1518_v31 = vadd.f32 %v1517_v27, %v1516_v21  ;;  %v1566_v32 = vadd.f32 %v1565_v28, %v1564_v22 }
 0x101   : > { %v1519_v33 = vpop.f32.mrf.mxu0  ;;  %v1567_v34 = vpop.f32.mrf.mxu1 }
 0x102   : > { %v1401_v35 = vpack.c.bf16 %v962_v29, %v961_v25  ;;  %v1441_v36 = vpack.c.bf16 %v978_v30, %v977_v26  ;;  %v931_v37 = vadd.f32 %v1518_v31, %v1857_v53  ;;  %v947_v38 = vadd.f32 %v1566_v32, %v1857_v53 }
 0x103   : > { %v1520_v39 = vpop.f32.mrf.mxu0  ;;  %v1568_v40 = vpop.f32.mrf.mxu1 }
 0x104   : > { %1473 = vst [vmem:[%s1867_s8 + $0x8] sm:$0xff] %v1401_v35   ;;  %1481 = vst [vmem:[%s1867_s8 + $0x48] sm:$0xff] %v1441_v36   ;;  %v1521_v41 = vadd.f32 %v1520_v39, %v1519_v33  ;;  %v1569_v42 = vadd.f32 %v1568_v40, %v1567_v34  ;;  %v963_v47 = vmax.f32 %v931_v37, 0.0  ;;  %v979_v48 = vmax.f32 %v947_v38, 0.0 }
 0x105   : > { %v1522_v43 = vpop.f32.mrf.mxu0  ;;  %v1570_v44 = vpop.f32.mrf.mxu1 }
 0x106   : > { %v932_v45 = vadd.f32 %v1521_v41, %v1857_v53  ;;  %v948_v46 = vadd.f32 %v1569_v42, %v1857_v53 }
 0x107   : > { %v1523_v49 = vpop.f32.mrf.mxu0  ;;  %v1571_v50 = vpop.f32.mrf.mxu1 }
 0x108   : > { %v964_v51 = vmax.f32 %v932_v45, 0.0  ;;  %v980_v52 = vmax.f32 %v948_v46, 0.0  ;;  %v1524_v54 = vadd.f32 %v1523_v49, %v1522_v43  ;;  %v1572_v55 = vadd.f32 %v1571_v50, %v1570_v44 }
 0x109   : > { %v1525_v56 = vpop.f32.mrf.mxu0  ;;  %v1573_v57 = vpop.f32.mrf.mxu1 }
 0x10a   : > { %v1406_v58 = vpack.c.bf16 %v964_v51, %v963_v47  ;;  %v1446_v59 = vpack.c.bf16 %v980_v52, %v979_v48  ;;  %v933_v60 = vadd.f32 %v1524_v54, %v1857_v53  ;;  %v949_v61 = vadd.f32 %v1572_v55, %v1857_v53 }
 0x10b   : > { %v1526_v62 = vpop.f32.mrf.mxu0  ;;  %v1574_v63 = vpop.f32.mrf.mxu1 }
 0x10c   : > { %1474 = vst [vmem:[%s1867_s8 + $0x10] sm:$0xff] %v1406_v58   ;;  %1482 = vst [vmem:[%s1867_s8 + $0x50] sm:$0xff] %v1446_v59   ;;  %v1527_v0 = vadd.f32 %v1526_v62, %v1525_v56  ;;  %v1575_v1 = vadd.f32 %v1574_v63, %v1573_v57  ;;  %v965_v6 = vmax.f32 %v933_v60, 0.0  ;;  %v981_v7 = vmax.f32 %v949_v61, 0.0 }
 0x10d   : > { %v1528_v2 = vpop.f32.mrf.mxu0  ;;  %v1576_v3 = vpop.f32.mrf.mxu1 }
 0x10e   : > { %v934_v4 = vadd.f32 %v1527_v0, %v1857_v53  ;;  %v950_v5 = vadd.f32 %v1575_v1, %v1857_v53 }
 0x10f   : > { %v1529_v8 = vpop.f32.mrf.mxu0  ;;  %v1577_v9 = vpop.f32.mrf.mxu1 }
 0x110   : > { %v966_v10 = vmax.f32 %v934_v4, 0.0  ;;  %v982_v11 = vmax.f32 %v950_v5, 0.0  ;;  %v1530_v12 = vadd.f32 %v1529_v8, %v1528_v2  ;;  %v1578_v13 = vadd.f32 %v1577_v9, %v1576_v3 }
 0x111   : > { %v1531_v14 = vpop.f32.mrf.mxu0  ;;  %v1579_v15 = vpop.f32.mrf.mxu1 }
 0x112   : > { %v1411_v16 = vpack.c.bf16 %v966_v10, %v965_v6  ;;  %v1451_v17 = vpack.c.bf16 %v982_v11, %v981_v7  ;;  %v935_v18 = vadd.f32 %v1530_v12, %v1857_v53  ;;  %v951_v19 = vadd.f32 %v1578_v13, %v1857_v53 }
 0x113   : > { %v1532_v20 = vpop.f32.mrf.mxu0  ;;  %v1580_v21 = vpop.f32.mrf.mxu1 }
 0x114   : > { %1475 = vst [vmem:[%s1867_s8 + $0x18] sm:$0xff] %v1411_v16   ;;  %1483 = vst [vmem:[%s1867_s8 + $0x58] sm:$0xff] %v1451_v17   ;;  %v1533_v22 = vadd.f32 %v1532_v20, %v1531_v14  ;;  %v1581_v23 = vadd.f32 %v1580_v21, %v1579_v15  ;;  %v967_v28 = vmax.f32 %v935_v18, 0.0  ;;  %v983_v29 = vmax.f32 %v951_v19, 0.0 }
 0x115   : > { %v1534_v24 = vpop.f32.mrf.mxu0  ;;  %v1582_v25 = vpop.f32.mrf.mxu1 }
 0x116   : > { %v936_v26 = vadd.f32 %v1533_v22, %v1857_v53  ;;  %v952_v27 = vadd.f32 %v1581_v23, %v1857_v53 }
 0x117   : > { %v1535_v30 = vpop.f32.mrf.mxu0  ;;  %v1583_v31 = vpop.f32.mrf.mxu1 }
 0x118   : > { %v968_v32 = vmax.f32 %v936_v26, 0.0  ;;  %v984_v33 = vmax.f32 %v952_v27, 0.0  ;;  %v1536_v34 = vadd.f32 %v1535_v30, %v1534_v24  ;;  %v1584_v35 = vadd.f32 %v1583_v31, %v1582_v25 }
 0x119   : > { %v1537_v36 = vpop.f32.mrf.mxu0  ;;  %v1585_v37 = vpop.f32.mrf.mxu1 }
 0x11a   : > { %v1416_v38 = vpack.c.bf16 %v968_v32, %v967_v28  ;;  %v1456_v39 = vpack.c.bf16 %v984_v33, %v983_v29  ;;  %v937_v40 = vadd.f32 %v1536_v34, %v1857_v53  ;;  %v953_v41 = vadd.f32 %v1584_v35, %v1857_v53 }
 0x11b   : > { %v1538_v42 = vpop.f32.mrf.mxu0  ;;  %v1586_v43 = vpop.f32.mrf.mxu1 }
 0x11c   : > { %1476 = vst [vmem:[%s1867_s8 + $0x20] sm:$0xff] %v1416_v38   ;;  %1484 = vst [vmem:[%s1867_s8 + $0x60] sm:$0xff] %v1456_v39   ;;  %v1539_v44 = vadd.f32 %v1538_v42, %v1537_v36  ;;  %v1587_v45 = vadd.f32 %v1586_v43, %v1585_v37  ;;  %v969_v50 = vmax.f32 %v937_v40, 0.0  ;;  %v985_v51 = vmax.f32 %v953_v41, 0.0 }
 0x11d   : > { %v1540_v46 = vpop.f32.mrf.mxu0  ;;  %v1588_v47 = vpop.f32.mrf.mxu1 }
 0x11e   : > { %v938_v48 = vadd.f32 %v1539_v44, %v1857_v53  ;;  %v954_v49 = vadd.f32 %v1587_v45, %v1857_v53 }
 0x11f   : > { %v1541_v52 = vpop.f32.mrf.mxu0  ;;  %v1589_v54 = vpop.f32.mrf.mxu1 }
 0x120   : > { %v970_v55 = vmax.f32 %v938_v48, 0.0  ;;  %v986_v56 = vmax.f32 %v954_v49, 0.0  ;;  %v1542_v57 = vadd.f32 %v1541_v52, %v1540_v46  ;;  %v1590_v58 = vadd.f32 %v1589_v54, %v1588_v47 }
 0x121   : > { %v1543_v59 = vpop.f32.mrf.mxu0  ;;  %v1591_v60 = vpop.f32.mrf.mxu1 }
 0x122   : > { %v1421_v61 = vpack.c.bf16 %v970_v55, %v969_v50  ;;  %v1461_v62 = vpack.c.bf16 %v986_v56, %v985_v51  ;;  %v939_v63 = vadd.f32 %v1542_v57, %v1857_v53  ;;  %v955_v0 = vadd.f32 %v1590_v58, %v1857_v53 }
 0x123   : > { %v1544_v1 = vpop.f32.mrf.mxu0  ;;  %v1592_v2 = vpop.f32.mrf.mxu1 }
 0x124   : > { %1477 = vst [vmem:[%s1867_s8 + $0x28] sm:$0xff] %v1421_v61   ;;  %1485 = vst [vmem:[%s1867_s8 + $0x68] sm:$0xff] %v1461_v62   ;;  %v1545_v3 = vadd.f32 %v1544_v1, %v1543_v59  ;;  %v1593_v4 = vadd.f32 %v1592_v2, %v1591_v60  ;;  %v971_v9 = vmax.f32 %v939_v63, 0.0  ;;  %v987_v10 = vmax.f32 %v955_v0, 0.0 }
 0x125   : > { %v1546_v5 = vpop.f32.mrf.mxu0  ;;  %v1594_v6 = vpop.f32.mrf.mxu1 }
 0x126   : > { %v940_v7 = vadd.f32 %v1545_v3, %v1857_v53  ;;  %v956_v8 = vadd.f32 %v1593_v4, %v1857_v53 }
 0x127   : > { %v1547_v11 = vpop.f32.mrf.mxu0  ;;  %v1595_v12 = vpop.f32.mrf.mxu1 }
 0x128   : > { %v972_v13 = vmax.f32 %v940_v7, 0.0  ;;  %v988_v14 = vmax.f32 %v956_v8, 0.0  ;;  %v1548_v15 = vadd.f32 %v1547_v11, %v1546_v5  ;;  %v1596_v16 = vadd.f32 %v1595_v12, %v1594_v6 }
 0x129   : > { %v1549_v17 = vpop.f32.mrf.mxu0  ;;  %v1597_v18 = vpop.f32.mrf.mxu1 }
 0x12a   : > { %v1426_v19 = vpack.c.bf16 %v972_v13, %v971_v9  ;;  %v1466_v20 = vpack.c.bf16 %v988_v14, %v987_v10  ;;  %v941_v23 = vadd.f32 %v1548_v15, %v1857_v53  ;;  %v957_v24 = vadd.f32 %v1596_v16, %v1857_v53 }
 0x12b   : > { %v1550_v21 = vpop.f32.mrf.mxu0  ;;  %v1598_v22 = vpop.f32.mrf.mxu1 }
 0x12c   : > { %1478 = vst [vmem:[%s1867_s8 + $0x30] sm:$0xff] %v1426_v19   ;;  %1486 = vst [vmem:[%s1867_s8 + $0x70] sm:$0xff] %v1466_v20   ;;  %v1551_v25 = vadd.f32 %v1550_v21, %v1549_v17  ;;  %v1599_v26 = vadd.f32 %v1598_v22, %v1597_v18  ;;  %v973_v29 = vmax.f32 %v941_v23, 0.0  ;;  %v989_v30 = vmax.f32 %v957_v24, 0.0 }
 0x12e   : > { %v942_v27 = vadd.f32 %v1551_v25, %v1857_v53  ;;  %v958_v28 = vadd.f32 %v1599_v26, %v1857_v53 }
 0x130   : > { %v974_v31 = vmax.f32 %v942_v27, 0.0  ;;  %v990_v32 = vmax.f32 %v958_v28, 0.0 }
 0x132   : > { %v1431_v33 = vpack.c.bf16 %v974_v31, %v973_v29  ;;  %v1471_v34 = vpack.c.bf16 %v990_v32, %v989_v30 }
 0x134   : > { %1479 = vst [vmem:[%s1867_s8 + $0x38] sm:$0xff] %v1431_v33   ;;  %1487 = vst [vmem:[%s1867_s8 + $0x78] sm:$0xff] %v1471_v34  }
 0x135 PF: > { %s13_s14 = sadd.s32 1, %s1726_s14   ;;  %s1926_s12 = smov %s1722_s13 }
 0x136   : > { %p10_p5 = scmp.ge.s32.totalorder %s13_s14, 4   ;;  %s1927_s13 = smov %s1929_s15 }
 0x138   :  { %12 = sbr.rel (!%p10_p5) target bundleno = 2 (0x2), region = 80 }

// kernel: resnet_forward.22
= control target key start
LH: loop header
LB: loop body
LE: loop exit
PB: predicated region body
PF: predicated region fallthrough
CT: control target
= control target key end

     0   :  { %s1663_s12 = smov 0   ;;  %s1665_s13 = smov 0   ;;  %s1942_s0 = inlined_call_operand.vmem [shape: bf16[128,1152], index: 0, kind: input, shape index: {}]   ;;  %s1943_s1 = inlined_call_operand.vmem [shape: bf16[1152,128], index: 1, kind: input, shape index: {}]   ;;  %s1944_s2 = inlined_call_operand.vmem [shape: f32[1,128], index: 2, kind: input, shape index: {}]   ;;  %s1945_s3 = inlined_call_operand.vmem [shape: bf16[128,128], index: 3, kind: output, shape index: {}]  }
   0x1   :  { %s1667_s14 = smov 0   ;;  %s1669_s15 = smov 0  }
   0x2   :  { %s1671_s16 = smov 0  }
   0x3 LB: > { %s25_s17 = sadd.s32 1, %s1637_s15  ;;  %p48_p1 = scmp.ne.s32.totalorder %s1629_s13, %s1625_s12  ;;  %s1641_s16 = sphi %s1671_s16, %s13_s16   ;;  %s1637_s15 = sphi %s1669_s15, %s1949_s15   ;;  %s1633_s14 = sphi %s1667_s14, %s1948_s14   ;;  %s1629_s13 = sphi %s1665_s13, %s1947_s13   ;;  %s1625_s12 = sphi %s1663_s12, %s1946_s12  }
   0x4   : > { %p26_p0 = scmp.ge.s32.totalorder %s25_s17, 3  ;;  %p49_p2 = scmp.eq.s32.totalorder %s1641_s16, 0 }
   0x5   : > { %s41_s19 = sadd.s32 1, %s1629_s13  ;;  %p1221_p5 = scmp.ge.s32.totalorder %s1641_s16, 3 }
   0x6   : > { %s1951_s17 = smov (%p26_p0, %s25_s17), 0  ;;  %p50_p3 = por %p49_p2, %p48_p1 }
   0x7   : > { %s37_s18 = ssub.s32 %s1637_s15, %s1951_s17  ;;  %162 = sbr.rel (%p1221_p5) target bundleno = 35 (0x23), region = 20 }
   0x8   : > { %p39_p4 = scmp.eq.s32.totalorder %s37_s18, 0 }
   0xa   : > { %s1698_s20 = scalar_select %p39_p4, %s1629_s13, %s41_s19  }
   0xc   : > { %165 = sbr.rel (!%p50_p3) target bundleno = 35 (0x23), region = 24  ;;  %s167_s21 = sand.u32 (%p50_p3), 1, %s1629_s13  }
   0xd   : > { %s1329_s22 = smul.u32 (%p50_p3), 12, %s1637_s15 }
   0xe   : > { %s1505_s23 = smul.u32 (%p50_p3), 192, %s167_s21 }
   0xf   : > { %s1706_s26 = scalar_lea.vmem (%p50_p3), %s1942_s0, %s1329_s22 }
  0x10   : > { %v190_v0 = vld [vmem:[%s1706_s26] sm:$0xff] (%p50_p3)  ;;  %v194_v2 = vld [vmem:[%s1706_s26 + $0x48] sm:$0xff] (%p50_p3)  ;;  %s1711_s27 = scalar_lea.vmem (%p50_p3), [#allocation3], %s1505_s23  ;;  %v198_v4 = vld [vmem:[%s1706_s26 + $0x90] sm:$0xff] (%p50_p3) }
  0x11   : > { %v192_v1 = vld [vmem:[%s1706_s26 + $0x24] sm:$0xff]  ;;  %191 = vst [vmem:[%s1711_s27] sm:$0xff] %v190_v0  ;;  %195 = vst [vmem:[%s1711_s27 + $0x18] sm:$0xff] %v194_v2  ;;  %v196_v3 = vld [vmem:[%s1706_s26 + $0x6c] sm:$0xff] }
  0x12   : > { %193 = vst [vmem:[%s1711_s27 + $0xc] sm:$0xff] %v192_v1  ;;  %v200_v5 = vld [vmem:[%s1706_s26 + $0xb4] sm:$0xff]  ;;  %197 = vst [vmem:[%s1711_s27 + $0x24] sm:$0xff] %v196_v3  ;;  %v204_v7 = vld [vmem:[%s1706_s26 + $0xfc] sm:$0xff] }
  0x13   : > { %199 = vst [vmem:[%s1711_s27 + $0x30] sm:$0xff] %v198_v4  ;;  %201 = vst [vmem:[%s1711_s27 + $0x3c] sm:$0xff] %v200_v5  ;;  %v202_v6 = vld [vmem:[%s1706_s26 + $0xd8] sm:$0xff]  ;;  %v206_v8 = vld [vmem:[%s1706_s26 + $0x120] sm:$0xff] }
  0x14   : > { %203 = vst [vmem:[%s1711_s27 + $0x48] sm:$0xff] %v202_v6  ;;  %205 = vst [vmem:[%s1711_s27 + $0x54] sm:$0xff] %v204_v7  ;;  %v208_v9 = vld [vmem:[%s1706_s26 + $0x144] sm:$0xff]  ;;  %v212_v11 = vld [vmem:[%s1706_s26 + $0x18c] sm:$0xff] }
  0x15   : > { %207 = vst [vmem:[%s1711_s27 + $0x60] sm:$0xff] %v206_v8  ;;  %v210_v10 = vld [vmem:[%s1706_s26 + $0x168] sm:$0xff]  ;;  %209 = vst [vmem:[%s1711_s27 + $0x6c] sm:$0xff] %v208_v9  ;;  %v214_v12 = vld [vmem:[%s1706_s26 + $0x1b0] sm:$0xff] }
  0x16   : > { %211 = vst [vmem:[%s1711_s27 + $0x78] sm:$0xff] %v210_v10  ;;  %213 = vst [vmem:[%s1711_s27 + $0x84] sm:$0xff] %v212_v11  ;;  %v216_v13 = vld [vmem:[%s1706_s26 + $0x1d4] sm:$0xff]  ;;  %v220_v15 = vld [vmem:[%s1706_s26 + $0x21c] sm:$0xff] }
  0x17   : > { %v218_v14 = vld [vmem:[%s1706_s26 + $0x1f8] sm:$0xff]  ;;  %215 = vst [vmem:[%s1711_s27 + $0x90] sm:$0xff] %v214_v12  ;;  %217 = vst [vmem:[%s1711_s27 + $0x9c] sm:$0xff] %v216_v13  ;;  %v1223_v16 = vld [vmem:[%s1706_s26 + $0x8] sm:$0xf] }
  0x18   : > { %219 = vst [vmem:[%s1711_s27 + $0xa8] sm:$0xff] %v218_v14  ;;  %v1225_v17 = vld [vmem:[%s1706_s26 + $0x2c] sm:$0xf]  ;;  %221 = vst [vmem:[%s1711_s27 + $0xb4] sm:$0xff] %v220_v15  ;;  %v1227_v18 = vld [vmem:[%s1706_s26 + $0x50] sm:$0xf] }
  0x19   : > { %1224 = vst [vmem:[%s1711_s27 + $0x8] sm:$0xf] %v1223_v16  ;;  %1226 = vst [vmem:[%s1711_s27 + $0x14] sm:$0xf] %v1225_v17  ;;  %v1229_v19 = vld [vmem:[%s1706_s26 + $0x74] sm:$0xf] }
  0x1a   : > { %v1231_v20 = vld [vmem:[%s1706_s26 + $0x98] sm:$0xf]  ;;  %1228 = vst [vmem:[%s1711_s27 + $0x20] sm:$0xf] %v1227_v18  ;;  %1230 = vst [vmem:[%s1711_s27 + $0x2c] sm:$0xf] %v1229_v19 }
  0x1b   : > { %1232 = vst [vmem:[%s1711_s27 + $0x38] sm:$0xf] %v1231_v20  ;;  %v1233_v21 = vld [vmem:[%s1706_s26 + $0xbc] sm:$0xf]  ;;  %v1235_v22 = vld [vmem:[%s1706_s26 + $0xe0] sm:$0xf] }
  0x1c   : > { %v1237_v23 = vld [vmem:[%s1706_s26 + $0x104] sm:$0xf]  ;;  %1234 = vst [vmem:[%s1711_s27 + $0x44] sm:$0xf] %v1233_v21  ;;  %1236 = vst [vmem:[%s1711_s27 + $0x50] sm:$0xf] %v1235_v22 }
  0x1d   : > { %1238 = vst [vmem:[%s1711_s27 + $0x5c] sm:$0xf] %v1237_v23  ;;  %v1239_v24 = vld [vmem:[%s1706_s26 + $0x128] sm:$0xf]  ;;  %v1241_v25 = vld [vmem:[%s1706_s26 + $0x14c] sm:$0xf] }
  0x1e   : > { %v1243_v26 = vld [vmem:[%s1706_s26 + $0x170] sm:$0xf]  ;;  %1240 = vst [vmem:[%s1711_s27 + $0x68] sm:$0xf] %v1239_v24  ;;  %1242 = vst [vmem:[%s1711_s27 + $0x74] sm:$0xf] %v1241_v25 }
  0x1f   : > { %1244 = vst [vmem:[%s1711_s27 + $0x80] sm:$0xf] %v1243_v26  ;;  %v1245_v27 = vld [vmem:[%s1706_s26 + $0x194] sm:$0xf]  ;;  %v1247_v28 = vld [vmem:[%s1706_s26 + $0x1b8] sm:$0xf] }
  0x20   : > { %v1249_v29 = vld [vmem:[%s1706_s26 + $0x1dc] sm:$0xf]  ;;  %1246 = vst [vmem:[%s1711_s27 + $0x8c] sm:$0xf] %v1245_v27  ;;  %1248 = vst [vmem:[%s1711_s27 + $0x98] sm:$0xf] %v1247_v28 }
  0x21   : > { %1250 = vst [vmem:[%s1711_s27 + $0xa4] sm:$0xf] %v1249_v29  ;;  %v1251_v30 = vld [vmem:[%s1706_s26 + $0x200] sm:$0xf]  ;;  %v1253_v31 = vld [vmem:[%s1706_s26 + $0x224] sm:$0xf] }
  0x22   : > { %1252 = vst [vmem:[%s1711_s27 + $0xb0] sm:$0xf] %v1251_v30  ;;  %1254 = vst [vmem:[%s1711_s27 + $0xbc] sm:$0xf] %v1253_v31 }
  0x23 PF: > { %p1255_p6 = scmp.ge.s32.totalorder %s1641_s16, 1  ;;  %p278_p7 = scmp.lt.s32.totalorder %s1641_s16, 4 }
  0x25   : > { %p279_p8 = pnand %p1255_p6, %p278_p7 }
  0x26   : > { %s324_s28 = smul.u32 (!%p279_p8), 48, %s1633_s14  ;;  %s285_s29 = sand.u32 (!%p279_p8), 1, %s1625_s12  }
  0x27   : > { %282 = sbr.rel (%p279_p8) target bundleno = 387 (0x183), region = 54  ;;  %p1305_p10 = scmp.ne.s32.totalorder (!%p279_p8), %s1633_s14, 0 }
  0x28   : > { %s1506_s30 = smul.u32 (!%p279_p8), 192, %s285_s29  ;;  %p325_p9 = scmp.lt.s32.totalorder (!%p279_p8), %s324_s28, 143 }
  0x2a   : > { %s1778_s4 = scalar_lea.vmem (!%p279_p8), [#allocation3], %s1506_s30 }
  0x2c   : > { %s1953_s28 = smov (!%p325_p9, %s324_s28), 143  ;;  %v1573_v32 = vld [vmem:[%s1778_s4 + $0x4] ss:$12 sps:$4 sm:$0xff]   ;;  %v1574_v33 = vld [vmem:[%s1778_s4 + $0x8] ss:$12 sps:$4 sm:$0xff]  }
  0x2d   : > { %s1256_s5 = sshll.u32 %s1953_s28, 2  ;;  %730 = vmatprep.mubr.bf16.mxu0 %v1573_v32  ;;  %1489 = vmatprep.mubr.bf16.mxu1 %v1574_v33  ;;  %v1571_v58 = vld [vmem:[%s1778_s4] ss:$12 sps:$4 sm:$0xff]   ;;  %v1576_v59 = vld [vmem:[%s1778_s4 + $0x1c] ss:$12 sps:$4 sm:$0xff]  }
  0x2e   : > { %s1785_s8 = scalar_lea.vmem %s1943_s1, %s1256_s5  ;;  %v1575_v60 = vld [vmem:[%s1778_s4 + $0x20] ss:$12 sps:$4 sm:$0xff]   ;;  %v1582_v61 = vld [vmem:[%s1778_s4 + $0x38] ss:$12 sps:$4 sm:$0xff]   ;;  %v1583_v0 = vld [vmem:[%s1778_s4 + $0x50] ss:$12 sps:$4 sm:$0xff]  }
  0x2f   : > { %v1547_v34 = vld [vmem:[%s1785_s8 + $0x78] sm:$0xff]   ;;  %v1550_v37 = vld [vmem:[%s1785_s8 + $0x70] sm:$0xff]   ;;  %v1553_v40 = vld [vmem:[%s1785_s8 + $0x68] sm:$0xff]  }
  0x30   : > { %v1548_v35 = vld [vmem:[%s1785_s8 + $0x38] sm:$0xff]   ;;  %1393 = vmatprep.subr.bf16.mxu0 %v1547_v34  ;;  %v1551_v38 = vld [vmem:[%s1785_s8 + $0x30] sm:$0xff]   ;;  %v1554_v41 = vld [vmem:[%s1785_s8 + $0x28] sm:$0xff]  }
  0x31   : > { %v1549_v36 = vld [vmem:[%s1785_s8 + $0xb8] sm:$0xff]   ;;  %1394 = vmatpush3.bf16.msra.mxu0 %v1548_v35  ;;  %v1552_v39 = vld [vmem:[%s1785_s8 + $0xb0] sm:$0xff]   ;;  %v1555_v42 = vld [vmem:[%s1785_s8 + $0xa8] sm:$0xff]  }
  0x32   : > { %1473 = vmatprep.subr.bf16.mxu1 %v1549_v36  ;;  %1395 = vmatprep.subr.bf16.mxu0 %v1550_v37  ;;  %v1556_v43 = vld [vmem:[%s1785_s8 + $0x60] sm:$0xff]   ;;  %v1559_v46 = vld [vmem:[%s1785_s8 + $0x58] sm:$0xff]   ;;  %v1562_v49 = vld [vmem:[%s1785_s8 + $0x50] sm:$0xff]  }
  0x33   : > { %1474 = vmatpush3.bf16.msra.mxu1 %v1549_v36  ;;  %v1557_v44 = vld [vmem:[%s1785_s8 + $0x20] sm:$0xff]   ;;  %v1561_v47 = vld [vmem:[%s1785_s8 + $0x98] sm:$0xff]   ;;  %v1564_v50 = vld [vmem:[%s1785_s8 + $0x90] sm:$0xff]  }
  0x34   : > { %1475 = vmatprep.subr.bf16.mxu1 %v1552_v39  ;;  %v1558_v45 = vld [vmem:[%s1785_s8 + $0xa0] sm:$0xff]   ;;  %v1560_v48 = vld [vmem:[%s1785_s8 + $0x18] sm:$0xff]   ;;  %v1563_v51 = vld [vmem:[%s1785_s8 + $0x10] sm:$0xff]  }
  0x35   : > { %1396 = vmatpush3.bf16.msra.mxu0 %v1551_v38  ;;  %v1565_v52 = vld [vmem:[%s1785_s8 + $0x48] sm:$0xff]   ;;  %v1568_v55 = vld [vmem:[%s1785_s8 + $0x40] sm:$0xff]   ;;  %v1581_v2 = vld [vmem:[%s1778_s4 + $0x30] ss:$12 sps:$4 sm:$0xff]  }
  0x36   : > { %1397 = vmatprep.subr.bf16.mxu0 %v1553_v40  ;;  %v1567_v53 = vld [vmem:[%s1785_s8 + $0x88] sm:$0xff]   ;;  %v1570_v56 = vld [vmem:[%s1785_s8 + $0x80] sm:$0xff]   ;;  %v1599_v8 = vld [vmem:[%s1778_s4 + $0xb0] ss:$12 sps:$4 sm:$0xff]  }
  0x37   : > { %1476 = vmatpush3.bf16.msra.mxu1 %v1552_v39  ;;  %v1566_v54 = vld [vmem:[%s1785_s8 + $0x8] sm:$0xff]   ;;  %v1569_v57 = vld [vmem:[%s1785_s8] sm:$0xff]   ;;  %v1597_v13 = vld [vmem:[%s1778_s4 + $0x90] ss:$12 sps:$4 sm:$0xff]  }
  0x38   : > { %1477 = vmatprep.subr.bf16.mxu1 %v1555_v42  ;;  %v1578_v62 = vld [vmem:[%s1778_s4 + $0x18] ss:$12 sps:$4 sm:$0xff]   ;;  %v1579_v63 = vld [vmem:[%s1778_s4 + $0x34] ss:$12 sps:$4 sm:$0xff]   ;;  %v1592_v10 = vld [vmem:[%s1778_s4 + $0x7c] ss:$12 sps:$4 sm:$0xff]  }
  0x39   : > { %1398 = vmatpush3.bf16.msra.mxu0 %v1554_v41  ;;  %v1590_v1 = vld [vmem:[%s1778_s4 + $0x68] ss:$12 sps:$4 sm:$0xff]   ;;  %v1584_v3 = vld [vmem:[%s1778_s4 + $0x4c] ss:$12 sps:$4 sm:$0xff]   ;;  %v1587_v7 = vld [vmem:[%s1778_s4 + $0x64] ss:$12 sps:$4 sm:$0xff]  }
  0x3a   : > { %1399 = vmatprep.subr.bf16.mxu0 %v1556_v43  ;;  %v1591_v4 = vld [vmem:[%s1778_s4 + $0x80] ss:$12 sps:$4 sm:$0xff]   ;;  %v1598_v5 = vld [vmem:[%s1778_s4 + $0x98] ss:$12 sps:$4 sm:$0xff]   ;;  %v1586_v6 = vld [vmem:[%s1778_s4 + $0x48] ss:$12 sps:$4 sm:$0xff]  }
  0x3b   : > { %1478 = vmatpush3.bf16.msra.mxu1 %v1555_v42  ;;  %v1589_v9 = vld [vmem:[%s1778_s4 + $0x60] ss:$12 sps:$4 sm:$0xff]   ;;  %v1594_v11 = vld [vmem:[%s1778_s4 + $0x78] ss:$12 sps:$4 sm:$0xff]   ;;  %v1602_v15 = vld [vmem:[%s1778_s4 + $0xa8] ss:$12 sps:$4 sm:$0xff]  }
  0x3c   : > { %1479 = vmatprep.subr.bf16.mxu1 %v1558_v45  ;;  %v1595_v12 = vld [vmem:[%s1778_s4 + $0x94] ss:$12 sps:$4 sm:$0xff]   ;;  %v1600_v14 = vld [vmem:[%s1778_s4 + $0xac] ss:$12 sps:$4 sm:$0xff]  }
  0x3d   : > { %1400 = vmatpush3.bf16.msra.mxu0 %v1557_v44 }
  0x3e   : > { %1401 = vmatprep.subr.bf16.mxu0 %v1559_v46 }
  0x3f   : > { %1480 = vmatpush3.bf16.msra.mxu1 %v1558_v45 }
  0x40   : > { %1481 = vmatprep.subr.bf16.mxu1 %v1561_v47 }
  0x41   : > { %1402 = vmatpush3.bf16.msra.mxu0 %v1560_v48 }
  0x42   : > { %1403 = vmatprep.subr.bf16.mxu0 %v1562_v49 }
  0x43   : > { %1482 = vmatpush3.bf16.msra.mxu1 %v1561_v47 }
  0x44   : > { %1483 = vmatprep.subr.bf16.mxu1 %v1564_v50 }
  0x45   : > { %1404 = vmatpush3.bf16.msra.mxu0 %v1563_v51 }
  0x46   : > { %1405 = vmatprep.subr.bf16.mxu0 %v1565_v52 }
  0x47   : > { %1484 = vmatpush3.bf16.msra.mxu1 %v1564_v50 }
  0x48   : > { %1485 = vmatprep.subr.bf16.mxu1 %v1567_v53 }
  0x49   : > { %1406 = vmatpush3.bf16.msra.mxu0 %v1566_v54 }
  0x4a   : > { %1407 = vmatprep.subr.bf16.mxu0 %v1568_v55 }
  0x4b   : > { %1486 = vmatpush3.bf16.msra.mxu1 %v1567_v53 }
  0x4c   : > { %1487 = vmatprep.subr.bf16.mxu1 %v1570_v56 }
  0x4d   : > { %1408 = vmatpush3.bf16.msra.mxu0 %v1569_v57 }
  0x4f   : > { %1488 = vmatpush3.bf16.msra.mxu1 %v1570_v56 }
  0x50   : > { %731 = vmatmul.mubr.bf16.vlgmr.msra.gmra.mxu0 %v1571_v58 }
  0x51   : > { %738 = vmatprep.mubr.bf16.mxu0 %v1576_v59 }
  0x52   : > { %1490 = vmatmul.mubr.bf16.vlgmr.msra.gmra.mxu1 %v1575_v60 }
  0x53   : > { %1493 = vmatprep.mubr.bf16.mxu1 %v1582_v61 }
  0x58   : > { %739 = vmatmul.mubr.bf16.gmra.mxu0 %v1578_v62 }
  0x59   : > { %746 = vmatprep.mubr.bf16.mxu0 %v1579_v63 }
  0x5a   : > { %1494 = vmatmul.mubr.bf16.gmra.mxu1 %v1583_v0 }
  0x5b   : > { %1497 = vmatprep.mubr.bf16.mxu1 %v1590_v1 }
  0x60   : > { %747 = vmatmul.mubr.bf16.gmra.mxu0 %v1581_v2 }
  0x61   : > { %754 = vmatprep.mubr.bf16.mxu0 %v1584_v3 }
  0x62   : > { %1498 = vmatmul.mubr.bf16.gmra.mxu1 %v1591_v4 }
  0x63   : > { %1501 = vmatprep.mubr.bf16.mxu1 %v1598_v5 }
  0x68   : > { %755 = vmatmul.mubr.bf16.gmra.mxu0 %v1586_v6 }
  0x69   : > { %762 = vmatprep.mubr.bf16.mxu0 %v1587_v7 }
  0x6a   : > { %1502 = vmatmul.mubr.bf16.gmra.mxu1 %v1599_v8 }
  0x70   : > { %763 = vmatmul.mubr.bf16.gmra.mxu0 %v1589_v9 }
  0x71   : > { %770 = vmatprep.mubr.bf16.mxu0 %v1592_v10 }
  0x78   : > { %771 = vmatmul.mubr.bf16.gmra.mxu0 %v1594_v11 }
  0x79   : > { %778 = vmatprep.mubr.bf16.mxu0 %v1595_v12 }
  0x80   : > { %779 = vmatmul.mubr.bf16.gmra.mxu0 %v1597_v13 }
  0x81   : > { %786 = vmatprep.mubr.bf16.mxu0 %v1600_v14 }
  0x88   : > { %787 = vmatmul.mubr.bf16.gmra.mxu0 %v1602_v15 }
 0x110   : > { %v1409_v16 = vpop.f32.mrf.mxu0 }
 0x112   : > { %v1410_v17 = vpop.f32.mrf.mxu0  ;;  %v1491_v18 = vpop.f32.mrf.mxu1 }
 0x113   : > { %v1411_v19 = vadd.f32 %v1410_v17, %v1409_v16 }
 0x114   : > { %v1412_v20 = vpop.f32.mrf.mxu0  ;;  %v829_v21 = vpop.f32.mrf.mxu1 }
 0x115   : > { %v1833_v22 = vadd.f32 %v1411_v19, %v829_v21 }
 0x116   : > { %v1413_v23 = vpop.f32.mrf.mxu0  ;;  %v1492_v24 = vpop.f32.mrf.mxu1 }
 0x117   : > { %v1414_v25 = vadd.f32 %v1413_v23, %v1412_v20 }
 0x118   : > { %v1415_v26 = vpop.f32.mrf.mxu0  ;;  %v832_v27 = vpop.f32.mrf.mxu1 }
 0x119   : > { %v1835_v28 = vadd.f32 %v1414_v25, %v832_v27 }
 0x11a   : > { %v1416_v29 = vpop.f32.mrf.mxu0  ;;  %v1495_v30 = vpop.f32.mrf.mxu1 }
 0x11b   : > { %v1417_v31 = vadd.f32 %v1416_v29, %v1415_v26 }
 0x11c   : > { %v1418_v32 = vpop.f32.mrf.mxu0  ;;  %v845_v35 = vpop.f32.mrf.mxu1 }
 0x11d   : > { %v1837_v33 = vadd.f32 %v1491_v18, %v1417_v31 }
 0x11e   : > { %v1419_v34 = vpop.f32.mrf.mxu0  ;;  %v1496_v40 = vpop.f32.mrf.mxu1 }
 0x11f   : > { %v1420_v36 = vadd.f32 %v1419_v34, %v1418_v32 }
 0x120   : > { %v1421_v37 = vpop.f32.mrf.mxu0  ;;  %v848_v45 = vpop.f32.mrf.mxu1 }
 0x121   : > { %v1839_v38 = vadd.f32 %v1492_v24, %v1420_v36 }
 0x122   : > { %v1422_v39 = vpop.f32.mrf.mxu0  ;;  %v1499_v50 = vpop.f32.mrf.mxu1 }
 0x123   : > { %v1423_v41 = vadd.f32 %v1422_v39, %v1421_v37 }
 0x124   : > { %v1424_v42 = vpop.f32.mrf.mxu0  ;;  %v861_v55 = vpop.f32.mrf.mxu1 }
 0x125   : > { %v1841_v43 = vadd.f32 %v1423_v41, %v845_v35 }
 0x126   : > { %v1425_v44 = vpop.f32.mrf.mxu0  ;;  %v1500_v60 = vpop.f32.mrf.mxu1 }
 0x127   : > { %v1426_v46 = vadd.f32 %v1425_v44, %v1424_v42 }
 0x128   : > { %v1427_v47 = vpop.f32.mrf.mxu0  ;;  %v864_v1 = vpop.f32.mrf.mxu1 }
 0x129   : > { %v1843_v48 = vadd.f32 %v1426_v46, %v848_v45 }
 0x12a   : > { %v1428_v49 = vpop.f32.mrf.mxu0  ;;  %v1503_v6 = vpop.f32.mrf.mxu1 }
 0x12b   : > { %v1429_v51 = vadd.f32 %v1428_v49, %v1427_v47 }
 0x12c   : > { %v1430_v52 = vpop.f32.mrf.mxu0  ;;  %v877_v11 = vpop.f32.mrf.mxu1 }
 0x12d   : > { %v1845_v53 = vadd.f32 %v1495_v30, %v1429_v51 }
 0x12e   : > { %v1431_v54 = vpop.f32.mrf.mxu0  ;;  %v1504_v16 = vpop.f32.mrf.mxu1 }
 0x12f   : > { %v1432_v56 = vadd.f32 %v1431_v54, %v1430_v52 }
 0x130   : > { %v1433_v57 = vpop.f32.mrf.mxu0  ;;  %v880_v21 = vpop.f32.mrf.mxu1 }
 0x131   : > { %v1847_v58 = vadd.f32 %v1496_v40, %v1432_v56 }
 0x132   : > { %v1434_v59 = vpop.f32.mrf.mxu0 }
 0x133   : > { %v1435_v61 = vadd.f32 %v1434_v59, %v1433_v57 }
 0x134   : > { %v1436_v62 = vpop.f32.mrf.mxu0 }
 0x135   : > { %v1849_v63 = vadd.f32 %v1435_v61, %v861_v55 }
 0x136   : > { %v1437_v0 = vpop.f32.mrf.mxu0 }
 0x137   : > { %v1438_v2 = vadd.f32 %v1437_v0, %v1436_v62 }
 0x138   : > { %v1439_v3 = vpop.f32.mrf.mxu0 }
 0x139   : > { %v1851_v4 = vadd.f32 %v1438_v2, %v864_v1 }
 0x13a   : > { %v1440_v5 = vpop.f32.mrf.mxu0 }
 0x13b   : > { %v1441_v7 = vadd.f32 %v1440_v5, %v1439_v3 }
 0x13c   : > { %v1442_v8 = vpop.f32.mrf.mxu0 }
 0x13d   : > { %v1853_v9 = vadd.f32 %v1499_v50, %v1441_v7 }
 0x13e   : > { %v1443_v10 = vpop.f32.mrf.mxu0 }
 0x13f   : > { %v1444_v12 = vadd.f32 %v1443_v10, %v1442_v8 }
 0x140   : > { %v1445_v13 = vpop.f32.mrf.mxu0 }
 0x141   : > { %v1855_v14 = vadd.f32 %v1500_v60, %v1444_v12 }
 0x142   : > { %v1446_v15 = vpop.f32.mrf.mxu0 }
 0x143   : > { %v1447_v17 = vadd.f32 %v1446_v15, %v1445_v13 }
 0x144   : > { %v1448_v18 = vpop.f32.mrf.mxu0 }
 0x145   : > { %v1857_v19 = vadd.f32 %v1447_v17, %v877_v11 }
 0x146   : > { %v1449_v20 = vpop.f32.mrf.mxu0 }
 0x147   : > { %v1450_v23 = vadd.f32 %v1449_v20, %v1448_v18 }
 0x148   : > { %v1451_v24 = vpop.f32.mrf.mxu0 }
 0x149   : > { %v1859_v25 = vadd.f32 %v1450_v23, %v880_v21 }
 0x14a   : > { %v1452_v26 = vpop.f32.mrf.mxu0 }
 0x14b   : > { %v1453_v27 = vadd.f32 %v1452_v26, %v1451_v24 }
 0x14c   : > { %v1454_v29 = vpop.f32.mrf.mxu0 }
 0x14d   : > { %v1861_v30 = vadd.f32 %v1503_v6, %v1453_v27  ;;  %895 = sbr.rel (%p1305_p10) target bundleno = 346 (0x15a), region = 62 }
 0x14e   : > { %v1455_v31 = vpop.f32.mrf.mxu0 }
 0x14f   : > { %v1456_v32 = vadd.f32 %v1455_v31, %v1454_v29 }
 0x151   : > { %v1863_v34 = vadd.f32 %v1504_v16, %v1456_v32 }
 0x152   : > { %896 = vst [vmem:[#allocation2 + $0x30] sm:$0xff] %v1833_v22  ;;  %897 = vst [vmem:[#allocation2] sm:$0xff] %v1835_v28 }
 0x153   : > { %898 = vst [vmem:[#allocation2 + $0x58] sm:$0xff] %v1837_v33  ;;  %899 = vst [vmem:[#allocation2 + $0x18] sm:$0xff] %v1839_v38 }
 0x154   : > { %900 = vst [vmem:[#allocation2 + $0x50] sm:$0xff] %v1841_v43  ;;  %901 = vst [vmem:[#allocation2 + $0x68] sm:$0xff] %v1843_v48 }
 0x155   : > { %902 = vst [vmem:[#allocation2 + $0x8] sm:$0xff] %v1845_v53  ;;  %903 = vst [vmem:[#allocation2 + $0x48] sm:$0xff] %v1847_v58 }
 0x156   : > { %904 = vst [vmem:[#allocation2 + $0x40] sm:$0xff] %v1849_v63  ;;  %905 = vst [vmem:[#allocation2 + $0x20] sm:$0xff] %v1851_v4 }
 0x157   : > { %906 = vst [vmem:[#allocation2 + $0x10] sm:$0xff] %v1853_v9  ;;  %907 = vst [vmem:[#allocation2 + $0x38] sm:$0xff] %v1855_v14 }
 0x158   : > { %908 = vst [vmem:[#allocation2 + $0x60] sm:$0xff] %v1857_v19  ;;  %909 = vst [vmem:[#allocation2 + $0x70] sm:$0xff] %v1859_v25 }
 0x159   : > { %910 = vst [vmem:[#allocation2 + $0x78] sm:$0xff] %v1861_v30  ;;  %911 = vst [vmem:[#allocation2 + $0x28] sm:$0xff] %v1863_v34 }
 0x15a PF: > { %p1306_p11 = scmp.le.s32.totalorder %s1633_s14, 0 }
 0x15c   : > { %915 = sbr.rel (%p1306_p11) target bundleno = 364 (0x16c), region = 66 }
 0x161   : > { %v916_v35 = vld [vmem:[#allocation2 + $0x30] sm:$0xff]  ;;  %v917_v36 = vld [vmem:[#allocation2] sm:$0xff]  ;;  %v918_v37 = vld [vmem:[#allocation2 + $0x58] sm:$0xff] }
 0x162   : > { %v932_v39 = vadd.f32 %v916_v35, %v1833_v22  ;;  %v933_v40 = vadd.f32 %v917_v36, %v1835_v28  ;;  %v934_v41 = vadd.f32 %v918_v37, %v1837_v33  ;;  %v919_v42 = vld [vmem:[#allocation2 + $0x18] sm:$0xff]  ;;  %v920_v44 = vld [vmem:[#allocation2 + $0x50] sm:$0xff]  ;;  %v921_v45 = vld [vmem:[#allocation2 + $0x68] sm:$0xff] }
 0x163   : > { %v935_v46 = vadd.f32 %v919_v42, %v1839_v38  ;;  %v936_v47 = vadd.f32 %v920_v44, %v1841_v43  ;;  %v937_v49 = vadd.f32 %v921_v45, %v1843_v48  ;;  %v922_v50 = vld [vmem:[#allocation2 + $0x8] sm:$0xff]  ;;  %v924_v52 = vld [vmem:[#allocation2 + $0x40] sm:$0xff]  ;;  %v926_v55 = vld [vmem:[#allocation2 + $0x10] sm:$0xff] }
 0x164   : > { %v923_v51 = vld [vmem:[#allocation2 + $0x48] sm:$0xff]  ;;  %948 = vst [vmem:[#allocation2 + $0x30] sm:$0xff] %v932_v39  ;;  %949 = vst [vmem:[#allocation2] sm:$0xff] %v933_v40  ;;  %v938_v22 = vadd.f32 %v922_v50, %v1845_v53  ;;  %v940_v33 = vadd.f32 %v924_v52, %v1849_v63  ;;  %v925_v54 = vld [vmem:[#allocation2 + $0x20] sm:$0xff]  ;;  %v942_v43 = vadd.f32 %v926_v55, %v1853_v9 }
 0x165   : > { %950 = vst [vmem:[#allocation2 + $0x58] sm:$0xff] %v934_v41  ;;  %v939_v28 = vadd.f32 %v923_v51, %v1847_v58  ;;  %v927_v56 = vld [vmem:[#allocation2 + $0x38] sm:$0xff]  ;;  %951 = vst [vmem:[#allocation2 + $0x18] sm:$0xff] %v935_v46  ;;  %v941_v38 = vadd.f32 %v925_v54, %v1851_v4  ;;  %v928_v57 = vld [vmem:[#allocation2 + $0x60] sm:$0xff] }
 0x166   : > { %952 = vst [vmem:[#allocation2 + $0x50] sm:$0xff] %v936_v47  ;;  %953 = vst [vmem:[#allocation2 + $0x68] sm:$0xff] %v937_v49  ;;  %v943_v48 = vadd.f32 %v927_v56, %v1855_v14  ;;  %v929_v59 = vld [vmem:[#allocation2 + $0x70] sm:$0xff]  ;;  %v930_v60 = vld [vmem:[#allocation2 + $0x78] sm:$0xff]  ;;  %v944_v53 = vadd.f32 %v928_v57, %v1857_v19 }
 0x167   : > { %954 = vst [vmem:[#allocation2 + $0x8] sm:$0xff] %v938_v22  ;;  %955 = vst [vmem:[#allocation2 + $0x48] sm:$0xff] %v939_v28  ;;  %v945_v58 = vadd.f32 %v929_v59, %v1859_v25  ;;  %v946_v61 = vadd.f32 %v930_v60, %v1861_v30  ;;  %v931_v62 = vld [vmem:[#allocation2 + $0x28] sm:$0xff] }
 0x168   : > { %956 = vst [vmem:[#allocation2 + $0x40] sm:$0xff] %v940_v33  ;;  %957 = vst [vmem:[#allocation2 + $0x20] sm:$0xff] %v941_v38  ;;  %v947_v63 = vadd.f32 %v931_v62, %v1863_v34 }
 0x169   : > { %958 = vst [vmem:[#allocation2 + $0x10] sm:$0xff] %v942_v43  ;;  %959 = vst [vmem:[#allocation2 + $0x38] sm:$0xff] %v943_v48 }
 0x16a   : > { %960 = vst [vmem:[#allocation2 + $0x60] sm:$0xff] %v944_v53  ;;  %961 = vst [vmem:[#allocation2 + $0x70] sm:$0xff] %v945_v58 }
 0x16b   : > { %962 = vst [vmem:[#allocation2 + $0x78] sm:$0xff] %v946_v61  ;;  %963 = vst [vmem:[#allocation2 + $0x28] sm:$0xff] %v947_v63 }
 0x16c PF: > { %p1307_p12 = scmp.ne.s32.totalorder %s1633_s14, 2 }
 0x16e   : > { %967 = sbr.rel (%p1307_p12) target bundleno = 387 (0x183), region = 70 }
 0x173   : > { %v968_v0 = vld [vmem:[#allocation2 + $0x30] sm:$0xff]  ;;  %v969_v1 = vld [vmem:[#allocation2] sm:$0xff]  ;;  %v970_v5 = vld [vmem:[#allocation2 + $0x58] sm:$0xff] }
 0x174   : > { %v1308_v2 = vld [vmem:[%s1944_s2] ss:$0 sm:$0xff]  ;;  %v971_v6 = vld [vmem:[#allocation2 + $0x18] sm:$0xff]  ;;  %v972_v7 = vld [vmem:[#allocation2 + $0x50] sm:$0xff] }
 0x175   : > { %v991_v3 = vadd.f32 %v1308_v2, %v968_v0  ;;  %v992_v4 = vadd.f32 %v1308_v2, %v969_v1  ;;  %v993_v8 = vadd.f32 %v1308_v2, %v970_v5  ;;  %v994_v9 = vadd.f32 %v1308_v2, %v971_v6  ;;  %v973_v10 = vld [vmem:[#allocation2 + $0x68] sm:$0xff]  ;;  %v976_v18 = vld [vmem:[#allocation2 + $0x40] sm:$0xff]  ;;  %v978_v20 = vld [vmem:[#allocation2 + $0x10] sm:$0xff] }
 0x176   : > { %v995_v11 = vadd.f32 %v1308_v2, %v972_v7  ;;  %v974_v12 = vld [vmem:[#allocation2 + $0x8] sm:$0xff]  ;;  %v996_v16 = vadd.f32 %v1308_v2, %v973_v10  ;;  %v977_v19 = vld [vmem:[#allocation2 + $0x20] sm:$0xff]  ;;  %v979_v26 = vld [vmem:[#allocation2 + $0x38] sm:$0xff]  ;;  %v999_v32 = vadd.f32 %v1308_v2, %v976_v18  ;;  %v1001_v39 = vadd.f32 %v1308_v2, %v978_v20 }
 0x177   : > { %v975_v13 = vld [vmem:[#allocation2 + $0x48] sm:$0xff]  ;;  %v1007_v14 = vmax.f32 %v991_v3, 0.0  ;;  %v1008_v15 = vmax.f32 %v992_v4, 0.0  ;;  %v997_v17 = vadd.f32 %v1308_v2, %v974_v12  ;;  %v1009_v21 = vmax.f32 %v993_v8, 0.0  ;;  %v980_v27 = vld [vmem:[#allocation2 + $0x60] sm:$0xff]  ;;  %v981_v34 = vld [vmem:[#allocation2 + $0x70] sm:$0xff] }
 0x178   : > { %v1010_v23 = vmax.f32 %v994_v9, 0.0  ;;  %v1011_v24 = vmax.f32 %v995_v11, 0.0  ;;  %v998_v25 = vadd.f32 %v1308_v2, %v975_v13  ;;  %v1012_v30 = vmax.f32 %v996_v16, 0.0  ;;  %v982_v40 = vld [vmem:[#allocation2 + $0x78] sm:$0xff]  ;;  %v983_v41 = vld [vmem:[#allocation2 + $0x28] sm:$0xff] }
 0x179   : > { %v1349_v29 = vpack.c.bf16 %v1008_v15, %v1007_v14  ;;  %v1013_v31 = vmax.f32 %v997_v17, 0.0  ;;  %v1000_v37 = vadd.f32 %v1308_v2, %v977_v19  ;;  %v1015_v44 = vmax.f32 %v999_v32, 0.0 }
 0x17a   : > { %v1354_v35 = vpack.c.bf16 %v1010_v23, %v1009_v21  ;;  %v1014_v36 = vmax.f32 %v998_v25, 0.0  ;;  %v1359_v42 = vpack.c.bf16 %v1012_v30, %v1011_v24  ;;  %v1002_v45 = vadd.f32 %v1308_v2, %v979_v26 }
 0x17b   : > { %1350 = vst [vmem:[%s1945_s3] sm:$0xff] %v1349_v29   ;;  %v1003_v46 = vadd.f32 %v1308_v2, %v980_v27  ;;  %v1016_v49 = vmax.f32 %v1000_v37, 0.0  ;;  %v1017_v50 = vmax.f32 %v1001_v39, 0.0  ;;  %v1004_v51 = vadd.f32 %v1308_v2, %v981_v34 }
 0x17c   : > { %1386 = vst [vmem:[%s1945_s3 + $0x8] sm:$0xff] %v1354_v35   ;;  %v1364_v47 = vpack.c.bf16 %v1014_v36, %v1013_v31  ;;  %1387 = vst [vmem:[%s1945_s3 + $0x10] sm:$0xff] %v1359_v42   ;;  %v1018_v52 = vmax.f32 %v1002_v45, 0.0  ;;  %v1005_v28 = vadd.f32 %v1308_v2, %v982_v40  ;;  %v1006_v33 = vadd.f32 %v1308_v2, %v983_v41 }
 0x17d   : > { %v1019_v22 = vmax.f32 %v1003_v46, 0.0  ;;  %v1369_v54 = vpack.c.bf16 %v1016_v49, %v1015_v44  ;;  %v1020_v55 = vmax.f32 %v1004_v51, 0.0 }
 0x17e   : > { %1388 = vst [vmem:[%s1945_s3 + $0x18] sm:$0xff] %v1364_v47   ;;  %v1374_v56 = vpack.c.bf16 %v1018_v52, %v1017_v50  ;;  %v1021_v38 = vmax.f32 %v1005_v28, 0.0  ;;  %v1022_v43 = vmax.f32 %v1006_v33, 0.0 }
 0x17f   : > { %1389 = vst [vmem:[%s1945_s3 + $0x20] sm:$0xff] %v1369_v54   ;;  %v1379_v48 = vpack.c.bf16 %v1020_v55, %v1019_v22 }
 0x180   : > { %1390 = vst [vmem:[%s1945_s3 + $0x28] sm:$0xff] %v1374_v56   ;;  %v1384_v57 = vpack.c.bf16 %v1022_v43, %v1021_v38 }
 0x181   : > { %1391 = vst [vmem:[%s1945_s3 + $0x30] sm:$0xff] %v1379_v48  }
 0x182   : > { %1392 = vst [vmem:[%s1945_s3 + $0x38] sm:$0xff] %v1384_v57  }
 0x183 PF: > { %s13_s16 = sadd.s32 1, %s1641_s16   ;;  %s1946_s12 = smov %s1629_s13 }
 0x184   : > { %p10_p13 = scmp.ge.s32.totalorder %s13_s16, 5   ;;  %s1947_s13 = smov %s1698_s20 }
 0x185   : > { %s1948_s14 = smov %s1637_s15  ;;  %s1949_s15 = smov %s1951_s17 }
 0x186   :  { %12 = sbr.rel (!%p10_p13) target bundleno = 3 (0x3), region = 117 }

// kernel: resnet_forward.23
= control target key start
LH: loop header
LB: loop body
LE: loop exit
PB: predicated region body
PF: predicated region fallthrough
CT: control target
= control target key end

     0   :  { %s1834_s15 = smov 0   ;;  %s1836_s16 = smov 0   ;;  %s2155_s0 = inlined_call_operand.vmem [shape: bf16[128,1152], index: 0, kind: input, shape index: {}]   ;;  %s2156_s1 = inlined_call_operand.vmem [shape: bf16[1152,128], index: 1, kind: input, shape index: {}]   ;;  %s2157_s2 = inlined_call_operand.vmem [shape: f32[1,128], index: 2, kind: input, shape index: {}]   ;;  %s2158_s3 = inlined_call_operand.vmem [shape: bf16[128,128], index: 3, kind: input, shape index: {}]   ;;  %s2159_s4 = inlined_call_operand.vmem [shape: bf16[128,128], index: 4, kind: output, shape index: {}]  }
   0x1   :  { %s1838_s17 = smov 0   ;;  %s1840_s18 = smov 0  }
   0x2   :  { %s1842_s19 = smov 0  }
   0x3 LB: > { %s26_s20 = sadd.s32 1, %s1803_s18  ;;  %p49_p1 = scmp.ne.s32.totalorder %s1795_s16, %s1791_s15  ;;  %s1807_s19 = sphi %s1842_s19, %s14_s19   ;;  %s1803_s18 = sphi %s1840_s18, %s2163_s18   ;;  %s1799_s17 = sphi %s1838_s17, %s2162_s17   ;;  %s1795_s16 = sphi %s1836_s16, %s2161_s16   ;;  %s1791_s15 = sphi %s1834_s15, %s2160_s15  }
   0x4   : > { %p27_p0 = scmp.ge.s32.totalorder %s26_s20, 3  ;;  %p50_p2 = scmp.eq.s32.totalorder %s1807_s19, 0 }
   0x5   : > { %s42_s22 = sadd.s32 1, %s1795_s16  ;;  %p1348_p5 = scmp.ge.s32.totalorder %s1807_s19, 3 }
   0x6   : > { %s2165_s20 = smov (%p27_p0, %s26_s20), 0  ;;  %p51_p3 = por %p50_p2, %p49_p1 }
   0x7   : > { %s38_s21 = ssub.s32 %s1803_s18, %s2165_s20  ;;  %203 = sbr.rel (%p1348_p5) target bundleno = 35 (0x23), region = 24 }
   0x8   : > { %p40_p4 = scmp.eq.s32.totalorder %s38_s21, 0 }
   0xa   : > { %s1869_s23 = scalar_select %p40_p4, %s1795_s16, %s42_s22  }
   0xc   : > { %206 = sbr.rel (!%p51_p3) target bundleno = 35 (0x23), region = 28  ;;  %s208_s24 = sand.u32 (%p51_p3), 1, %s1795_s16  }
   0xd   : > { %s1456_s25 = smul.u32 (%p51_p3), 12, %s1803_s18 }
   0xe   : > { %s1671_s26 = smul.u32 (%p51_p3), 192, %s208_s24 }
   0xf   : > { %s1877_s29 = scalar_lea.vmem (%p51_p3), %s2155_s0, %s1456_s25 }
  0x10   : > { %v231_v0 = vld [vmem:[%s1877_s29] sm:$0xff] (%p51_p3)  ;;  %v235_v2 = vld [vmem:[%s1877_s29 + $0x48] sm:$0xff] (%p51_p3)  ;;  %s1882_s30 = scalar_lea.vmem (%p51_p3), [#allocation3], %s1671_s26  ;;  %v239_v4 = vld [vmem:[%s1877_s29 + $0x90] sm:$0xff] (%p51_p3) }
  0x11   : > { %v233_v1 = vld [vmem:[%s1877_s29 + $0x24] sm:$0xff]  ;;  %232 = vst [vmem:[%s1882_s30] sm:$0xff] %v231_v0  ;;  %236 = vst [vmem:[%s1882_s30 + $0x18] sm:$0xff] %v235_v2  ;;  %v237_v3 = vld [vmem:[%s1877_s29 + $0x6c] sm:$0xff] }
  0x12   : > { %234 = vst [vmem:[%s1882_s30 + $0xc] sm:$0xff] %v233_v1  ;;  %v241_v5 = vld [vmem:[%s1877_s29 + $0xb4] sm:$0xff]  ;;  %238 = vst [vmem:[%s1882_s30 + $0x24] sm:$0xff] %v237_v3  ;;  %v245_v7 = vld [vmem:[%s1877_s29 + $0xfc] sm:$0xff] }
  0x13   : > { %240 = vst [vmem:[%s1882_s30 + $0x30] sm:$0xff] %v239_v4  ;;  %242 = vst [vmem:[%s1882_s30 + $0x3c] sm:$0xff] %v241_v5  ;;  %v243_v6 = vld [vmem:[%s1877_s29 + $0xd8] sm:$0xff]  ;;  %v247_v8 = vld [vmem:[%s1877_s29 + $0x120] sm:$0xff] }
  0x14   : > { %244 = vst [vmem:[%s1882_s30 + $0x48] sm:$0xff] %v243_v6  ;;  %246 = vst [vmem:[%s1882_s30 + $0x54] sm:$0xff] %v245_v7  ;;  %v249_v9 = vld [vmem:[%s1877_s29 + $0x144] sm:$0xff]  ;;  %v253_v11 = vld [vmem:[%s1877_s29 + $0x18c] sm:$0xff] }
  0x15   : > { %248 = vst [vmem:[%s1882_s30 + $0x60] sm:$0xff] %v247_v8  ;;  %v251_v10 = vld [vmem:[%s1877_s29 + $0x168] sm:$0xff]  ;;  %250 = vst [vmem:[%s1882_s30 + $0x6c] sm:$0xff] %v249_v9  ;;  %v255_v12 = vld [vmem:[%s1877_s29 + $0x1b0] sm:$0xff] }
  0x16   : > { %252 = vst [vmem:[%s1882_s30 + $0x78] sm:$0xff] %v251_v10  ;;  %254 = vst [vmem:[%s1882_s30 + $0x84] sm:$0xff] %v253_v11  ;;  %v257_v13 = vld [vmem:[%s1877_s29 + $0x1d4] sm:$0xff]  ;;  %v261_v15 = vld [vmem:[%s1877_s29 + $0x21c] sm:$0xff] }
  0x17   : > { %v259_v14 = vld [vmem:[%s1877_s29 + $0x1f8] sm:$0xff]  ;;  %256 = vst [vmem:[%s1882_s30 + $0x90] sm:$0xff] %v255_v12  ;;  %258 = vst [vmem:[%s1882_s30 + $0x9c] sm:$0xff] %v257_v13  ;;  %v1350_v16 = vld [vmem:[%s1877_s29 + $0x8] sm:$0xf] }
  0x18   : > { %260 = vst [vmem:[%s1882_s30 + $0xa8] sm:$0xff] %v259_v14  ;;  %v1352_v17 = vld [vmem:[%s1877_s29 + $0x2c] sm:$0xf]  ;;  %262 = vst [vmem:[%s1882_s30 + $0xb4] sm:$0xff] %v261_v15  ;;  %v1354_v18 = vld [vmem:[%s1877_s29 + $0x50] sm:$0xf] }
  0x19   : > { %1351 = vst [vmem:[%s1882_s30 + $0x8] sm:$0xf] %v1350_v16  ;;  %1353 = vst [vmem:[%s1882_s30 + $0x14] sm:$0xf] %v1352_v17  ;;  %v1356_v19 = vld [vmem:[%s1877_s29 + $0x74] sm:$0xf] }
  0x1a   : > { %v1358_v20 = vld [vmem:[%s1877_s29 + $0x98] sm:$0xf]  ;;  %1355 = vst [vmem:[%s1882_s30 + $0x20] sm:$0xf] %v1354_v18  ;;  %1357 = vst [vmem:[%s1882_s30 + $0x2c] sm:$0xf] %v1356_v19 }
  0x1b   : > { %1359 = vst [vmem:[%s1882_s30 + $0x38] sm:$0xf] %v1358_v20  ;;  %v1360_v21 = vld [vmem:[%s1877_s29 + $0xbc] sm:$0xf]  ;;  %v1362_v22 = vld [vmem:[%s1877_s29 + $0xe0] sm:$0xf] }
  0x1c   : > { %v1364_v23 = vld [vmem:[%s1877_s29 + $0x104] sm:$0xf]  ;;  %1361 = vst [vmem:[%s1882_s30 + $0x44] sm:$0xf] %v1360_v21  ;;  %1363 = vst [vmem:[%s1882_s30 + $0x50] sm:$0xf] %v1362_v22 }
  0x1d   : > { %1365 = vst [vmem:[%s1882_s30 + $0x5c] sm:$0xf] %v1364_v23  ;;  %v1366_v24 = vld [vmem:[%s1877_s29 + $0x128] sm:$0xf]  ;;  %v1368_v25 = vld [vmem:[%s1877_s29 + $0x14c] sm:$0xf] }
  0x1e   : > { %v1370_v26 = vld [vmem:[%s1877_s29 + $0x170] sm:$0xf]  ;;  %1367 = vst [vmem:[%s1882_s30 + $0x68] sm:$0xf] %v1366_v24  ;;  %1369 = vst [vmem:[%s1882_s30 + $0x74] sm:$0xf] %v1368_v25 }
  0x1f   : > { %1371 = vst [vmem:[%s1882_s30 + $0x80] sm:$0xf] %v1370_v26  ;;  %v1372_v27 = vld [vmem:[%s1877_s29 + $0x194] sm:$0xf]  ;;  %v1374_v28 = vld [vmem:[%s1877_s29 + $0x1b8] sm:$0xf] }
  0x20   : > { %v1376_v29 = vld [vmem:[%s1877_s29 + $0x1dc] sm:$0xf]  ;;  %1373 = vst [vmem:[%s1882_s30 + $0x8c] sm:$0xf] %v1372_v27  ;;  %1375 = vst [vmem:[%s1882_s30 + $0x98] sm:$0xf] %v1374_v28 }
  0x21   : > { %1377 = vst [vmem:[%s1882_s30 + $0xa4] sm:$0xf] %v1376_v29  ;;  %v1378_v30 = vld [vmem:[%s1877_s29 + $0x200] sm:$0xf]  ;;  %v1380_v31 = vld [vmem:[%s1877_s29 + $0x224] sm:$0xf] }
  0x22   : > { %1379 = vst [vmem:[%s1882_s30 + $0xb0] sm:$0xf] %v1378_v30  ;;  %1381 = vst [vmem:[%s1882_s30 + $0xbc] sm:$0xf] %v1380_v31 }
  0x23 PF: > { %p1382_p6 = scmp.ge.s32.totalorder %s1807_s19, 1  ;;  %p319_p7 = scmp.lt.s32.totalorder %s1807_s19, 4 }
  0x25   : > { %p320_p8 = pnand %p1382_p6, %p319_p7 }
  0x26   : > { %s375_s5 = smul.u32 (!%p320_p8), 48, %s1799_s17  ;;  %s326_s6 = sand.u32 (!%p320_p8), 1, %s1791_s15  }
  0x27   : > { %323 = sbr.rel (%p320_p8) target bundleno = 397 (0x18d), region = 58  ;;  %p1432_p10 = scmp.ne.s32.totalorder (!%p320_p8), %s1799_s17, 0 }
  0x28   : > { %s1672_s7 = smul.u32 (!%p320_p8), 192, %s326_s6  ;;  %p376_p9 = scmp.lt.s32.totalorder (!%p320_p8), %s375_s5, 143 }
  0x2a   : > { %s1949_s8 = scalar_lea.vmem (!%p320_p8), [#allocation3], %s1672_s7 }
  0x2c   : > { %s2167_s5 = smov (!%p376_p9, %s375_s5), 143  ;;  %v1739_v32 = vld [vmem:[%s1949_s8 + $0x4] ss:$12 sps:$4 sm:$0xff]   ;;  %v1740_v33 = vld [vmem:[%s1949_s8 + $0x8] ss:$12 sps:$4 sm:$0xff]  }
  0x2d   : > { %s1383_s9 = sshll.u32 %s2167_s5, 2  ;;  %790 = vmatprep.mubr.bf16.mxu0 %v1739_v32  ;;  %1655 = vmatprep.mubr.bf16.mxu1 %v1740_v33  ;;  %v1737_v58 = vld [vmem:[%s1949_s8] ss:$12 sps:$4 sm:$0xff]   ;;  %v1742_v59 = vld [vmem:[%s1949_s8 + $0x1c] ss:$12 sps:$4 sm:$0xff]  }
  0x2e   : > { %s1956_s12 = scalar_lea.vmem %s2156_s1, %s1383_s9  ;;  %v1741_v60 = vld [vmem:[%s1949_s8 + $0x20] ss:$12 sps:$4 sm:$0xff]   ;;  %v1748_v61 = vld [vmem:[%s1949_s8 + $0x38] ss:$12 sps:$4 sm:$0xff]   ;;  %v1749_v0 = vld [vmem:[%s1949_s8 + $0x50] ss:$12 sps:$4 sm:$0xff]  }
  0x2f   : > { %v1713_v34 = vld [vmem:[%s1956_s12 + $0x78] sm:$0xff]   ;;  %v1716_v37 = vld [vmem:[%s1956_s12 + $0x70] sm:$0xff]   ;;  %v1719_v40 = vld [vmem:[%s1956_s12 + $0x68] sm:$0xff]  }
  0x30   : > { %v1714_v35 = vld [vmem:[%s1956_s12 + $0x38] sm:$0xff]   ;;  %1559 = vmatprep.subr.bf16.mxu0 %v1713_v34  ;;  %v1717_v38 = vld [vmem:[%s1956_s12 + $0x30] sm:$0xff]   ;;  %v1720_v41 = vld [vmem:[%s1956_s12 + $0x28] sm:$0xff]  }
  0x31   : > { %v1715_v36 = vld [vmem:[%s1956_s12 + $0xb8] sm:$0xff]   ;;  %1560 = vmatpush3.bf16.msra.mxu0 %v1714_v35  ;;  %v1718_v39 = vld [vmem:[%s1956_s12 + $0xb0] sm:$0xff]   ;;  %v1721_v42 = vld [vmem:[%s1956_s12 + $0xa8] sm:$0xff]  }
  0x32   : > { %1639 = vmatprep.subr.bf16.mxu1 %v1715_v36  ;;  %1561 = vmatprep.subr.bf16.mxu0 %v1716_v37  ;;  %v1722_v43 = vld [vmem:[%s1956_s12 + $0x60] sm:$0xff]   ;;  %v1725_v46 = vld [vmem:[%s1956_s12 + $0x58] sm:$0xff]   ;;  %v1728_v49 = vld [vmem:[%s1956_s12 + $0x50] sm:$0xff]  }
  0x33   : > { %1640 = vmatpush3.bf16.msra.mxu1 %v1715_v36  ;;  %v1723_v44 = vld [vmem:[%s1956_s12 + $0x20] sm:$0xff]   ;;  %v1727_v47 = vld [vmem:[%s1956_s12 + $0x98] sm:$0xff]   ;;  %v1730_v50 = vld [vmem:[%s1956_s12 + $0x90] sm:$0xff]  }
  0x34   : > { %1641 = vmatprep.subr.bf16.mxu1 %v1718_v39  ;;  %v1724_v45 = vld [vmem:[%s1956_s12 + $0xa0] sm:$0xff]   ;;  %v1726_v48 = vld [vmem:[%s1956_s12 + $0x18] sm:$0xff]   ;;  %v1729_v51 = vld [vmem:[%s1956_s12 + $0x10] sm:$0xff]  }
  0x35   : > { %1562 = vmatpush3.bf16.msra.mxu0 %v1717_v38  ;;  %v1731_v52 = vld [vmem:[%s1956_s12 + $0x48] sm:$0xff]   ;;  %v1734_v55 = vld [vmem:[%s1956_s12 + $0x40] sm:$0xff]   ;;  %v1747_v2 = vld [vmem:[%s1949_s8 + $0x30] ss:$12 sps:$4 sm:$0xff]  }
  0x36   : > { %1563 = vmatprep.subr.bf16.mxu0 %v1719_v40  ;;  %v1733_v53 = vld [vmem:[%s1956_s12 + $0x88] sm:$0xff]   ;;  %v1736_v56 = vld [vmem:[%s1956_s12 + $0x80] sm:$0xff]   ;;  %v1765_v8 = vld [vmem:[%s1949_s8 + $0xb0] ss:$12 sps:$4 sm:$0xff]  }
  0x37   : > { %1642 = vmatpush3.bf16.msra.mxu1 %v1718_v39  ;;  %v1732_v54 = vld [vmem:[%s1956_s12 + $0x8] sm:$0xff]   ;;  %v1735_v57 = vld [vmem:[%s1956_s12] sm:$0xff]   ;;  %v1763_v13 = vld [vmem:[%s1949_s8 + $0x90] ss:$12 sps:$4 sm:$0xff]  }
  0x38   : > { %1643 = vmatprep.subr.bf16.mxu1 %v1721_v42  ;;  %v1744_v62 = vld [vmem:[%s1949_s8 + $0x18] ss:$12 sps:$4 sm:$0xff]   ;;  %v1745_v63 = vld [vmem:[%s1949_s8 + $0x34] ss:$12 sps:$4 sm:$0xff]   ;;  %v1758_v10 = vld [vmem:[%s1949_s8 + $0x7c] ss:$12 sps:$4 sm:$0xff]  }
  0x39   : > { %1564 = vmatpush3.bf16.msra.mxu0 %v1720_v41  ;;  %v1756_v1 = vld [vmem:[%s1949_s8 + $0x68] ss:$12 sps:$4 sm:$0xff]   ;;  %v1750_v3 = vld [vmem:[%s1949_s8 + $0x4c] ss:$12 sps:$4 sm:$0xff]   ;;  %v1753_v7 = vld [vmem:[%s1949_s8 + $0x64] ss:$12 sps:$4 sm:$0xff]  }
  0x3a   : > { %1565 = vmatprep.subr.bf16.mxu0 %v1722_v43  ;;  %v1757_v4 = vld [vmem:[%s1949_s8 + $0x80] ss:$12 sps:$4 sm:$0xff]   ;;  %v1764_v5 = vld [vmem:[%s1949_s8 + $0x98] ss:$12 sps:$4 sm:$0xff]   ;;  %v1752_v6 = vld [vmem:[%s1949_s8 + $0x48] ss:$12 sps:$4 sm:$0xff]  }
  0x3b   : > { %1644 = vmatpush3.bf16.msra.mxu1 %v1721_v42  ;;  %v1755_v9 = vld [vmem:[%s1949_s8 + $0x60] ss:$12 sps:$4 sm:$0xff]   ;;  %v1760_v11 = vld [vmem:[%s1949_s8 + $0x78] ss:$12 sps:$4 sm:$0xff]   ;;  %v1768_v15 = vld [vmem:[%s1949_s8 + $0xa8] ss:$12 sps:$4 sm:$0xff]  }
  0x3c   : > { %1645 = vmatprep.subr.bf16.mxu1 %v1724_v45  ;;  %v1761_v12 = vld [vmem:[%s1949_s8 + $0x94] ss:$12 sps:$4 sm:$0xff]   ;;  %v1766_v14 = vld [vmem:[%s1949_s8 + $0xac] ss:$12 sps:$4 sm:$0xff]  }
  0x3d   : > { %1566 = vmatpush3.bf16.msra.mxu0 %v1723_v44 }
  0x3e   : > { %1567 = vmatprep.subr.bf16.mxu0 %v1725_v46 }
  0x3f   : > { %1646 = vmatpush3.bf16.msra.mxu1 %v1724_v45 }
  0x40   : > { %1647 = vmatprep.subr.bf16.mxu1 %v1727_v47 }
  0x41   : > { %1568 = vmatpush3.bf16.msra.mxu0 %v1726_v48 }
  0x42   : > { %1569 = vmatprep.subr.bf16.mxu0 %v1728_v49 }
  0x43   : > { %1648 = vmatpush3.bf16.msra.mxu1 %v1727_v47 }
  0x44   : > { %1649 = vmatprep.subr.bf16.mxu1 %v1730_v50 }
  0x45   : > { %1570 = vmatpush3.bf16.msra.mxu0 %v1729_v51 }
  0x46   : > { %1571 = vmatprep.subr.bf16.mxu0 %v1731_v52 }
  0x47   : > { %1650 = vmatpush3.bf16.msra.mxu1 %v1730_v50 }
  0x48   : > { %1651 = vmatprep.subr.bf16.mxu1 %v1733_v53 }
  0x49   : > { %1572 = vmatpush3.bf16.msra.mxu0 %v1732_v54 }
  0x4a   : > { %1573 = vmatprep.subr.bf16.mxu0 %v1734_v55 }
  0x4b   : > { %1652 = vmatpush3.bf16.msra.mxu1 %v1733_v53 }
  0x4c   : > { %1653 = vmatprep.subr.bf16.mxu1 %v1736_v56 }
  0x4d   : > { %1574 = vmatpush3.bf16.msra.mxu0 %v1735_v57 }
  0x4f   : > { %1654 = vmatpush3.bf16.msra.mxu1 %v1736_v56 }
  0x50   : > { %791 = vmatmul.mubr.bf16.vlgmr.msra.gmra.mxu0 %v1737_v58 }
  0x51   : > { %798 = vmatprep.mubr.bf16.mxu0 %v1742_v59 }
  0x52   : > { %1656 = vmatmul.mubr.bf16.vlgmr.msra.gmra.mxu1 %v1741_v60 }
  0x53   : > { %1659 = vmatprep.mubr.bf16.mxu1 %v1748_v61 }
  0x58   : > { %799 = vmatmul.mubr.bf16.gmra.mxu0 %v1744_v62 }
  0x59   : > { %806 = vmatprep.mubr.bf16.mxu0 %v1745_v63 }
  0x5a   : > { %1660 = vmatmul.mubr.bf16.gmra.mxu1 %v1749_v0 }
  0x5b   : > { %1663 = vmatprep.mubr.bf16.mxu1 %v1756_v1 }
  0x60   : > { %807 = vmatmul.mubr.bf16.gmra.mxu0 %v1747_v2 }
  0x61   : > { %814 = vmatprep.mubr.bf16.mxu0 %v1750_v3 }
  0x62   : > { %1664 = vmatmul.mubr.bf16.gmra.mxu1 %v1757_v4 }
  0x63   : > { %1667 = vmatprep.mubr.bf16.mxu1 %v1764_v5 }
  0x68   : > { %815 = vmatmul.mubr.bf16.gmra.mxu0 %v1752_v6 }
  0x69   : > { %822 = vmatprep.mubr.bf16.mxu0 %v1753_v7 }
  0x6a   : > { %1668 = vmatmul.mubr.bf16.gmra.mxu1 %v1765_v8 }
  0x70   : > { %823 = vmatmul.mubr.bf16.gmra.mxu0 %v1755_v9 }
  0x71   : > { %830 = vmatprep.mubr.bf16.mxu0 %v1758_v10 }
  0x78   : > { %831 = vmatmul.mubr.bf16.gmra.mxu0 %v1760_v11 }
  0x79   : > { %838 = vmatprep.mubr.bf16.mxu0 %v1761_v12 }
  0x80   : > { %839 = vmatmul.mubr.bf16.gmra.mxu0 %v1763_v13 }
  0x81   : > { %846 = vmatprep.mubr.bf16.mxu0 %v1766_v14 }
  0x88   : > { %847 = vmatmul.mubr.bf16.gmra.mxu0 %v1768_v15 }
 0x110   : > { %v1575_v16 = vpop.f32.mrf.mxu0 }
 0x112   : > { %v1576_v17 = vpop.f32.mrf.mxu0  ;;  %v1657_v18 = vpop.f32.mrf.mxu1 }
 0x113   : > { %v1577_v19 = vadd.f32 %v1576_v17, %v1575_v16 }
 0x114   : > { %v1578_v20 = vpop.f32.mrf.mxu0  ;;  %v889_v21 = vpop.f32.mrf.mxu1 }
 0x115   : > { %v2004_v22 = vadd.f32 %v1577_v19, %v889_v21 }
 0x116   : > { %v1579_v23 = vpop.f32.mrf.mxu0  ;;  %v1658_v24 = vpop.f32.mrf.mxu1 }
 0x117   : > { %v1580_v25 = vadd.f32 %v1579_v23, %v1578_v20 }
 0x118   : > { %v1581_v26 = vpop.f32.mrf.mxu0  ;;  %v892_v27 = vpop.f32.mrf.mxu1 }
 0x119   : > { %v2006_v28 = vadd.f32 %v1580_v25, %v892_v27 }
 0x11a   : > { %v1582_v29 = vpop.f32.mrf.mxu0  ;;  %v1661_v30 = vpop.f32.mrf.mxu1 }
 0x11b   : > { %v1583_v31 = vadd.f32 %v1582_v29, %v1581_v26 }
 0x11c   : > { %v1584_v32 = vpop.f32.mrf.mxu0  ;;  %v905_v35 = vpop.f32.mrf.mxu1 }
 0x11d   : > { %v2008_v33 = vadd.f32 %v1657_v18, %v1583_v31 }
 0x11e   : > { %v1585_v34 = vpop.f32.mrf.mxu0  ;;  %v1662_v40 = vpop.f32.mrf.mxu1 }
 0x11f   : > { %v1586_v36 = vadd.f32 %v1585_v34, %v1584_v32 }
 0x120   : > { %v1587_v37 = vpop.f32.mrf.mxu0  ;;  %v908_v45 = vpop.f32.mrf.mxu1 }
 0x121   : > { %v2010_v38 = vadd.f32 %v1658_v24, %v1586_v36 }
 0x122   : > { %v1588_v39 = vpop.f32.mrf.mxu0  ;;  %v1665_v50 = vpop.f32.mrf.mxu1 }
 0x123   : > { %v1589_v41 = vadd.f32 %v1588_v39, %v1587_v37 }
 0x124   : > { %v1590_v42 = vpop.f32.mrf.mxu0  ;;  %v921_v55 = vpop.f32.mrf.mxu1 }
 0x125   : > { %v2012_v43 = vadd.f32 %v1589_v41, %v905_v35 }
 0x126   : > { %v1591_v44 = vpop.f32.mrf.mxu0  ;;  %v1666_v60 = vpop.f32.mrf.mxu1 }
 0x127   : > { %v1592_v46 = vadd.f32 %v1591_v44, %v1590_v42 }
 0x128   : > { %v1593_v47 = vpop.f32.mrf.mxu0  ;;  %v924_v1 = vpop.f32.mrf.mxu1 }
 0x129   : > { %v2014_v48 = vadd.f32 %v1592_v46, %v908_v45 }
 0x12a   : > { %v1594_v49 = vpop.f32.mrf.mxu0  ;;  %v1669_v6 = vpop.f32.mrf.mxu1 }
 0x12b   : > { %v1595_v51 = vadd.f32 %v1594_v49, %v1593_v47 }
 0x12c   : > { %v1596_v52 = vpop.f32.mrf.mxu0  ;;  %v937_v11 = vpop.f32.mrf.mxu1 }
 0x12d   : > { %v2016_v53 = vadd.f32 %v1661_v30, %v1595_v51 }
 0x12e   : > { %v1597_v54 = vpop.f32.mrf.mxu0  ;;  %v1670_v16 = vpop.f32.mrf.mxu1 }
 0x12f   : > { %v1598_v56 = vadd.f32 %v1597_v54, %v1596_v52 }
 0x130   : > { %v1599_v57 = vpop.f32.mrf.mxu0  ;;  %v940_v21 = vpop.f32.mrf.mxu1 }
 0x131   : > { %v2018_v58 = vadd.f32 %v1662_v40, %v1598_v56 }
 0x132   : > { %v1600_v59 = vpop.f32.mrf.mxu0 }
 0x133   : > { %v1601_v61 = vadd.f32 %v1600_v59, %v1599_v57 }
 0x134   : > { %v1602_v62 = vpop.f32.mrf.mxu0 }
 0x135   : > { %v2020_v63 = vadd.f32 %v1601_v61, %v921_v55 }
 0x136   : > { %v1603_v0 = vpop.f32.mrf.mxu0 }
 0x137   : > { %v1604_v2 = vadd.f32 %v1603_v0, %v1602_v62 }
 0x138   : > { %v1605_v3 = vpop.f32.mrf.mxu0 }
 0x139   : > { %v2022_v4 = vadd.f32 %v1604_v2, %v924_v1 }
 0x13a   : > { %v1606_v5 = vpop.f32.mrf.mxu0 }
 0x13b   : > { %v1607_v7 = vadd.f32 %v1606_v5, %v1605_v3 }
 0x13c   : > { %v1608_v8 = vpop.f32.mrf.mxu0 }
 0x13d   : > { %v2024_v9 = vadd.f32 %v1665_v50, %v1607_v7 }
 0x13e   : > { %v1609_v10 = vpop.f32.mrf.mxu0 }
 0x13f   : > { %v1610_v12 = vadd.f32 %v1609_v10, %v1608_v8 }
 0x140   : > { %v1611_v13 = vpop.f32.mrf.mxu0 }
 0x141   : > { %v2026_v14 = vadd.f32 %v1666_v60, %v1610_v12 }
 0x142   : > { %v1612_v15 = vpop.f32.mrf.mxu0 }
 0x143   : > { %v1613_v17 = vadd.f32 %v1612_v15, %v1611_v13 }
 0x144   : > { %v1614_v18 = vpop.f32.mrf.mxu0 }
 0x145   : > { %v2028_v19 = vadd.f32 %v1613_v17, %v937_v11 }
 0x146   : > { %v1615_v20 = vpop.f32.mrf.mxu0 }
 0x147   : > { %v1616_v23 = vadd.f32 %v1615_v20, %v1614_v18 }
 0x148   : > { %v1617_v24 = vpop.f32.mrf.mxu0 }
 0x149   : > { %v2030_v25 = vadd.f32 %v1616_v23, %v940_v21 }
 0x14a   : > { %v1618_v26 = vpop.f32.mrf.mxu0 }
 0x14b   : > { %v1619_v27 = vadd.f32 %v1618_v26, %v1617_v24 }
 0x14c   : > { %v1620_v29 = vpop.f32.mrf.mxu0 }
 0x14d   : > { %v2032_v30 = vadd.f32 %v1669_v6, %v1619_v27  ;;  %955 = sbr.rel (%p1432_p10) target bundleno = 346 (0x15a), region = 66 }
 0x14e   : > { %v1621_v31 = vpop.f32.mrf.mxu0 }
 0x14f   : > { %v1622_v32 = vadd.f32 %v1621_v31, %v1620_v29 }
 0x151   : > { %v2034_v34 = vadd.f32 %v1670_v16, %v1622_v32 }
 0x152   : > { %956 = vst [vmem:[#allocation2 + $0x30] sm:$0xff] %v2004_v22  ;;  %957 = vst [vmem:[#allocation2] sm:$0xff] %v2006_v28 }
 0x153   : > { %958 = vst [vmem:[#allocation2 + $0x58] sm:$0xff] %v2008_v33  ;;  %959 = vst [vmem:[#allocation2 + $0x18] sm:$0xff] %v2010_v38 }
 0x154   : > { %960 = vst [vmem:[#allocation2 + $0x50] sm:$0xff] %v2012_v43  ;;  %961 = vst [vmem:[#allocation2 + $0x68] sm:$0xff] %v2014_v48 }
 0x155   : > { %962 = vst [vmem:[#allocation2 + $0x8] sm:$0xff] %v2016_v53  ;;  %963 = vst [vmem:[#allocation2 + $0x48] sm:$0xff] %v2018_v58 }
 0x156   : > { %964 = vst [vmem:[#allocation2 + $0x40] sm:$0xff] %v2020_v63  ;;  %965 = vst [vmem:[#allocation2 + $0x20] sm:$0xff] %v2022_v4 }
 0x157   : > { %966 = vst [vmem:[#allocation2 + $0x10] sm:$0xff] %v2024_v9  ;;  %967 = vst [vmem:[#allocation2 + $0x38] sm:$0xff] %v2026_v14 }
 0x158   : > { %968 = vst [vmem:[#allocation2 + $0x60] sm:$0xff] %v2028_v19  ;;  %969 = vst [vmem:[#allocation2 + $0x70] sm:$0xff] %v2030_v25 }
 0x159   : > { %970 = vst [vmem:[#allocation2 + $0x78] sm:$0xff] %v2032_v30  ;;  %971 = vst [vmem:[#allocation2 + $0x28] sm:$0xff] %v2034_v34 }
 0x15a PF: > { %p1433_p11 = scmp.le.s32.totalorder %s1799_s17, 0 }
 0x15c   : > { %975 = sbr.rel (%p1433_p11) target bundleno = 364 (0x16c), region = 70 }
 0x161   : > { %v976_v35 = vld [vmem:[#allocation2 + $0x30] sm:$0xff]  ;;  %v977_v36 = vld [vmem:[#allocation2] sm:$0xff]  ;;  %v978_v37 = vld [vmem:[#allocation2 + $0x58] sm:$0xff] }
 0x162   : > { %v992_v39 = vadd.f32 %v976_v35, %v2004_v22  ;;  %v993_v40 = vadd.f32 %v977_v36, %v2006_v28  ;;  %v994_v41 = vadd.f32 %v978_v37, %v2008_v33  ;;  %v979_v42 = vld [vmem:[#allocation2 + $0x18] sm:$0xff]  ;;  %v980_v44 = vld [vmem:[#allocation2 + $0x50] sm:$0xff]  ;;  %v981_v45 = vld [vmem:[#allocation2 + $0x68] sm:$0xff] }
 0x163   : > { %v995_v46 = vadd.f32 %v979_v42, %v2010_v38  ;;  %v996_v47 = vadd.f32 %v980_v44, %v2012_v43  ;;  %v997_v49 = vadd.f32 %v981_v45, %v2014_v48  ;;  %v982_v50 = vld [vmem:[#allocation2 + $0x8] sm:$0xff]  ;;  %v984_v52 = vld [vmem:[#allocation2 + $0x40] sm:$0xff]  ;;  %v986_v55 = vld [vmem:[#allocation2 + $0x10] sm:$0xff] }
 0x164   : > { %v983_v51 = vld [vmem:[#allocation2 + $0x48] sm:$0xff]  ;;  %1008 = vst [vmem:[#allocation2 + $0x30] sm:$0xff] %v992_v39  ;;  %1009 = vst [vmem:[#allocation2] sm:$0xff] %v993_v40  ;;  %v998_v22 = vadd.f32 %v982_v50, %v2016_v53  ;;  %v1000_v33 = vadd.f32 %v984_v52, %v2020_v63  ;;  %v985_v54 = vld [vmem:[#allocation2 + $0x20] sm:$0xff]  ;;  %v1002_v43 = vadd.f32 %v986_v55, %v2024_v9 }
 0x165   : > { %1010 = vst [vmem:[#allocation2 + $0x58] sm:$0xff] %v994_v41  ;;  %v999_v28 = vadd.f32 %v983_v51, %v2018_v58  ;;  %v987_v56 = vld [vmem:[#allocation2 + $0x38] sm:$0xff]  ;;  %1011 = vst [vmem:[#allocation2 + $0x18] sm:$0xff] %v995_v46  ;;  %v1001_v38 = vadd.f32 %v985_v54, %v2022_v4  ;;  %v988_v57 = vld [vmem:[#allocation2 + $0x60] sm:$0xff] }
 0x166   : > { %1012 = vst [vmem:[#allocation2 + $0x50] sm:$0xff] %v996_v47  ;;  %1013 = vst [vmem:[#allocation2 + $0x68] sm:$0xff] %v997_v49  ;;  %v1003_v48 = vadd.f32 %v987_v56, %v2026_v14  ;;  %v989_v59 = vld [vmem:[#allocation2 + $0x70] sm:$0xff]  ;;  %v990_v60 = vld [vmem:[#allocation2 + $0x78] sm:$0xff]  ;;  %v1004_v53 = vadd.f32 %v988_v57, %v2028_v19 }
 0x167   : > { %1014 = vst [vmem:[#allocation2 + $0x8] sm:$0xff] %v998_v22  ;;  %1015 = vst [vmem:[#allocation2 + $0x48] sm:$0xff] %v999_v28  ;;  %v1005_v58 = vadd.f32 %v989_v59, %v2030_v25  ;;  %v1006_v61 = vadd.f32 %v990_v60, %v2032_v30  ;;  %v991_v62 = vld [vmem:[#allocation2 + $0x28] sm:$0xff] }
 0x168   : > { %1016 = vst [vmem:[#allocation2 + $0x40] sm:$0xff] %v1000_v33  ;;  %1017 = vst [vmem:[#allocation2 + $0x20] sm:$0xff] %v1001_v38  ;;  %v1007_v63 = vadd.f32 %v991_v62, %v2034_v34 }
 0x169   : > { %1018 = vst [vmem:[#allocation2 + $0x10] sm:$0xff] %v1002_v43  ;;  %1019 = vst [vmem:[#allocation2 + $0x38] sm:$0xff] %v1003_v48 }
 0x16a   : > { %1020 = vst [vmem:[#allocation2 + $0x60] sm:$0xff] %v1004_v53  ;;  %1021 = vst [vmem:[#allocation2 + $0x70] sm:$0xff] %v1005_v58 }
 0x16b   : > { %1022 = vst [vmem:[#allocation2 + $0x78] sm:$0xff] %v1006_v61  ;;  %1023 = vst [vmem:[#allocation2 + $0x28] sm:$0xff] %v1007_v63 }
 0x16c PF: > { %p1434_p12 = scmp.ne.s32.totalorder %s1799_s17, 2 }
 0x16e   : > { %1027 = sbr.rel (%p1434_p12) target bundleno = 397 (0x18d), region = 74 }
 0x173   : > { %v1028_v0 = vld [vmem:[#allocation2 + $0x30] sm:$0xff]  ;;  %v1029_v1 = vld [vmem:[#allocation2] sm:$0xff]  ;;  %v1030_v6 = vld [vmem:[#allocation2 + $0x58] sm:$0xff] }
 0x174   : > { %v2074_v2 = vld [vmem:[%s2157_s2] ss:$0 sm:$0xff]  ;;  %v1031_v7 = vld [vmem:[#allocation2 + $0x18] sm:$0xff]  ;;  %v1545_v12 = vld [vmem:[%s2158_s3 + $0x8] sm:$0xff]  }
 0x175   : > { %v1051_v3 = vadd.f32 %v2074_v2, %v1028_v0  ;;  %v1052_v4 = vadd.f32 %v2074_v2, %v1029_v1  ;;  %v1474_v5 = vld [vmem:[%s2158_s3] sm:$0xff]   ;;  %v1053_v10 = vadd.f32 %v2074_v2, %v1030_v6  ;;  %v1054_v11 = vadd.f32 %v2074_v2, %v1031_v7  ;;  %v1032_v13 = vld [vmem:[#allocation2 + $0x50] sm:$0xff]  ;;  %v1033_v14 = vld [vmem:[#allocation2 + $0x68] sm:$0xff] }
 0x176   : > { %v1475_v8 = vunpack.c.l.bf16 %v1474_v5  ;;  %v1476_v9 = vunpack.c.h.bf16 %v1474_v5  ;;  %v1479_v15 = vunpack.c.l.bf16 %v1545_v12  ;;  %v1480_v16 = vunpack.c.h.bf16 %v1545_v12  ;;  %v1546_v19 = vld [vmem:[%s2158_s3 + $0x10] sm:$0xff]   ;;  %v1034_v20 = vld [vmem:[#allocation2 + $0x8] sm:$0xff]  ;;  %v1547_v27 = vld [vmem:[%s2158_s3 + $0x18] sm:$0xff]  }
 0x177   : > { %v1055_v17 = vadd.f32 %v2074_v2, %v1032_v13  ;;  %v1056_v18 = vadd.f32 %v2074_v2, %v1033_v14  ;;  %v1035_v21 = vld [vmem:[#allocation2 + $0x48] sm:$0xff]  ;;  %v1483_v25 = vunpack.c.l.bf16 %v1546_v19  ;;  %v1484_v26 = vunpack.c.h.bf16 %v1546_v19  ;;  %v1036_v34 = vld [vmem:[#allocation2 + $0x40] sm:$0xff]  ;;  %v1038_v47 = vld [vmem:[#allocation2 + $0x10] sm:$0xff] }
 0x178   : > { %v1099_v23 = vadd.f32 %v1475_v8, %v1051_v3  ;;  %v1100_v24 = vadd.f32 %v1476_v9, %v1052_v4  ;;  %v1101_v29 = vadd.f32 %v1479_v15, %v1053_v10  ;;  %v1102_v30 = vadd.f32 %v1480_v16, %v1054_v11  ;;  %v1037_v40 = vld [vmem:[#allocation2 + $0x20] sm:$0xff]  ;;  %v1039_v22 = vld [vmem:[#allocation2 + $0x38] sm:$0xff]  ;;  %v1549_v28 = vld [vmem:[%s2158_s3 + $0x28] sm:$0xff]  }
 0x179   : > { %v1057_v31 = vadd.f32 %v2074_v2, %v1034_v20  ;;  %v1058_v32 = vadd.f32 %v2074_v2, %v1035_v21  ;;  %v1103_v37 = vadd.f32 %v1483_v25, %v1055_v17  ;;  %v1104_v39 = vadd.f32 %v1484_v26, %v1056_v18  ;;  %v1548_v46 = vld [vmem:[%s2158_s3 + $0x20] sm:$0xff]   ;;  %v1041_v60 = vld [vmem:[#allocation2 + $0x70] sm:$0xff]  ;;  %v1042_v5 = vld [vmem:[#allocation2 + $0x78] sm:$0xff] }
 0x17a   : > { %v1115_v35 = vmax.f32 %v1099_v23, 0.0  ;;  %v1116_v36 = vmax.f32 %v1100_v24, 0.0  ;;  %v1117_v41 = vmax.f32 %v1101_v29, 0.0  ;;  %v1118_v42 = vmax.f32 %v1102_v30, 0.0  ;;  %v1040_v38 = vld [vmem:[#allocation2 + $0x60] sm:$0xff]  ;;  %v1550_v53 = vld [vmem:[%s2158_s3 + $0x30] sm:$0xff]  }
 0x17b   : > { %v1487_v44 = vunpack.c.l.bf16 %v1547_v27  ;;  %v1488_v45 = vunpack.c.h.bf16 %v1547_v27  ;;  %v1119_v50 = vmax.f32 %v1103_v37, 0.0  ;;  %v1120_v51 = vmax.f32 %v1104_v39, 0.0  ;;  %v1043_v6 = vld [vmem:[#allocation2 + $0x28] sm:$0xff]  ;;  %v1551_v11 = vld [vmem:[%s2158_s3 + $0x38] sm:$0xff]  }
 0x17c   : > { %v1508_v49 = vpack.c.bf16 %v1116_v36, %v1115_v35  ;;  %v1059_v52 = vadd.f32 %v2074_v2, %v1036_v34  ;;  %v1513_v33 = vpack.c.bf16 %v1118_v42, %v1117_v41  ;;  %v1060_v56 = vadd.f32 %v2074_v2, %v1037_v40 }
 0x17d   : > { %v1105_v54 = vadd.f32 %v1487_v44, %v1057_v31  ;;  %v1106_v55 = vadd.f32 %v1488_v45, %v1058_v32  ;;  %v1518_v43 = vpack.c.bf16 %v1120_v51, %v1119_v50  ;;  %v1491_v48 = vunpack.c.l.bf16 %v1548_v46 }
 0x17e   : > { %1509 = vst [vmem:[%s2159_s4] sm:$0xff] %v1508_v49   ;;  %v1492_v57 = vunpack.c.h.bf16 %v1548_v46  ;;  %v1061_v59 = vadd.f32 %v2074_v2, %v1038_v47  ;;  %1552 = vst [vmem:[%s2159_s4 + $0x8] sm:$0xff] %v1513_v33   ;;  %v1062_v62 = vadd.f32 %v2074_v2, %v1039_v22  ;;  %v1495_v63 = vunpack.c.l.bf16 %v1549_v28 }
 0x17f   : > { %v1121_v58 = vmax.f32 %v1105_v54, 0.0  ;;  %v1122_v61 = vmax.f32 %v1106_v55, 0.0  ;;  %1553 = vst [vmem:[%s2159_s4 + $0x10] sm:$0xff] %v1518_v43   ;;  %v1107_v0 = vadd.f32 %v1491_v48, %v1059_v52  ;;  %v1496_v3 = vunpack.c.h.bf16 %v1549_v28 }
 0x180   : > { %v1108_v1 = vadd.f32 %v1492_v57, %v1060_v56  ;;  %v1063_v4 = vadd.f32 %v2074_v2, %v1040_v38  ;;  %v1109_v8 = vadd.f32 %v1495_v63, %v1061_v59  ;;  %v1064_v9 = vadd.f32 %v2074_v2, %v1041_v60 }
 0x181   : > { %v1523_v7 = vpack.c.bf16 %v1122_v61, %v1121_v58  ;;  %v1499_v10 = vunpack.c.l.bf16 %v1550_v53  ;;  %v1123_v12 = vmax.f32 %v1107_v0, 0.0  ;;  %v1110_v14 = vadd.f32 %v1496_v3, %v1062_v62 }
 0x182   : > { %v1124_v13 = vmax.f32 %v1108_v1, 0.0  ;;  %v1500_v15 = vunpack.c.h.bf16 %v1550_v53  ;;  %v1125_v16 = vmax.f32 %v1109_v8, 0.0  ;;  %v1065_v18 = vadd.f32 %v2074_v2, %v1042_v5 }
 0x183   : > { %1554 = vst [vmem:[%s2159_s4 + $0x18] sm:$0xff] %v1523_v7   ;;  %v1111_v17 = vadd.f32 %v1499_v10, %v1063_v4  ;;  %v1066_v19 = vadd.f32 %v2074_v2, %v1043_v6  ;;  %v1126_v21 = vmax.f32 %v1110_v14, 0.0  ;;  %v1503_v24 = vunpack.c.l.bf16 %v1551_v11 }
 0x184   : > { %v1528_v20 = vpack.c.bf16 %v1124_v13, %v1123_v12  ;;  %v1112_v23 = vadd.f32 %v1500_v15, %v1064_v9  ;;  %v1504_v26 = vunpack.c.h.bf16 %v1551_v11 }
 0x185   : > { %v1127_v25 = vmax.f32 %v1111_v17, 0.0  ;;  %v1533_v27 = vpack.c.bf16 %v1126_v21, %v1125_v16  ;;  %v1113_v30 = vadd.f32 %v1503_v24, %v1065_v18 }
 0x186   : > { %1555 = vst [vmem:[%s2159_s4 + $0x20] sm:$0xff] %v1528_v20   ;;  %v1128_v29 = vmax.f32 %v1112_v23, 0.0  ;;  %v1114_v31 = vadd.f32 %v1504_v26, %v1066_v19 }
 0x187   : > { %1556 = vst [vmem:[%s2159_s4 + $0x28] sm:$0xff] %v1533_v27   ;;  %v1129_v2 = vmax.f32 %v1113_v30, 0.0 }
 0x188   : > { %v1538_v32 = vpack.c.bf16 %v1128_v29, %v1127_v25  ;;  %v1130_v34 = vmax.f32 %v1114_v31, 0.0 }
 0x18a   : > { %1557 = vst [vmem:[%s2159_s4 + $0x30] sm:$0xff] %v1538_v32   ;;  %v1543_v35 = vpack.c.bf16 %v1130_v34, %v1129_v2 }
 0x18c   : > { %1558 = vst [vmem:[%s2159_s4 + $0x38] sm:$0xff] %v1543_v35  }
 0x18d PF: > { %s14_s19 = sadd.s32 1, %s1807_s19   ;;  %s2160_s15 = smov %s1795_s16 }
 0x18e   : > { %p11_p13 = scmp.ge.s32.totalorder %s14_s19, 5   ;;  %s2161_s16 = smov %s1869_s23 }
 0x18f   : > { %s2162_s17 = smov %s1803_s18  ;;  %s2163_s18 = smov %s2165_s20 }
 0x190   :  { %13 = sbr.rel (!%p11_p13) target bundleno = 3 (0x3), region = 124 }

// kernel: resnet_forward.27
= control target key start
LH: loop header
LB: loop body
LE: loop exit
PB: predicated region body
PF: predicated region fallthrough
CT: control target
= control target key end

     0   :  { %s1075_s12 = smov 0   ;;  %s1077_s13 = smov 0   ;;  %s1186_s0 = inlined_call_operand.vmem [shape: bf16[32,1152], index: 0, kind: input, shape index: {}]   ;;  %s1187_s1 = inlined_call_operand.vmem [shape: bf16[1152,128], index: 1, kind: input, shape index: {}]   ;;  %s1188_s2 = inlined_call_operand.vmem [shape: f32[1,128], index: 2, kind: input, shape index: {}]   ;;  %s1189_s3 = inlined_call_operand.vmem [shape: bf16[32,128], index: 3, kind: output, shape index: {}]  }
   0x1   :  { %s1079_s14 = smov 0   ;;  %s1081_s15 = smov 0  }
   0x2   :  { %s1083_s16 = smov 0  }
   0x3 LB: > { %s25_s17 = sadd.s32 1, %s1049_s15  ;;  %p48_p1 = scmp.ne.s32.totalorder %s1041_s13, %s1037_s12  ;;  %s1053_s16 = sphi %s1083_s16, %s13_s16   ;;  %s1049_s15 = sphi %s1081_s15, %s1193_s15   ;;  %s1045_s14 = sphi %s1079_s14, %s1192_s14   ;;  %s1041_s13 = sphi %s1077_s13, %s1191_s13   ;;  %s1037_s12 = sphi %s1075_s12, %s1190_s12  }
   0x4   : > { %p26_p0 = scmp.ge.s32.totalorder %s25_s17, 3  ;;  %p49_p2 = scmp.eq.s32.totalorder %s1053_s16, 0 }
   0x5   : > { %s41_s19 = sadd.s32 1, %s1041_s13  ;;  %p813_p5 = scmp.ge.s32.totalorder %s1053_s16, 3 }
   0x6   : > { %s1195_s17 = smov (%p26_p0, %s25_s17), 0  ;;  %p50_p3 = por %p49_p2, %p48_p1 }
   0x7   : > { %s37_s18 = ssub.s32 %s1049_s15, %s1195_s17  ;;  %162 = sbr.rel (%p813_p5) target bundleno = 21 (0x15), region = 20 }
   0x8   : > { %p39_p4 = scmp.eq.s32.totalorder %s37_s18, 0 }
   0xa   : > { %s1110_s20 = scalar_select %p39_p4, %s1041_s13, %s41_s19  }
   0xc   : > { %165 = sbr.rel (!%p50_p3) target bundleno = 21 (0x15), region = 24  ;;  %s167_s21 = sand.u32 (%p50_p3), 1, %s1041_s13  }
   0xd   : > { %s867_s22 = smul.u32 (%p50_p3), 12, %s1049_s15 }
   0xe   : > { %s941_s23 = smul.u32 (%p50_p3), 48, %s167_s21 }
   0xf   : > { %s175_s26 = scalar_lea.vmem (%p50_p3), %s1186_s0, %s867_s22 }
  0x10   : > { %v190_v0 = vld [vmem:[%s175_s26] sm:$0xff] (%p50_p3)  ;;  %v194_v2 = vld [vmem:[%s175_s26 + $0x48] sm:$0xff] (%p50_p3)  ;;  %s169_s27 = scalar_lea.vmem (%p50_p3), [#allocation3], %s941_s23  ;;  %v819_v6 = vld [vmem:[%s175_s26 + $0x50] sm:$0xf] (%p50_p3) }
  0x11   : > { %v192_v1 = vld [vmem:[%s175_s26 + $0x24] sm:$0xff]  ;;  %191 = vst [vmem:[%s169_s27] sm:$0xff] %v190_v0  ;;  %195 = vst [vmem:[%s169_s27 + $0x18] sm:$0xff] %v194_v2  ;;  %v196_v3 = vld [vmem:[%s175_s26 + $0x6c] sm:$0xff] }
  0x12   : > { %193 = vst [vmem:[%s169_s27 + $0xc] sm:$0xff] %v192_v1  ;;  %v815_v4 = vld [vmem:[%s175_s26 + $0x8] sm:$0xf]  ;;  %v817_v5 = vld [vmem:[%s175_s26 + $0x2c] sm:$0xf]  ;;  %197 = vst [vmem:[%s169_s27 + $0x24] sm:$0xff] %v196_v3 }
  0x13   : > { %816 = vst [vmem:[%s169_s27 + $0x8] sm:$0xf] %v815_v4  ;;  %818 = vst [vmem:[%s169_s27 + $0x14] sm:$0xf] %v817_v5  ;;  %v821_v7 = vld [vmem:[%s175_s26 + $0x74] sm:$0xf] }
  0x14   : > { %820 = vst [vmem:[%s169_s27 + $0x20] sm:$0xf] %v819_v6  ;;  %822 = vst [vmem:[%s169_s27 + $0x2c] sm:$0xf] %v821_v7 }
  0x15 PF: > { %p823_p6 = scmp.ge.s32.totalorder %s1053_s16, 1  ;;  %p230_p7 = scmp.lt.s32.totalorder %s1053_s16, 4 }
  0x17   : > { %p231_p8 = pnand %p823_p6, %p230_p7 }
  0x18   : > { %s276_s28 = smul.u32 (!%p231_p8), 48, %s1045_s14  ;;  %s237_s29 = sand.u32 (!%p231_p8), 1, %s1037_s12  }
  0x19   : > { %234 = sbr.rel (%p231_p8) target bundleno = 306 (0x132), region = 54  ;;  %p855_p10 = scmp.ne.s32.totalorder (!%p231_p8), %s1045_s14, 0 }
  0x1a   : > { %s942_s30 = smul.u32 (!%p231_p8), 48, %s237_s29  ;;  %p277_p9 = scmp.lt.s32.totalorder (!%p231_p8), %s276_s28, 143 }
  0x1c   : > { %s1122_s4 = scalar_lea.vmem (!%p231_p8), [#allocation3], %s942_s30 }
  0x1e   : > { %s1197_s28 = smov (!%p277_p9, %s276_s28), 143  ;;  %v1009_v8 = vld [vmem:[%s1122_s4 + $0x4] ss:$12 sps:$4 sm:$0xff]   ;;  %v1010_v9 = vld [vmem:[%s1122_s4 + $0x8] ss:$12 sps:$4 sm:$0xff]  }
  0x1f   : > { %s824_s5 = sshll.u32 %s1197_s28, 2  ;;  %562 = vmatprep.mubr.bf16.mxu0 %v1009_v8  ;;  %937 = vmatprep.mubr.bf16.mxu1 %v1010_v9  ;;  %v1007_v34 = vld [vmem:[%s1122_s4] ss:$12 sps:$4 sm:$0xff]   ;;  %v1012_v35 = vld [vmem:[%s1122_s4 + $0x1c] ss:$12 sps:$4 sm:$0xff]  }
  0x20   : > { %s1129_s8 = scalar_lea.vmem %s1187_s1, %s824_s5  ;;  %v1011_v36 = vld [vmem:[%s1122_s4 + $0x20] ss:$12 sps:$4 sm:$0xff]   ;;  %v1014_v37 = vld [vmem:[%s1122_s4 + $0x18] ss:$12 sps:$4 sm:$0xff]  }
  0x21   : > { %v983_v10 = vld [vmem:[%s1129_s8 + $0x78] sm:$0xff]   ;;  %v986_v13 = vld [vmem:[%s1129_s8 + $0x70] sm:$0xff]   ;;  %v989_v16 = vld [vmem:[%s1129_s8 + $0x68] sm:$0xff]  }
  0x22   : > { %v984_v11 = vld [vmem:[%s1129_s8 + $0x38] sm:$0xff]   ;;  %883 = vmatprep.subr.bf16.mxu0 %v983_v10  ;;  %v987_v14 = vld [vmem:[%s1129_s8 + $0x30] sm:$0xff]   ;;  %v990_v17 = vld [vmem:[%s1129_s8 + $0x28] sm:$0xff]  }
  0x23   : > { %v985_v12 = vld [vmem:[%s1129_s8 + $0xb8] sm:$0xff]   ;;  %884 = vmatpush3.bf16.msra.mxu0 %v984_v11  ;;  %v988_v15 = vld [vmem:[%s1129_s8 + $0xb0] sm:$0xff]   ;;  %v991_v18 = vld [vmem:[%s1129_s8 + $0xa8] sm:$0xff]  }
  0x24   : > { %921 = vmatprep.subr.bf16.mxu1 %v985_v12  ;;  %885 = vmatprep.subr.bf16.mxu0 %v986_v13  ;;  %v992_v19 = vld [vmem:[%s1129_s8 + $0x60] sm:$0xff]   ;;  %v995_v22 = vld [vmem:[%s1129_s8 + $0x58] sm:$0xff]   ;;  %v998_v25 = vld [vmem:[%s1129_s8 + $0x50] sm:$0xff]  }
  0x25   : > { %922 = vmatpush3.bf16.msra.mxu1 %v985_v12  ;;  %v993_v20 = vld [vmem:[%s1129_s8 + $0x20] sm:$0xff]   ;;  %v997_v23 = vld [vmem:[%s1129_s8 + $0x98] sm:$0xff]   ;;  %v1000_v26 = vld [vmem:[%s1129_s8 + $0x90] sm:$0xff]  }
  0x26   : > { %923 = vmatprep.subr.bf16.mxu1 %v988_v15  ;;  %v994_v21 = vld [vmem:[%s1129_s8 + $0xa0] sm:$0xff]   ;;  %v996_v24 = vld [vmem:[%s1129_s8 + $0x18] sm:$0xff]   ;;  %v999_v27 = vld [vmem:[%s1129_s8 + $0x10] sm:$0xff]  }
  0x27   : > { %886 = vmatpush3.bf16.msra.mxu0 %v987_v14  ;;  %v1001_v28 = vld [vmem:[%s1129_s8 + $0x48] sm:$0xff]   ;;  %v1004_v31 = vld [vmem:[%s1129_s8 + $0x40] sm:$0xff]  }
  0x28   : > { %887 = vmatprep.subr.bf16.mxu0 %v989_v16  ;;  %v1003_v29 = vld [vmem:[%s1129_s8 + $0x88] sm:$0xff]   ;;  %v1006_v32 = vld [vmem:[%s1129_s8 + $0x80] sm:$0xff]  }
  0x29   : > { %924 = vmatpush3.bf16.msra.mxu1 %v988_v15  ;;  %v1002_v30 = vld [vmem:[%s1129_s8 + $0x8] sm:$0xff]   ;;  %v1005_v33 = vld [vmem:[%s1129_s8] sm:$0xff]  }
  0x2a   : > { %925 = vmatprep.subr.bf16.mxu1 %v991_v18 }
  0x2b   : > { %888 = vmatpush3.bf16.msra.mxu0 %v990_v17 }
  0x2c   : > { %889 = vmatprep.subr.bf16.mxu0 %v992_v19 }
  0x2d   : > { %926 = vmatpush3.bf16.msra.mxu1 %v991_v18 }
  0x2e   : > { %927 = vmatprep.subr.bf16.mxu1 %v994_v21 }
  0x2f   : > { %890 = vmatpush3.bf16.msra.mxu0 %v993_v20 }
  0x30   : > { %891 = vmatprep.subr.bf16.mxu0 %v995_v22 }
  0x31   : > { %928 = vmatpush3.bf16.msra.mxu1 %v994_v21 }
  0x32   : > { %929 = vmatprep.subr.bf16.mxu1 %v997_v23 }
  0x33   : > { %892 = vmatpush3.bf16.msra.mxu0 %v996_v24 }
  0x34   : > { %893 = vmatprep.subr.bf16.mxu0 %v998_v25 }
  0x35   : > { %930 = vmatpush3.bf16.msra.mxu1 %v997_v23 }
  0x36   : > { %931 = vmatprep.subr.bf16.mxu1 %v1000_v26 }
  0x37   : > { %894 = vmatpush3.bf16.msra.mxu0 %v999_v27 }
  0x38   : > { %895 = vmatprep.subr.bf16.mxu0 %v1001_v28 }
  0x39   : > { %932 = vmatpush3.bf16.msra.mxu1 %v1000_v26 }
  0x3a   : > { %933 = vmatprep.subr.bf16.mxu1 %v1003_v29 }
  0x3b   : > { %896 = vmatpush3.bf16.msra.mxu0 %v1002_v30 }
  0x3c   : > { %897 = vmatprep.subr.bf16.mxu0 %v1004_v31 }
  0x3d   : > { %934 = vmatpush3.bf16.msra.mxu1 %v1003_v29 }
  0x3e   : > { %935 = vmatprep.subr.bf16.mxu1 %v1006_v32 }
  0x3f   : > { %898 = vmatpush3.bf16.msra.mxu0 %v1005_v33 }
  0x41   : > { %936 = vmatpush3.bf16.msra.mxu1 %v1006_v32 }
  0x42   : > { %563 = vmatmul.mubr.bf16.vlgmr.msra.gmra.mxu0 %v1007_v34 }
  0x43   : > { %570 = vmatprep.mubr.bf16.mxu0 %v1012_v35 }
  0x44   : > { %938 = vmatmul.mubr.bf16.vlgmr.msra.gmra.mxu1 %v1011_v36 }
  0x4a   : > { %571 = vmatmul.mubr.bf16.gmra.mxu0 %v1014_v37 }
 0x102   : > { %v899_v38 = vpop.f32.mrf.mxu0 }
 0x104   : > { %v900_v39 = vpop.f32.mrf.mxu0  ;;  %v939_v40 = vpop.f32.mrf.mxu1 }
 0x105   : > { %v901_v41 = vadd.f32 %v900_v39, %v899_v38 }
 0x106   : > { %v902_v42 = vpop.f32.mrf.mxu0  ;;  %v613_v43 = vpop.f32.mrf.mxu1 }
 0x107   : > { %v614_v44 = vadd.f32 %v901_v41, %v613_v43 }
 0x108   : > { %v903_v45 = vpop.f32.mrf.mxu0  ;;  %v940_v46 = vpop.f32.mrf.mxu1 }
 0x109   : > { %v904_v47 = vadd.f32 %v903_v45, %v902_v42 }
 0x10a   : > { %v905_v48 = vpop.f32.mrf.mxu0  ;;  %v616_v49 = vpop.f32.mrf.mxu1 }
 0x10b   : > { %v617_v50 = vadd.f32 %v904_v47, %v616_v49 }
 0x10c   : > { %v906_v51 = vpop.f32.mrf.mxu0 }
 0x10d   : > { %v907_v52 = vadd.f32 %v906_v51, %v905_v48 }
 0x10e   : > { %v908_v53 = vpop.f32.mrf.mxu0 }
 0x10f   : > { %v622_v54 = vadd.f32 %v939_v40, %v907_v52  ;;  %631 = sbr.rel (%p855_p10) target bundleno = 278 (0x116), region = 62 }
 0x110   : > { %v909_v55 = vpop.f32.mrf.mxu0 }
 0x111   : > { %v910_v56 = vadd.f32 %v909_v55, %v908_v53 }
 0x113   : > { %v625_v57 = vadd.f32 %v940_v46, %v910_v56 }
 0x114   : > { %632 = vst [vmem:[#allocation2 + $0x10] sm:$0xff] %v614_v44  ;;  %633 = vst [vmem:[#allocation2] sm:$0xff] %v617_v50 }
 0x115   : > { %634 = vst [vmem:[#allocation2 + $0x18] sm:$0xff] %v622_v54  ;;  %635 = vst [vmem:[#allocation2 + $0x8] sm:$0xff] %v625_v57 }
 0x116 PF: > { %p856_p11 = scmp.le.s32.totalorder %s1045_s14, 0 }
 0x118   : > { %639 = sbr.rel (%p856_p11) target bundleno = 290 (0x122), region = 66 }
 0x11d   : > { %v640_v58 = vld [vmem:[#allocation2 + $0x10] sm:$0xff]  ;;  %v641_v59 = vld [vmem:[#allocation2] sm:$0xff]  ;;  %v642_v60 = vld [vmem:[#allocation2 + $0x18] sm:$0xff] }
 0x11e   : > { %v644_v61 = vadd.f32 %v640_v58, %v614_v44  ;;  %v645_v62 = vadd.f32 %v641_v59, %v617_v50  ;;  %v646_v63 = vadd.f32 %v642_v60, %v622_v54  ;;  %v643_v0 = vld [vmem:[#allocation2 + $0x8] sm:$0xff] }
 0x11f   : > { %v647_v1 = vadd.f32 %v643_v0, %v625_v57 }
 0x120   : > { %648 = vst [vmem:[#allocation2 + $0x10] sm:$0xff] %v644_v61  ;;  %649 = vst [vmem:[#allocation2] sm:$0xff] %v645_v62 }
 0x121   : > { %650 = vst [vmem:[#allocation2 + $0x18] sm:$0xff] %v646_v63  ;;  %651 = vst [vmem:[#allocation2 + $0x8] sm:$0xff] %v647_v1 }
 0x122 PF: > { %p857_p12 = scmp.ne.s32.totalorder %s1045_s14, 2 }
 0x124   : > { %655 = sbr.rel (%p857_p12) target bundleno = 306 (0x132), region = 70 }
 0x129   : > { %v656_v2 = vld [vmem:[#allocation2 + $0x10] sm:$0xff]  ;;  %v657_v3 = vld [vmem:[#allocation2] sm:$0xff]  ;;  %v658_v7 = vld [vmem:[#allocation2 + $0x18] sm:$0xff] }
 0x12a   : > { %v858_v4 = vld [vmem:[%s1188_s2] ss:$0 sm:$0xff]  ;;  %v659_v8 = vld [vmem:[#allocation2 + $0x8] sm:$0xff] }
 0x12b   : > { %v667_v5 = vadd.f32 %v858_v4, %v656_v2  ;;  %v668_v6 = vadd.f32 %v858_v4, %v657_v3  ;;  %v669_v9 = vadd.f32 %v858_v4, %v658_v7  ;;  %v670_v10 = vadd.f32 %v858_v4, %v659_v8 }
 0x12d   : > { %v671_v11 = vmax.f32 %v667_v5, 0.0  ;;  %v672_v12 = vmax.f32 %v668_v6, 0.0  ;;  %v673_v13 = vmax.f32 %v669_v9, 0.0  ;;  %v674_v14 = vmax.f32 %v670_v10, 0.0 }
 0x12f   : > { %v875_v15 = vpack.c.bf16 %v672_v12, %v671_v11  ;;  %v880_v16 = vpack.c.bf16 %v674_v14, %v673_v13 }
 0x131   : > { %876 = vst [vmem:[%s1189_s3] sm:$0xff] %v875_v15   ;;  %882 = vst [vmem:[%s1189_s3 + $0x8] sm:$0xff] %v880_v16  }
 0x132 PF: > { %s13_s16 = sadd.s32 1, %s1053_s16   ;;  %s1190_s12 = smov %s1041_s13 }
 0x133   : > { %p10_p13 = scmp.ge.s32.totalorder %s13_s16, 5   ;;  %s1191_s13 = smov %s1110_s20 }
 0x134   : > { %s1192_s14 = smov %s1049_s15  ;;  %s1193_s15 = smov %s1195_s17 }
 0x135   :  { %12 = sbr.rel (!%p10_p13) target bundleno = 3 (0x3), region = 117 }

// kernel: resnet_forward.26
= control target key start
LH: loop header
LB: loop body
LE: loop exit
PB: predicated region body
PF: predicated region fallthrough
CT: control target
= control target key end

     0   :  { %s339_s1 = inlined_call_operand.vmem [shape: bf16[128,128], index: 1, kind: input, shape index: {}]   ;;  %s340_s0 = inlined_call_operand.vmem [shape: bf16[32,128], index: 0, kind: input, shape index: {}]   ;;  %s341_s2 = inlined_call_operand.vmem [shape: f32[1,128], index: 2, kind: input, shape index: {}]   ;;  %s342_s3 = inlined_call_operand.vmem [shape: bf16[32,128], index: 3, kind: output, shape index: {}]  }
   0x1   :  { %v270_v0 = vld [vmem:[%s339_s1 + $0x38] sm:$0xff]   ;;  %v271_v1 = vld [vmem:[%s339_s1 + $0x30] sm:$0xff]   ;;  %v272_v2 = vld [vmem:[%s339_s1 + $0x28] sm:$0xff]  }
   0x2   :  { %250 = vmatprep.subr.bf16.mxu0 %v270_v0  ;;  %v273_v3 = vld [vmem:[%s339_s1 + $0x20] sm:$0xff]   ;;  %v274_v5 = vld [vmem:[%s339_s1 + $0x18] sm:$0xff]   ;;  %v275_v6 = vld [vmem:[%s339_s1 + $0x10] sm:$0xff]  }
   0x3   :  { %251 = vmatpush3.bf16.msra.mxu0 %v270_v0  ;;  %v278_v4 = vld [vmem:[%s340_s0] sm:$0xff]   ;;  %v276_v7 = vld [vmem:[%s339_s1 + $0x8] sm:$0xff]  }
   0x4   :  { %252 = vmatprep.subr.bf16.mxu0 %v271_v1  ;;  %266 = vmatprep.mubr.bf16.mxu0 %v278_v4  ;;  %v277_v8 = vld [vmem:[%s339_s1] sm:$0xff]   ;;  %v279_v9 = vld [vmem:[%s340_s0 + $0x8] sm:$0xff]  }
   0x5   :  { %v220_v11 = vld [vmem:[%s341_s2] ss:$0 sm:$0xff] }
   0x7   :  { %253 = vmatpush3.bf16.msra.mxu0 %v271_v1 }
   0x8   :  { %254 = vmatprep.subr.bf16.mxu0 %v272_v2 }
   0xb   :  { %255 = vmatpush3.bf16.msra.mxu0 %v272_v2 }
   0xc   :  { %256 = vmatprep.subr.bf16.mxu0 %v273_v3 }
   0xf   :  { %257 = vmatpush3.bf16.msra.mxu0 %v273_v3 }
  0x10   :  { %258 = vmatprep.subr.bf16.mxu0 %v274_v5 }
  0x13   :  { %259 = vmatpush3.bf16.msra.mxu0 %v274_v5 }
  0x14   :  { %260 = vmatprep.subr.bf16.mxu0 %v275_v6 }
  0x17   :  { %261 = vmatpush3.bf16.msra.mxu0 %v275_v6 }
  0x18   :  { %262 = vmatprep.subr.bf16.mxu0 %v276_v7 }
  0x1b   :  { %263 = vmatpush3.bf16.msra.mxu0 %v276_v7 }
  0x1c   :  { %264 = vmatprep.subr.bf16.mxu0 %v277_v8 }
  0x1f   :  { %265 = vmatpush3.bf16.msra.mxu0 %v277_v8 }
  0x22   :  { %267 = vmatmul.mubr.bf16.vlgmr.msra.gmra.mxu0 %v279_v9 }
  0xe2   :  { %v268_v10 = vpop.f32.mrf.mxu0 }
  0xe3   :  { %v184_v14 = vadd.f32 %v268_v10, %v220_v11 }
  0xe4   :  { %v129_v12 = vpop.f32.mrf.mxu0 }
  0xe5   :  { %v182_v17 = vadd.f32 %v220_v11, %v129_v12 }
  0xe6   :  { %v269_v13 = vpop.f32.mrf.mxu0 }
  0xe7   :  { %v185_v15 = vadd.f32 %v269_v13, %v220_v11 }
  0xe8   :  { %v132_v16 = vpop.f32.mrf.mxu0 }
  0xe9   :  { %v237_v18 = vpack.c.bf16 %v185_v15, %v184_v14  ;;  %v183_v19 = vadd.f32 %v220_v11, %v132_v16 }
  0xeb   :  { %239 = vst [vmem:[%s342_s3 + $0x8] sm:$0xff] %v237_v18   ;;  %v232_v20 = vpack.c.bf16 %v183_v19, %v182_v17 }
  0xed   :  { %233 = vst [vmem:[%s342_s3] sm:$0xff] %v232_v20  }

// kernel: resnet_forward.28
= control target key start
LH: loop header
LB: loop body
LE: loop exit
PB: predicated region body
PF: predicated region fallthrough
CT: control target
= control target key end

     0   :  { %s1180_s15 = smov 0   ;;  %s1182_s16 = smov 0   ;;  %s1297_s0 = inlined_call_operand.vmem [shape: bf16[32,1152], index: 0, kind: input, shape index: {}]   ;;  %s1298_s1 = inlined_call_operand.vmem [shape: bf16[1152,128], index: 1, kind: input, shape index: {}]   ;;  %s1299_s2 = inlined_call_operand.vmem [shape: f32[1,128], index: 2, kind: input, shape index: {}]   ;;  %s1300_s3 = inlined_call_operand.vmem [shape: bf16[32,128], index: 3, kind: input, shape index: {}]   ;;  %s1301_s4 = inlined_call_operand.vmem [shape: bf16[32,128], index: 4, kind: output, shape index: {}]  }
   0x1   :  { %s1184_s17 = smov 0   ;;  %s1186_s18 = smov 0  }
   0x2   :  { %s1188_s19 = smov 0  }
   0x3 LB: > { %s26_s20 = sadd.s32 1, %s1149_s18  ;;  %p49_p1 = scmp.ne.s32.totalorder %s1141_s16, %s1137_s15  ;;  %s1153_s19 = sphi %s1188_s19, %s14_s19   ;;  %s1149_s18 = sphi %s1186_s18, %s1305_s18   ;;  %s1145_s17 = sphi %s1184_s17, %s1304_s17   ;;  %s1141_s16 = sphi %s1182_s16, %s1303_s16   ;;  %s1137_s15 = sphi %s1180_s15, %s1302_s15  }
   0x4   : > { %p27_p0 = scmp.ge.s32.totalorder %s26_s20, 3  ;;  %p50_p2 = scmp.eq.s32.totalorder %s1153_s19, 0 }
   0x5   : > { %s42_s22 = sadd.s32 1, %s1141_s16  ;;  %p904_p5 = scmp.ge.s32.totalorder %s1153_s19, 3 }
   0x6   : > { %s1307_s20 = smov (%p27_p0, %s26_s20), 0  ;;  %p51_p3 = por %p50_p2, %p49_p1 }
   0x7   : > { %s38_s21 = ssub.s32 %s1149_s18, %s1307_s20  ;;  %203 = sbr.rel (%p904_p5) target bundleno = 21 (0x15), region = 24 }
   0x8   : > { %p40_p4 = scmp.eq.s32.totalorder %s38_s21, 0 }
   0xa   : > { %s1215_s23 = scalar_select %p40_p4, %s1141_s16, %s42_s22  }
   0xc   : > { %206 = sbr.rel (!%p51_p3) target bundleno = 21 (0x15), region = 28  ;;  %s208_s24 = sand.u32 (%p51_p3), 1, %s1141_s16  }
   0xd   : > { %s958_s25 = smul.u32 (%p51_p3), 12, %s1149_s18 }
   0xe   : > { %s1041_s26 = smul.u32 (%p51_p3), 48, %s208_s24 }
   0xf   : > { %s216_s29 = scalar_lea.vmem (%p51_p3), %s1297_s0, %s958_s25 }
  0x10   : > { %v231_v0 = vld [vmem:[%s216_s29] sm:$0xff] (%p51_p3)  ;;  %v235_v2 = vld [vmem:[%s216_s29 + $0x48] sm:$0xff] (%p51_p3)  ;;  %s210_s30 = scalar_lea.vmem (%p51_p3), [#allocation3], %s1041_s26  ;;  %v910_v6 = vld [vmem:[%s216_s29 + $0x50] sm:$0xf] (%p51_p3) }
  0x11   : > { %v233_v1 = vld [vmem:[%s216_s29 + $0x24] sm:$0xff]  ;;  %232 = vst [vmem:[%s210_s30] sm:$0xff] %v231_v0  ;;  %236 = vst [vmem:[%s210_s30 + $0x18] sm:$0xff] %v235_v2  ;;  %v237_v3 = vld [vmem:[%s216_s29 + $0x6c] sm:$0xff] }
  0x12   : > { %234 = vst [vmem:[%s210_s30 + $0xc] sm:$0xff] %v233_v1  ;;  %v906_v4 = vld [vmem:[%s216_s29 + $0x8] sm:$0xf]  ;;  %v908_v5 = vld [vmem:[%s216_s29 + $0x2c] sm:$0xf]  ;;  %238 = vst [vmem:[%s210_s30 + $0x24] sm:$0xff] %v237_v3 }
  0x13   : > { %907 = vst [vmem:[%s210_s30 + $0x8] sm:$0xf] %v906_v4  ;;  %909 = vst [vmem:[%s210_s30 + $0x14] sm:$0xf] %v908_v5  ;;  %v912_v7 = vld [vmem:[%s216_s29 + $0x74] sm:$0xf] }
  0x14   : > { %911 = vst [vmem:[%s210_s30 + $0x20] sm:$0xf] %v910_v6  ;;  %913 = vst [vmem:[%s210_s30 + $0x2c] sm:$0xf] %v912_v7 }
  0x15 PF: > { %p914_p6 = scmp.ge.s32.totalorder %s1153_s19, 1  ;;  %p271_p7 = scmp.lt.s32.totalorder %s1153_s19, 4 }
  0x17   : > { %p272_p8 = pnand %p914_p6, %p271_p7 }
  0x18   : > { %s327_s5 = smul.u32 (!%p272_p8), 48, %s1145_s17  ;;  %s278_s6 = sand.u32 (!%p272_p8), 1, %s1137_s15  }
  0x19   : > { %275 = sbr.rel (%p272_p8) target bundleno = 309 (0x135), region = 58  ;;  %p946_p10 = scmp.ne.s32.totalorder (!%p272_p8), %s1145_s17, 0 }
  0x1a   : > { %s1042_s7 = smul.u32 (!%p272_p8), 48, %s278_s6  ;;  %p328_p9 = scmp.lt.s32.totalorder (!%p272_p8), %s327_s5, 143 }
  0x1c   : > { %s1227_s8 = scalar_lea.vmem (!%p272_p8), [#allocation3], %s1042_s7 }
  0x1e   : > { %s1309_s5 = smov (!%p328_p9, %s327_s5), 143  ;;  %v1109_v8 = vld [vmem:[%s1227_s8 + $0x4] ss:$12 sps:$4 sm:$0xff]   ;;  %v1110_v9 = vld [vmem:[%s1227_s8 + $0x8] ss:$12 sps:$4 sm:$0xff]  }
  0x1f   : > { %s915_s9 = sshll.u32 %s1309_s5, 2  ;;  %622 = vmatprep.mubr.bf16.mxu0 %v1109_v8  ;;  %1037 = vmatprep.mubr.bf16.mxu1 %v1110_v9  ;;  %v1107_v34 = vld [vmem:[%s1227_s8] ss:$12 sps:$4 sm:$0xff]   ;;  %v1112_v35 = vld [vmem:[%s1227_s8 + $0x1c] ss:$12 sps:$4 sm:$0xff]  }
  0x20   : > { %s1234_s12 = scalar_lea.vmem %s1298_s1, %s915_s9  ;;  %v1111_v36 = vld [vmem:[%s1227_s8 + $0x20] ss:$12 sps:$4 sm:$0xff]   ;;  %v1114_v37 = vld [vmem:[%s1227_s8 + $0x18] ss:$12 sps:$4 sm:$0xff]  }
  0x21   : > { %v1083_v10 = vld [vmem:[%s1234_s12 + $0x78] sm:$0xff]   ;;  %v1086_v13 = vld [vmem:[%s1234_s12 + $0x70] sm:$0xff]   ;;  %v1089_v16 = vld [vmem:[%s1234_s12 + $0x68] sm:$0xff]  }
  0x22   : > { %v1084_v11 = vld [vmem:[%s1234_s12 + $0x38] sm:$0xff]   ;;  %983 = vmatprep.subr.bf16.mxu0 %v1083_v10  ;;  %v1087_v14 = vld [vmem:[%s1234_s12 + $0x30] sm:$0xff]   ;;  %v1090_v17 = vld [vmem:[%s1234_s12 + $0x28] sm:$0xff]  }
  0x23   : > { %v1085_v12 = vld [vmem:[%s1234_s12 + $0xb8] sm:$0xff]   ;;  %984 = vmatpush3.bf16.msra.mxu0 %v1084_v11  ;;  %v1088_v15 = vld [vmem:[%s1234_s12 + $0xb0] sm:$0xff]   ;;  %v1091_v18 = vld [vmem:[%s1234_s12 + $0xa8] sm:$0xff]  }
  0x24   : > { %1021 = vmatprep.subr.bf16.mxu1 %v1085_v12  ;;  %985 = vmatprep.subr.bf16.mxu0 %v1086_v13  ;;  %v1092_v19 = vld [vmem:[%s1234_s12 + $0x60] sm:$0xff]   ;;  %v1095_v22 = vld [vmem:[%s1234_s12 + $0x58] sm:$0xff]   ;;  %v1098_v25 = vld [vmem:[%s1234_s12 + $0x50] sm:$0xff]  }
  0x25   : > { %1022 = vmatpush3.bf16.msra.mxu1 %v1085_v12  ;;  %v1093_v20 = vld [vmem:[%s1234_s12 + $0x20] sm:$0xff]   ;;  %v1097_v23 = vld [vmem:[%s1234_s12 + $0x98] sm:$0xff]   ;;  %v1100_v26 = vld [vmem:[%s1234_s12 + $0x90] sm:$0xff]  }
  0x26   : > { %1023 = vmatprep.subr.bf16.mxu1 %v1088_v15  ;;  %v1094_v21 = vld [vmem:[%s1234_s12 + $0xa0] sm:$0xff]   ;;  %v1096_v24 = vld [vmem:[%s1234_s12 + $0x18] sm:$0xff]   ;;  %v1099_v27 = vld [vmem:[%s1234_s12 + $0x10] sm:$0xff]  }
  0x27   : > { %986 = vmatpush3.bf16.msra.mxu0 %v1087_v14  ;;  %v1101_v28 = vld [vmem:[%s1234_s12 + $0x48] sm:$0xff]   ;;  %v1104_v31 = vld [vmem:[%s1234_s12 + $0x40] sm:$0xff]  }
  0x28   : > { %987 = vmatprep.subr.bf16.mxu0 %v1089_v16  ;;  %v1103_v29 = vld [vmem:[%s1234_s12 + $0x88] sm:$0xff]   ;;  %v1106_v32 = vld [vmem:[%s1234_s12 + $0x80] sm:$0xff]  }
  0x29   : > { %1024 = vmatpush3.bf16.msra.mxu1 %v1088_v15  ;;  %v1102_v30 = vld [vmem:[%s1234_s12 + $0x8] sm:$0xff]   ;;  %v1105_v33 = vld [vmem:[%s1234_s12] sm:$0xff]  }
  0x2a   : > { %1025 = vmatprep.subr.bf16.mxu1 %v1091_v18 }
  0x2b   : > { %988 = vmatpush3.bf16.msra.mxu0 %v1090_v17 }
  0x2c   : > { %989 = vmatprep.subr.bf16.mxu0 %v1092_v19 }
  0x2d   : > { %1026 = vmatpush3.bf16.msra.mxu1 %v1091_v18 }
  0x2e   : > { %1027 = vmatprep.subr.bf16.mxu1 %v1094_v21 }
  0x2f   : > { %990 = vmatpush3.bf16.msra.mxu0 %v1093_v20 }
  0x30   : > { %991 = vmatprep.subr.bf16.mxu0 %v1095_v22 }
  0x31   : > { %1028 = vmatpush3.bf16.msra.mxu1 %v1094_v21 }
  0x32   : > { %1029 = vmatprep.subr.bf16.mxu1 %v1097_v23 }
  0x33   : > { %992 = vmatpush3.bf16.msra.mxu0 %v1096_v24 }
  0x34   : > { %993 = vmatprep.subr.bf16.mxu0 %v1098_v25 }
  0x35   : > { %1030 = vmatpush3.bf16.msra.mxu1 %v1097_v23 }
  0x36   : > { %1031 = vmatprep.subr.bf16.mxu1 %v1100_v26 }
  0x37   : > { %994 = vmatpush3.bf16.msra.mxu0 %v1099_v27 }
  0x38   : > { %995 = vmatprep.subr.bf16.mxu0 %v1101_v28 }
  0x39   : > { %1032 = vmatpush3.bf16.msra.mxu1 %v1100_v26 }
  0x3a   : > { %1033 = vmatprep.subr.bf16.mxu1 %v1103_v29 }
  0x3b   : > { %996 = vmatpush3.bf16.msra.mxu0 %v1102_v30 }
  0x3c   : > { %997 = vmatprep.subr.bf16.mxu0 %v1104_v31 }
  0x3d   : > { %1034 = vmatpush3.bf16.msra.mxu1 %v1103_v29 }
  0x3e   : > { %1035 = vmatprep.subr.bf16.mxu1 %v1106_v32 }
  0x3f   : > { %998 = vmatpush3.bf16.msra.mxu0 %v1105_v33 }
  0x41   : > { %1036 = vmatpush3.bf16.msra.mxu1 %v1106_v32 }
  0x42   : > { %623 = vmatmul.mubr.bf16.vlgmr.msra.gmra.mxu0 %v1107_v34 }
  0x43   : > { %630 = vmatprep.mubr.bf16.mxu0 %v1112_v35 }
  0x44   : > { %1038 = vmatmul.mubr.bf16.vlgmr.msra.gmra.mxu1 %v1111_v36 }
  0x4a   : > { %631 = vmatmul.mubr.bf16.gmra.mxu0 %v1114_v37 }
 0x102   : > { %v999_v38 = vpop.f32.mrf.mxu0 }
 0x104   : > { %v1000_v39 = vpop.f32.mrf.mxu0  ;;  %v1039_v40 = vpop.f32.mrf.mxu1 }
 0x105   : > { %v1001_v41 = vadd.f32 %v1000_v39, %v999_v38 }
 0x106   : > { %v1002_v42 = vpop.f32.mrf.mxu0  ;;  %v673_v43 = vpop.f32.mrf.mxu1 }
 0x107   : > { %v674_v44 = vadd.f32 %v1001_v41, %v673_v43 }
 0x108   : > { %v1003_v45 = vpop.f32.mrf.mxu0  ;;  %v1040_v46 = vpop.f32.mrf.mxu1 }
 0x109   : > { %v1004_v47 = vadd.f32 %v1003_v45, %v1002_v42 }
 0x10a   : > { %v1005_v48 = vpop.f32.mrf.mxu0  ;;  %v676_v49 = vpop.f32.mrf.mxu1 }
 0x10b   : > { %v677_v50 = vadd.f32 %v1004_v47, %v676_v49 }
 0x10c   : > { %v1006_v51 = vpop.f32.mrf.mxu0 }
 0x10d   : > { %v1007_v52 = vadd.f32 %v1006_v51, %v1005_v48 }
 0x10e   : > { %v1008_v53 = vpop.f32.mrf.mxu0 }
 0x10f   : > { %v682_v54 = vadd.f32 %v1039_v40, %v1007_v52  ;;  %691 = sbr.rel (%p946_p10) target bundleno = 278 (0x116), region = 66 }
 0x110   : > { %v1009_v55 = vpop.f32.mrf.mxu0 }
 0x111   : > { %v1010_v56 = vadd.f32 %v1009_v55, %v1008_v53 }
 0x113   : > { %v685_v57 = vadd.f32 %v1040_v46, %v1010_v56 }
 0x114   : > { %692 = vst [vmem:[#allocation2 + $0x10] sm:$0xff] %v674_v44  ;;  %693 = vst [vmem:[#allocation2] sm:$0xff] %v677_v50 }
 0x115   : > { %694 = vst [vmem:[#allocation2 + $0x18] sm:$0xff] %v682_v54  ;;  %695 = vst [vmem:[#allocation2 + $0x8] sm:$0xff] %v685_v57 }
 0x116 PF: > { %p947_p11 = scmp.le.s32.totalorder %s1145_s17, 0 }
 0x118   : > { %699 = sbr.rel (%p947_p11) target bundleno = 290 (0x122), region = 70 }
 0x11d   : > { %v700_v58 = vld [vmem:[#allocation2 + $0x10] sm:$0xff]  ;;  %v701_v59 = vld [vmem:[#allocation2] sm:$0xff]  ;;  %v702_v60 = vld [vmem:[#allocation2 + $0x18] sm:$0xff] }
 0x11e   : > { %v704_v61 = vadd.f32 %v700_v58, %v674_v44  ;;  %v705_v62 = vadd.f32 %v701_v59, %v677_v50  ;;  %v706_v63 = vadd.f32 %v702_v60, %v682_v54  ;;  %v703_v0 = vld [vmem:[#allocation2 + $0x8] sm:$0xff] }
 0x11f   : > { %v707_v1 = vadd.f32 %v703_v0, %v685_v57 }
 0x120   : > { %708 = vst [vmem:[#allocation2 + $0x10] sm:$0xff] %v704_v61  ;;  %709 = vst [vmem:[#allocation2] sm:$0xff] %v705_v62 }
 0x121   : > { %710 = vst [vmem:[#allocation2 + $0x18] sm:$0xff] %v706_v63  ;;  %711 = vst [vmem:[#allocation2 + $0x8] sm:$0xff] %v707_v1 }
 0x122 PF: > { %p948_p12 = scmp.ne.s32.totalorder %s1145_s17, 2 }
 0x124   : > { %715 = sbr.rel (%p948_p12) target bundleno = 309 (0x135), region = 74 }
 0x129   : > { %v716_v2 = vld [vmem:[#allocation2 + $0x10] sm:$0xff]  ;;  %v717_v3 = vld [vmem:[#allocation2] sm:$0xff]  ;;  %v718_v8 = vld [vmem:[#allocation2 + $0x18] sm:$0xff] }
 0x12a   : > { %v949_v4 = vld [vmem:[%s1299_s2] ss:$0 sm:$0xff]  ;;  %v719_v9 = vld [vmem:[#allocation2 + $0x8] sm:$0xff] }
 0x12b   : > { %v727_v5 = vadd.f32 %v949_v4, %v716_v2  ;;  %v728_v6 = vadd.f32 %v949_v4, %v717_v3  ;;  %v964_v7 = vld [vmem:[%s1300_s3] sm:$0xff]   ;;  %v729_v12 = vadd.f32 %v949_v4, %v718_v8  ;;  %v730_v13 = vadd.f32 %v949_v4, %v719_v9  ;;  %v981_v14 = vld [vmem:[%s1300_s3 + $0x8] sm:$0xff]  }
 0x12c   : > { %v965_v10 = vunpack.c.l.bf16 %v964_v7  ;;  %v966_v11 = vunpack.c.h.bf16 %v964_v7  ;;  %v969_v15 = vunpack.c.l.bf16 %v981_v14  ;;  %v970_v16 = vunpack.c.h.bf16 %v981_v14 }
 0x12e   : > { %v739_v17 = vadd.f32 %v965_v10, %v727_v5  ;;  %v740_v18 = vadd.f32 %v966_v11, %v728_v6  ;;  %v741_v19 = vadd.f32 %v969_v15, %v729_v12  ;;  %v742_v20 = vadd.f32 %v970_v16, %v730_v13 }
 0x130   : > { %v743_v21 = vmax.f32 %v739_v17, 0.0  ;;  %v744_v22 = vmax.f32 %v740_v18, 0.0  ;;  %v745_v23 = vmax.f32 %v741_v19, 0.0  ;;  %v746_v24 = vmax.f32 %v742_v20, 0.0 }
 0x132   : > { %v974_v25 = vpack.c.bf16 %v744_v22, %v743_v21  ;;  %v979_v26 = vpack.c.bf16 %v746_v24, %v745_v23 }
 0x134   : > { %975 = vst [vmem:[%s1301_s4] sm:$0xff] %v974_v25   ;;  %982 = vst [vmem:[%s1301_s4 + $0x8] sm:$0xff] %v979_v26  }
 0x135 PF: > { %s14_s19 = sadd.s32 1, %s1153_s19   ;;  %s1302_s15 = smov %s1141_s16 }
 0x136   : > { %p11_p13 = scmp.ge.s32.totalorder %s14_s19, 5   ;;  %s1303_s16 = smov %s1215_s23 }
 0x137   : > { %s1304_s17 = smov %s1149_s18  ;;  %s1305_s18 = smov %s1307_s20 }
 0x138   :  { %13 = sbr.rel (!%p11_p13) target bundleno = 3 (0x3), region = 124 }

// kernel: resnet_forward.32
= control target key start
LH: loop header
LB: loop body
LE: loop exit
PB: predicated region body
PF: predicated region fallthrough
CT: control target
= control target key end

     0   :  { %s1151_s12 = smov 0   ;;  %s1153_s13 = smov 0   ;;  %s1283_s0 = inlined_call_operand.vmem [shape: bf16[16,1152], index: 0, kind: input, shape index: {}]   ;;  %s1284_s1 = inlined_call_operand.vmem [shape: bf16[1152,256], index: 1, kind: input, shape index: {}]   ;;  %s1285_s2 = inlined_call_operand.vmem [shape: f32[1,256], index: 2, kind: input, shape index: {}]   ;;  %s1286_s3 = inlined_call_operand.vmem [shape: bf16[16,256], index: 3, kind: output, shape index: {}]  }
   0x1   :  { %s1155_s14 = smov 0   ;;  %s1157_s15 = smov 0  }
   0x2   :  { %s1159_s16 = smov 0  }
   0x3 LB: > { %s25_s17 = sadd.s32 1, %s1124_s15  ;;  %p48_p1 = scmp.ne.s32.totalorder %s1116_s13, %s1112_s12  ;;  %s1128_s16 = sphi %s1159_s16, %s13_s16   ;;  %s1124_s15 = sphi %s1157_s15, %s1290_s15   ;;  %s1120_s14 = sphi %s1155_s14, %s1289_s14   ;;  %s1116_s13 = sphi %s1153_s13, %s1288_s13   ;;  %s1112_s12 = sphi %s1151_s12, %s1287_s12  }
   0x4   : > { %p26_p0 = scmp.ge.s32.totalorder %s25_s17, 3  ;;  %p49_p2 = scmp.eq.s32.totalorder %s1128_s16, 0 }
   0x5   : > { %s41_s19 = sadd.s32 1, %s1116_s13  ;;  %p898_p5 = scmp.ge.s32.totalorder %s1128_s16, 3 }
   0x6   : > { %s1292_s17 = smov (%p26_p0, %s25_s17), 0  ;;  %p50_p3 = por %p49_p2, %p48_p1 }
   0x7   : > { %s37_s18 = ssub.s32 %s1124_s15, %s1292_s17  ;;  %164 = sbr.rel (%p898_p5) target bundleno = 19 (0x13), region = 20 }
   0x8   : > { %p39_p4 = scmp.eq.s32.totalorder %s37_s18, 0 }
   0xa   : > { %s1186_s20 = scalar_select %p39_p4, %s1116_s13, %s41_s19  }
   0xc   : > { %167 = sbr.rel (!%p50_p3) target bundleno = 19 (0x13), region = 24  ;;  %s169_s21 = sand.u32 (%p50_p3), 1, %s1116_s13  }
   0xd   : > { %s967_s22 = smul.u32 (%p50_p3), 12, %s1124_s15 }
   0xe   : > { %s971_s23 = smul.u32 (%p50_p3), 24, %s169_s21 }
   0xf   : > { %s177_s26 = scalar_lea.vmem (%p50_p3), %s1283_s0, %s967_s22 }
  0x10   : > { %v192_v0 = vld [vmem:[%s177_s26] sm:$0xff] (%p50_p3)  ;;  %v900_v2 = vld [vmem:[%s177_s26 + $0x8] sm:$0xf] (%p50_p3)  ;;  %s171_s27 = scalar_lea.vmem (%p50_p3), [#allocation3], %s971_s23  ;;  %v902_v3 = vld [vmem:[%s177_s26 + $0x2c] sm:$0xf] (%p50_p3) }
  0x11   : > { %v194_v1 = vld [vmem:[%s177_s26 + $0x24] sm:$0xff]  ;;  %193 = vst [vmem:[%s171_s27] sm:$0xff] %v192_v0  ;;  %901 = vst [vmem:[%s171_s27 + $0x8] sm:$0xf] %v900_v2 }
  0x12   : > { %195 = vst [vmem:[%s171_s27 + $0xc] sm:$0xff] %v194_v1  ;;  %903 = vst [vmem:[%s171_s27 + $0x14] sm:$0xf] %v902_v3 }
  0x13 PF: > { %p904_p6 = scmp.ge.s32.totalorder %s1128_s16, 1  ;;  %p227_p7 = scmp.lt.s32.totalorder %s1128_s16, 4 }
  0x15   : > { %p228_p8 = pnand %p904_p6, %p227_p7 }
  0x16   : > { %s278_s28 = smul.u32 (!%p228_p8), 48, %s1120_s14  ;;  %s234_s29 = sand.u32 (!%p228_p8), 1, %s1112_s12  }
  0x17   : > { %231 = sbr.rel (%p228_p8) target bundleno = 332 (0x14c), region = 54  ;;  %p958_p10 = scmp.ne.s32.totalorder (!%p228_p8), %s1120_s14, 0 }
  0x18   : > { %s972_s30 = smul.u32 (!%p228_p8), 24, %s234_s29  ;;  %p280_p9 = scmp.lt.s32.totalorder (!%p228_p8), %s278_s28, 143 }
  0x1a   : > { %s1198_s4 = scalar_lea.vmem (!%p228_p8), [#allocation3], %s972_s30 }
  0x1c   : > { %v1130_v4 = vmov 0   ;;  %s1294_s28 = smov (!%p280_p9, %s278_s28), 143  ;;  %v1089_v5 = vld [vmem:[%s1198_s4 + $0x4] ss:$12 sps:$4 sm:$0xff]   ;;  %v1083_v45 = vld [vmem:[%s1198_s4 + $0x8] ss:$12 sps:$4 sm:$0xff]  }
  0x1d   : > { %691 = vmatprep.mubr.bf16.mxu1 %v1130_v4  ;;  %s968_s5 = sshll.u32 %s1294_s28, 3  ;;  %648 = vmatprep.mubr.bf16.mxu0 %v1089_v5  ;;  %v1087_v55 = vld [vmem:[%s1198_s4] ss:$12 sps:$4 sm:$0xff]  }
  0x1e   : > { %s1204_s8 = scalar_lea.vmem %s1284_s1, %s968_s5 }
  0x1f   : > { %v1014_v6 = vld [vmem:[%s1204_s8 + $0x74] ss:$8 sps:$4 sm:$0xff]   ;;  %v1016_v7 = vld [vmem:[%s1204_s8 + $0x70] ss:$8 sps:$4 sm:$0xff]   ;;  %v1017_v8 = vld [vmem:[%s1204_s8 + $0x64] ss:$8 sps:$4 sm:$0xff]  }
  0x20   : > { %616 = vmatprep.subr.bf16.mxu0 %v1014_v6  ;;  %v1019_v9 = vld [vmem:[%s1204_s8 + $0x60] ss:$8 sps:$4 sm:$0xff]   ;;  %v1020_v10 = vld [vmem:[%s1204_s8 + $0x54] ss:$8 sps:$4 sm:$0xff]   ;;  %v1022_v11 = vld [vmem:[%s1204_s8 + $0x50] ss:$8 sps:$4 sm:$0xff]  }
  0x21   : > { %617 = vmatpush1.bf16.msra.mxu0 %v1016_v7  ;;  %v1023_v12 = vld [vmem:[%s1204_s8 + $0x44] ss:$8 sps:$4 sm:$0xff]   ;;  %v1035_v13 = vld [vmem:[%s1204_s8 + $0x174] ss:$8 sps:$4 sm:$0xff]   ;;  %v1037_v14 = vld [vmem:[%s1204_s8 + $0x170] ss:$8 sps:$4 sm:$0xff]  }
  0x22   : > { %618 = vmatprep.subr.bf16.mxu0 %v1017_v8  ;;  %v1025_v15 = vld [vmem:[%s1204_s8 + $0x40] ss:$8 sps:$4 sm:$0xff]   ;;  %v1026_v16 = vld [vmem:[%s1204_s8 + $0x34] ss:$8 sps:$4 sm:$0xff]   ;;  %659 = vmatprep.subr.bf16.mxu1 %v1035_v13  ;;  %v1041_v17 = vld [vmem:[%s1204_s8 + $0x164] ss:$8 sps:$4 sm:$0xff]  }
  0x23   : > { %660 = vmatpush1.bf16.msra.mxu1 %v1037_v14  ;;  %v1043_v18 = vld [vmem:[%s1204_s8 + $0x160] ss:$8 sps:$4 sm:$0xff]   ;;  %v1028_v19 = vld [vmem:[%s1204_s8 + $0x30] ss:$8 sps:$4 sm:$0xff]   ;;  %v1047_v20 = vld [vmem:[%s1204_s8 + $0x154] ss:$8 sps:$4 sm:$0xff]  }
  0x24   : > { %661 = vmatprep.subr.bf16.mxu1 %v1041_v17  ;;  %v1029_v21 = vld [vmem:[%s1204_s8 + $0x24] ss:$8 sps:$4 sm:$0xff]   ;;  %v1049_v22 = vld [vmem:[%s1204_s8 + $0x150] ss:$8 sps:$4 sm:$0xff]   ;;  %v1031_v24 = vld [vmem:[%s1204_s8 + $0x20] ss:$8 sps:$4 sm:$0xff]  }
  0x25   : > { %619 = vmatpush1.bf16.msra.mxu0 %v1019_v9  ;;  %v1053_v23 = vld [vmem:[%s1204_s8 + $0x144] ss:$8 sps:$4 sm:$0xff]   ;;  %v1032_v25 = vld [vmem:[%s1204_s8 + $0x14] ss:$8 sps:$4 sm:$0xff]   ;;  %v1055_v26 = vld [vmem:[%s1204_s8 + $0x140] ss:$8 sps:$4 sm:$0xff]  }
  0x26   : > { %620 = vmatprep.subr.bf16.mxu0 %v1020_v10  ;;  %v1059_v27 = vld [vmem:[%s1204_s8 + $0x134] ss:$8 sps:$4 sm:$0xff]   ;;  %v1034_v28 = vld [vmem:[%s1204_s8 + $0x10] ss:$8 sps:$4 sm:$0xff]   ;;  %v1038_v29 = vld [vmem:[%s1204_s8 + $0x4] ss:$8 sps:$4 sm:$0xff]  }
  0x27   : > { %662 = vmatpush1.bf16.msra.mxu1 %v1043_v18  ;;  %v1061_v30 = vld [vmem:[%s1204_s8 + $0x130] ss:$8 sps:$4 sm:$0xff]   ;;  %v1065_v31 = vld [vmem:[%s1204_s8 + $0x124] ss:$8 sps:$4 sm:$0xff]   ;;  %v1040_v32 = vld [vmem:[%s1204_s8] ss:$8 sps:$4 sm:$0xff]  }
  0x28   : > { %663 = vmatprep.subr.bf16.mxu1 %v1047_v20  ;;  %v1044_v33 = vld [vmem:[%s1204_s8 + $0xf4] ss:$8 sps:$4 sm:$0xff]   ;;  %v1067_v34 = vld [vmem:[%s1204_s8 + $0x120] ss:$8 sps:$4 sm:$0xff]   ;;  %v1046_v36 = vld [vmem:[%s1204_s8 + $0xf0] ss:$8 sps:$4 sm:$0xff]  }
  0x29   : > { %621 = vmatpush1.bf16.msra.mxu0 %v1022_v11  ;;  %v1071_v35 = vld [vmem:[%s1204_s8 + $0x114] ss:$8 sps:$4 sm:$0xff]   ;;  %v1050_v37 = vld [vmem:[%s1204_s8 + $0xe4] ss:$8 sps:$4 sm:$0xff]   ;;  %v1073_v38 = vld [vmem:[%s1204_s8 + $0x110] ss:$8 sps:$4 sm:$0xff]  }
  0x2a   : > { %622 = vmatprep.subr.bf16.mxu0 %v1023_v12  ;;  %v1077_v39 = vld [vmem:[%s1204_s8 + $0x104] ss:$8 sps:$4 sm:$0xff]   ;;  %v1052_v40 = vld [vmem:[%s1204_s8 + $0xe0] ss:$8 sps:$4 sm:$0xff]   ;;  %v1056_v41 = vld [vmem:[%s1204_s8 + $0xd4] ss:$8 sps:$4 sm:$0xff]  }
  0x2b   : > { %664 = vmatpush1.bf16.msra.mxu1 %v1049_v22  ;;  %v1079_v42 = vld [vmem:[%s1204_s8 + $0x100] ss:$8 sps:$4 sm:$0xff]   ;;  %v1058_v43 = vld [vmem:[%s1204_s8 + $0xd0] ss:$8 sps:$4 sm:$0xff]   ;;  %v1062_v44 = vld [vmem:[%s1204_s8 + $0xc4] ss:$8 sps:$4 sm:$0xff]  }
  0x2c   : > { %665 = vmatprep.subr.bf16.mxu1 %v1053_v23  ;;  %v1064_v46 = vld [vmem:[%s1204_s8 + $0xc0] ss:$8 sps:$4 sm:$0xff]   ;;  %v1068_v47 = vld [vmem:[%s1204_s8 + $0xb4] ss:$8 sps:$4 sm:$0xff]   ;;  %v1070_v48 = vld [vmem:[%s1204_s8 + $0xb0] ss:$8 sps:$4 sm:$0xff]  }
  0x2d   : > { %623 = vmatpush1.bf16.msra.mxu0 %v1025_v15  ;;  %v1074_v49 = vld [vmem:[%s1204_s8 + $0xa4] ss:$8 sps:$4 sm:$0xff]   ;;  %v1076_v50 = vld [vmem:[%s1204_s8 + $0xa0] ss:$8 sps:$4 sm:$0xff]   ;;  %v1080_v51 = vld [vmem:[%s1204_s8 + $0x94] ss:$8 sps:$4 sm:$0xff]  }
  0x2e   : > { %624 = vmatprep.subr.bf16.mxu0 %v1026_v16  ;;  %v1082_v52 = vld [vmem:[%s1204_s8 + $0x90] ss:$8 sps:$4 sm:$0xff]   ;;  %v1084_v53 = vld [vmem:[%s1204_s8 + $0x84] ss:$8 sps:$4 sm:$0xff]   ;;  %v1086_v54 = vld [vmem:[%s1204_s8 + $0x80] ss:$8 sps:$4 sm:$0xff]  }
  0x2f   : > { %666 = vmatpush1.bf16.msra.mxu1 %v1055_v26 }
  0x30   : > { %667 = vmatprep.subr.bf16.mxu1 %v1059_v27 }
  0x31   : > { %625 = vmatpush1.bf16.msra.mxu0 %v1028_v19 }
  0x32   : > { %626 = vmatprep.subr.bf16.mxu0 %v1029_v21 }
  0x33   : > { %668 = vmatpush1.bf16.msra.mxu1 %v1061_v30 }
  0x34   : > { %669 = vmatprep.subr.bf16.mxu1 %v1065_v31 }
  0x35   : > { %627 = vmatpush1.bf16.msra.mxu0 %v1031_v24 }
  0x36   : > { %628 = vmatprep.subr.bf16.mxu0 %v1032_v25 }
  0x37   : > { %670 = vmatpush1.bf16.msra.mxu1 %v1067_v34 }
  0x38   : > { %671 = vmatprep.subr.bf16.mxu1 %v1071_v35 }
  0x39   : > { %629 = vmatpush1.bf16.msra.mxu0 %v1034_v28 }
  0x3a   : > { %630 = vmatprep.subr.bf16.mxu0 %v1038_v29 }
  0x3b   : > { %672 = vmatpush1.bf16.msra.mxu1 %v1073_v38 }
  0x3c   : > { %673 = vmatprep.subr.bf16.mxu1 %v1077_v39 }
  0x3d   : > { %631 = vmatpush1.bf16.msra.mxu0 %v1040_v32 }
  0x3e   : > { %632 = vmatprep.subr.bf16.mxu0 %v1044_v33 }
  0x3f   : > { %674 = vmatpush1.bf16.msra.mxu1 %v1079_v42 }
  0x41   : > { %633 = vmatpush2.bf16.msra.mxu0 %v1046_v36 }
  0x42   : > { %634 = vmatprep.subr.bf16.mxu0 %v1050_v37  ;;  %692 = vmatmul.mubr.bf16.vlgmr.msra.gmra.mxu1 %v1083_v45 }
  0x45   : > { %635 = vmatpush2.bf16.msra.mxu0 %v1052_v40 }
  0x46   : > { %636 = vmatprep.subr.bf16.mxu0 %v1056_v41 }
  0x49   : > { %637 = vmatpush2.bf16.msra.mxu0 %v1058_v43 }
  0x4a   : > { %638 = vmatprep.subr.bf16.mxu0 %v1062_v44 }
  0x4d   : > { %639 = vmatpush2.bf16.msra.mxu0 %v1064_v46 }
  0x4e   : > { %640 = vmatprep.subr.bf16.mxu0 %v1068_v47 }
  0x51   : > { %641 = vmatpush2.bf16.msra.mxu0 %v1070_v48 }
  0x52   : > { %642 = vmatprep.subr.bf16.mxu0 %v1074_v49 }
  0x55   : > { %643 = vmatpush2.bf16.msra.mxu0 %v1076_v50 }
  0x56   : > { %644 = vmatprep.subr.bf16.mxu0 %v1080_v51 }
  0x59   : > { %645 = vmatpush2.bf16.msra.mxu0 %v1082_v52 }
  0x5a   : > { %646 = vmatprep.subr.bf16.mxu0 %v1084_v53 }
  0x5d   : > { %647 = vmatpush2.bf16.msra.mxu0 %v1086_v54 }
  0x60   : > { %649 = vmatmul.mubr.bf16.vlgmr.msra.gmra.mxu0 %v1087_v55 }
 0x102   : > { %v693_v56 = vpop.f32.mrf.mxu1 }
 0x104   : > { %v695_v57 = vpop.f32.mrf.mxu1 }
 0x106   : > { %v697_v60 = vpop.f32.mrf.mxu1 }
 0x108   : > { %v699_v1 = vpop.f32.mrf.mxu1 }
 0x120   : > { %v650_v58 = vpop.f32.mrf.mxu0 }
 0x121   : > { %v694_v59 = vadd.f32 %v693_v56, %v650_v58 }
 0x122   : > { %v652_v61 = vpop.f32.mrf.mxu0 }
 0x123   : > { %v696_v62 = vadd.f32 %v695_v57, %v652_v61  ;;  %705 = sbr.rel (%p958_p10) target bundleno = 298 (0x12a), region = 62 }
 0x124   : > { %v654_v63 = vpop.f32.mrf.mxu0 }
 0x125   : > { %v698_v0 = vadd.f32 %v697_v60, %v654_v63 }
 0x126   : > { %v656_v2 = vpop.f32.mrf.mxu0 }
 0x127   : > { %v700_v3 = vadd.f32 %v699_v1, %v656_v2 }
 0x128   : > { %706 = vst [vmem:[#allocation2 + $0x10] sm:$0xff] %v694_v59  ;;  %707 = vst [vmem:[#allocation2] sm:$0xff] %v696_v62 }
 0x129   : > { %708 = vst [vmem:[#allocation2 + $0x18] sm:$0xff] %v698_v0  ;;  %709 = vst [vmem:[#allocation2 + $0x8] sm:$0xff] %v700_v3 }
 0x12a PF: > { %p959_p11 = scmp.le.s32.totalorder %s1120_s14, 0 }
 0x12c   : > { %713 = sbr.rel (%p959_p11) target bundleno = 310 (0x136), region = 66 }
 0x131   : > { %v714_v4 = vld [vmem:[#allocation2 + $0x10] sm:$0xff]  ;;  %v715_v5 = vld [vmem:[#allocation2] sm:$0xff]  ;;  %v716_v6 = vld [vmem:[#allocation2 + $0x18] sm:$0xff] }
 0x132   : > { %v718_v7 = vadd.f32 %v714_v4, %v694_v59  ;;  %v719_v8 = vadd.f32 %v715_v5, %v696_v62  ;;  %v720_v9 = vadd.f32 %v716_v6, %v698_v0  ;;  %v717_v10 = vld [vmem:[#allocation2 + $0x8] sm:$0xff] }
 0x133   : > { %v721_v11 = vadd.f32 %v717_v10, %v700_v3 }
 0x134   : > { %722 = vst [vmem:[#allocation2 + $0x10] sm:$0xff] %v718_v7  ;;  %723 = vst [vmem:[#allocation2] sm:$0xff] %v719_v8 }
 0x135   : > { %724 = vst [vmem:[#allocation2 + $0x18] sm:$0xff] %v720_v9  ;;  %725 = vst [vmem:[#allocation2 + $0x8] sm:$0xff] %v721_v11 }
 0x136 PF: > { %p960_p12 = scmp.ne.s32.totalorder %s1120_s14, 2 }
 0x138   : > { %729 = sbr.rel (%p960_p12) target bundleno = 332 (0x14c), region = 70 }
 0x13d   : > { %v736_v12 = vlaneseq  ;;  %v734_v14 = vld [vmem:[%s1285_s2] sm:$0x3]  ;;  %v730_v15 = vld [vmem:[#allocation2 + $0x10] sm:$0xff]  ;;  %v732_v19 = vld [vmem:[#allocation2 + $0x18] sm:$0xff] }
 0x13e   : > { %v731_v18 = vld [vmem:[#allocation2] sm:$0xff]  ;;  %v733_v20 = vld [vmem:[#allocation2 + $0x8] sm:$0xff] }
 0x13f   : > { %v737_v13 = vshrl.u32 %v736_v12, 7 }
 0x141   : > { %v738_v16 = vsub.s32 0, %v737_v13  ;;  %v742_v17 = vsub.s32 1, %v737_v13 }
 0x143   : > { %v739_v21 = vrot.slane %v734_v14, %v738_v16  ;;  %v743_v22 = vrot.slane %v734_v14, %v742_v17 }
 0x145   : > { %v746_v23 = vadd.f32 %v739_v21, %v730_v15  ;;  %v747_v24 = vadd.f32 %v743_v22, %v731_v18  ;;  %v748_v25 = vadd.f32 %v739_v21, %v732_v19  ;;  %v749_v26 = vadd.f32 %v743_v22, %v733_v20 }
 0x147   : > { %v750_v27 = vmax.f32 %v746_v23, 0.0  ;;  %v751_v28 = vmax.f32 %v747_v24, 0.0  ;;  %v752_v29 = vmax.f32 %v748_v25, 0.0  ;;  %v753_v30 = vmax.f32 %v749_v26, 0.0 }
 0x149   : > { %v969_v31 = vpack.c.bf16 %v751_v28, %v750_v27  ;;  %v970_v32 = vpack.c.bf16 %v753_v30, %v752_v29 }
 0x14b   : > { %766 = vst [vmem:[%s1286_s3] sm:$0xff] %v969_v31  ;;  %767 = vst [vmem:[%s1286_s3 + $0x8] sm:$0xff] %v970_v32 }
 0x14c PF: > { %s13_s16 = sadd.s32 1, %s1128_s16   ;;  %s1287_s12 = smov %s1116_s13 }
 0x14d   : > { %p10_p13 = scmp.ge.s32.totalorder %s13_s16, 5   ;;  %s1288_s13 = smov %s1186_s20 }
 0x14e   : > { %s1289_s14 = smov %s1124_s15  ;;  %s1290_s15 = smov %s1292_s17 }
 0x14f   :  { %12 = sbr.rel (!%p10_p13) target bundleno = 3 (0x3), region = 117 }

// kernel: resnet_forward.31
= control target key start
LH: loop header
LB: loop body
LE: loop exit
PB: predicated region body
PF: predicated region fallthrough
CT: control target
= control target key end

     0   :  { %v274_v1 = vmov 0   ;;  %v195_v18 = vlaneseq  ;;  %s355_s1 = inlined_call_operand.vmem [shape: bf16[128,256], index: 1, kind: input, shape index: {}]   ;;  %s356_s0 = inlined_call_operand.vmem [shape: bf16[16,128], index: 0, kind: input, shape index: {}]   ;;  %s357_s2 = inlined_call_operand.vmem [shape: f32[1,256], index: 2, kind: input, shape index: {}]   ;;  %s358_s3 = inlined_call_operand.vmem [shape: bf16[16,256], index: 3, kind: output, shape index: {}]  }
   0x1   :  { %v249_v0 = vld [vmem:[%s355_s1 + $0x74] ss:$8 sps:$4 sm:$0xff]   ;;  %151 = vmatprep.mubr.bf16.mxu0 %v274_v1  ;;  %v251_v2 = vld [vmem:[%s355_s1 + $0x70] ss:$8 sps:$4 sm:$0xff]   ;;  %v252_v3 = vld [vmem:[%s355_s1 + $0x64] ss:$8 sps:$4 sm:$0xff]  }
   0x2   :  { %119 = vmatprep.subr.bf16.mxu0 %v249_v0  ;;  %v254_v4 = vld [vmem:[%s355_s1 + $0x60] ss:$8 sps:$4 sm:$0xff]   ;;  %v255_v5 = vld [vmem:[%s355_s1 + $0x54] ss:$8 sps:$4 sm:$0xff]   ;;  %v257_v6 = vld [vmem:[%s355_s1 + $0x50] ss:$8 sps:$4 sm:$0xff]  }
   0x3   :  { %120 = vmatpush1.bf16.msra.mxu0 %v251_v2  ;;  %v258_v7 = vld [vmem:[%s355_s1 + $0x44] ss:$8 sps:$4 sm:$0xff]   ;;  %v260_v8 = vld [vmem:[%s355_s1 + $0x40] ss:$8 sps:$4 sm:$0xff]   ;;  %v261_v9 = vld [vmem:[%s355_s1 + $0x34] ss:$8 sps:$4 sm:$0xff]  }
   0x4   :  { %121 = vmatprep.subr.bf16.mxu0 %v252_v3  ;;  %v263_v10 = vld [vmem:[%s355_s1 + $0x30] ss:$8 sps:$4 sm:$0xff]   ;;  %v264_v11 = vld [vmem:[%s355_s1 + $0x24] ss:$8 sps:$4 sm:$0xff]   ;;  %v266_v12 = vld [vmem:[%s355_s1 + $0x20] ss:$8 sps:$4 sm:$0xff]  }
   0x5   :  { %v267_v13 = vld [vmem:[%s355_s1 + $0x14] ss:$8 sps:$4 sm:$0xff]   ;;  %v269_v14 = vld [vmem:[%s355_s1 + $0x10] ss:$8 sps:$4 sm:$0xff]   ;;  %v270_v15 = vld [vmem:[%s355_s1 + $0x4] ss:$8 sps:$4 sm:$0xff]  }
   0x6   :  { %v272_v16 = vld [vmem:[%s355_s1] ss:$8 sps:$4 sm:$0xff]   ;;  %v196_v19 = vshrl.u32 %v195_v18, 7 }
   0x7   :  { %122 = vmatpush1.bf16.msra.mxu0 %v254_v4  ;;  %v273_v17 = vld [vmem:[%s356_s0] sm:$0xff]  }
   0x8   :  { %123 = vmatprep.subr.bf16.mxu0 %v255_v5  ;;  %v197_v20 = vsub.s32 0, %v196_v19  ;;  %v201_v21 = vsub.s32 1, %v196_v19  ;;  %v193_v22 = vld [vmem:[%s357_s2] sm:$0x3] }
   0xa   :  { %v198_v23 = vrot.slane %v193_v22, %v197_v20  ;;  %v202_v24 = vrot.slane %v193_v22, %v201_v21 }
   0xb   :  { %124 = vmatpush1.bf16.msra.mxu0 %v257_v6 }
   0xc   :  { %125 = vmatprep.subr.bf16.mxu0 %v258_v7 }
   0xf   :  { %126 = vmatpush1.bf16.msra.mxu0 %v260_v8 }
  0x10   :  { %127 = vmatprep.subr.bf16.mxu0 %v261_v9 }
  0x13   :  { %128 = vmatpush1.bf16.msra.mxu0 %v263_v10 }
  0x14   :  { %129 = vmatprep.subr.bf16.mxu0 %v264_v11 }
  0x17   :  { %130 = vmatpush1.bf16.msra.mxu0 %v266_v12 }
  0x18   :  { %131 = vmatprep.subr.bf16.mxu0 %v267_v13 }
  0x1b   :  { %132 = vmatpush1.bf16.msra.mxu0 %v269_v14 }
  0x1c   :  { %133 = vmatprep.subr.bf16.mxu0 %v270_v15 }
  0x1f   :  { %134 = vmatpush1.bf16.msra.mxu0 %v272_v16 }
  0x22   :  { %152 = vmatmul.mubr.bf16.vlgmr.msra.gmra.mxu0 %v273_v17 }
  0xe2   :  { %v153_v25 = vpop.f32.mrf.mxu0 }
  0xe3   :  { %v205_v27 = vadd.f32 %v198_v23, %v153_v25 }
  0xe4   :  { %v155_v26 = vpop.f32.mrf.mxu0 }
  0xe5   :  { %v206_v28 = vadd.f32 %v202_v24, %v155_v26 }
  0xe6   :  { %v157_v29 = vpop.f32.mrf.mxu0 }
  0xe7   :  { %v246_v30 = vpack.c.bf16 %v206_v28, %v205_v27  ;;  %v207_v32 = vadd.f32 %v198_v23, %v157_v29 }
  0xe8   :  { %v159_v31 = vpop.f32.mrf.mxu0 }
  0xe9   :  { %221 = vst [vmem:[%s358_s3] sm:$0xff] %v246_v30  ;;  %v208_v33 = vadd.f32 %v202_v24, %v159_v31 }
  0xeb   :  { %v247_v34 = vpack.c.bf16 %v208_v33, %v207_v32 }
  0xed   :  { %222 = vst [vmem:[%s358_s3 + $0x8] sm:$0xff] %v247_v34 }

// kernel: resnet_forward.34
= control target key start
LH: loop header
LB: loop body
LE: loop exit
PB: predicated region body
PF: predicated region fallthrough
CT: control target
= control target key end

     0   :  { %s1609_s12 = smov 0   ;;  %s1611_s13 = smov 0   ;;  %s1792_s0 = inlined_call_operand.vmem [shape: bf16[16,2304], index: 0, kind: input, shape index: {}]   ;;  %s1793_s1 = inlined_call_operand.vmem [shape: bf16[2304,256], index: 1, kind: input, shape index: {}]   ;;  %s1794_s2 = inlined_call_operand.vmem [shape: f32[1,256], index: 2, kind: input, shape index: {}]   ;;  %s1795_s3 = inlined_call_operand.vmem [shape: bf16[16,256], index: 3, kind: output, shape index: {}]  }
   0x1   :  { %s1613_s14 = smov 0   ;;  %s1615_s15 = smov 0  }
   0x2   :  { %s1617_s16 = smov 0  }
   0x3 LB: > { %s25_s17 = sadd.s32 1, %s1583_s15  ;;  %p48_p1 = scmp.ne.s32.totalorder %s1575_s13, %s1571_s12  ;;  %s1587_s16 = sphi %s1617_s16, %s13_s16   ;;  %s1583_s15 = sphi %s1615_s15, %s1799_s15   ;;  %s1579_s14 = sphi %s1613_s14, %s1798_s14   ;;  %s1575_s13 = sphi %s1611_s13, %s1797_s13   ;;  %s1571_s12 = sphi %s1609_s12, %s1796_s12  }
   0x4   : > { %p26_p0 = scmp.ge.s32.totalorder %s25_s17, 3  ;;  %p49_p2 = scmp.eq.s32.totalorder %s1587_s16, 0 }
   0x5   : > { %s41_s19 = sadd.s32 1, %s1575_s13  ;;  %p1234_p5 = scmp.ge.s32.totalorder %s1587_s16, 3 }
   0x6   : > { %s1801_s17 = smov (%p26_p0, %s25_s17), 0  ;;  %p50_p3 = por %p49_p2, %p48_p1 }
   0x7   : > { %s37_s18 = ssub.s32 %s1583_s15, %s1801_s17  ;;  %164 = sbr.rel (%p1234_p5) target bundleno = 20 (0x14), region = 20 }
   0x8   : > { %p39_p4 = scmp.eq.s32.totalorder %s37_s18, 0 }
   0xa   : > { %s1644_s20 = scalar_select %p39_p4, %s1575_s13, %s41_s19  }
   0xc   : > { %167 = sbr.rel (!%p50_p3) target bundleno = 20 (0x14), region = 24  ;;  %s169_s21 = sand.u32 (%p50_p3), 1, %s1575_s13  }
   0xd   : > { %s1350_s22 = smul.u32 (%p50_p3), 24, %s1583_s15 }
   0xe   : > { %s1354_s23 = smul.u32 (%p50_p3), 48, %s169_s21 }
   0xf   : > { %s177_s26 = scalar_lea.vmem (%p50_p3), %s1792_s0, %s1350_s22 }
  0x10   : > { %v190_v0 = vld [vmem:[%s177_s26] sm:$0xff] (%p50_p3)  ;;  %v192_v1 = vld [vmem:[%s177_s26 + $0x8] sm:$0xff] (%p50_p3)  ;;  %v194_v2 = vld [vmem:[%s177_s26 + $0x10] sm:$0xff] (%p50_p3)  ;;  %s171_s27 = scalar_lea.vmem (%p50_p3), [#allocation3], %s1354_s23 }
  0x11   : > { %191 = vst [vmem:[%s171_s27] sm:$0xff] %v190_v0  ;;  %193 = vst [vmem:[%s171_s27 + $0x8] sm:$0xff] %v192_v1  ;;  %v196_v3 = vld [vmem:[%s177_s26 + $0x48] sm:$0xff]  ;;  %v198_v4 = vld [vmem:[%s177_s26 + $0x50] sm:$0xff] }
  0x12   : > { %195 = vst [vmem:[%s171_s27 + $0x10] sm:$0xff] %v194_v2  ;;  %v200_v5 = vld [vmem:[%s177_s26 + $0x58] sm:$0xff]  ;;  %197 = vst [vmem:[%s171_s27 + $0x18] sm:$0xff] %v196_v3 }
  0x13   : > { %199 = vst [vmem:[%s171_s27 + $0x20] sm:$0xff] %v198_v4  ;;  %201 = vst [vmem:[%s171_s27 + $0x28] sm:$0xff] %v200_v5 }
  0x14 PF: > { %p1236_p6 = scmp.ge.s32.totalorder %s1587_s16, 1  ;;  %p221_p7 = scmp.lt.s32.totalorder %s1587_s16, 4 }
  0x16   : > { %p222_p8 = pnand %p1236_p6, %p221_p7 }
  0x17   : > { %s272_s28 = smul.u32 (!%p222_p8), 96, %s1579_s14  ;;  %s228_s29 = sand.u32 (!%p222_p8), 1, %s1571_s12  }
  0x18   : > { %225 = sbr.rel (%p222_p8) target bundleno = 397 (0x18d), region = 51  ;;  %p1341_p10 = scmp.ne.s32.totalorder (!%p222_p8), %s1579_s14, 0 }
  0x19   : > { %s1355_s30 = smul.u32 (!%p222_p8), 48, %s228_s29  ;;  %p274_p9 = scmp.lt.s32.totalorder (!%p222_p8), %s272_s28, 287 }
  0x1b   : > { %s1656_s4 = scalar_lea.vmem (!%p222_p8), [#allocation3], %s1355_s30 }
  0x1d   : > { %s1803_s28 = smov (!%p274_p9, %s272_s28), 287  ;;  %v1494_v6 = vld [vmem:[%s1656_s4 + $0x4] ss:$24 sps:$4 sm:$0xff]  }
  0x1e   : > { %s1351_s5 = sshll.u32 %s1803_s28, 3  ;;  %v1497_v7 = vld [vmem:[%s1656_s4 + $0xc] ss:$24 sps:$4 sm:$0xff]   ;;  %945 = vmatprep.mubr.bf16.mxu0 %v1494_v6 }
  0x1f   : > { %s1663_s8 = scalar_lea.vmem %s1793_s1, %s1351_s5  ;;  %988 = vmatprep.mubr.bf16.mxu1 %v1497_v7 }
  0x20   : > { %v1396_v8 = vld [vmem:[%s1663_s8 + $0x74] ss:$8 sps:$4 sm:$0xff]   ;;  %v1400_v10 = vld [vmem:[%s1663_s8 + $0x70] ss:$8 sps:$4 sm:$0xff]   ;;  %v1402_v12 = vld [vmem:[%s1663_s8 + $0x64] ss:$8 sps:$4 sm:$0xff]  }
  0x21   : > { %v1398_v9 = vld [vmem:[%s1663_s8 + $0x174] ss:$8 sps:$4 sm:$0xff]   ;;  %913 = vmatprep.subr.bf16.mxu0 %v1396_v8  ;;  %v1401_v11 = vld [vmem:[%s1663_s8 + $0x170] ss:$8 sps:$4 sm:$0xff]   ;;  %v1404_v13 = vld [vmem:[%s1663_s8 + $0x164] ss:$8 sps:$4 sm:$0xff]  }
  0x22   : > { %956 = vmatprep.subr.bf16.mxu1 %v1398_v9  ;;  %914 = vmatpush1.bf16.msra.mxu0 %v1400_v10  ;;  %v1406_v14 = vld [vmem:[%s1663_s8 + $0x60] ss:$8 sps:$4 sm:$0xff]   ;;  %v1408_v16 = vld [vmem:[%s1663_s8 + $0x54] ss:$8 sps:$4 sm:$0xff]   ;;  %v1412_v18 = vld [vmem:[%s1663_s8 + $0x50] ss:$8 sps:$4 sm:$0xff]  }
  0x23   : > { %957 = vmatpush1.bf16.msra.mxu1 %v1401_v11  ;;  %915 = vmatprep.subr.bf16.mxu0 %v1402_v12  ;;  %v1407_v15 = vld [vmem:[%s1663_s8 + $0x160] ss:$8 sps:$4 sm:$0xff]   ;;  %v1410_v17 = vld [vmem:[%s1663_s8 + $0x154] ss:$8 sps:$4 sm:$0xff]   ;;  %v1413_v19 = vld [vmem:[%s1663_s8 + $0x150] ss:$8 sps:$4 sm:$0xff]  }
  0x24   : > { %958 = vmatprep.subr.bf16.mxu1 %v1404_v13  ;;  %v1414_v20 = vld [vmem:[%s1663_s8 + $0x44] ss:$8 sps:$4 sm:$0xff]   ;;  %v1418_v22 = vld [vmem:[%s1663_s8 + $0x40] ss:$8 sps:$4 sm:$0xff]   ;;  %v1420_v24 = vld [vmem:[%s1663_s8 + $0x34] ss:$8 sps:$4 sm:$0xff]  }
  0x25   : > { %v1416_v21 = vld [vmem:[%s1663_s8 + $0x144] ss:$8 sps:$4 sm:$0xff]   ;;  %v1419_v23 = vld [vmem:[%s1663_s8 + $0x140] ss:$8 sps:$4 sm:$0xff]   ;;  %v1422_v25 = vld [vmem:[%s1663_s8 + $0x134] ss:$8 sps:$4 sm:$0xff]  }
  0x26   : > { %916 = vmatpush1.bf16.msra.mxu0 %v1406_v14  ;;  %v1424_v26 = vld [vmem:[%s1663_s8 + $0x30] ss:$8 sps:$4 sm:$0xff]   ;;  %v1426_v28 = vld [vmem:[%s1663_s8 + $0x24] ss:$8 sps:$4 sm:$0xff]   ;;  %v1430_v30 = vld [vmem:[%s1663_s8 + $0x20] ss:$8 sps:$4 sm:$0xff]  }
  0x27   : > { %959 = vmatpush1.bf16.msra.mxu1 %v1407_v15  ;;  %917 = vmatprep.subr.bf16.mxu0 %v1408_v16  ;;  %v1425_v27 = vld [vmem:[%s1663_s8 + $0x130] ss:$8 sps:$4 sm:$0xff]   ;;  %v1428_v29 = vld [vmem:[%s1663_s8 + $0x124] ss:$8 sps:$4 sm:$0xff]   ;;  %v1431_v31 = vld [vmem:[%s1663_s8 + $0x120] ss:$8 sps:$4 sm:$0xff]  }
  0x28   : > { %960 = vmatprep.subr.bf16.mxu1 %v1410_v17  ;;  %v1432_v32 = vld [vmem:[%s1663_s8 + $0x14] ss:$8 sps:$4 sm:$0xff]   ;;  %v1436_v34 = vld [vmem:[%s1663_s8 + $0x10] ss:$8 sps:$4 sm:$0xff]   ;;  %v1438_v36 = vld [vmem:[%s1663_s8 + $0x4] ss:$8 sps:$4 sm:$0xff]  }
  0x29   : > { %v1434_v33 = vld [vmem:[%s1663_s8 + $0x114] ss:$8 sps:$4 sm:$0xff]   ;;  %v1437_v35 = vld [vmem:[%s1663_s8 + $0x110] ss:$8 sps:$4 sm:$0xff]   ;;  %v1440_v37 = vld [vmem:[%s1663_s8 + $0x104] ss:$8 sps:$4 sm:$0xff]  }
  0x2a   : > { %918 = vmatpush1.bf16.msra.mxu0 %v1412_v18  ;;  %v1442_v38 = vld [vmem:[%s1663_s8] ss:$8 sps:$4 sm:$0xff]   ;;  %v1444_v40 = vld [vmem:[%s1663_s8 + $0xf4] ss:$8 sps:$4 sm:$0xff]   ;;  %v1448_v42 = vld [vmem:[%s1663_s8 + $0xf0] ss:$8 sps:$4 sm:$0xff]  }
  0x2b   : > { %961 = vmatpush1.bf16.msra.mxu1 %v1413_v19  ;;  %919 = vmatprep.subr.bf16.mxu0 %v1414_v20  ;;  %v1443_v39 = vld [vmem:[%s1663_s8 + $0x100] ss:$8 sps:$4 sm:$0xff]   ;;  %v1446_v41 = vld [vmem:[%s1663_s8 + $0x1f4] ss:$8 sps:$4 sm:$0xff]   ;;  %v1449_v43 = vld [vmem:[%s1663_s8 + $0x1f0] ss:$8 sps:$4 sm:$0xff]  }
  0x2c   : > { %962 = vmatprep.subr.bf16.mxu1 %v1416_v21  ;;  %v1450_v44 = vld [vmem:[%s1663_s8 + $0xe4] ss:$8 sps:$4 sm:$0xff]   ;;  %v1454_v46 = vld [vmem:[%s1663_s8 + $0xe0] ss:$8 sps:$4 sm:$0xff]   ;;  %v1456_v48 = vld [vmem:[%s1663_s8 + $0xd4] ss:$8 sps:$4 sm:$0xff]  }
  0x2d   : > { %v1452_v45 = vld [vmem:[%s1663_s8 + $0x1e4] ss:$8 sps:$4 sm:$0xff]   ;;  %v1455_v47 = vld [vmem:[%s1663_s8 + $0x1e0] ss:$8 sps:$4 sm:$0xff]   ;;  %v1458_v49 = vld [vmem:[%s1663_s8 + $0x1d4] ss:$8 sps:$4 sm:$0xff]  }
  0x2e   : > { %920 = vmatpush1.bf16.msra.mxu0 %v1418_v22  ;;  %v1460_v50 = vld [vmem:[%s1663_s8 + $0xd0] ss:$8 sps:$4 sm:$0xff]   ;;  %v1462_v52 = vld [vmem:[%s1663_s8 + $0xc4] ss:$8 sps:$4 sm:$0xff]   ;;  %v1466_v54 = vld [vmem:[%s1663_s8 + $0xc0] ss:$8 sps:$4 sm:$0xff]  }
  0x2f   : > { %963 = vmatpush1.bf16.msra.mxu1 %v1419_v23  ;;  %921 = vmatprep.subr.bf16.mxu0 %v1420_v24  ;;  %v1461_v51 = vld [vmem:[%s1663_s8 + $0x1d0] ss:$8 sps:$4 sm:$0xff]   ;;  %v1464_v53 = vld [vmem:[%s1663_s8 + $0x1c4] ss:$8 sps:$4 sm:$0xff]   ;;  %v1467_v55 = vld [vmem:[%s1663_s8 + $0x1c0] ss:$8 sps:$4 sm:$0xff]  }
  0x30   : > { %964 = vmatprep.subr.bf16.mxu1 %v1422_v25  ;;  %v1468_v56 = vld [vmem:[%s1663_s8 + $0xb4] ss:$8 sps:$4 sm:$0xff]   ;;  %v1472_v58 = vld [vmem:[%s1663_s8 + $0xb0] ss:$8 sps:$4 sm:$0xff]   ;;  %v1474_v60 = vld [vmem:[%s1663_s8 + $0xa4] ss:$8 sps:$4 sm:$0xff]  }
  0x31   : > { %v1470_v57 = vld [vmem:[%s1663_s8 + $0x1b4] ss:$8 sps:$4 sm:$0xff]   ;;  %v1473_v59 = vld [vmem:[%s1663_s8 + $0x1b0] ss:$8 sps:$4 sm:$0xff]   ;;  %v1476_v61 = vld [vmem:[%s1663_s8 + $0x1a4] ss:$8 sps:$4 sm:$0xff]  }
  0x32   : > { %922 = vmatpush1.bf16.msra.mxu0 %v1424_v26  ;;  %v1478_v62 = vld [vmem:[%s1663_s8 + $0xa0] ss:$8 sps:$4 sm:$0xff]   ;;  %v1480_v0 = vld [vmem:[%s1663_s8 + $0x94] ss:$8 sps:$4 sm:$0xff]   ;;  %v1484_v2 = vld [vmem:[%s1663_s8 + $0x90] ss:$8 sps:$4 sm:$0xff]  }
  0x33   : > { %965 = vmatpush1.bf16.msra.mxu1 %v1425_v27  ;;  %923 = vmatprep.subr.bf16.mxu0 %v1426_v28  ;;  %v1479_v63 = vld [vmem:[%s1663_s8 + $0x1a0] ss:$8 sps:$4 sm:$0xff]   ;;  %v1482_v1 = vld [vmem:[%s1663_s8 + $0x194] ss:$8 sps:$4 sm:$0xff]   ;;  %v1485_v3 = vld [vmem:[%s1663_s8 + $0x190] ss:$8 sps:$4 sm:$0xff]  }
  0x34   : > { %966 = vmatprep.subr.bf16.mxu1 %v1428_v29  ;;  %v1486_v4 = vld [vmem:[%s1663_s8 + $0x84] ss:$8 sps:$4 sm:$0xff]   ;;  %v1490_v6 = vld [vmem:[%s1663_s8 + $0x80] ss:$8 sps:$4 sm:$0xff]   ;;  %v1500_v8 = vld [vmem:[%s1663_s8 + $0x274] ss:$8 sps:$4 sm:$0xff]  }
  0x35   : > { %v1488_v5 = vld [vmem:[%s1663_s8 + $0x184] ss:$8 sps:$4 sm:$0xff]   ;;  %v1491_v7 = vld [vmem:[%s1663_s8 + $0x180] ss:$8 sps:$4 sm:$0xff]   ;;  %v1498_v11 = vld [vmem:[%s1663_s8 + $0x270] ss:$8 sps:$4 sm:$0xff]  }
  0x36   : > { %924 = vmatpush1.bf16.msra.mxu0 %v1430_v30  ;;  %v1492_v9 = vld [vmem:[%s1656_s4] ss:$24 sps:$4 sm:$0xff]   ;;  %v1548_v12 = vld [vmem:[%s1656_s4 + $0x14] ss:$24 sps:$4 sm:$0xff]  }
  0x37   : > { %967 = vmatpush1.bf16.msra.mxu1 %v1431_v31  ;;  %925 = vmatprep.subr.bf16.mxu0 %v1432_v32  ;;  %v1495_v10 = vld [vmem:[%s1656_s4 + $0x8] ss:$24 sps:$4 sm:$0xff]   ;;  %v1503_v13 = vld [vmem:[%s1663_s8 + $0x264] ss:$8 sps:$4 sm:$0xff]   ;;  %v1506_v15 = vld [vmem:[%s1663_s8 + $0x254] ss:$8 sps:$4 sm:$0xff]  }
  0x38   : > { %968 = vmatprep.subr.bf16.mxu1 %v1434_v33  ;;  %v1501_v14 = vld [vmem:[%s1663_s8 + $0x260] ss:$8 sps:$4 sm:$0xff]   ;;  %v1504_v16 = vld [vmem:[%s1663_s8 + $0x250] ss:$8 sps:$4 sm:$0xff]   ;;  %v1509_v17 = vld [vmem:[%s1663_s8 + $0x244] ss:$8 sps:$4 sm:$0xff]  }
  0x39   : > { %v1507_v18 = vld [vmem:[%s1663_s8 + $0x240] ss:$8 sps:$4 sm:$0xff]   ;;  %v1512_v19 = vld [vmem:[%s1663_s8 + $0x234] ss:$8 sps:$4 sm:$0xff]   ;;  %v1510_v20 = vld [vmem:[%s1663_s8 + $0x230] ss:$8 sps:$4 sm:$0xff]  }
  0x3a   : > { %926 = vmatpush1.bf16.msra.mxu0 %v1436_v34  ;;  %v1515_v21 = vld [vmem:[%s1663_s8 + $0x224] ss:$8 sps:$4 sm:$0xff]   ;;  %v1513_v22 = vld [vmem:[%s1663_s8 + $0x220] ss:$8 sps:$4 sm:$0xff]   ;;  %v1518_v23 = vld [vmem:[%s1663_s8 + $0x214] ss:$8 sps:$4 sm:$0xff]  }
  0x3b   : > { %969 = vmatpush1.bf16.msra.mxu1 %v1437_v35  ;;  %927 = vmatprep.subr.bf16.mxu0 %v1438_v36  ;;  %v1516_v24 = vld [vmem:[%s1663_s8 + $0x210] ss:$8 sps:$4 sm:$0xff]   ;;  %v1521_v25 = vld [vmem:[%s1663_s8 + $0x204] ss:$8 sps:$4 sm:$0xff]   ;;  %v1519_v26 = vld [vmem:[%s1663_s8 + $0x200] ss:$8 sps:$4 sm:$0xff]  }
  0x3c   : > { %970 = vmatprep.subr.bf16.mxu1 %v1440_v37  ;;  %v1524_v27 = vld [vmem:[%s1663_s8 + $0x2f4] ss:$8 sps:$4 sm:$0xff]   ;;  %v1522_v28 = vld [vmem:[%s1663_s8 + $0x2f0] ss:$8 sps:$4 sm:$0xff]   ;;  %v1527_v29 = vld [vmem:[%s1663_s8 + $0x2e4] ss:$8 sps:$4 sm:$0xff]  }
  0x3d   : > { %v1525_v30 = vld [vmem:[%s1663_s8 + $0x2e0] ss:$8 sps:$4 sm:$0xff]   ;;  %v1530_v31 = vld [vmem:[%s1663_s8 + $0x2d4] ss:$8 sps:$4 sm:$0xff]   ;;  %v1528_v32 = vld [vmem:[%s1663_s8 + $0x2d0] ss:$8 sps:$4 sm:$0xff]  }
  0x3e   : > { %928 = vmatpush1.bf16.msra.mxu0 %v1442_v38  ;;  %v1533_v33 = vld [vmem:[%s1663_s8 + $0x2c4] ss:$8 sps:$4 sm:$0xff]   ;;  %v1531_v34 = vld [vmem:[%s1663_s8 + $0x2c0] ss:$8 sps:$4 sm:$0xff]   ;;  %v1536_v35 = vld [vmem:[%s1663_s8 + $0x2b4] ss:$8 sps:$4 sm:$0xff]  }
  0x3f   : > { %971 = vmatpush1.bf16.msra.mxu1 %v1443_v39  ;;  %929 = vmatprep.subr.bf16.mxu0 %v1444_v40  ;;  %v1534_v36 = vld [vmem:[%s1663_s8 + $0x2b0] ss:$8 sps:$4 sm:$0xff]   ;;  %v1539_v37 = vld [vmem:[%s1663_s8 + $0x2a4] ss:$8 sps:$4 sm:$0xff]   ;;  %v1537_v38 = vld [vmem:[%s1663_s8 + $0x2a0] ss:$8 sps:$4 sm:$0xff]  }
  0x40   : > { %972 = vmatprep.subr.bf16.mxu1 %v1446_v41  ;;  %v1542_v39 = vld [vmem:[%s1663_s8 + $0x294] ss:$8 sps:$4 sm:$0xff]   ;;  %v1540_v40 = vld [vmem:[%s1663_s8 + $0x290] ss:$8 sps:$4 sm:$0xff]   ;;  %v1545_v41 = vld [vmem:[%s1663_s8 + $0x284] ss:$8 sps:$4 sm:$0xff]  }
  0x42   : > { %930 = vmatpush2.bf16.msra.mxu0 %v1448_v42  ;;  %v1543_v42 = vld [vmem:[%s1663_s8 + $0x280] ss:$8 sps:$4 sm:$0xff]  }
  0x43   : > { %973 = vmatpush2.bf16.msra.mxu1 %v1449_v43  ;;  %931 = vmatprep.subr.bf16.mxu0 %v1450_v44  ;;  %v1546_v43 = vld [vmem:[%s1656_s4 + $0x10] ss:$24 sps:$4 sm:$0xff]  }
  0x44   : > { %974 = vmatprep.subr.bf16.mxu1 %v1452_v45 }
  0x46   : > { %932 = vmatpush2.bf16.msra.mxu0 %v1454_v46 }
  0x47   : > { %975 = vmatpush2.bf16.msra.mxu1 %v1455_v47  ;;  %933 = vmatprep.subr.bf16.mxu0 %v1456_v48 }
  0x48   : > { %976 = vmatprep.subr.bf16.mxu1 %v1458_v49 }
  0x4a   : > { %934 = vmatpush2.bf16.msra.mxu0 %v1460_v50 }
  0x4b   : > { %977 = vmatpush2.bf16.msra.mxu1 %v1461_v51  ;;  %935 = vmatprep.subr.bf16.mxu0 %v1462_v52 }
  0x4c   : > { %978 = vmatprep.subr.bf16.mxu1 %v1464_v53 }
  0x4e   : > { %936 = vmatpush2.bf16.msra.mxu0 %v1466_v54 }
  0x4f   : > { %979 = vmatpush2.bf16.msra.mxu1 %v1467_v55  ;;  %937 = vmatprep.subr.bf16.mxu0 %v1468_v56 }
  0x50   : > { %980 = vmatprep.subr.bf16.mxu1 %v1470_v57 }
  0x52   : > { %938 = vmatpush2.bf16.msra.mxu0 %v1472_v58 }
  0x53   : > { %981 = vmatpush2.bf16.msra.mxu1 %v1473_v59  ;;  %939 = vmatprep.subr.bf16.mxu0 %v1474_v60 }
  0x54   : > { %982 = vmatprep.subr.bf16.mxu1 %v1476_v61 }
  0x56   : > { %940 = vmatpush2.bf16.msra.mxu0 %v1478_v62 }
  0x57   : > { %983 = vmatpush2.bf16.msra.mxu1 %v1479_v63  ;;  %941 = vmatprep.subr.bf16.mxu0 %v1480_v0 }
  0x58   : > { %984 = vmatprep.subr.bf16.mxu1 %v1482_v1 }
  0x5a   : > { %942 = vmatpush2.bf16.msra.mxu0 %v1484_v2 }
  0x5b   : > { %985 = vmatpush2.bf16.msra.mxu1 %v1485_v3  ;;  %943 = vmatprep.subr.bf16.mxu0 %v1486_v4 }
  0x5c   : > { %986 = vmatprep.subr.bf16.mxu1 %v1488_v5 }
  0x5e   : > { %944 = vmatpush2.bf16.msra.mxu0 %v1490_v6 }
  0x5f   : > { %987 = vmatpush2.bf16.msra.mxu1 %v1491_v7  ;;  %999 = vmatprep.subr.bf16.mxu0 %v1500_v8 }
  0x61   : > { %946 = vmatmul.mubr.bf16.vlgmr.msra.gmra.mxu0 %v1492_v9 }
  0x62   : > { %989 = vmatmul.mubr.bf16.vlgmr.msra.gmra.mxu1 %v1495_v10  ;;  %1000 = vmatpush1.bf16.msra.mxu0 %v1498_v11 }
  0x63   : > { %1031 = vmatprep.mubr.bf16.mxu0 %v1548_v12  ;;  %1001 = vmatprep.subr.bf16.mxu0 %v1503_v13 }
  0x66   : > { %1002 = vmatpush1.bf16.msra.mxu0 %v1501_v14 }
  0x67   : > { %1003 = vmatprep.subr.bf16.mxu0 %v1506_v15 }
  0x6a   : > { %1004 = vmatpush1.bf16.msra.mxu0 %v1504_v16 }
  0x6b   : > { %1005 = vmatprep.subr.bf16.mxu0 %v1509_v17 }
  0x6e   : > { %1006 = vmatpush1.bf16.msra.mxu0 %v1507_v18 }
  0x6f   : > { %1007 = vmatprep.subr.bf16.mxu0 %v1512_v19 }
  0x72   : > { %1008 = vmatpush1.bf16.msra.mxu0 %v1510_v20 }
  0x73   : > { %1009 = vmatprep.subr.bf16.mxu0 %v1515_v21 }
  0x76   : > { %1010 = vmatpush1.bf16.msra.mxu0 %v1513_v22 }
  0x77   : > { %1011 = vmatprep.subr.bf16.mxu0 %v1518_v23 }
  0x7a   : > { %1012 = vmatpush1.bf16.msra.mxu0 %v1516_v24 }
  0x7b   : > { %1013 = vmatprep.subr.bf16.mxu0 %v1521_v25 }
  0x7e   : > { %1014 = vmatpush1.bf16.msra.mxu0 %v1519_v26 }
  0x7f   : > { %1015 = vmatprep.subr.bf16.mxu0 %v1524_v27 }
  0x82   : > { %1016 = vmatpush2.bf16.msra.mxu0 %v1522_v28 }
  0x83   : > { %1017 = vmatprep.subr.bf16.mxu0 %v1527_v29 }
  0x86   : > { %1018 = vmatpush2.bf16.msra.mxu0 %v1525_v30 }
  0x87   : > { %1019 = vmatprep.subr.bf16.mxu0 %v1530_v31 }
  0x8a   : > { %1020 = vmatpush2.bf16.msra.mxu0 %v1528_v32 }
  0x8b   : > { %1021 = vmatprep.subr.bf16.mxu0 %v1533_v33 }
  0x8e   : > { %1022 = vmatpush2.bf16.msra.mxu0 %v1531_v34 }
  0x8f   : > { %1023 = vmatprep.subr.bf16.mxu0 %v1536_v35 }
  0x92   : > { %1024 = vmatpush2.bf16.msra.mxu0 %v1534_v36 }
  0x93   : > { %1025 = vmatprep.subr.bf16.mxu0 %v1539_v37 }
  0x96   : > { %1026 = vmatpush2.bf16.msra.mxu0 %v1537_v38 }
  0x97   : > { %1027 = vmatprep.subr.bf16.mxu0 %v1542_v39 }
  0x9a   : > { %1028 = vmatpush2.bf16.msra.mxu0 %v1540_v40 }
  0x9b   : > { %1029 = vmatprep.subr.bf16.mxu0 %v1545_v41 }
  0x9e   : > { %1030 = vmatpush2.bf16.msra.mxu0 %v1543_v42 }
  0xa1   : > { %1032 = vmatmul.mubr.bf16.vlgmr.msra.gmra.mxu0 %v1546_v43 }
 0x121   : > { %v947_v44 = vpop.f32.mrf.mxu0 }
 0x122   : > { %v990_v45 = vpop.f32.mrf.mxu1 }
 0x123   : > { %v949_v46 = vpop.f32.mrf.mxu0  ;;  %v991_v51 = vadd.f32 %v990_v45, %v947_v44 }
 0x124   : > { %v992_v47 = vpop.f32.mrf.mxu1 }
 0x125   : > { %v951_v48 = vpop.f32.mrf.mxu0  ;;  %v993_v53 = vadd.f32 %v992_v47, %v949_v46 }
 0x126   : > { %v994_v49 = vpop.f32.mrf.mxu1 }
 0x127   : > { %v953_v50 = vpop.f32.mrf.mxu0  ;;  %v995_v57 = vadd.f32 %v994_v49, %v951_v48 }
 0x128   : > { %v996_v55 = vpop.f32.mrf.mxu1 }
 0x129   : > { %v997_v60 = vadd.f32 %v996_v55, %v953_v50 }
 0x161   : > { %v1033_v52 = vpop.f32.mrf.mxu0 }
 0x162   : > { %v1034_v54 = vadd.f32 %v1033_v52, %v991_v51 }
 0x163   : > { %v1035_v56 = vpop.f32.mrf.mxu0 }
 0x164   : > { %v1036_v58 = vadd.f32 %v1035_v56, %v993_v53  ;;  %1045 = sbr.rel (%p1341_p10) target bundleno = 363 (0x16b), region = 59 }
 0x165   : > { %v1037_v59 = vpop.f32.mrf.mxu0 }
 0x166   : > { %v1038_v61 = vadd.f32 %v1037_v59, %v995_v57 }
 0x167   : > { %v1039_v62 = vpop.f32.mrf.mxu0 }
 0x168   : > { %v1040_v63 = vadd.f32 %v1039_v62, %v997_v60 }
 0x169   : > { %1046 = vst [vmem:[#allocation2 + $0x10] sm:$0xff] %v1034_v54  ;;  %1047 = vst [vmem:[#allocation2] sm:$0xff] %v1036_v58 }
 0x16a   : > { %1048 = vst [vmem:[#allocation2 + $0x18] sm:$0xff] %v1038_v61  ;;  %1049 = vst [vmem:[#allocation2 + $0x8] sm:$0xff] %v1040_v63 }
 0x16b PF: > { %p1342_p11 = scmp.le.s32.totalorder %s1579_s14, 0 }
 0x16d   : > { %1053 = sbr.rel (%p1342_p11) target bundleno = 375 (0x177), region = 63 }
 0x172   : > { %v1054_v0 = vld [vmem:[#allocation2 + $0x10] sm:$0xff]  ;;  %v1055_v1 = vld [vmem:[#allocation2] sm:$0xff]  ;;  %v1056_v2 = vld [vmem:[#allocation2 + $0x18] sm:$0xff] }
 0x173   : > { %v1058_v3 = vadd.f32 %v1054_v0, %v1034_v54  ;;  %v1059_v4 = vadd.f32 %v1055_v1, %v1036_v58  ;;  %v1060_v5 = vadd.f32 %v1056_v2, %v1038_v61  ;;  %v1057_v6 = vld [vmem:[#allocation2 + $0x8] sm:$0xff] }
 0x174   : > { %v1061_v7 = vadd.f32 %v1057_v6, %v1040_v63 }
 0x175   : > { %1062 = vst [vmem:[#allocation2 + $0x10] sm:$0xff] %v1058_v3  ;;  %1063 = vst [vmem:[#allocation2] sm:$0xff] %v1059_v4 }
 0x176   : > { %1064 = vst [vmem:[#allocation2 + $0x18] sm:$0xff] %v1060_v5  ;;  %1065 = vst [vmem:[#allocation2 + $0x8] sm:$0xff] %v1061_v7 }
 0x177 PF: > { %p1343_p12 = scmp.ne.s32.totalorder %s1579_s14, 2 }
 0x179   : > { %1069 = sbr.rel (%p1343_p12) target bundleno = 397 (0x18d), region = 67 }
 0x17e   : > { %v1076_v8 = vlaneseq  ;;  %v1074_v10 = vld [vmem:[%s1794_s2] sm:$0x3]  ;;  %v1070_v11 = vld [vmem:[#allocation2 + $0x10] sm:$0xff]  ;;  %v1072_v15 = vld [vmem:[#allocation2 + $0x18] sm:$0xff] }
 0x17f   : > { %v1071_v14 = vld [vmem:[#allocation2] sm:$0xff]  ;;  %v1073_v16 = vld [vmem:[#allocation2 + $0x8] sm:$0xff] }
 0x180   : > { %v1077_v9 = vshrl.u32 %v1076_v8, 7 }
 0x182   : > { %v1078_v12 = vsub.s32 0, %v1077_v9  ;;  %v1082_v13 = vsub.s32 1, %v1077_v9 }
 0x184   : > { %v1079_v17 = vrot.slane %v1074_v10, %v1078_v12  ;;  %v1083_v18 = vrot.slane %v1074_v10, %v1082_v13 }
 0x186   : > { %v1086_v19 = vadd.f32 %v1079_v17, %v1070_v11  ;;  %v1087_v20 = vadd.f32 %v1083_v18, %v1071_v14  ;;  %v1088_v21 = vadd.f32 %v1079_v17, %v1072_v15  ;;  %v1089_v22 = vadd.f32 %v1083_v18, %v1073_v16 }
 0x188   : > { %v1090_v23 = vmax.f32 %v1086_v19, 0.0  ;;  %v1091_v24 = vmax.f32 %v1087_v20, 0.0  ;;  %v1092_v25 = vmax.f32 %v1088_v21, 0.0  ;;  %v1093_v26 = vmax.f32 %v1089_v22, 0.0 }
 0x18a   : > { %v1352_v27 = vpack.c.bf16 %v1091_v24, %v1090_v23  ;;  %v1353_v28 = vpack.c.bf16 %v1093_v26, %v1092_v25 }
 0x18c   : > { %1106 = vst [vmem:[%s1795_s3] sm:$0xff] %v1352_v27  ;;  %1107 = vst [vmem:[%s1795_s3 + $0x8] sm:$0xff] %v1353_v28 }
 0x18d PF: > { %s13_s16 = sadd.s32 1, %s1587_s16   ;;  %s1796_s12 = smov %s1575_s13 }
 0x18e   : > { %p10_p13 = scmp.ge.s32.totalorder %s13_s16, 5   ;;  %s1797_s13 = smov %s1644_s20 }
 0x18f   : > { %s1798_s14 = smov %s1583_s15  ;;  %s1799_s15 = smov %s1801_s17 }
 0x190   :  { %12 = sbr.rel (!%p10_p13) target bundleno = 3 (0x3), region = 108 }

// kernel: resnet_forward.33
= control target key start
LH: loop header
LB: loop body
LE: loop exit
PB: predicated region body
PF: predicated region fallthrough
CT: control target
= control target key end

     0   :  { %s1714_s15 = smov 0   ;;  %s1716_s16 = smov 0   ;;  %s1903_s0 = inlined_call_operand.vmem [shape: bf16[16,2304], index: 0, kind: input, shape index: {}]   ;;  %s1904_s1 = inlined_call_operand.vmem [shape: bf16[2304,256], index: 1, kind: input, shape index: {}]   ;;  %s1905_s2 = inlined_call_operand.vmem [shape: f32[1,256], index: 2, kind: input, shape index: {}]   ;;  %s1906_s3 = inlined_call_operand.vmem [shape: bf16[16,256], index: 3, kind: input, shape index: {}]   ;;  %s1907_s4 = inlined_call_operand.vmem [shape: bf16[16,256], index: 4, kind: output, shape index: {}]  }
   0x1   :  { %s1718_s17 = smov 0   ;;  %s1720_s18 = smov 0  }
   0x2   :  { %s1722_s19 = smov 0  }
   0x3 LB: > { %s26_s20 = sadd.s32 1, %s1683_s18  ;;  %p49_p1 = scmp.ne.s32.totalorder %s1675_s16, %s1671_s15  ;;  %s1687_s19 = sphi %s1722_s19, %s14_s19   ;;  %s1683_s18 = sphi %s1720_s18, %s1911_s18   ;;  %s1679_s17 = sphi %s1718_s17, %s1910_s17   ;;  %s1675_s16 = sphi %s1716_s16, %s1909_s16   ;;  %s1671_s15 = sphi %s1714_s15, %s1908_s15  }
   0x4   : > { %p27_p0 = scmp.ge.s32.totalorder %s26_s20, 3  ;;  %p50_p2 = scmp.eq.s32.totalorder %s1687_s19, 0 }
   0x5   : > { %s42_s22 = sadd.s32 1, %s1675_s16  ;;  %p1334_p5 = scmp.ge.s32.totalorder %s1687_s19, 3 }
   0x6   : > { %s1913_s20 = smov (%p27_p0, %s26_s20), 0  ;;  %p51_p3 = por %p50_p2, %p49_p1 }
   0x7   : > { %s38_s21 = ssub.s32 %s1683_s18, %s1913_s20  ;;  %208 = sbr.rel (%p1334_p5) target bundleno = 20 (0x14), region = 24 }
   0x8   : > { %p40_p4 = scmp.eq.s32.totalorder %s38_s21, 0 }
   0xa   : > { %s1749_s23 = scalar_select %p40_p4, %s1675_s16, %s42_s22  }
   0xc   : > { %211 = sbr.rel (!%p51_p3) target bundleno = 20 (0x14), region = 28  ;;  %s213_s24 = sand.u32 (%p51_p3), 1, %s1675_s16  }
   0xd   : > { %s1450_s25 = smul.u32 (%p51_p3), 24, %s1683_s18 }
   0xe   : > { %s1454_s26 = smul.u32 (%p51_p3), 48, %s213_s24 }
   0xf   : > { %s221_s29 = scalar_lea.vmem (%p51_p3), %s1903_s0, %s1450_s25 }
  0x10   : > { %v234_v0 = vld [vmem:[%s221_s29] sm:$0xff] (%p51_p3)  ;;  %v236_v1 = vld [vmem:[%s221_s29 + $0x8] sm:$0xff] (%p51_p3)  ;;  %v238_v2 = vld [vmem:[%s221_s29 + $0x10] sm:$0xff] (%p51_p3)  ;;  %s215_s30 = scalar_lea.vmem (%p51_p3), [#allocation3], %s1454_s26 }
  0x11   : > { %235 = vst [vmem:[%s215_s30] sm:$0xff] %v234_v0  ;;  %237 = vst [vmem:[%s215_s30 + $0x8] sm:$0xff] %v236_v1  ;;  %v240_v3 = vld [vmem:[%s221_s29 + $0x48] sm:$0xff]  ;;  %v242_v4 = vld [vmem:[%s221_s29 + $0x50] sm:$0xff] }
  0x12   : > { %239 = vst [vmem:[%s215_s30 + $0x10] sm:$0xff] %v238_v2  ;;  %v244_v5 = vld [vmem:[%s221_s29 + $0x58] sm:$0xff]  ;;  %241 = vst [vmem:[%s215_s30 + $0x18] sm:$0xff] %v240_v3 }
  0x13   : > { %243 = vst [vmem:[%s215_s30 + $0x20] sm:$0xff] %v242_v4  ;;  %245 = vst [vmem:[%s215_s30 + $0x28] sm:$0xff] %v244_v5 }
  0x14 PF: > { %p1336_p6 = scmp.ge.s32.totalorder %s1687_s19, 1  ;;  %p265_p7 = scmp.lt.s32.totalorder %s1687_s19, 4 }
  0x16   : > { %p266_p8 = pnand %p1336_p6, %p265_p7 }
  0x17   : > { %s328_s5 = smul.u32 (!%p266_p8), 96, %s1679_s17  ;;  %s272_s6 = sand.u32 (!%p266_p8), 1, %s1671_s15  }
  0x18   : > { %269 = sbr.rel (%p266_p8) target bundleno = 399 (0x18f), region = 55  ;;  %p1441_p10 = scmp.ne.s32.totalorder (!%p266_p8), %s1679_s17, 0 }
  0x19   : > { %s1455_s7 = smul.u32 (!%p266_p8), 48, %s272_s6  ;;  %p330_p9 = scmp.lt.s32.totalorder (!%p266_p8), %s328_s5, 287 }
  0x1b   : > { %s1761_s8 = scalar_lea.vmem (!%p266_p8), [#allocation3], %s1455_s7 }
  0x1d   : > { %s1915_s5 = smov (!%p330_p9, %s328_s5), 287  ;;  %v1594_v6 = vld [vmem:[%s1761_s8 + $0x4] ss:$24 sps:$4 sm:$0xff]  }
  0x1e   : > { %s1451_s9 = sshll.u32 %s1915_s5, 3  ;;  %v1597_v7 = vld [vmem:[%s1761_s8 + $0xc] ss:$24 sps:$4 sm:$0xff]   ;;  %1013 = vmatprep.mubr.bf16.mxu0 %v1594_v6 }
  0x1f   : > { %s1768_s12 = scalar_lea.vmem %s1904_s1, %s1451_s9  ;;  %1056 = vmatprep.mubr.bf16.mxu1 %v1597_v7 }
  0x20   : > { %v1496_v8 = vld [vmem:[%s1768_s12 + $0x74] ss:$8 sps:$4 sm:$0xff]   ;;  %v1500_v10 = vld [vmem:[%s1768_s12 + $0x70] ss:$8 sps:$4 sm:$0xff]   ;;  %v1502_v12 = vld [vmem:[%s1768_s12 + $0x64] ss:$8 sps:$4 sm:$0xff]  }
  0x21   : > { %v1498_v9 = vld [vmem:[%s1768_s12 + $0x174] ss:$8 sps:$4 sm:$0xff]   ;;  %981 = vmatprep.subr.bf16.mxu0 %v1496_v8  ;;  %v1501_v11 = vld [vmem:[%s1768_s12 + $0x170] ss:$8 sps:$4 sm:$0xff]   ;;  %v1504_v13 = vld [vmem:[%s1768_s12 + $0x164] ss:$8 sps:$4 sm:$0xff]  }
  0x22   : > { %1024 = vmatprep.subr.bf16.mxu1 %v1498_v9  ;;  %982 = vmatpush1.bf16.msra.mxu0 %v1500_v10  ;;  %v1506_v14 = vld [vmem:[%s1768_s12 + $0x60] ss:$8 sps:$4 sm:$0xff]   ;;  %v1508_v16 = vld [vmem:[%s1768_s12 + $0x54] ss:$8 sps:$4 sm:$0xff]   ;;  %v1512_v18 = vld [vmem:[%s1768_s12 + $0x50] ss:$8 sps:$4 sm:$0xff]  }
  0x23   : > { %1025 = vmatpush1.bf16.msra.mxu1 %v1501_v11  ;;  %983 = vmatprep.subr.bf16.mxu0 %v1502_v12  ;;  %v1507_v15 = vld [vmem:[%s1768_s12 + $0x160] ss:$8 sps:$4 sm:$0xff]   ;;  %v1510_v17 = vld [vmem:[%s1768_s12 + $0x154] ss:$8 sps:$4 sm:$0xff]   ;;  %v1513_v19 = vld [vmem:[%s1768_s12 + $0x150] ss:$8 sps:$4 sm:$0xff]  }
  0x24   : > { %1026 = vmatprep.subr.bf16.mxu1 %v1504_v13  ;;  %v1514_v20 = vld [vmem:[%s1768_s12 + $0x44] ss:$8 sps:$4 sm:$0xff]   ;;  %v1518_v22 = vld [vmem:[%s1768_s12 + $0x40] ss:$8 sps:$4 sm:$0xff]   ;;  %v1520_v24 = vld [vmem:[%s1768_s12 + $0x34] ss:$8 sps:$4 sm:$0xff]  }
  0x25   : > { %v1516_v21 = vld [vmem:[%s1768_s12 + $0x144] ss:$8 sps:$4 sm:$0xff]   ;;  %v1519_v23 = vld [vmem:[%s1768_s12 + $0x140] ss:$8 sps:$4 sm:$0xff]   ;;  %v1522_v25 = vld [vmem:[%s1768_s12 + $0x134] ss:$8 sps:$4 sm:$0xff]  }
  0x26   : > { %984 = vmatpush1.bf16.msra.mxu0 %v1506_v14  ;;  %v1524_v26 = vld [vmem:[%s1768_s12 + $0x30] ss:$8 sps:$4 sm:$0xff]   ;;  %v1526_v28 = vld [vmem:[%s1768_s12 + $0x24] ss:$8 sps:$4 sm:$0xff]   ;;  %v1530_v30 = vld [vmem:[%s1768_s12 + $0x20] ss:$8 sps:$4 sm:$0xff]  }
  0x27   : > { %1027 = vmatpush1.bf16.msra.mxu1 %v1507_v15  ;;  %985 = vmatprep.subr.bf16.mxu0 %v1508_v16  ;;  %v1525_v27 = vld [vmem:[%s1768_s12 + $0x130] ss:$8 sps:$4 sm:$0xff]   ;;  %v1528_v29 = vld [vmem:[%s1768_s12 + $0x124] ss:$8 sps:$4 sm:$0xff]   ;;  %v1531_v31 = vld [vmem:[%s1768_s12 + $0x120] ss:$8 sps:$4 sm:$0xff]  }
  0x28   : > { %1028 = vmatprep.subr.bf16.mxu1 %v1510_v17  ;;  %v1532_v32 = vld [vmem:[%s1768_s12 + $0x14] ss:$8 sps:$4 sm:$0xff]   ;;  %v1536_v34 = vld [vmem:[%s1768_s12 + $0x10] ss:$8 sps:$4 sm:$0xff]   ;;  %v1538_v36 = vld [vmem:[%s1768_s12 + $0x4] ss:$8 sps:$4 sm:$0xff]  }
  0x29   : > { %v1534_v33 = vld [vmem:[%s1768_s12 + $0x114] ss:$8 sps:$4 sm:$0xff]   ;;  %v1537_v35 = vld [vmem:[%s1768_s12 + $0x110] ss:$8 sps:$4 sm:$0xff]   ;;  %v1540_v37 = vld [vmem:[%s1768_s12 + $0x104] ss:$8 sps:$4 sm:$0xff]  }
  0x2a   : > { %986 = vmatpush1.bf16.msra.mxu0 %v1512_v18  ;;  %v1542_v38 = vld [vmem:[%s1768_s12] ss:$8 sps:$4 sm:$0xff]   ;;  %v1544_v40 = vld [vmem:[%s1768_s12 + $0xf4] ss:$8 sps:$4 sm:$0xff]   ;;  %v1548_v42 = vld [vmem:[%s1768_s12 + $0xf0] ss:$8 sps:$4 sm:$0xff]  }
  0x2b   : > { %1029 = vmatpush1.bf16.msra.mxu1 %v1513_v19  ;;  %987 = vmatprep.subr.bf16.mxu0 %v1514_v20  ;;  %v1543_v39 = vld [vmem:[%s1768_s12 + $0x100] ss:$8 sps:$4 sm:$0xff]   ;;  %v1546_v41 = vld [vmem:[%s1768_s12 + $0x1f4] ss:$8 sps:$4 sm:$0xff]   ;;  %v1549_v43 = vld [vmem:[%s1768_s12 + $0x1f0] ss:$8 sps:$4 sm:$0xff]  }
  0x2c   : > { %1030 = vmatprep.subr.bf16.mxu1 %v1516_v21  ;;  %v1550_v44 = vld [vmem:[%s1768_s12 + $0xe4] ss:$8 sps:$4 sm:$0xff]   ;;  %v1554_v46 = vld [vmem:[%s1768_s12 + $0xe0] ss:$8 sps:$4 sm:$0xff]   ;;  %v1556_v48 = vld [vmem:[%s1768_s12 + $0xd4] ss:$8 sps:$4 sm:$0xff]  }
  0x2d   : > { %v1552_v45 = vld [vmem:[%s1768_s12 + $0x1e4] ss:$8 sps:$4 sm:$0xff]   ;;  %v1555_v47 = vld [vmem:[%s1768_s12 + $0x1e0] ss:$8 sps:$4 sm:$0xff]   ;;  %v1558_v49 = vld [vmem:[%s1768_s12 + $0x1d4] ss:$8 sps:$4 sm:$0xff]  }
  0x2e   : > { %988 = vmatpush1.bf16.msra.mxu0 %v1518_v22  ;;  %v1560_v50 = vld [vmem:[%s1768_s12 + $0xd0] ss:$8 sps:$4 sm:$0xff]   ;;  %v1562_v52 = vld [vmem:[%s1768_s12 + $0xc4] ss:$8 sps:$4 sm:$0xff]   ;;  %v1566_v54 = vld [vmem:[%s1768_s12 + $0xc0] ss:$8 sps:$4 sm:$0xff]  }
  0x2f   : > { %1031 = vmatpush1.bf16.msra.mxu1 %v1519_v23  ;;  %989 = vmatprep.subr.bf16.mxu0 %v1520_v24  ;;  %v1561_v51 = vld [vmem:[%s1768_s12 + $0x1d0] ss:$8 sps:$4 sm:$0xff]   ;;  %v1564_v53 = vld [vmem:[%s1768_s12 + $0x1c4] ss:$8 sps:$4 sm:$0xff]   ;;  %v1567_v55 = vld [vmem:[%s1768_s12 + $0x1c0] ss:$8 sps:$4 sm:$0xff]  }
  0x30   : > { %1032 = vmatprep.subr.bf16.mxu1 %v1522_v25  ;;  %v1568_v56 = vld [vmem:[%s1768_s12 + $0xb4] ss:$8 sps:$4 sm:$0xff]   ;;  %v1572_v58 = vld [vmem:[%s1768_s12 + $0xb0] ss:$8 sps:$4 sm:$0xff]   ;;  %v1574_v60 = vld [vmem:[%s1768_s12 + $0xa4] ss:$8 sps:$4 sm:$0xff]  }
  0x31   : > { %v1570_v57 = vld [vmem:[%s1768_s12 + $0x1b4] ss:$8 sps:$4 sm:$0xff]   ;;  %v1573_v59 = vld [vmem:[%s1768_s12 + $0x1b0] ss:$8 sps:$4 sm:$0xff]   ;;  %v1576_v61 = vld [vmem:[%s1768_s12 + $0x1a4] ss:$8 sps:$4 sm:$0xff]  }
  0x32   : > { %990 = vmatpush1.bf16.msra.mxu0 %v1524_v26  ;;  %v1578_v62 = vld [vmem:[%s1768_s12 + $0xa0] ss:$8 sps:$4 sm:$0xff]   ;;  %v1580_v0 = vld [vmem:[%s1768_s12 + $0x94] ss:$8 sps:$4 sm:$0xff]   ;;  %v1584_v2 = vld [vmem:[%s1768_s12 + $0x90] ss:$8 sps:$4 sm:$0xff]  }
  0x33   : > { %1033 = vmatpush1.bf16.msra.mxu1 %v1525_v27  ;;  %991 = vmatprep.subr.bf16.mxu0 %v1526_v28  ;;  %v1579_v63 = vld [vmem:[%s1768_s12 + $0x1a0] ss:$8 sps:$4 sm:$0xff]   ;;  %v1582_v1 = vld [vmem:[%s1768_s12 + $0x194] ss:$8 sps:$4 sm:$0xff]   ;;  %v1585_v3 = vld [vmem:[%s1768_s12 + $0x190] ss:$8 sps:$4 sm:$0xff]  }
  0x34   : > { %1034 = vmatprep.subr.bf16.mxu1 %v1528_v29  ;;  %v1586_v4 = vld [vmem:[%s1768_s12 + $0x84] ss:$8 sps:$4 sm:$0xff]   ;;  %v1590_v6 = vld [vmem:[%s1768_s12 + $0x80] ss:$8 sps:$4 sm:$0xff]   ;;  %v1600_v8 = vld [vmem:[%s1768_s12 + $0x274] ss:$8 sps:$4 sm:$0xff]  }
  0x35   : > { %v1588_v5 = vld [vmem:[%s1768_s12 + $0x184] ss:$8 sps:$4 sm:$0xff]   ;;  %v1591_v7 = vld [vmem:[%s1768_s12 + $0x180] ss:$8 sps:$4 sm:$0xff]   ;;  %v1598_v11 = vld [vmem:[%s1768_s12 + $0x270] ss:$8 sps:$4 sm:$0xff]  }
  0x36   : > { %992 = vmatpush1.bf16.msra.mxu0 %v1530_v30  ;;  %v1592_v9 = vld [vmem:[%s1761_s8] ss:$24 sps:$4 sm:$0xff]   ;;  %v1648_v12 = vld [vmem:[%s1761_s8 + $0x14] ss:$24 sps:$4 sm:$0xff]  }
  0x37   : > { %1035 = vmatpush1.bf16.msra.mxu1 %v1531_v31  ;;  %993 = vmatprep.subr.bf16.mxu0 %v1532_v32  ;;  %v1595_v10 = vld [vmem:[%s1761_s8 + $0x8] ss:$24 sps:$4 sm:$0xff]   ;;  %v1603_v13 = vld [vmem:[%s1768_s12 + $0x264] ss:$8 sps:$4 sm:$0xff]   ;;  %v1606_v15 = vld [vmem:[%s1768_s12 + $0x254] ss:$8 sps:$4 sm:$0xff]  }
  0x38   : > { %1036 = vmatprep.subr.bf16.mxu1 %v1534_v33  ;;  %v1601_v14 = vld [vmem:[%s1768_s12 + $0x260] ss:$8 sps:$4 sm:$0xff]   ;;  %v1604_v16 = vld [vmem:[%s1768_s12 + $0x250] ss:$8 sps:$4 sm:$0xff]   ;;  %v1609_v17 = vld [vmem:[%s1768_s12 + $0x244] ss:$8 sps:$4 sm:$0xff]  }
  0x39   : > { %v1607_v18 = vld [vmem:[%s1768_s12 + $0x240] ss:$8 sps:$4 sm:$0xff]   ;;  %v1612_v19 = vld [vmem:[%s1768_s12 + $0x234] ss:$8 sps:$4 sm:$0xff]   ;;  %v1610_v20 = vld [vmem:[%s1768_s12 + $0x230] ss:$8 sps:$4 sm:$0xff]  }
  0x3a   : > { %994 = vmatpush1.bf16.msra.mxu0 %v1536_v34  ;;  %v1615_v21 = vld [vmem:[%s1768_s12 + $0x224] ss:$8 sps:$4 sm:$0xff]   ;;  %v1613_v22 = vld [vmem:[%s1768_s12 + $0x220] ss:$8 sps:$4 sm:$0xff]   ;;  %v1618_v23 = vld [vmem:[%s1768_s12 + $0x214] ss:$8 sps:$4 sm:$0xff]  }
  0x3b   : > { %1037 = vmatpush1.bf16.msra.mxu1 %v1537_v35  ;;  %995 = vmatprep.subr.bf16.mxu0 %v1538_v36  ;;  %v1616_v24 = vld [vmem:[%s1768_s12 + $0x210] ss:$8 sps:$4 sm:$0xff]   ;;  %v1621_v25 = vld [vmem:[%s1768_s12 + $0x204] ss:$8 sps:$4 sm:$0xff]   ;;  %v1619_v26 = vld [vmem:[%s1768_s12 + $0x200] ss:$8 sps:$4 sm:$0xff]  }
  0x3c   : > { %1038 = vmatprep.subr.bf16.mxu1 %v1540_v37  ;;  %v1624_v27 = vld [vmem:[%s1768_s12 + $0x2f4] ss:$8 sps:$4 sm:$0xff]   ;;  %v1622_v28 = vld [vmem:[%s1768_s12 + $0x2f0] ss:$8 sps:$4 sm:$0xff]   ;;  %v1627_v29 = vld [vmem:[%s1768_s12 + $0x2e4] ss:$8 sps:$4 sm:$0xff]  }
  0x3d   : > { %v1625_v30 = vld [vmem:[%s1768_s12 + $0x2e0] ss:$8 sps:$4 sm:$0xff]   ;;  %v1630_v31 = vld [vmem:[%s1768_s12 + $0x2d4] ss:$8 sps:$4 sm:$0xff]   ;;  %v1628_v32 = vld [vmem:[%s1768_s12 + $0x2d0] ss:$8 sps:$4 sm:$0xff]  }
  0x3e   : > { %996 = vmatpush1.bf16.msra.mxu0 %v1542_v38  ;;  %v1633_v33 = vld [vmem:[%s1768_s12 + $0x2c4] ss:$8 sps:$4 sm:$0xff]   ;;  %v1631_v34 = vld [vmem:[%s1768_s12 + $0x2c0] ss:$8 sps:$4 sm:$0xff]   ;;  %v1636_v35 = vld [vmem:[%s1768_s12 + $0x2b4] ss:$8 sps:$4 sm:$0xff]  }
  0x3f   : > { %1039 = vmatpush1.bf16.msra.mxu1 %v1543_v39  ;;  %997 = vmatprep.subr.bf16.mxu0 %v1544_v40  ;;  %v1634_v36 = vld [vmem:[%s1768_s12 + $0x2b0] ss:$8 sps:$4 sm:$0xff]   ;;  %v1639_v37 = vld [vmem:[%s1768_s12 + $0x2a4] ss:$8 sps:$4 sm:$0xff]   ;;  %v1637_v38 = vld [vmem:[%s1768_s12 + $0x2a0] ss:$8 sps:$4 sm:$0xff]  }
  0x40   : > { %1040 = vmatprep.subr.bf16.mxu1 %v1546_v41  ;;  %v1642_v39 = vld [vmem:[%s1768_s12 + $0x294] ss:$8 sps:$4 sm:$0xff]   ;;  %v1640_v40 = vld [vmem:[%s1768_s12 + $0x290] ss:$8 sps:$4 sm:$0xff]   ;;  %v1645_v41 = vld [vmem:[%s1768_s12 + $0x284] ss:$8 sps:$4 sm:$0xff]  }
  0x42   : > { %998 = vmatpush2.bf16.msra.mxu0 %v1548_v42  ;;  %v1643_v42 = vld [vmem:[%s1768_s12 + $0x280] ss:$8 sps:$4 sm:$0xff]  }
  0x43   : > { %1041 = vmatpush2.bf16.msra.mxu1 %v1549_v43  ;;  %999 = vmatprep.subr.bf16.mxu0 %v1550_v44  ;;  %v1646_v43 = vld [vmem:[%s1761_s8 + $0x10] ss:$24 sps:$4 sm:$0xff]  }
  0x44   : > { %1042 = vmatprep.subr.bf16.mxu1 %v1552_v45 }
  0x46   : > { %1000 = vmatpush2.bf16.msra.mxu0 %v1554_v46 }
  0x47   : > { %1043 = vmatpush2.bf16.msra.mxu1 %v1555_v47  ;;  %1001 = vmatprep.subr.bf16.mxu0 %v1556_v48 }
  0x48   : > { %1044 = vmatprep.subr.bf16.mxu1 %v1558_v49 }
  0x4a   : > { %1002 = vmatpush2.bf16.msra.mxu0 %v1560_v50 }
  0x4b   : > { %1045 = vmatpush2.bf16.msra.mxu1 %v1561_v51  ;;  %1003 = vmatprep.subr.bf16.mxu0 %v1562_v52 }
  0x4c   : > { %1046 = vmatprep.subr.bf16.mxu1 %v1564_v53 }
  0x4e   : > { %1004 = vmatpush2.bf16.msra.mxu0 %v1566_v54 }
  0x4f   : > { %1047 = vmatpush2.bf16.msra.mxu1 %v1567_v55  ;;  %1005 = vmatprep.subr.bf16.mxu0 %v1568_v56 }
  0x50   : > { %1048 = vmatprep.subr.bf16.mxu1 %v1570_v57 }
  0x52   : > { %1006 = vmatpush2.bf16.msra.mxu0 %v1572_v58 }
  0x53   : > { %1049 = vmatpush2.bf16.msra.mxu1 %v1573_v59  ;;  %1007 = vmatprep.subr.bf16.mxu0 %v1574_v60 }
  0x54   : > { %1050 = vmatprep.subr.bf16.mxu1 %v1576_v61 }
  0x56   : > { %1008 = vmatpush2.bf16.msra.mxu0 %v1578_v62 }
  0x57   : > { %1051 = vmatpush2.bf16.msra.mxu1 %v1579_v63  ;;  %1009 = vmatprep.subr.bf16.mxu0 %v1580_v0 }
  0x58   : > { %1052 = vmatprep.subr.bf16.mxu1 %v1582_v1 }
  0x5a   : > { %1010 = vmatpush2.bf16.msra.mxu0 %v1584_v2 }
  0x5b   : > { %1053 = vmatpush2.bf16.msra.mxu1 %v1585_v3  ;;  %1011 = vmatprep.subr.bf16.mxu0 %v1586_v4 }
  0x5c   : > { %1054 = vmatprep.subr.bf16.mxu1 %v1588_v5 }
  0x5e   : > { %1012 = vmatpush2.bf16.msra.mxu0 %v1590_v6 }
  0x5f   : > { %1055 = vmatpush2.bf16.msra.mxu1 %v1591_v7  ;;  %1067 = vmatprep.subr.bf16.mxu0 %v1600_v8 }
  0x61   : > { %1014 = vmatmul.mubr.bf16.vlgmr.msra.gmra.mxu0 %v1592_v9 }
  0x62   : > { %1057 = vmatmul.mubr.bf16.vlgmr.msra.gmra.mxu1 %v1595_v10  ;;  %1068 = vmatpush1.bf16.msra.mxu0 %v1598_v11 }
  0x63   : > { %1099 = vmatprep.mubr.bf16.mxu0 %v1648_v12  ;;  %1069 = vmatprep.subr.bf16.mxu0 %v1603_v13 }
  0x66   : > { %1070 = vmatpush1.bf16.msra.mxu0 %v1601_v14 }
  0x67   : > { %1071 = vmatprep.subr.bf16.mxu0 %v1606_v15 }
  0x6a   : > { %1072 = vmatpush1.bf16.msra.mxu0 %v1604_v16 }
  0x6b   : > { %1073 = vmatprep.subr.bf16.mxu0 %v1609_v17 }
  0x6e   : > { %1074 = vmatpush1.bf16.msra.mxu0 %v1607_v18 }
  0x6f   : > { %1075 = vmatprep.subr.bf16.mxu0 %v1612_v19 }
  0x72   : > { %1076 = vmatpush1.bf16.msra.mxu0 %v1610_v20 }
  0x73   : > { %1077 = vmatprep.subr.bf16.mxu0 %v1615_v21 }
  0x76   : > { %1078 = vmatpush1.bf16.msra.mxu0 %v1613_v22 }
  0x77   : > { %1079 = vmatprep.subr.bf16.mxu0 %v1618_v23 }
  0x7a   : > { %1080 = vmatpush1.bf16.msra.mxu0 %v1616_v24 }
  0x7b   : > { %1081 = vmatprep.subr.bf16.mxu0 %v1621_v25 }
  0x7e   : > { %1082 = vmatpush1.bf16.msra.mxu0 %v1619_v26 }
  0x7f   : > { %1083 = vmatprep.subr.bf16.mxu0 %v1624_v27 }
  0x82   : > { %1084 = vmatpush2.bf16.msra.mxu0 %v1622_v28 }
  0x83   : > { %1085 = vmatprep.subr.bf16.mxu0 %v1627_v29 }
  0x86   : > { %1086 = vmatpush2.bf16.msra.mxu0 %v1625_v30 }
  0x87   : > { %1087 = vmatprep.subr.bf16.mxu0 %v1630_v31 }
  0x8a   : > { %1088 = vmatpush2.bf16.msra.mxu0 %v1628_v32 }
  0x8b   : > { %1089 = vmatprep.subr.bf16.mxu0 %v1633_v33 }
  0x8e   : > { %1090 = vmatpush2.bf16.msra.mxu0 %v1631_v34 }
  0x8f   : > { %1091 = vmatprep.subr.bf16.mxu0 %v1636_v35 }
  0x92   : > { %1092 = vmatpush2.bf16.msra.mxu0 %v1634_v36 }
  0x93   : > { %1093 = vmatprep.subr.bf16.mxu0 %v1639_v37 }
  0x96   : > { %1094 = vmatpush2.bf16.msra.mxu0 %v1637_v38 }
  0x97   : > { %1095 = vmatprep.subr.bf16.mxu0 %v1642_v39 }
  0x9a   : > { %1096 = vmatpush2.bf16.msra.mxu0 %v1640_v40 }
  0x9b   : > { %1097 = vmatprep.subr.bf16.mxu0 %v1645_v41 }
  0x9e   : > { %1098 = vmatpush2.bf16.msra.mxu0 %v1643_v42 }
  0xa1   : > { %1100 = vmatmul.mubr.bf16.vlgmr.msra.gmra.mxu0 %v1646_v43 }
 0x121   : > { %v1015_v44 = vpop.f32.mrf.mxu0 }
 0x122   : > { %v1058_v45 = vpop.f32.mrf.mxu1 }
 0x123   : > { %v1017_v46 = vpop.f32.mrf.mxu0  ;;  %v1059_v51 = vadd.f32 %v1058_v45, %v1015_v44 }
 0x124   : > { %v1060_v47 = vpop.f32.mrf.mxu1 }
 0x125   : > { %v1019_v48 = vpop.f32.mrf.mxu0  ;;  %v1061_v53 = vadd.f32 %v1060_v47, %v1017_v46 }
 0x126   : > { %v1062_v49 = vpop.f32.mrf.mxu1 }
 0x127   : > { %v1021_v50 = vpop.f32.mrf.mxu0  ;;  %v1063_v57 = vadd.f32 %v1062_v49, %v1019_v48 }
 0x128   : > { %v1064_v55 = vpop.f32.mrf.mxu1 }
 0x129   : > { %v1065_v60 = vadd.f32 %v1064_v55, %v1021_v50 }
 0x161   : > { %v1101_v52 = vpop.f32.mrf.mxu0 }
 0x162   : > { %v1102_v54 = vadd.f32 %v1101_v52, %v1059_v51 }
 0x163   : > { %v1103_v56 = vpop.f32.mrf.mxu0 }
 0x164   : > { %v1104_v58 = vadd.f32 %v1103_v56, %v1061_v53  ;;  %1113 = sbr.rel (%p1441_p10) target bundleno = 363 (0x16b), region = 63 }
 0x165   : > { %v1105_v59 = vpop.f32.mrf.mxu0 }
 0x166   : > { %v1106_v61 = vadd.f32 %v1105_v59, %v1063_v57 }
 0x167   : > { %v1107_v62 = vpop.f32.mrf.mxu0 }
 0x168   : > { %v1108_v63 = vadd.f32 %v1107_v62, %v1065_v60 }
 0x169   : > { %1114 = vst [vmem:[#allocation2 + $0x10] sm:$0xff] %v1102_v54  ;;  %1115 = vst [vmem:[#allocation2] sm:$0xff] %v1104_v58 }
 0x16a   : > { %1116 = vst [vmem:[#allocation2 + $0x18] sm:$0xff] %v1106_v61  ;;  %1117 = vst [vmem:[#allocation2 + $0x8] sm:$0xff] %v1108_v63 }
 0x16b PF: > { %p1442_p11 = scmp.le.s32.totalorder %s1679_s17, 0 }
 0x16d   : > { %1121 = sbr.rel (%p1442_p11) target bundleno = 375 (0x177), region = 67 }
 0x172   : > { %v1122_v0 = vld [vmem:[#allocation2 + $0x10] sm:$0xff]  ;;  %v1123_v1 = vld [vmem:[#allocation2] sm:$0xff]  ;;  %v1124_v2 = vld [vmem:[#allocation2 + $0x18] sm:$0xff] }
 0x173   : > { %v1126_v3 = vadd.f32 %v1122_v0, %v1102_v54  ;;  %v1127_v4 = vadd.f32 %v1123_v1, %v1104_v58  ;;  %v1128_v5 = vadd.f32 %v1124_v2, %v1106_v61  ;;  %v1125_v6 = vld [vmem:[#allocation2 + $0x8] sm:$0xff] }
 0x174   : > { %v1129_v7 = vadd.f32 %v1125_v6, %v1108_v63 }
 0x175   : > { %1130 = vst [vmem:[#allocation2 + $0x10] sm:$0xff] %v1126_v3  ;;  %1131 = vst [vmem:[#allocation2] sm:$0xff] %v1127_v4 }
 0x176   : > { %1132 = vst [vmem:[#allocation2 + $0x18] sm:$0xff] %v1128_v5  ;;  %1133 = vst [vmem:[#allocation2 + $0x8] sm:$0xff] %v1129_v7 }
 0x177 PF: > { %p1443_p12 = scmp.ne.s32.totalorder %s1679_s17, 2 }
 0x179   : > { %1137 = sbr.rel (%p1443_p12) target bundleno = 399 (0x18f), region = 71 }
 0x17e   : > { %v1144_v8 = vlaneseq  ;;  %v1158_v10 = vld [vmem:[%s1906_s3] sm:$0xff]  ;;  %v1159_v12 = vld [vmem:[%s1906_s3 + $0x8] sm:$0xff]  ;;  %v1138_v13 = vld [vmem:[#allocation2 + $0x10] sm:$0xff] }
 0x17f   : > { %v1142_v11 = vld [vmem:[%s1905_s2] sm:$0x3]  ;;  %v1160_v17 = vunpack.c.l.bf16 %v1158_v10  ;;  %v1161_v18 = vunpack.c.h.bf16 %v1158_v10  ;;  %v1140_v19 = vld [vmem:[#allocation2 + $0x18] sm:$0xff]  ;;  %v1141_v20 = vld [vmem:[#allocation2 + $0x8] sm:$0xff]  ;;  %v1162_v23 = vunpack.c.l.bf16 %v1159_v12  ;;  %v1163_v24 = vunpack.c.h.bf16 %v1159_v12 }
 0x180   : > { %v1145_v9 = vshrl.u32 %v1144_v8, 7  ;;  %v1139_v16 = vld [vmem:[#allocation2] sm:$0xff] }
 0x182   : > { %v1146_v14 = vsub.s32 0, %v1145_v9  ;;  %v1150_v15 = vsub.s32 1, %v1145_v9 }
 0x184   : > { %v1147_v21 = vrot.slane %v1142_v11, %v1146_v14  ;;  %v1151_v22 = vrot.slane %v1142_v11, %v1150_v15 }
 0x186   : > { %v1154_v25 = vadd.f32 %v1147_v21, %v1138_v13  ;;  %v1155_v26 = vadd.f32 %v1151_v22, %v1139_v16  ;;  %v1156_v27 = vadd.f32 %v1147_v21, %v1140_v19  ;;  %v1157_v28 = vadd.f32 %v1151_v22, %v1141_v20 }
 0x188   : > { %v1164_v29 = vadd.f32 %v1160_v17, %v1154_v25  ;;  %v1165_v30 = vadd.f32 %v1161_v18, %v1155_v26  ;;  %v1166_v31 = vadd.f32 %v1162_v23, %v1156_v27  ;;  %v1167_v32 = vadd.f32 %v1163_v24, %v1157_v28 }
 0x18a   : > { %v1168_v33 = vmax.f32 %v1164_v29, 0.0  ;;  %v1169_v34 = vmax.f32 %v1165_v30, 0.0  ;;  %v1170_v35 = vmax.f32 %v1166_v31, 0.0  ;;  %v1171_v36 = vmax.f32 %v1167_v32, 0.0 }
 0x18c   : > { %v1452_v37 = vpack.c.bf16 %v1169_v34, %v1168_v33  ;;  %v1453_v38 = vpack.c.bf16 %v1171_v36, %v1170_v35 }
 0x18e   : > { %1184 = vst [vmem:[%s1907_s4] sm:$0xff] %v1452_v37  ;;  %1185 = vst [vmem:[%s1907_s4 + $0x8] sm:$0xff] %v1453_v38 }
 0x18f PF: > { %s14_s19 = sadd.s32 1, %s1687_s19   ;;  %s1908_s15 = smov %s1675_s16 }
 0x190   : > { %p11_p13 = scmp.ge.s32.totalorder %s14_s19, 5   ;;  %s1909_s16 = smov %s1749_s23 }
 0x191   : > { %s1910_s17 = smov %s1683_s18  ;;  %s1911_s18 = smov %s1913_s20 }
 0x192   :  { %13 = sbr.rel (!%p11_p13) target bundleno = 3 (0x3), region = 115 }

// kernel: resnet_forward.37
= control target key start
LH: loop header
LB: loop body
LE: loop exit
PB: predicated region body
PF: predicated region fallthrough
CT: control target
= control target key end

     0   :  { %s2616_s0 = inlined_call_operand.vmem [shape: bf16[16,2304], index: 0, kind: input, shape index: {}]   ;;  %s2617_s1 = inlined_call_operand.vmem [shape: bf16[2304,512], index: 1, kind: input, shape index: {}]   ;;  %s2618_s2 = inlined_call_operand.vmem [shape: f32[1,512], index: 2, kind: input, shape index: {}]   ;;  %s2619_s3 = inlined_call_operand.vmem [shape: bf16[16,512], index: 3, kind: output, shape index: {}]  }
   0x1   :  { %2620 = sst [smem:[#allocation6_spill]] %s2616_s0 }
   0x2   :  { %s2132_s12 = smov 0   ;;  %s2134_s13 = smov 0  }
   0x3   :  { %s2136_s14 = smov 0   ;;  %s2138_s15 = smov 0  }
   0x4   :  { %s2140_s16 = smov 0   ;;  %s2142_s17 = smov 0  }
   0x5   :  { %s2144_s18 = smov 0   ;;  %s2146_s19 = smov 0  }
   0x6   :  { %s2148_s20 = smov 0   ;;  %s2150_s21 = smov 0  }
   0x7   :  { %s2152_s22 = smov 0  }
   0x8 LB: > { %s1651_s23 = sadd.s32 4294967295, %s2110_s22   ;;  %s25_s24 = sadd.s32 1, %s2102_s20  ;;  %s2110_s22 = sphi %s2152_s22, %s13_s22   ;;  %s2106_s21 = sphi %s2150_s21, %s2634_s21   ;;  %s2102_s20 = sphi %s2148_s20, %s2633_s20   ;;  %s2098_s19 = sphi %s2146_s19, %s2632_s19   ;;  %s2094_s18 = sphi %s2144_s18, %s2631_s18   ;;  %s2090_s17 = sphi %s2142_s17, %s2630_s17   ;;  %s2086_s16 = sphi %s2140_s16, %s2629_s16   ;;  %s2082_s15 = sphi %s2138_s15, %s2628_s15   ;;  %s2078_s14 = sphi %s2136_s14, %s2627_s14   ;;  %s2074_s13 = sphi %s2134_s13, %s2626_s13   ;;  %s2070_s12 = sphi %s2132_s12, %s2625_s12  }
   0x9   : > { %p26_p0 = scmp.ge.s32.totalorder %s25_s24, 3  ;;  %s28_s25 = sadd.s32 1, %s2106_s21 }
   0xa   : > { %s41_s26 = sadd.s32 1, %s2090_s17  ;;  %p48_p1 = scmp.ne.s32.totalorder %s2090_s17, %s2086_s16 }
   0xb   : > { %s2636_s24 = smov (%p26_p0, %s25_s24), 0  ;;  %s2638_s25 = smov (!%p26_p0, %s28_s25), %s2106_s21 }
   0xc   : > { %s37_s27 = ssub.s32 %s2102_s20, %s2636_s24  ;;  %p49_p2 = scmp.eq.s32.totalorder %s2110_s22, 0 }
   0xd   : > { %p30_p3 = scmp.ge.s32.totalorder %s2638_s25, 2  ;;  %p39_p4 = scmp.eq.s32.totalorder %s37_s27, 0 }
   0xe   : > { %p2199_p5 = por %p49_p2, %p48_p1  ;;  %s69_s29 = sadd.s32 1, %s2082_s15 }
   0xf   : > { %s2640_s25 = smov (%p30_p3, %s2638_s25), 0  ;;  %p76_p6 = scmp.ne.s32.totalorder %s2082_s15, %s2078_s14 }
  0x10   : > { %s2207_s30 = scalar_select %p39_p4, %s2090_s17, %s41_s26  }
  0x11   : > { %s65_s4 = ssub.s32 %s2106_s21, %s2640_s25  ;;  %p2213_p9 = por %p76_p6, %p49_p2 }
  0x12   : > { %s66_s5 = sor.u32 %s65_s4, %s37_s27  ;;  %p121_p7 = scmp.eq.s32.totalorder %s65_s4, 0 }
  0x13   : > { %p67_p8 = scmp.eq.s32.totalorder %s66_s5, 0  ;;  %s123_s7 = sadd.s32 1, %s2074_s13 }
  0x14   : > { %p133_p10 = scmp.ne.s32.totalorder %s2074_s13, %s2070_s12  ;;  %p134_p11 = scmp.eq.s32.totalorder %s1651_s23, 5 }
  0x15   : > { %s2221_s8 = scalar_select %p67_p8, %s2082_s15, %s69_s29  }
  0x16   : > { %s2224_s9 = scalar_select %p121_p7, %s2074_s13, %s123_s7  }
  0x17   : > { %p2226_p12 = por %p134_p11, %p133_p10  ;;  %p1654_p13 = scmp.ge.s32.totalorder %s2110_s22, 6 }
  0x19   : > { %156 = sbr.rel (%p1654_p13) target bundleno = 98 (0x62), region = 16 }
  0x1e   : > { %159 = sbr.rel (!%p2199_p5) target bundleno = 42 (0x2a), region = 20  ;;  %s161_s11 = sand.u32 (%p2199_p5), 1, %s2090_s17  }
  0x1f   : > { %s1774_s26 = smul.u32 (%p2199_p5), 24, %s2102_s20  ;;  %s2624_s0 = sld [smem:[#allocation6_spill]] (%p2199_p5) }
  0x20   : > { %s1779_s27 = smul.u32 (%p2199_p5), 48, %s161_s11 }
  0x22   : > { %s163_s23 = scalar_lea.vmem (%p2199_p5), [#allocation3], %s1779_s27 }
  0x25   : > { %s169_s5 = scalar_lea.vmem %s2624_s0, %s1774_s26 }
  0x26   : > { %v182_v0 = vld [vmem:[%s169_s5] sm:$0xff]  ;;  %v184_v1 = vld [vmem:[%s169_s5 + $0x8] sm:$0xff]  ;;  %v186_v2 = vld [vmem:[%s169_s5 + $0x10] sm:$0xff] }
  0x27   : > { %183 = vst [vmem:[%s163_s23] sm:$0xff] %v182_v0  ;;  %185 = vst [vmem:[%s163_s23 + $0x8] sm:$0xff] %v184_v1  ;;  %v188_v3 = vld [vmem:[%s169_s5 + $0x48] sm:$0xff]  ;;  %v190_v4 = vld [vmem:[%s169_s5 + $0x50] sm:$0xff] }
  0x28   : > { %187 = vst [vmem:[%s163_s23 + $0x10] sm:$0xff] %v186_v2  ;;  %v192_v5 = vld [vmem:[%s169_s5 + $0x58] sm:$0xff]  ;;  %189 = vst [vmem:[%s163_s23 + $0x18] sm:$0xff] %v188_v3 }
  0x29   : > { %191 = vst [vmem:[%s163_s23 + $0x20] sm:$0xff] %v190_v4  ;;  %193 = vst [vmem:[%s163_s23 + $0x28] sm:$0xff] %v192_v5 }
  0x2a PF: > { %199 = sbr.rel (!%p2213_p9) target bundleno = 98 (0x62), region = 43  ;;  %s201_s28 = sand.u32 (%p2213_p9), 1, %s2082_s15  }
  0x2b   : > { %s1780_s7 = smul.u32 (%p2213_p9), 768, %s201_s28  ;;  %s1656_s11 = sshll.u32 (%p2213_p9), %s2106_s21, 1 }
  0x2c   : > { %s1775_s26 = smul.u32 (%p2213_p9), 384, %s2102_s20 }
  0x2d   : > { %s2251_s6 = scalar_lea.vmem (%p2213_p9), [#allocation4], %s1780_s7 }
  0x2e   : > { %s207_s27 = sadd.s32 (%p2213_p9), %s1775_s26, %s1656_s11 }
  0x2f   : > { %s1658_s29 = sshll.u32 %s207_s27, 2 }
  0x30   : > { %s2246_s5 = scalar_lea.vmem %s2617_s1, %s1658_s29 }
  0x31   : > { %v428_v6 = vld [vmem:[%s2246_s5] sm:$0xff]  ;;  %v430_v7 = vld [vmem:[%s2246_s5 + $0x10] sm:$0xff] }
  0x32   : > { %v432_v8 = vld [vmem:[%s2246_s5 + $0x20] sm:$0xff]  ;;  %429 = vst [vmem:[%s2251_s6] sm:$0xff] %v428_v6  ;;  %431 = vst [vmem:[%s2251_s6 + $0x8] sm:$0xff] %v430_v7  ;;  %v434_v9 = vld [vmem:[%s2246_s5 + $0x30] sm:$0xff] }
  0x33   : > { %433 = vst [vmem:[%s2251_s6 + $0x10] sm:$0xff] %v432_v8  ;;  %v436_v10 = vld [vmem:[%s2246_s5 + $0x40] sm:$0xff]  ;;  %v438_v11 = vld [vmem:[%s2246_s5 + $0x50] sm:$0xff]  ;;  %435 = vst [vmem:[%s2251_s6 + $0x18] sm:$0xff] %v434_v9 }
  0x34   : > { %437 = vst [vmem:[%s2251_s6 + $0x20] sm:$0xff] %v436_v10  ;;  %439 = vst [vmem:[%s2251_s6 + $0x28] sm:$0xff] %v438_v11  ;;  %v440_v12 = vld [vmem:[%s2246_s5 + $0x60] sm:$0xff]  ;;  %v442_v13 = vld [vmem:[%s2246_s5 + $0x70] sm:$0xff] }
  0x35   : > { %v444_v14 = vld [vmem:[%s2246_s5 + $0x80] sm:$0xff]  ;;  %441 = vst [vmem:[%s2251_s6 + $0x30] sm:$0xff] %v440_v12  ;;  %443 = vst [vmem:[%s2251_s6 + $0x38] sm:$0xff] %v442_v13  ;;  %v446_v15 = vld [vmem:[%s2246_s5 + $0x90] sm:$0xff] }
  0x36   : > { %445 = vst [vmem:[%s2251_s6 + $0x40] sm:$0xff] %v444_v14  ;;  %v448_v16 = vld [vmem:[%s2246_s5 + $0xa0] sm:$0xff]  ;;  %v450_v17 = vld [vmem:[%s2246_s5 + $0xb0] sm:$0xff]  ;;  %447 = vst [vmem:[%s2251_s6 + $0x48] sm:$0xff] %v446_v15 }
  0x37   : > { %449 = vst [vmem:[%s2251_s6 + $0x50] sm:$0xff] %v448_v16  ;;  %451 = vst [vmem:[%s2251_s6 + $0x58] sm:$0xff] %v450_v17  ;;  %v452_v18 = vld [vmem:[%s2246_s5 + $0xc0] sm:$0xff]  ;;  %v454_v19 = vld [vmem:[%s2246_s5 + $0xd0] sm:$0xff] }
  0x38   : > { %v456_v20 = vld [vmem:[%s2246_s5 + $0xe0] sm:$0xff]  ;;  %453 = vst [vmem:[%s2251_s6 + $0x60] sm:$0xff] %v452_v18  ;;  %455 = vst [vmem:[%s2251_s6 + $0x68] sm:$0xff] %v454_v19  ;;  %v458_v21 = vld [vmem:[%s2246_s5 + $0xf0] sm:$0xff] }
  0x39   : > { %457 = vst [vmem:[%s2251_s6 + $0x70] sm:$0xff] %v456_v20  ;;  %v460_v22 = vld [vmem:[%s2246_s5 + $0x100] sm:$0xff]  ;;  %v462_v23 = vld [vmem:[%s2246_s5 + $0x110] sm:$0xff]  ;;  %459 = vst [vmem:[%s2251_s6 + $0x78] sm:$0xff] %v458_v21 }
  0x3a   : > { %461 = vst [vmem:[%s2251_s6 + $0x80] sm:$0xff] %v460_v22  ;;  %463 = vst [vmem:[%s2251_s6 + $0x88] sm:$0xff] %v462_v23  ;;  %v464_v24 = vld [vmem:[%s2246_s5 + $0x120] sm:$0xff]  ;;  %v466_v25 = vld [vmem:[%s2246_s5 + $0x130] sm:$0xff] }
  0x3b   : > { %v468_v26 = vld [vmem:[%s2246_s5 + $0x140] sm:$0xff]  ;;  %465 = vst [vmem:[%s2251_s6 + $0x90] sm:$0xff] %v464_v24  ;;  %467 = vst [vmem:[%s2251_s6 + $0x98] sm:$0xff] %v466_v25  ;;  %v470_v27 = vld [vmem:[%s2246_s5 + $0x150] sm:$0xff] }
  0x3c   : > { %469 = vst [vmem:[%s2251_s6 + $0xa0] sm:$0xff] %v468_v26  ;;  %v472_v28 = vld [vmem:[%s2246_s5 + $0x160] sm:$0xff]  ;;  %v474_v29 = vld [vmem:[%s2246_s5 + $0x170] sm:$0xff]  ;;  %471 = vst [vmem:[%s2251_s6 + $0xa8] sm:$0xff] %v470_v27 }
  0x3d   : > { %473 = vst [vmem:[%s2251_s6 + $0xb0] sm:$0xff] %v472_v28  ;;  %475 = vst [vmem:[%s2251_s6 + $0xb8] sm:$0xff] %v474_v29  ;;  %v476_v30 = vld [vmem:[%s2246_s5 + $0x180] sm:$0xff]  ;;  %v478_v31 = vld [vmem:[%s2246_s5 + $0x190] sm:$0xff] }
  0x3e   : > { %v480_v32 = vld [vmem:[%s2246_s5 + $0x1a0] sm:$0xff]  ;;  %477 = vst [vmem:[%s2251_s6 + $0xc0] sm:$0xff] %v476_v30  ;;  %479 = vst [vmem:[%s2251_s6 + $0xc8] sm:$0xff] %v478_v31  ;;  %v482_v33 = vld [vmem:[%s2246_s5 + $0x1b0] sm:$0xff] }
  0x3f   : > { %481 = vst [vmem:[%s2251_s6 + $0xd0] sm:$0xff] %v480_v32  ;;  %v484_v34 = vld [vmem:[%s2246_s5 + $0x1c0] sm:$0xff]  ;;  %v486_v35 = vld [vmem:[%s2246_s5 + $0x1d0] sm:$0xff]  ;;  %483 = vst [vmem:[%s2251_s6 + $0xd8] sm:$0xff] %v482_v33 }
  0x40   : > { %485 = vst [vmem:[%s2251_s6 + $0xe0] sm:$0xff] %v484_v34  ;;  %487 = vst [vmem:[%s2251_s6 + $0xe8] sm:$0xff] %v486_v35  ;;  %v488_v36 = vld [vmem:[%s2246_s5 + $0x1e0] sm:$0xff]  ;;  %v490_v37 = vld [vmem:[%s2246_s5 + $0x1f0] sm:$0xff] }
  0x41   : > { %v492_v38 = vld [vmem:[%s2246_s5 + $0x200] sm:$0xff]  ;;  %489 = vst [vmem:[%s2251_s6 + $0xf0] sm:$0xff] %v488_v36  ;;  %491 = vst [vmem:[%s2251_s6 + $0xf8] sm:$0xff] %v490_v37  ;;  %v494_v39 = vld [vmem:[%s2246_s5 + $0x210] sm:$0xff] }
  0x42   : > { %493 = vst [vmem:[%s2251_s6 + $0x100] sm:$0xff] %v492_v38  ;;  %v496_v40 = vld [vmem:[%s2246_s5 + $0x220] sm:$0xff]  ;;  %v498_v41 = vld [vmem:[%s2246_s5 + $0x230] sm:$0xff]  ;;  %495 = vst [vmem:[%s2251_s6 + $0x108] sm:$0xff] %v494_v39 }
  0x43   : > { %497 = vst [vmem:[%s2251_s6 + $0x110] sm:$0xff] %v496_v40  ;;  %499 = vst [vmem:[%s2251_s6 + $0x118] sm:$0xff] %v498_v41  ;;  %v500_v42 = vld [vmem:[%s2246_s5 + $0x240] sm:$0xff]  ;;  %v502_v43 = vld [vmem:[%s2246_s5 + $0x250] sm:$0xff] }
  0x44   : > { %v504_v44 = vld [vmem:[%s2246_s5 + $0x260] sm:$0xff]  ;;  %501 = vst [vmem:[%s2251_s6 + $0x120] sm:$0xff] %v500_v42  ;;  %503 = vst [vmem:[%s2251_s6 + $0x128] sm:$0xff] %v502_v43  ;;  %v506_v45 = vld [vmem:[%s2246_s5 + $0x270] sm:$0xff] }
  0x45   : > { %505 = vst [vmem:[%s2251_s6 + $0x130] sm:$0xff] %v504_v44  ;;  %v508_v46 = vld [vmem:[%s2246_s5 + $0x280] sm:$0xff]  ;;  %v510_v47 = vld [vmem:[%s2246_s5 + $0x290] sm:$0xff]  ;;  %507 = vst [vmem:[%s2251_s6 + $0x138] sm:$0xff] %v506_v45 }
  0x46   : > { %509 = vst [vmem:[%s2251_s6 + $0x140] sm:$0xff] %v508_v46  ;;  %511 = vst [vmem:[%s2251_s6 + $0x148] sm:$0xff] %v510_v47  ;;  %v512_v48 = vld [vmem:[%s2246_s5 + $0x2a0] sm:$0xff]  ;;  %v514_v49 = vld [vmem:[%s2246_s5 + $0x2b0] sm:$0xff] }
  0x47   : > { %v516_v50 = vld [vmem:[%s2246_s5 + $0x2c0] sm:$0xff]  ;;  %513 = vst [vmem:[%s2251_s6 + $0x150] sm:$0xff] %v512_v48  ;;  %515 = vst [vmem:[%s2251_s6 + $0x158] sm:$0xff] %v514_v49  ;;  %v518_v51 = vld [vmem:[%s2246_s5 + $0x2d0] sm:$0xff] }
  0x48   : > { %517 = vst [vmem:[%s2251_s6 + $0x160] sm:$0xff] %v516_v50  ;;  %v520_v52 = vld [vmem:[%s2246_s5 + $0x2e0] sm:$0xff]  ;;  %v522_v53 = vld [vmem:[%s2246_s5 + $0x2f0] sm:$0xff]  ;;  %519 = vst [vmem:[%s2251_s6 + $0x168] sm:$0xff] %v518_v51 }
  0x49   : > { %521 = vst [vmem:[%s2251_s6 + $0x170] sm:$0xff] %v520_v52  ;;  %523 = vst [vmem:[%s2251_s6 + $0x178] sm:$0xff] %v522_v53  ;;  %v524_v54 = vld [vmem:[%s2246_s5 + $0x300] sm:$0xff]  ;;  %v526_v55 = vld [vmem:[%s2246_s5 + $0x310] sm:$0xff] }
  0x4a   : > { %v528_v56 = vld [vmem:[%s2246_s5 + $0x320] sm:$0xff]  ;;  %525 = vst [vmem:[%s2251_s6 + $0x180] sm:$0xff] %v524_v54  ;;  %527 = vst [vmem:[%s2251_s6 + $0x188] sm:$0xff] %v526_v55  ;;  %v530_v57 = vld [vmem:[%s2246_s5 + $0x330] sm:$0xff] }
  0x4b   : > { %529 = vst [vmem:[%s2251_s6 + $0x190] sm:$0xff] %v528_v56  ;;  %v532_v58 = vld [vmem:[%s2246_s5 + $0x340] sm:$0xff]  ;;  %v534_v59 = vld [vmem:[%s2246_s5 + $0x350] sm:$0xff]  ;;  %531 = vst [vmem:[%s2251_s6 + $0x198] sm:$0xff] %v530_v57 }
  0x4c   : > { %533 = vst [vmem:[%s2251_s6 + $0x1a0] sm:$0xff] %v532_v58  ;;  %535 = vst [vmem:[%s2251_s6 + $0x1a8] sm:$0xff] %v534_v59  ;;  %v536_v60 = vld [vmem:[%s2246_s5 + $0x360] sm:$0xff]  ;;  %v538_v61 = vld [vmem:[%s2246_s5 + $0x370] sm:$0xff] }
  0x4d   : > { %v540_v62 = vld [vmem:[%s2246_s5 + $0x380] sm:$0xff]  ;;  %537 = vst [vmem:[%s2251_s6 + $0x1b0] sm:$0xff] %v536_v60  ;;  %539 = vst [vmem:[%s2251_s6 + $0x1b8] sm:$0xff] %v538_v61  ;;  %v542_v63 = vld [vmem:[%s2246_s5 + $0x390] sm:$0xff] }
  0x4e   : > { %541 = vst [vmem:[%s2251_s6 + $0x1c0] sm:$0xff] %v540_v62  ;;  %v544_v0 = vld [vmem:[%s2246_s5 + $0x3a0] sm:$0xff]  ;;  %v546_v1 = vld [vmem:[%s2246_s5 + $0x3b0] sm:$0xff]  ;;  %543 = vst [vmem:[%s2251_s6 + $0x1c8] sm:$0xff] %v542_v63 }
  0x4f   : > { %545 = vst [vmem:[%s2251_s6 + $0x1d0] sm:$0xff] %v544_v0  ;;  %547 = vst [vmem:[%s2251_s6 + $0x1d8] sm:$0xff] %v546_v1  ;;  %v548_v2 = vld [vmem:[%s2246_s5 + $0x3c0] sm:$0xff]  ;;  %v550_v3 = vld [vmem:[%s2246_s5 + $0x3d0] sm:$0xff] }
  0x50   : > { %v552_v4 = vld [vmem:[%s2246_s5 + $0x3e0] sm:$0xff]  ;;  %549 = vst [vmem:[%s2251_s6 + $0x1e0] sm:$0xff] %v548_v2  ;;  %551 = vst [vmem:[%s2251_s6 + $0x1e8] sm:$0xff] %v550_v3  ;;  %v554_v5 = vld [vmem:[%s2246_s5 + $0x3f0] sm:$0xff] }
  0x51   : > { %553 = vst [vmem:[%s2251_s6 + $0x1f0] sm:$0xff] %v552_v4  ;;  %v556_v6 = vld [vmem:[%s2246_s5 + $0x400] sm:$0xff]  ;;  %v558_v7 = vld [vmem:[%s2246_s5 + $0x410] sm:$0xff]  ;;  %555 = vst [vmem:[%s2251_s6 + $0x1f8] sm:$0xff] %v554_v5 }
  0x52   : > { %557 = vst [vmem:[%s2251_s6 + $0x200] sm:$0xff] %v556_v6  ;;  %559 = vst [vmem:[%s2251_s6 + $0x208] sm:$0xff] %v558_v7  ;;  %v560_v8 = vld [vmem:[%s2246_s5 + $0x420] sm:$0xff]  ;;  %v562_v9 = vld [vmem:[%s2246_s5 + $0x430] sm:$0xff] }
  0x53   : > { %v564_v10 = vld [vmem:[%s2246_s5 + $0x440] sm:$0xff]  ;;  %561 = vst [vmem:[%s2251_s6 + $0x210] sm:$0xff] %v560_v8  ;;  %563 = vst [vmem:[%s2251_s6 + $0x218] sm:$0xff] %v562_v9  ;;  %v566_v11 = vld [vmem:[%s2246_s5 + $0x450] sm:$0xff] }
  0x54   : > { %565 = vst [vmem:[%s2251_s6 + $0x220] sm:$0xff] %v564_v10  ;;  %v568_v12 = vld [vmem:[%s2246_s5 + $0x460] sm:$0xff]  ;;  %v570_v13 = vld [vmem:[%s2246_s5 + $0x470] sm:$0xff]  ;;  %567 = vst [vmem:[%s2251_s6 + $0x228] sm:$0xff] %v566_v11 }
  0x55   : > { %569 = vst [vmem:[%s2251_s6 + $0x230] sm:$0xff] %v568_v12  ;;  %571 = vst [vmem:[%s2251_s6 + $0x238] sm:$0xff] %v570_v13  ;;  %v572_v14 = vld [vmem:[%s2246_s5 + $0x480] sm:$0xff]  ;;  %v574_v15 = vld [vmem:[%s2246_s5 + $0x490] sm:$0xff] }
  0x56   : > { %v576_v16 = vld [vmem:[%s2246_s5 + $0x4a0] sm:$0xff]  ;;  %573 = vst [vmem:[%s2251_s6 + $0x240] sm:$0xff] %v572_v14  ;;  %575 = vst [vmem:[%s2251_s6 + $0x248] sm:$0xff] %v574_v15  ;;  %v578_v17 = vld [vmem:[%s2246_s5 + $0x4b0] sm:$0xff] }
  0x57   : > { %577 = vst [vmem:[%s2251_s6 + $0x250] sm:$0xff] %v576_v16  ;;  %v580_v18 = vld [vmem:[%s2246_s5 + $0x4c0] sm:$0xff]  ;;  %v582_v19 = vld [vmem:[%s2246_s5 + $0x4d0] sm:$0xff]  ;;  %579 = vst [vmem:[%s2251_s6 + $0x258] sm:$0xff] %v578_v17 }
  0x58   : > { %581 = vst [vmem:[%s2251_s6 + $0x260] sm:$0xff] %v580_v18  ;;  %583 = vst [vmem:[%s2251_s6 + $0x268] sm:$0xff] %v582_v19  ;;  %v584_v20 = vld [vmem:[%s2246_s5 + $0x4e0] sm:$0xff]  ;;  %v586_v21 = vld [vmem:[%s2246_s5 + $0x4f0] sm:$0xff] }
  0x59   : > { %v588_v22 = vld [vmem:[%s2246_s5 + $0x500] sm:$0xff]  ;;  %585 = vst [vmem:[%s2251_s6 + $0x270] sm:$0xff] %v584_v20  ;;  %587 = vst [vmem:[%s2251_s6 + $0x278] sm:$0xff] %v586_v21  ;;  %v590_v23 = vld [vmem:[%s2246_s5 + $0x510] sm:$0xff] }
  0x5a   : > { %589 = vst [vmem:[%s2251_s6 + $0x280] sm:$0xff] %v588_v22  ;;  %v592_v24 = vld [vmem:[%s2246_s5 + $0x520] sm:$0xff]  ;;  %v594_v25 = vld [vmem:[%s2246_s5 + $0x530] sm:$0xff]  ;;  %591 = vst [vmem:[%s2251_s6 + $0x288] sm:$0xff] %v590_v23 }
  0x5b   : > { %593 = vst [vmem:[%s2251_s6 + $0x290] sm:$0xff] %v592_v24  ;;  %595 = vst [vmem:[%s2251_s6 + $0x298] sm:$0xff] %v594_v25  ;;  %v596_v26 = vld [vmem:[%s2246_s5 + $0x540] sm:$0xff]  ;;  %v598_v27 = vld [vmem:[%s2246_s5 + $0x550] sm:$0xff] }
  0x5c   : > { %v600_v28 = vld [vmem:[%s2246_s5 + $0x560] sm:$0xff]  ;;  %597 = vst [vmem:[%s2251_s6 + $0x2a0] sm:$0xff] %v596_v26  ;;  %599 = vst [vmem:[%s2251_s6 + $0x2a8] sm:$0xff] %v598_v27  ;;  %v602_v29 = vld [vmem:[%s2246_s5 + $0x570] sm:$0xff] }
  0x5d   : > { %601 = vst [vmem:[%s2251_s6 + $0x2b0] sm:$0xff] %v600_v28  ;;  %v604_v30 = vld [vmem:[%s2246_s5 + $0x580] sm:$0xff]  ;;  %v606_v31 = vld [vmem:[%s2246_s5 + $0x590] sm:$0xff]  ;;  %603 = vst [vmem:[%s2251_s6 + $0x2b8] sm:$0xff] %v602_v29 }
  0x5e   : > { %605 = vst [vmem:[%s2251_s6 + $0x2c0] sm:$0xff] %v604_v30  ;;  %607 = vst [vmem:[%s2251_s6 + $0x2c8] sm:$0xff] %v606_v31  ;;  %v608_v32 = vld [vmem:[%s2246_s5 + $0x5a0] sm:$0xff]  ;;  %v610_v33 = vld [vmem:[%s2246_s5 + $0x5b0] sm:$0xff] }
  0x5f   : > { %v612_v34 = vld [vmem:[%s2246_s5 + $0x5c0] sm:$0xff]  ;;  %609 = vst [vmem:[%s2251_s6 + $0x2d0] sm:$0xff] %v608_v32  ;;  %611 = vst [vmem:[%s2251_s6 + $0x2d8] sm:$0xff] %v610_v33  ;;  %v614_v35 = vld [vmem:[%s2246_s5 + $0x5d0] sm:$0xff] }
  0x60   : > { %613 = vst [vmem:[%s2251_s6 + $0x2e0] sm:$0xff] %v612_v34  ;;  %v616_v36 = vld [vmem:[%s2246_s5 + $0x5e0] sm:$0xff]  ;;  %v618_v37 = vld [vmem:[%s2246_s5 + $0x5f0] sm:$0xff]  ;;  %615 = vst [vmem:[%s2251_s6 + $0x2e8] sm:$0xff] %v614_v35 }
  0x61   : > { %617 = vst [vmem:[%s2251_s6 + $0x2f0] sm:$0xff] %v616_v36  ;;  %619 = vst [vmem:[%s2251_s6 + $0x2f8] sm:$0xff] %v618_v37 }
  0x62 PF: > { %p1659_p0 = scmp.ge.s32.totalorder %s2110_s22, 1  ;;  %p632_p1 = scmp.lt.s32.totalorder %s2110_s22, 7 }
  0x64   : > { %p633_p2 = pnand %p1659_p0, %p632_p1 }
  0x65   : > { %s646_s0 = sand.u32 (!%p633_p2), 1, %s2078_s14   ;;  %s673_s23 = sand.u32 (!%p633_p2), 1, %s2070_s12  }
  0x66   : > { %636 = sbr.rel (%p633_p2) target bundleno = 480 (0x1e0), region = 85  ;;  %s2446_s7 = sshll.u32 (!%p633_p2), %s673_s23, 4 }
  0x67   : > { %s1782_s28 = smul.u32 (!%p633_p2), 768, %s646_s0  ;;  %s1661_s11 = sshll.u32 (!%p633_p2), %s2098_s19, 1 }
  0x68   : > { %p681_p3 = scmp.lt.s32.totalorder (!%p633_p2), %s1661_s11, 3  ;;  %s639_s29 = sand.u32 (!%p633_p2), 1, %s2086_s16  }
  0x69   : > { %s2449_s26 = scalar_lea.vmem (!%p633_p2), [#allocation4], %s1782_s28  ;;  %s1781_s4 = smul.u32 (!%p633_p2), 48, %s639_s29 }
  0x6a   : > { %s2563_s5 = scalar_lea.vmem (!%p633_p2), [#allocation5], %s2446_s7  ;;  %p1764_p4 = scmp.ne.s32.totalorder (!%p633_p2), %s2094_s18, 0 }
  0x6b   : > { %v1871_v38 = vld [vmem:[%s2449_s26 + $0x74] ss:$8 sps:$4 sm:$0xff]   ;;  %s2642_s11 = smov (!%p681_p3, %s1661_s11), 3  ;;  %v1875_v40 = vld [vmem:[%s2449_s26 + $0x70] ss:$8 sps:$4 sm:$0xff]   ;;  %s2506_s16 = scalar_lea.vmem [#allocation3], %s1781_s4 }
  0x6c   : > { %v1873_v39 = vld [vmem:[%s2449_s26 + $0x174] ss:$8 sps:$4 sm:$0xff]   ;;  %1299 = vmatprep.subr.bf16.mxu0 %v1871_v38  ;;  %v1876_v41 = vld [vmem:[%s2449_s26 + $0x170] ss:$8 sps:$4 sm:$0xff]   ;;  %s683_s27 = scalar_lea.vmem %s2618_s2, %s2642_s11  ;;  %v1877_v42 = vld [vmem:[%s2449_s26 + $0x64] ss:$8 sps:$4 sm:$0xff]  }
  0x6d   : > { %1342 = vmatprep.subr.bf16.mxu1 %v1873_v39  ;;  %1300 = vmatpush1.bf16.msra.mxu0 %v1875_v40  ;;  %v1879_v43 = vld [vmem:[%s2449_s26 + $0x164] ss:$8 sps:$4 sm:$0xff]   ;;  %v1881_v44 = vld [vmem:[%s2449_s26 + $0x60] ss:$8 sps:$4 sm:$0xff]   ;;  %v1883_v46 = vld [vmem:[%s2449_s26 + $0x54] ss:$8 sps:$4 sm:$0xff]  }
  0x6e   : > { %1343 = vmatpush1.bf16.msra.mxu1 %v1876_v41  ;;  %1301 = vmatprep.subr.bf16.mxu0 %v1877_v42  ;;  %v1882_v45 = vld [vmem:[%s2449_s26 + $0x160] ss:$8 sps:$4 sm:$0xff]   ;;  %v1885_v47 = vld [vmem:[%s2449_s26 + $0x154] ss:$8 sps:$4 sm:$0xff]   ;;  %v1887_v48 = vld [vmem:[%s2449_s26 + $0x50] ss:$8 sps:$4 sm:$0xff]  }
  0x6f   : > { %1344 = vmatprep.subr.bf16.mxu1 %v1879_v43  ;;  %v1888_v49 = vld [vmem:[%s2449_s26 + $0x150] ss:$8 sps:$4 sm:$0xff]   ;;  %v1889_v50 = vld [vmem:[%s2449_s26 + $0x44] ss:$8 sps:$4 sm:$0xff]   ;;  %v1893_v52 = vld [vmem:[%s2449_s26 + $0x40] ss:$8 sps:$4 sm:$0xff]  }
  0x70   : > { %v1891_v51 = vld [vmem:[%s2449_s26 + $0x144] ss:$8 sps:$4 sm:$0xff]   ;;  %v1894_v53 = vld [vmem:[%s2449_s26 + $0x140] ss:$8 sps:$4 sm:$0xff]   ;;  %v1895_v54 = vld [vmem:[%s2449_s26 + $0x34] ss:$8 sps:$4 sm:$0xff]  }
  0x71   : > { %1302 = vmatpush1.bf16.msra.mxu0 %v1881_v44  ;;  %v1897_v55 = vld [vmem:[%s2449_s26 + $0x134] ss:$8 sps:$4 sm:$0xff]   ;;  %v1899_v56 = vld [vmem:[%s2449_s26 + $0x30] ss:$8 sps:$4 sm:$0xff]   ;;  %v1901_v58 = vld [vmem:[%s2449_s26 + $0x24] ss:$8 sps:$4 sm:$0xff]  }
  0x72   : > { %1345 = vmatpush1.bf16.msra.mxu1 %v1882_v45  ;;  %1303 = vmatprep.subr.bf16.mxu0 %v1883_v46  ;;  %v1900_v57 = vld [vmem:[%s2449_s26 + $0x130] ss:$8 sps:$4 sm:$0xff]   ;;  %v1903_v59 = vld [vmem:[%s2449_s26 + $0x124] ss:$8 sps:$4 sm:$0xff]   ;;  %v1905_v60 = vld [vmem:[%s2449_s26 + $0x20] ss:$8 sps:$4 sm:$0xff]  }
  0x73   : > { %1346 = vmatprep.subr.bf16.mxu1 %v1885_v47  ;;  %v1906_v61 = vld [vmem:[%s2449_s26 + $0x120] ss:$8 sps:$4 sm:$0xff]   ;;  %v1907_v62 = vld [vmem:[%s2449_s26 + $0x14] ss:$8 sps:$4 sm:$0xff]   ;;  %v1911_v0 = vld [vmem:[%s2449_s26 + $0x10] ss:$8 sps:$4 sm:$0xff]  }
  0x74   : > { %v1909_v63 = vld [vmem:[%s2449_s26 + $0x114] ss:$8 sps:$4 sm:$0xff]   ;;  %v1912_v1 = vld [vmem:[%s2449_s26 + $0x110] ss:$8 sps:$4 sm:$0xff]   ;;  %v1913_v2 = vld [vmem:[%s2449_s26 + $0x4] ss:$8 sps:$4 sm:$0xff]  }
  0x75   : > { %1304 = vmatpush1.bf16.msra.mxu0 %v1887_v48  ;;  %v1915_v3 = vld [vmem:[%s2449_s26 + $0x104] ss:$8 sps:$4 sm:$0xff]   ;;  %v1917_v4 = vld [vmem:[%s2449_s26] ss:$8 sps:$4 sm:$0xff]   ;;  %v1919_v6 = vld [vmem:[%s2449_s26 + $0xf4] ss:$8 sps:$4 sm:$0xff]  }
  0x76   : > { %1347 = vmatpush1.bf16.msra.mxu1 %v1888_v49  ;;  %1305 = vmatprep.subr.bf16.mxu0 %v1889_v50  ;;  %v1918_v5 = vld [vmem:[%s2449_s26 + $0x100] ss:$8 sps:$4 sm:$0xff]   ;;  %v1921_v7 = vld [vmem:[%s2449_s26 + $0x1f4] ss:$8 sps:$4 sm:$0xff]   ;;  %v1923_v8 = vld [vmem:[%s2449_s26 + $0xf0] ss:$8 sps:$4 sm:$0xff]  }
  0x77   : > { %1348 = vmatprep.subr.bf16.mxu1 %v1891_v51  ;;  %v1924_v9 = vld [vmem:[%s2449_s26 + $0x1f0] ss:$8 sps:$4 sm:$0xff]   ;;  %v1925_v10 = vld [vmem:[%s2449_s26 + $0xe4] ss:$8 sps:$4 sm:$0xff]   ;;  %v1929_v12 = vld [vmem:[%s2449_s26 + $0xe0] ss:$8 sps:$4 sm:$0xff]  }
  0x78   : > { %v1927_v11 = vld [vmem:[%s2449_s26 + $0x1e4] ss:$8 sps:$4 sm:$0xff]   ;;  %v1930_v13 = vld [vmem:[%s2449_s26 + $0x1e0] ss:$8 sps:$4 sm:$0xff]   ;;  %v1931_v14 = vld [vmem:[%s2449_s26 + $0xd4] ss:$8 sps:$4 sm:$0xff]  }
  0x79   : > { %1306 = vmatpush1.bf16.msra.mxu0 %v1893_v52  ;;  %v1933_v15 = vld [vmem:[%s2449_s26 + $0x1d4] ss:$8 sps:$4 sm:$0xff]   ;;  %v1935_v16 = vld [vmem:[%s2449_s26 + $0xd0] ss:$8 sps:$4 sm:$0xff]   ;;  %v1937_v18 = vld [vmem:[%s2449_s26 + $0xc4] ss:$8 sps:$4 sm:$0xff]  }
  0x7a   : > { %1349 = vmatpush1.bf16.msra.mxu1 %v1894_v53  ;;  %1307 = vmatprep.subr.bf16.mxu0 %v1895_v54  ;;  %v1936_v17 = vld [vmem:[%s2449_s26 + $0x1d0] ss:$8 sps:$4 sm:$0xff]   ;;  %v1939_v19 = vld [vmem:[%s2449_s26 + $0x1c4] ss:$8 sps:$4 sm:$0xff]   ;;  %v1941_v20 = vld [vmem:[%s2449_s26 + $0xc0] ss:$8 sps:$4 sm:$0xff]  }
  0x7b   : > { %1350 = vmatprep.subr.bf16.mxu1 %v1897_v55  ;;  %v1942_v21 = vld [vmem:[%s2449_s26 + $0x1c0] ss:$8 sps:$4 sm:$0xff]   ;;  %v1943_v22 = vld [vmem:[%s2449_s26 + $0xb4] ss:$8 sps:$4 sm:$0xff]   ;;  %v1947_v26 = vld [vmem:[%s2449_s26 + $0xb0] ss:$8 sps:$4 sm:$0xff]  }
  0x7c   : > { %v1969_v23 = vld [vmem:[%s2506_s16 + $0x4] ss:$24 sps:$4 sm:$0xff]   ;;  %v1948_v27 = vld [vmem:[%s2449_s26 + $0x1b0] ss:$8 sps:$4 sm:$0xff]   ;;  %v1953_v30 = vld [vmem:[%s2449_s26 + $0xa0] ss:$8 sps:$4 sm:$0xff]  }
  0x7d   : > { %1308 = vmatpush1.bf16.msra.mxu0 %v1899_v56  ;;  %v1945_v24 = vld [vmem:[%s2449_s26 + $0x1b4] ss:$8 sps:$4 sm:$0xff]   ;;  %1331 = vmatprep.mubr.bf16.mxu0 %v1969_v23  ;;  %v1949_v28 = vld [vmem:[%s2449_s26 + $0xa4] ss:$8 sps:$4 sm:$0xff]   ;;  %v1954_v31 = vld [vmem:[%s2449_s26 + $0x1a0] ss:$8 sps:$4 sm:$0xff]  }
  0x7e   : > { %1351 = vmatpush1.bf16.msra.mxu1 %v1900_v57  ;;  %1309 = vmatprep.subr.bf16.mxu0 %v1901_v58  ;;  %v1972_v25 = vld [vmem:[%s2506_s16 + $0xc] ss:$24 sps:$4 sm:$0xff]   ;;  %v1959_v34 = vld [vmem:[%s2449_s26 + $0x90] ss:$8 sps:$4 sm:$0xff]   ;;  %v1965_v38 = vld [vmem:[%s2449_s26 + $0x80] ss:$8 sps:$4 sm:$0xff]  }
  0x7f   : > { %1352 = vmatprep.subr.bf16.mxu1 %v1903_v59  ;;  %1374 = vmatprep.mubr.bf16.mxu1 %v1972_v25  ;;  %v1951_v29 = vld [vmem:[%s2449_s26 + $0x1a4] ss:$8 sps:$4 sm:$0xff]   ;;  %v1955_v32 = vld [vmem:[%s2449_s26 + $0x94] ss:$8 sps:$4 sm:$0xff]   ;;  %v1960_v35 = vld [vmem:[%s2449_s26 + $0x190] ss:$8 sps:$4 sm:$0xff]  }
  0x80   : > { %v1957_v33 = vld [vmem:[%s2449_s26 + $0x194] ss:$8 sps:$4 sm:$0xff]   ;;  %v1961_v36 = vld [vmem:[%s2449_s26 + $0x84] ss:$8 sps:$4 sm:$0xff]   ;;  %v1966_v39 = vld [vmem:[%s2449_s26 + $0x180] ss:$8 sps:$4 sm:$0xff]  }
  0x81   : > { %1310 = vmatpush1.bf16.msra.mxu0 %v1905_v60  ;;  %v1963_v37 = vld [vmem:[%s2449_s26 + $0x184] ss:$8 sps:$4 sm:$0xff]   ;;  %v1975_v40 = vld [vmem:[%s2449_s26 + $0x274] ss:$8 sps:$4 sm:$0xff]   ;;  %v1967_v41 = vld [vmem:[%s2506_s16] ss:$24 sps:$4 sm:$0xff]  }
  0x82   : > { %1353 = vmatpush1.bf16.msra.mxu1 %v1906_v61  ;;  %1311 = vmatprep.subr.bf16.mxu0 %v1907_v62  ;;  %v1970_v42 = vld [vmem:[%s2506_s16 + $0x8] ss:$24 sps:$4 sm:$0xff]   ;;  %v1978_v44 = vld [vmem:[%s2449_s26 + $0x264] ss:$8 sps:$4 sm:$0xff]   ;;  %v1981_v47 = vld [vmem:[%s2449_s26 + $0x254] ss:$8 sps:$4 sm:$0xff]  }
  0x83   : > { %1354 = vmatprep.subr.bf16.mxu1 %v1909_v63  ;;  %v1973_v43 = vld [vmem:[%s2449_s26 + $0x270] ss:$8 sps:$4 sm:$0xff]   ;;  %v2023_v45 = vld [vmem:[%s2506_s16 + $0x14] ss:$24 sps:$4 sm:$0xff]   ;;  %v1976_v46 = vld [vmem:[%s2449_s26 + $0x260] ss:$8 sps:$4 sm:$0xff]  }
  0x84   : > { %v1979_v48 = vld [vmem:[%s2449_s26 + $0x250] ss:$8 sps:$4 sm:$0xff]   ;;  %v1984_v49 = vld [vmem:[%s2449_s26 + $0x244] ss:$8 sps:$4 sm:$0xff]   ;;  %v1982_v50 = vld [vmem:[%s2449_s26 + $0x240] ss:$8 sps:$4 sm:$0xff]  }
  0x85   : > { %1312 = vmatpush1.bf16.msra.mxu0 %v1911_v0  ;;  %v1987_v51 = vld [vmem:[%s2449_s26 + $0x234] ss:$8 sps:$4 sm:$0xff]   ;;  %v1985_v52 = vld [vmem:[%s2449_s26 + $0x230] ss:$8 sps:$4 sm:$0xff]   ;;  %v1990_v53 = vld [vmem:[%s2449_s26 + $0x224] ss:$8 sps:$4 sm:$0xff]  }
  0x86   : > { %1355 = vmatpush1.bf16.msra.mxu1 %v1912_v1  ;;  %1313 = vmatprep.subr.bf16.mxu0 %v1913_v2  ;;  %v1988_v54 = vld [vmem:[%s2449_s26 + $0x220] ss:$8 sps:$4 sm:$0xff]   ;;  %v1993_v55 = vld [vmem:[%s2449_s26 + $0x214] ss:$8 sps:$4 sm:$0xff]   ;;  %v1991_v56 = vld [vmem:[%s2449_s26 + $0x210] ss:$8 sps:$4 sm:$0xff]  }
  0x87   : > { %1356 = vmatprep.subr.bf16.mxu1 %v1915_v3  ;;  %v1996_v57 = vld [vmem:[%s2449_s26 + $0x204] ss:$8 sps:$4 sm:$0xff]   ;;  %v1994_v58 = vld [vmem:[%s2449_s26 + $0x200] ss:$8 sps:$4 sm:$0xff]   ;;  %v1999_v59 = vld [vmem:[%s2449_s26 + $0x2f4] ss:$8 sps:$4 sm:$0xff]  }
  0x88   : > { %v1997_v60 = vld [vmem:[%s2449_s26 + $0x2f0] ss:$8 sps:$4 sm:$0xff]   ;;  %v2002_v61 = vld [vmem:[%s2449_s26 + $0x2e4] ss:$8 sps:$4 sm:$0xff]   ;;  %v2000_v62 = vld [vmem:[%s2449_s26 + $0x2e0] ss:$8 sps:$4 sm:$0xff]  }
  0x89   : > { %1314 = vmatpush1.bf16.msra.mxu0 %v1917_v4  ;;  %v2005_v63 = vld [vmem:[%s2449_s26 + $0x2d4] ss:$8 sps:$4 sm:$0xff]   ;;  %v2003_v0 = vld [vmem:[%s2449_s26 + $0x2d0] ss:$8 sps:$4 sm:$0xff]   ;;  %v2008_v1 = vld [vmem:[%s2449_s26 + $0x2c4] ss:$8 sps:$4 sm:$0xff]  }
  0x8a   : > { %1357 = vmatpush1.bf16.msra.mxu1 %v1918_v5  ;;  %1315 = vmatprep.subr.bf16.mxu0 %v1919_v6  ;;  %v2006_v2 = vld [vmem:[%s2449_s26 + $0x2c0] ss:$8 sps:$4 sm:$0xff]   ;;  %v2011_v3 = vld [vmem:[%s2449_s26 + $0x2b4] ss:$8 sps:$4 sm:$0xff]   ;;  %v2009_v4 = vld [vmem:[%s2449_s26 + $0x2b0] ss:$8 sps:$4 sm:$0xff]  }
  0x8b   : > { %1358 = vmatprep.subr.bf16.mxu1 %v1921_v7  ;;  %v2014_v5 = vld [vmem:[%s2449_s26 + $0x2a4] ss:$8 sps:$4 sm:$0xff]   ;;  %v2012_v6 = vld [vmem:[%s2449_s26 + $0x2a0] ss:$8 sps:$4 sm:$0xff]   ;;  %v2017_v7 = vld [vmem:[%s2449_s26 + $0x294] ss:$8 sps:$4 sm:$0xff]  }
  0x8d   : > { %1316 = vmatpush2.bf16.msra.mxu0 %v1923_v8  ;;  %v2015_v8 = vld [vmem:[%s2449_s26 + $0x290] ss:$8 sps:$4 sm:$0xff]  }
  0x8e   : > { %1359 = vmatpush2.bf16.msra.mxu1 %v1924_v9  ;;  %1317 = vmatprep.subr.bf16.mxu0 %v1925_v10  ;;  %v2020_v9 = vld [vmem:[%s2449_s26 + $0x284] ss:$8 sps:$4 sm:$0xff]   ;;  %v2018_v10 = vld [vmem:[%s2449_s26 + $0x280] ss:$8 sps:$4 sm:$0xff]  }
  0x8f   : > { %1360 = vmatprep.subr.bf16.mxu1 %v1927_v11  ;;  %v2021_v11 = vld [vmem:[%s2506_s16 + $0x10] ss:$24 sps:$4 sm:$0xff]  }
  0x91   : > { %1318 = vmatpush2.bf16.msra.mxu0 %v1929_v12 }
  0x92   : > { %1361 = vmatpush2.bf16.msra.mxu1 %v1930_v13  ;;  %1319 = vmatprep.subr.bf16.mxu0 %v1931_v14 }
  0x93   : > { %1362 = vmatprep.subr.bf16.mxu1 %v1933_v15 }
  0x95   : > { %1320 = vmatpush2.bf16.msra.mxu0 %v1935_v16 }
  0x96   : > { %1363 = vmatpush2.bf16.msra.mxu1 %v1936_v17  ;;  %1321 = vmatprep.subr.bf16.mxu0 %v1937_v18 }
  0x97   : > { %1364 = vmatprep.subr.bf16.mxu1 %v1939_v19 }
  0x99   : > { %1322 = vmatpush2.bf16.msra.mxu0 %v1941_v20 }
  0x9a   : > { %1365 = vmatpush2.bf16.msra.mxu1 %v1942_v21  ;;  %1323 = vmatprep.subr.bf16.mxu0 %v1943_v22 }
  0x9b   : > { %1366 = vmatprep.subr.bf16.mxu1 %v1945_v24 }
  0x9d   : > { %1324 = vmatpush2.bf16.msra.mxu0 %v1947_v26 }
  0x9e   : > { %1367 = vmatpush2.bf16.msra.mxu1 %v1948_v27  ;;  %1325 = vmatprep.subr.bf16.mxu0 %v1949_v28 }
  0x9f   : > { %1368 = vmatprep.subr.bf16.mxu1 %v1951_v29 }
  0xa1   : > { %1326 = vmatpush2.bf16.msra.mxu0 %v1953_v30 }
  0xa2   : > { %1369 = vmatpush2.bf16.msra.mxu1 %v1954_v31  ;;  %1327 = vmatprep.subr.bf16.mxu0 %v1955_v32 }
  0xa3   : > { %1370 = vmatprep.subr.bf16.mxu1 %v1957_v33 }
  0xa5   : > { %1328 = vmatpush2.bf16.msra.mxu0 %v1959_v34 }
  0xa6   : > { %1371 = vmatpush2.bf16.msra.mxu1 %v1960_v35  ;;  %1329 = vmatprep.subr.bf16.mxu0 %v1961_v36 }
  0xa7   : > { %1372 = vmatprep.subr.bf16.mxu1 %v1963_v37 }
  0xa9   : > { %1330 = vmatpush2.bf16.msra.mxu0 %v1965_v38 }
  0xaa   : > { %1373 = vmatpush2.bf16.msra.mxu1 %v1966_v39  ;;  %1385 = vmatprep.subr.bf16.mxu0 %v1975_v40 }
  0xac   : > { %1332 = vmatmul.mubr.bf16.vlgmr.msra.gmra.mxu0 %v1967_v41 }
  0xad   : > { %1375 = vmatmul.mubr.bf16.vlgmr.msra.gmra.mxu1 %v1970_v42  ;;  %1386 = vmatpush1.bf16.msra.mxu0 %v1973_v43 }
  0xae   : > { %1387 = vmatprep.subr.bf16.mxu0 %v1978_v44  ;;  %1417 = vmatprep.mubr.bf16.mxu0 %v2023_v45 }
  0xb1   : > { %1388 = vmatpush1.bf16.msra.mxu0 %v1976_v46 }
  0xb2   : > { %1389 = vmatprep.subr.bf16.mxu0 %v1981_v47 }
  0xb5   : > { %1390 = vmatpush1.bf16.msra.mxu0 %v1979_v48 }
  0xb6   : > { %1391 = vmatprep.subr.bf16.mxu0 %v1984_v49 }
  0xb9   : > { %1392 = vmatpush1.bf16.msra.mxu0 %v1982_v50 }
  0xba   : > { %1393 = vmatprep.subr.bf16.mxu0 %v1987_v51 }
  0xbd   : > { %1394 = vmatpush1.bf16.msra.mxu0 %v1985_v52 }
  0xbe   : > { %1395 = vmatprep.subr.bf16.mxu0 %v1990_v53 }
  0xc1   : > { %1396 = vmatpush1.bf16.msra.mxu0 %v1988_v54 }
  0xc2   : > { %1397 = vmatprep.subr.bf16.mxu0 %v1993_v55 }
  0xc5   : > { %1398 = vmatpush1.bf16.msra.mxu0 %v1991_v56 }
  0xc6   : > { %1399 = vmatprep.subr.bf16.mxu0 %v1996_v57 }
  0xc9   : > { %1400 = vmatpush1.bf16.msra.mxu0 %v1994_v58 }
  0xca   : > { %1401 = vmatprep.subr.bf16.mxu0 %v1999_v59 }
  0xcd   : > { %1402 = vmatpush2.bf16.msra.mxu0 %v1997_v60 }
  0xce   : > { %1403 = vmatprep.subr.bf16.mxu0 %v2002_v61 }
  0xd1   : > { %1404 = vmatpush2.bf16.msra.mxu0 %v2000_v62 }
  0xd2   : > { %1405 = vmatprep.subr.bf16.mxu0 %v2005_v63 }
  0xd5   : > { %1406 = vmatpush2.bf16.msra.mxu0 %v2003_v0 }
  0xd6   : > { %1407 = vmatprep.subr.bf16.mxu0 %v2008_v1 }
  0xd9   : > { %1408 = vmatpush2.bf16.msra.mxu0 %v2006_v2 }
  0xda   : > { %1409 = vmatprep.subr.bf16.mxu0 %v2011_v3 }
  0xdd   : > { %1410 = vmatpush2.bf16.msra.mxu0 %v2009_v4 }
  0xde   : > { %1411 = vmatprep.subr.bf16.mxu0 %v2014_v5 }
  0xe1   : > { %1412 = vmatpush2.bf16.msra.mxu0 %v2012_v6 }
  0xe2   : > { %1413 = vmatprep.subr.bf16.mxu0 %v2017_v7 }
  0xe5   : > { %1414 = vmatpush2.bf16.msra.mxu0 %v2015_v8 }
  0xe6   : > { %1415 = vmatprep.subr.bf16.mxu0 %v2020_v9 }
  0xe9   : > { %1416 = vmatpush2.bf16.msra.mxu0 %v2018_v10 }
  0xec   : > { %1418 = vmatmul.mubr.bf16.vlgmr.msra.gmra.mxu0 %v2021_v11 }
 0x16c   : > { %v1333_v12 = vpop.f32.mrf.mxu0 }
 0x16d   : > { %v1376_v13 = vpop.f32.mrf.mxu1 }
 0x16e   : > { %v1335_v14 = vpop.f32.mrf.mxu0  ;;  %v1377_v19 = vadd.f32 %v1376_v13, %v1333_v12 }
 0x16f   : > { %v1378_v15 = vpop.f32.mrf.mxu1 }
 0x170   : > { %v1337_v16 = vpop.f32.mrf.mxu0  ;;  %v1379_v21 = vadd.f32 %v1378_v15, %v1335_v14 }
 0x171   : > { %v1380_v17 = vpop.f32.mrf.mxu1 }
 0x172   : > { %v1339_v18 = vpop.f32.mrf.mxu0  ;;  %v1381_v25 = vadd.f32 %v1380_v17, %v1337_v16 }
 0x173   : > { %v1382_v23 = vpop.f32.mrf.mxu1 }
 0x174   : > { %v1383_v28 = vadd.f32 %v1382_v23, %v1339_v18 }
 0x1ac   : > { %v1419_v20 = vpop.f32.mrf.mxu0 }
 0x1ad   : > { %v1420_v22 = vadd.f32 %v1419_v20, %v1377_v19 }
 0x1ae   : > { %v1421_v24 = vpop.f32.mrf.mxu0 }
 0x1af   : > { %v1422_v26 = vadd.f32 %v1421_v24, %v1379_v21  ;;  %1431 = sbr.rel (%p1764_p4) target bundleno = 438 (0x1b6), region = 97 }
 0x1b0   : > { %v1423_v27 = vpop.f32.mrf.mxu0 }
 0x1b1   : > { %v1424_v29 = vadd.f32 %v1423_v27, %v1381_v25 }
 0x1b2   : > { %v1425_v30 = vpop.f32.mrf.mxu0 }
 0x1b3   : > { %v1426_v31 = vadd.f32 %v1425_v30, %v1383_v28 }
 0x1b4   : > { %1432 = vst [vmem:[#allocation2 + $0x10] sm:$0xff] %v1420_v22  ;;  %1433 = vst [vmem:[#allocation2] sm:$0xff] %v1422_v26 }
 0x1b5   : > { %1434 = vst [vmem:[#allocation2 + $0x18] sm:$0xff] %v1424_v29  ;;  %1435 = vst [vmem:[#allocation2 + $0x8] sm:$0xff] %v1426_v31 }
 0x1b6 PF: > { %p1765_p5 = scmp.le.s32.totalorder %s2094_s18, 0 }
 0x1b8   : > { %1439 = sbr.rel (%p1765_p5) target bundleno = 450 (0x1c2), region = 101 }
 0x1bd   : > { %v1440_v32 = vld [vmem:[#allocation2 + $0x10] sm:$0xff]  ;;  %v1441_v33 = vld [vmem:[#allocation2] sm:$0xff]  ;;  %v1442_v34 = vld [vmem:[#allocation2 + $0x18] sm:$0xff] }
 0x1be   : > { %v1444_v35 = vadd.f32 %v1440_v32, %v1420_v22  ;;  %v1445_v36 = vadd.f32 %v1441_v33, %v1422_v26  ;;  %v1446_v37 = vadd.f32 %v1442_v34, %v1424_v29  ;;  %v1443_v38 = vld [vmem:[#allocation2 + $0x8] sm:$0xff] }
 0x1bf   : > { %v1447_v39 = vadd.f32 %v1443_v38, %v1426_v31 }
 0x1c0   : > { %1448 = vst [vmem:[#allocation2 + $0x10] sm:$0xff] %v1444_v35  ;;  %1449 = vst [vmem:[#allocation2] sm:$0xff] %v1445_v36 }
 0x1c1   : > { %1450 = vst [vmem:[#allocation2 + $0x18] sm:$0xff] %v1446_v37  ;;  %1451 = vst [vmem:[#allocation2 + $0x8] sm:$0xff] %v1447_v39 }
 0x1c2 PF: > { %p1766_p6 = scmp.ne.s32.totalorder %s2094_s18, 2 }
 0x1c4   : > { %1455 = sbr.rel (%p1766_p6) target bundleno = 472 (0x1d8), region = 105 }
 0x1c9   : > { %v1462_v40 = vlaneseq  ;;  %v1460_v42 = vld [vmem:[%s683_s27] sm:$0x3]  ;;  %v1456_v43 = vld [vmem:[#allocation2 + $0x10] sm:$0xff]  ;;  %v1458_v47 = vld [vmem:[#allocation2 + $0x18] sm:$0xff] }
 0x1ca   : > { %v1457_v46 = vld [vmem:[#allocation2] sm:$0xff]  ;;  %v1459_v48 = vld [vmem:[#allocation2 + $0x8] sm:$0xff] }
 0x1cb   : > { %v1463_v41 = vshrl.u32 %v1462_v40, 7 }
 0x1cd   : > { %v1464_v44 = vsub.s32 0, %v1463_v41  ;;  %v1468_v45 = vsub.s32 1, %v1463_v41 }
 0x1cf   : > { %v1465_v49 = vrot.slane %v1460_v42, %v1464_v44  ;;  %v1469_v50 = vrot.slane %v1460_v42, %v1468_v45 }
 0x1d1   : > { %v1472_v51 = vadd.f32 %v1465_v49, %v1456_v43  ;;  %v1473_v52 = vadd.f32 %v1469_v50, %v1457_v46  ;;  %v1474_v53 = vadd.f32 %v1465_v49, %v1458_v47  ;;  %v1475_v54 = vadd.f32 %v1469_v50, %v1459_v48 }
 0x1d3   : > { %v1476_v55 = vmax.f32 %v1472_v51, 0.0  ;;  %v1477_v56 = vmax.f32 %v1473_v52, 0.0  ;;  %v1478_v57 = vmax.f32 %v1474_v53, 0.0  ;;  %v1479_v58 = vmax.f32 %v1475_v54, 0.0 }
 0x1d5   : > { %v1776_v59 = vpack.c.bf16 %v1477_v56, %v1476_v55  ;;  %v1777_v60 = vpack.c.bf16 %v1479_v58, %v1478_v57 }
 0x1d7   : > { %1492 = vst [vmem:[%s2563_s5] sm:$0xff] %v1776_v59  ;;  %1493 = vst [vmem:[%s2563_s5 + $0x8] sm:$0xff] %v1777_v60 }
 0x1d8 PF: > { %1500 = sbr.rel (!%p2226_p12) target bundleno = 480 (0x1e0), region = 109  ;;  %s1778_s18 = sshll.u32 (%p2226_p12), %s2098_s19, 3 }
 0x1d9   : > { %s1506_s7 = scalar_lea.vmem (%p2226_p12), %s2619_s3, %s1778_s18 }
 0x1de   : > { %v1537_v61 = vld [vmem:[%s2563_s5] sm:$0xff]  ;;  %v1539_v62 = vld [vmem:[%s2563_s5 + $0x8] sm:$0xff] }
 0x1df   : > { %1538 = vst [vmem:[%s1506_s7] sm:$0xff] %v1537_v61  ;;  %1540 = vst [vmem:[%s1506_s7 + $0x10] sm:$0xff] %v1539_v62 }
 0x1e0 PF: > { %s13_s22 = sadd.s32 1, %s2110_s22   ;;  %s2625_s12 = smov %s2074_s13 }
 0x1e1   : > { %p10_p7 = scmp.ge.s32.totalorder %s13_s22, 8   ;;  %s2626_s13 = smov %s2224_s9 }
 0x1e2   : > { %s2627_s14 = smov %s2082_s15  ;;  %s2628_s15 = smov %s2221_s8 }
 0x1e3   : > { %s2629_s16 = smov %s2090_s17  ;;  %s2630_s17 = smov %s2207_s30 }
 0x1e4   : > { %s2631_s18 = smov %s2102_s20  ;;  %s2632_s19 = smov %s2106_s21 }
 0x1e5   : > { %s2633_s20 = smov %s2636_s24  ;;  %s2634_s21 = smov %s2640_s25 }
 0x1e6   :  { %12 = sbr.rel (!%p10_p7) target bundleno = 8 (0x8), region = 189 }

// kernel: resnet_forward.36
= control target key start
LH: loop header
LB: loop body
LE: loop exit
PB: predicated region body
PF: predicated region fallthrough
CT: control target
= control target key end

     0   :  { %s1085_s12 = smov 0   ;;  %s1087_s13 = smov 0   ;;  %s1273_s0 = inlined_call_operand.vmem [shape: bf16[16,256], index: 0, kind: input, shape index: {}]   ;;  %s1274_s1 = inlined_call_operand.vmem [shape: bf16[256,512], index: 1, kind: input, shape index: {}]   ;;  %s1275_s2 = inlined_call_operand.vmem [shape: f32[1,512], index: 2, kind: input, shape index: {}]   ;;  %s1276_s3 = inlined_call_operand.vmem [shape: bf16[16,512], index: 3, kind: output, shape index: {}]  }
   0x1   :  { %s1089_s14 = smov 0   ;;  %s1091_s15 = smov 0  }
   0x2   :  { %s1093_s16 = smov 0  }
   0x3 LB: > { %s28_s17 = sadd.s32 1, %s1059_s15  ;;  %s877_s18 = sadd.s32 4294967295, %s1063_s16   ;;  %s1063_s16 = sphi %s1093_s16, %s13_s16   ;;  %s1059_s15 = sphi %s1091_s15, %s1281_s15   ;;  %s1055_s14 = sphi %s1089_s14, %s1280_s14   ;;  %s1051_s13 = sphi %s1087_s13, %s1279_s13   ;;  %s1047_s12 = sphi %s1085_s12, %s1278_s12  }
   0x4   : > { %p30_p0 = scmp.ge.s32.totalorder %s28_s17, 2  ;;  %p76_p1 = scmp.ne.s32.totalorder %s1051_s13, %s1047_s12 }
   0x5   : > { %p77_p2 = scmp.eq.s32.totalorder %s1063_s16, 0  ;;  %p134_p4 = scmp.eq.s32.totalorder %s877_s18, 1 }
   0x6   : > { %s1283_s17 = smov (%p30_p0, %s28_s17), 0  ;;  %s69_s20 = sadd.s32 1, %s1051_s13 }
   0x7   : > { %p78_p3 = por %p77_p2, %p76_p1  ;;  %s65_s19 = ssub.s32 %s1059_s15, %s1283_s17 }
   0x8   : > { %p67_p5 = scmp.eq.s32.totalorder %s65_s19, 0  ;;  %p1120_p6 = por %p134_p4, %p76_p1 }
   0x9   : > { %p881_p7 = scmp.ge.s32.totalorder %s1063_s16, 2 }
   0xa   : > { %s1125_s22 = scalar_select %p67_p5, %s1051_s13, %s69_s20  }
   0xb   : > { %171 = sbr.rel (%p881_p7) target bundleno = 36 (0x24), region = 20 }
  0x10   : > { %174 = sbr.rel (!%p78_p3) target bundleno = 36 (0x24), region = 24  ;;  %s176_s23 = sand.u32 (%p78_p3), 1, %s1051_s13  }
  0x11   : > { %s930_s24 = sshll.u32 (%p78_p3), %s1059_s15, 3  ;;  %s882_s25 = sshll.u32 (%p78_p3), %s176_s23, 8 }
  0x12   : > { %s1133_s28 = scalar_lea.vmem (%p78_p3), %s1274_s1, %s930_s24  ;;  %s1138_s29 = scalar_lea.vmem (%p78_p3), [#allocation3], %s882_s25 }
  0x13   : > { %v275_v0 = vld [vmem:[%s1133_s28] sm:$0xff] (%p78_p3)  ;;  %v277_v1 = vld [vmem:[%s1133_s28 + $0x10] sm:$0xff] (%p78_p3) }
  0x14   : > { %v279_v2 = vld [vmem:[%s1133_s28 + $0x20] sm:$0xff] (%p78_p3)  ;;  %276 = vst [vmem:[%s1138_s29] sm:$0xff] (%p78_p3), %v275_v0  ;;  %278 = vst [vmem:[%s1138_s29 + $0x8] sm:$0xff] (%p78_p3), %v277_v1  ;;  %v281_v3 = vld [vmem:[%s1133_s28 + $0x30] sm:$0xff] (%p78_p3) }
  0x15   : > { %280 = vst [vmem:[%s1138_s29 + $0x10] sm:$0xff] %v279_v2  ;;  %v283_v4 = vld [vmem:[%s1133_s28 + $0x40] sm:$0xff]  ;;  %v285_v5 = vld [vmem:[%s1133_s28 + $0x50] sm:$0xff]  ;;  %282 = vst [vmem:[%s1138_s29 + $0x18] sm:$0xff] %v281_v3 }
  0x16   : > { %284 = vst [vmem:[%s1138_s29 + $0x20] sm:$0xff] %v283_v4  ;;  %286 = vst [vmem:[%s1138_s29 + $0x28] sm:$0xff] %v285_v5  ;;  %v287_v6 = vld [vmem:[%s1133_s28 + $0x60] sm:$0xff]  ;;  %v289_v7 = vld [vmem:[%s1133_s28 + $0x70] sm:$0xff] }
  0x17   : > { %v291_v8 = vld [vmem:[%s1133_s28 + $0x80] sm:$0xff]  ;;  %288 = vst [vmem:[%s1138_s29 + $0x30] sm:$0xff] %v287_v6  ;;  %290 = vst [vmem:[%s1138_s29 + $0x38] sm:$0xff] %v289_v7  ;;  %v293_v9 = vld [vmem:[%s1133_s28 + $0x90] sm:$0xff] }
  0x18   : > { %292 = vst [vmem:[%s1138_s29 + $0x40] sm:$0xff] %v291_v8  ;;  %v295_v10 = vld [vmem:[%s1133_s28 + $0xa0] sm:$0xff]  ;;  %v297_v11 = vld [vmem:[%s1133_s28 + $0xb0] sm:$0xff]  ;;  %294 = vst [vmem:[%s1138_s29 + $0x48] sm:$0xff] %v293_v9 }
  0x19   : > { %296 = vst [vmem:[%s1138_s29 + $0x50] sm:$0xff] %v295_v10  ;;  %298 = vst [vmem:[%s1138_s29 + $0x58] sm:$0xff] %v297_v11  ;;  %v299_v12 = vld [vmem:[%s1133_s28 + $0xc0] sm:$0xff]  ;;  %v301_v13 = vld [vmem:[%s1133_s28 + $0xd0] sm:$0xff] }
  0x1a   : > { %v303_v14 = vld [vmem:[%s1133_s28 + $0xe0] sm:$0xff]  ;;  %300 = vst [vmem:[%s1138_s29 + $0x60] sm:$0xff] %v299_v12  ;;  %302 = vst [vmem:[%s1138_s29 + $0x68] sm:$0xff] %v301_v13  ;;  %v305_v15 = vld [vmem:[%s1133_s28 + $0xf0] sm:$0xff] }
  0x1b   : > { %304 = vst [vmem:[%s1138_s29 + $0x70] sm:$0xff] %v303_v14  ;;  %v307_v16 = vld [vmem:[%s1133_s28 + $0x100] sm:$0xff]  ;;  %v309_v17 = vld [vmem:[%s1133_s28 + $0x110] sm:$0xff]  ;;  %306 = vst [vmem:[%s1138_s29 + $0x78] sm:$0xff] %v305_v15 }
  0x1c   : > { %308 = vst [vmem:[%s1138_s29 + $0x80] sm:$0xff] %v307_v16  ;;  %310 = vst [vmem:[%s1138_s29 + $0x88] sm:$0xff] %v309_v17  ;;  %v311_v18 = vld [vmem:[%s1133_s28 + $0x120] sm:$0xff]  ;;  %v313_v19 = vld [vmem:[%s1133_s28 + $0x130] sm:$0xff] }
  0x1d   : > { %v315_v20 = vld [vmem:[%s1133_s28 + $0x140] sm:$0xff]  ;;  %312 = vst [vmem:[%s1138_s29 + $0x90] sm:$0xff] %v311_v18  ;;  %314 = vst [vmem:[%s1138_s29 + $0x98] sm:$0xff] %v313_v19  ;;  %v317_v21 = vld [vmem:[%s1133_s28 + $0x150] sm:$0xff] }
  0x1e   : > { %316 = vst [vmem:[%s1138_s29 + $0xa0] sm:$0xff] %v315_v20  ;;  %v319_v22 = vld [vmem:[%s1133_s28 + $0x160] sm:$0xff]  ;;  %v321_v23 = vld [vmem:[%s1133_s28 + $0x170] sm:$0xff]  ;;  %318 = vst [vmem:[%s1138_s29 + $0xa8] sm:$0xff] %v317_v21 }
  0x1f   : > { %320 = vst [vmem:[%s1138_s29 + $0xb0] sm:$0xff] %v319_v22  ;;  %322 = vst [vmem:[%s1138_s29 + $0xb8] sm:$0xff] %v321_v23  ;;  %v323_v24 = vld [vmem:[%s1133_s28 + $0x180] sm:$0xff]  ;;  %v325_v25 = vld [vmem:[%s1133_s28 + $0x190] sm:$0xff] }
  0x20   : > { %v327_v26 = vld [vmem:[%s1133_s28 + $0x1a0] sm:$0xff]  ;;  %324 = vst [vmem:[%s1138_s29 + $0xc0] sm:$0xff] %v323_v24  ;;  %326 = vst [vmem:[%s1138_s29 + $0xc8] sm:$0xff] %v325_v25  ;;  %v329_v27 = vld [vmem:[%s1133_s28 + $0x1b0] sm:$0xff] }
  0x21   : > { %328 = vst [vmem:[%s1138_s29 + $0xd0] sm:$0xff] %v327_v26  ;;  %v331_v28 = vld [vmem:[%s1133_s28 + $0x1c0] sm:$0xff]  ;;  %v333_v29 = vld [vmem:[%s1133_s28 + $0x1d0] sm:$0xff]  ;;  %330 = vst [vmem:[%s1138_s29 + $0xd8] sm:$0xff] %v329_v27 }
  0x22   : > { %332 = vst [vmem:[%s1138_s29 + $0xe0] sm:$0xff] %v331_v28  ;;  %334 = vst [vmem:[%s1138_s29 + $0xe8] sm:$0xff] %v333_v29  ;;  %v335_v30 = vld [vmem:[%s1133_s28 + $0x1e0] sm:$0xff]  ;;  %v337_v31 = vld [vmem:[%s1133_s28 + $0x1f0] sm:$0xff] }
  0x23   : > { %336 = vst [vmem:[%s1138_s29 + $0xf0] sm:$0xff] %v335_v30  ;;  %338 = vst [vmem:[%s1138_s29 + $0xf8] sm:$0xff] %v337_v31 }
  0x24 PF: > { %p885_p8 = scmp.ge.s32.totalorder %s1063_s16, 1  ;;  %p351_p9 = scmp.lt.s32.totalorder %s1063_s16, 3 }
  0x26   : > { %p352_p10 = pnand %p885_p8, %p351_p9 }
  0x27   : > { %s358_s30 = sand.u32 (!%p352_p10), 1, %s1047_s12   ;;  %s888_s10 = sshll.u32 (!%p352_p10), %s1055_s14, 1 }
  0x28   : > { %355 = sbr.rel (%p352_p10) target bundleno = 322 (0x142), region = 66  ;;  %s886_s4 = sshll.u32 (!%p352_p10), %s358_s30, 8 }
  0x29   : > { %s1209_s7 = scalar_lea.vmem (!%p352_p10), [#allocation3], %s886_s4  ;;  %p409_p11 = scmp.lt.s32.totalorder (!%p352_p10), %s888_s10, 3 }
  0x2a   : > { %s887_s20 = sshll.u32 (!%p352_p10), %s358_s30, 4 }
  0x2b   : > { %s393_s23 = scalar_lea.vmem (!%p352_p10), [#allocation4], %s887_s20 }
  0x2d   : > { %v1024_v32 = vld [vmem:[%s1273_s0 + $0x4] ss:$8 sps:$4 sm:$0xff]   ;;  %v974_v33 = vld [vmem:[%s1209_s7 + $0x74] ss:$8 sps:$4 sm:$0xff]   ;;  %v976_v34 = vld [vmem:[%s1209_s7 + $0x70] ss:$8 sps:$4 sm:$0xff]   ;;  %v695_v2 = vlaneseq }
  0x2e   : > { %651 = vmatprep.mubr.bf16.mxu0 %v1024_v32  ;;  %619 = vmatprep.subr.bf16.mxu0 %v974_v33  ;;  %v977_v35 = vld [vmem:[%s1209_s7 + $0x64] ss:$8 sps:$4 sm:$0xff]   ;;  %v979_v36 = vld [vmem:[%s1209_s7 + $0x60] ss:$8 sps:$4 sm:$0xff]   ;;  %v980_v37 = vld [vmem:[%s1209_s7 + $0x54] ss:$8 sps:$4 sm:$0xff]  }
  0x2f   : > { %620 = vmatpush1.bf16.msra.mxu0 %v976_v34  ;;  %v982_v38 = vld [vmem:[%s1209_s7 + $0x50] ss:$8 sps:$4 sm:$0xff]   ;;  %v983_v39 = vld [vmem:[%s1209_s7 + $0x44] ss:$8 sps:$4 sm:$0xff]   ;;  %v985_v40 = vld [vmem:[%s1209_s7 + $0x40] ss:$8 sps:$4 sm:$0xff]  }
  0x30   : > { %621 = vmatprep.subr.bf16.mxu0 %v977_v35  ;;  %v986_v41 = vld [vmem:[%s1209_s7 + $0x34] ss:$8 sps:$4 sm:$0xff]   ;;  %v988_v42 = vld [vmem:[%s1209_s7 + $0x30] ss:$8 sps:$4 sm:$0xff]   ;;  %v989_v43 = vld [vmem:[%s1209_s7 + $0x24] ss:$8 sps:$4 sm:$0xff]  }
  0x31   : > { %v991_v44 = vld [vmem:[%s1209_s7 + $0x20] ss:$8 sps:$4 sm:$0xff]   ;;  %v992_v45 = vld [vmem:[%s1209_s7 + $0x14] ss:$8 sps:$4 sm:$0xff]   ;;  %v994_v46 = vld [vmem:[%s1209_s7 + $0x10] ss:$8 sps:$4 sm:$0xff]  }
  0x32   : > { %v995_v47 = vld [vmem:[%s1209_s7 + $0x4] ss:$8 sps:$4 sm:$0xff]   ;;  %v997_v48 = vld [vmem:[%s1209_s7] ss:$8 sps:$4 sm:$0xff]   ;;  %v998_v49 = vld [vmem:[%s1209_s7 + $0xf4] ss:$8 sps:$4 sm:$0xff]  }
  0x33   : > { %622 = vmatpush1.bf16.msra.mxu0 %v979_v36  ;;  %v1000_v50 = vld [vmem:[%s1209_s7 + $0xf0] ss:$8 sps:$4 sm:$0xff]   ;;  %v1001_v51 = vld [vmem:[%s1209_s7 + $0xe4] ss:$8 sps:$4 sm:$0xff]   ;;  %v1003_v52 = vld [vmem:[%s1209_s7 + $0xe0] ss:$8 sps:$4 sm:$0xff]  }
  0x34   : > { %623 = vmatprep.subr.bf16.mxu0 %v980_v37  ;;  %v1004_v53 = vld [vmem:[%s1209_s7 + $0xd4] ss:$8 sps:$4 sm:$0xff]   ;;  %v1006_v54 = vld [vmem:[%s1209_s7 + $0xd0] ss:$8 sps:$4 sm:$0xff]   ;;  %v1007_v55 = vld [vmem:[%s1209_s7 + $0xc4] ss:$8 sps:$4 sm:$0xff]  }
  0x35   : > { %v1009_v56 = vld [vmem:[%s1209_s7 + $0xc0] ss:$8 sps:$4 sm:$0xff]   ;;  %v1010_v57 = vld [vmem:[%s1209_s7 + $0xb4] ss:$8 sps:$4 sm:$0xff]   ;;  %v1012_v58 = vld [vmem:[%s1209_s7 + $0xb0] ss:$8 sps:$4 sm:$0xff]  }
  0x36   : > { %v1013_v59 = vld [vmem:[%s1209_s7 + $0xa4] ss:$8 sps:$4 sm:$0xff]   ;;  %v1015_v60 = vld [vmem:[%s1209_s7 + $0xa0] ss:$8 sps:$4 sm:$0xff]   ;;  %v1016_v61 = vld [vmem:[%s1209_s7 + $0x94] ss:$8 sps:$4 sm:$0xff]  }
  0x37   : > { %624 = vmatpush1.bf16.msra.mxu0 %v982_v38  ;;  %v1018_v62 = vld [vmem:[%s1209_s7 + $0x90] ss:$8 sps:$4 sm:$0xff]   ;;  %v1019_v63 = vld [vmem:[%s1209_s7 + $0x84] ss:$8 sps:$4 sm:$0xff]   ;;  %v1021_v0 = vld [vmem:[%s1209_s7 + $0x80] ss:$8 sps:$4 sm:$0xff]  }
  0x38   : > { %625 = vmatprep.subr.bf16.mxu0 %v983_v39  ;;  %v1022_v1 = vld [vmem:[%s1273_s0] ss:$8 sps:$4 sm:$0xff]   ;;  %s1285_s10 = smov (!%p409_p11, %s888_s10), 3  ;;  %v696_v3 = vshrl.u32 %v695_v2, 7  ;;  %s933_s24 = sshll.u32 (%p1120_p6), %s1055_s14, 3 }
  0x39   : > { %s411_s19 = scalar_lea.vmem %s1275_s2, %s1285_s10  ;;  %s735_s26 = scalar_lea.vmem (%p1120_p6), %s1276_s3, %s933_s24 }
  0x3a   : > { %v697_v4 = vsub.s32 0, %v696_v3  ;;  %v701_v5 = vsub.s32 1, %v696_v3  ;;  %v693_v6 = vld [vmem:[%s411_s19] sm:$0x3] }
  0x3b   : > { %626 = vmatpush1.bf16.msra.mxu0 %v985_v40 }
  0x3c   : > { %627 = vmatprep.subr.bf16.mxu0 %v986_v41  ;;  %v698_v7 = vrot.slane %v693_v6, %v697_v4  ;;  %v702_v8 = vrot.slane %v693_v6, %v701_v5 }
  0x3f   : > { %628 = vmatpush1.bf16.msra.mxu0 %v988_v42 }
  0x40   : > { %629 = vmatprep.subr.bf16.mxu0 %v989_v43 }
  0x43   : > { %630 = vmatpush1.bf16.msra.mxu0 %v991_v44 }
  0x44   : > { %631 = vmatprep.subr.bf16.mxu0 %v992_v45 }
  0x47   : > { %632 = vmatpush1.bf16.msra.mxu0 %v994_v46 }
  0x48   : > { %633 = vmatprep.subr.bf16.mxu0 %v995_v47 }
  0x4b   : > { %634 = vmatpush1.bf16.msra.mxu0 %v997_v48 }
  0x4c   : > { %635 = vmatprep.subr.bf16.mxu0 %v998_v49 }
  0x4f   : > { %636 = vmatpush2.bf16.msra.mxu0 %v1000_v50 }
  0x50   : > { %637 = vmatprep.subr.bf16.mxu0 %v1001_v51 }
  0x53   : > { %638 = vmatpush2.bf16.msra.mxu0 %v1003_v52 }
  0x54   : > { %639 = vmatprep.subr.bf16.mxu0 %v1004_v53 }
  0x57   : > { %640 = vmatpush2.bf16.msra.mxu0 %v1006_v54 }
  0x58   : > { %641 = vmatprep.subr.bf16.mxu0 %v1007_v55 }
  0x5b   : > { %642 = vmatpush2.bf16.msra.mxu0 %v1009_v56 }
  0x5c   : > { %643 = vmatprep.subr.bf16.mxu0 %v1010_v57 }
  0x5f   : > { %644 = vmatpush2.bf16.msra.mxu0 %v1012_v58 }
  0x60   : > { %645 = vmatprep.subr.bf16.mxu0 %v1013_v59 }
  0x63   : > { %646 = vmatpush2.bf16.msra.mxu0 %v1015_v60 }
  0x64   : > { %647 = vmatprep.subr.bf16.mxu0 %v1016_v61 }
  0x67   : > { %648 = vmatpush2.bf16.msra.mxu0 %v1018_v62 }
  0x68   : > { %649 = vmatprep.subr.bf16.mxu0 %v1019_v63 }
  0x6b   : > { %650 = vmatpush2.bf16.msra.mxu0 %v1021_v0 }
  0x6e   : > { %652 = vmatmul.mubr.bf16.vlgmr.msra.gmra.mxu0 %v1022_v1 }
 0x12e   : > { %v653_v9 = vpop.f32.mrf.mxu0 }
 0x12f   : > { %v705_v11 = vadd.f32 %v698_v7, %v653_v9 }
 0x130   : > { %v655_v10 = vpop.f32.mrf.mxu0 }
 0x131   : > { %v706_v12 = vadd.f32 %v702_v8, %v655_v10 }
 0x132   : > { %v657_v13 = vpop.f32.mrf.mxu0 }
 0x133   : > { %v931_v14 = vpack.c.bf16 %v706_v12, %v705_v11  ;;  %v707_v16 = vadd.f32 %v698_v7, %v657_v13 }
 0x134   : > { %v659_v15 = vpop.f32.mrf.mxu0 }
 0x135   : > { %721 = vst [vmem:[%s393_s23] sm:$0xff] %v931_v14  ;;  %v708_v17 = vadd.f32 %v702_v8, %v659_v15  ;;  %729 = sbr.rel (!%p1120_p6) target bundleno = 322 (0x142), region = 86 }
 0x137   : > { %v932_v18 = vpack.c.bf16 %v708_v17, %v707_v16 }
 0x139   : > { %722 = vst [vmem:[%s393_s23 + $0x8] sm:$0xff] %v932_v18 }
 0x13c   : > { %v766_v19 = vld [vmem:[%s393_s23] sm:$0xff] }
 0x13d   : > { %767 = vst [vmem:[%s735_s26] sm:$0xff] %v766_v19 }
 0x140   : > { %v768_v20 = vld [vmem:[%s393_s23 + $0x8] sm:$0xff] }
 0x141   : > { %769 = vst [vmem:[%s735_s26 + $0x10] sm:$0xff] %v768_v20 }
 0x142 PF: > { %s13_s16 = sadd.s32 1, %s1063_s16   ;;  %s1278_s12 = smov %s1051_s13 }
 0x143   : > { %p10_p12 = scmp.ge.s32.totalorder %s13_s16, 4   ;;  %s1279_s13 = smov %s1125_s22 }
 0x144   : > { %s1280_s14 = smov %s1059_s15  ;;  %s1281_s15 = smov %s1283_s17 }
 0x145   :  { %12 = sbr.rel (!%p10_p12) target bundleno = 3 (0x3), region = 161 }

// kernel: resnet_forward.38
= control target key start
LH: loop header
LB: loop body
LE: loop exit
PB: predicated region body
PF: predicated region fallthrough
CT: control target
= control target key end

     0   :  { %s2773_s0 = inlined_call_operand.vmem [shape: bf16[16,4608], index: 0, kind: input, shape index: {}]   ;;  %s2774_s1 = inlined_call_operand.vmem [shape: bf16[4608,512], index: 1, kind: input, shape index: {}]   ;;  %s2775_s2 = inlined_call_operand.vmem [shape: f32[1,512], index: 2, kind: input, shape index: {}]   ;;  %s2776_s3 = inlined_call_operand.vmem [shape: bf16[16,512], index: 3, kind: input, shape index: {}]   ;;  %s2777_s4 = inlined_call_operand.vmem [shape: bf16[16,512], index: 4, kind: output, shape index: {}]  }
   0x1   :  { %2780 = sst [smem:[#allocation9_spill]] %s2773_s0 }
   0x2   :  { %s2267_s15 = smov 0   ;;  %s2269_s16 = smov 0  }
   0x3   :  { %s2271_s17 = smov 0   ;;  %s2273_s18 = smov 0  }
   0x4   :  { %s2275_s19 = smov 0   ;;  %s2277_s20 = smov 0  }
   0x5   :  { %s2279_s21 = smov 0   ;;  %s2281_s22 = smov 0  }
   0x6   :  { %s2283_s23 = smov 0   ;;  %s2285_s24 = smov 0  }
   0x7   :  { %s2287_s25 = smov 0  }
   0x8 LB: > { %s1776_s26 = sadd.s32 4294967295, %s2240_s25   ;;  %s26_s27 = sadd.s32 1, %s2232_s23  ;;  %s2240_s25 = sphi %s2287_s25, %s14_s25   ;;  %s2236_s24 = sphi %s2285_s24, %s2799_s24   ;;  %s2232_s23 = sphi %s2283_s23, %s2798_s23   ;;  %s2228_s22 = sphi %s2281_s22, %s2797_s22   ;;  %s2224_s21 = sphi %s2279_s21, %s2796_s21   ;;  %s2220_s20 = sphi %s2277_s20, %s2795_s20   ;;  %s2216_s19 = sphi %s2275_s19, %s2794_s19   ;;  %s2212_s18 = sphi %s2273_s18, %s2793_s18   ;;  %s2208_s17 = sphi %s2271_s17, %s2792_s17   ;;  %s2204_s16 = sphi %s2269_s16, %s2791_s16   ;;  %s2200_s15 = sphi %s2267_s15, %s2790_s15  }
   0x9   : > { %p27_p0 = scmp.ge.s32.totalorder %s26_s27, 6  ;;  %s29_s28 = sadd.s32 1, %s2236_s24 }
   0xa   : > { %s42_s29 = sadd.s32 1, %s2220_s20  ;;  %p49_p1 = scmp.ne.s32.totalorder %s2220_s20, %s2216_s19 }
   0xb   : > { %s2801_s27 = smov (%p27_p0, %s26_s27), 0  ;;  %s2803_s28 = smov (!%p27_p0, %s29_s28), %s2236_s24 }
   0xc   : > { %2781 = sst [smem:[#allocation7_spill]] %s2801_s27  ;;  %s38_s30 = ssub.s32 %s2232_s23, %s2801_s27 }
   0xd   : > { %p50_p2 = scmp.eq.s32.totalorder %s2240_s25, 0  ;;  %p31_p3 = scmp.ge.s32.totalorder %s2803_s28, 2 }
   0xe   : > { %p40_p4 = scmp.eq.s32.totalorder %s38_s30, 0  ;;  %s70_s6 = sadd.s32 1, %s2212_s18 }
   0xf   : > { %p2336_p5 = por %p50_p2, %p49_p1  ;;  %s2805_s28 = smov (%p31_p3, %s2803_s28), 0 }
  0x10   : > { %2783 = sst [smem:[#allocation8_spill]] %s2805_s28  ;;  %s66_s8 = ssub.s32 %s2236_s24, %s2805_s28 }
  0x11   : > { %s2344_s7 = scalar_select %p40_p4, %s2220_s20, %s42_s29  }
  0x12   : > { %p77_p6 = scmp.ne.s32.totalorder %s2212_s18, %s2208_s17  ;;  %s67_s9 = sor.u32 %s66_s8, %s38_s30 }
  0x13   : > { %p122_p7 = scmp.eq.s32.totalorder %s66_s8, 0  ;;  %p68_p8 = scmp.eq.s32.totalorder %s67_s9, 0 }
  0x14   : > { %p2352_p9 = por %p77_p6, %p50_p2  ;;  %s124_s11 = sadd.s32 1, %s2204_s16 }
  0x15   : > { %p131_p10 = scmp.ne.s32.totalorder %s2204_s16, %s2200_s15  ;;  %p163_p12 = scmp.eq.s32.totalorder %s1776_s26, 11 }
  0x16   : > { %s2360_s12 = scalar_select %p68_p8, %s2212_s18, %s70_s6  }
  0x17   : > { %s2363_s13 = scalar_select %p122_p7, %s2204_s16, %s124_s11  }
  0x18   : > { %p2367_p11 = por %p131_p10, %p50_p2  ;;  %p2371_p13 = por %p163_p12, %p131_p10 }
  0x19   : > { %p1779_p0 = scmp.ge.s32.totalorder %s2240_s25, 12 }
  0x1b   : > { %185 = sbr.rel (%p1779_p0) target bundleno = 105 (0x69), region = 16 }
  0x20   : > { %188 = sbr.rel (!%p2336_p5) target bundleno = 44 (0x2c), region = 20  ;;  %s190_s30 = sand.u32 (%p2336_p5), 1, %s2220_s20  }
  0x21   : > { %s1903_s6 = smul.u32 (%p2336_p5), 24, %s2232_s23  ;;  %s2787_s0 = sld [smem:[#allocation9_spill]] (%p2336_p5) }
  0x22   : > { %s1909_s8 = smul.u32 (%p2336_p5), 48, %s190_s30 }
  0x24   : > { %s192_s26 = scalar_lea.vmem (%p2336_p5), [#allocation3], %s1909_s8 }
  0x27   : > { %s198_s28 = scalar_lea.vmem %s2787_s0, %s1903_s6 }
  0x28   : > { %v211_v0 = vld [vmem:[%s198_s28] sm:$0xff]  ;;  %v213_v1 = vld [vmem:[%s198_s28 + $0x8] sm:$0xff]  ;;  %v215_v2 = vld [vmem:[%s198_s28 + $0x10] sm:$0xff] }
  0x29   : > { %212 = vst [vmem:[%s192_s26] sm:$0xff] %v211_v0  ;;  %214 = vst [vmem:[%s192_s26 + $0x8] sm:$0xff] %v213_v1  ;;  %v217_v3 = vld [vmem:[%s198_s28 + $0x90] sm:$0xff]  ;;  %v219_v4 = vld [vmem:[%s198_s28 + $0x98] sm:$0xff] }
  0x2a   : > { %216 = vst [vmem:[%s192_s26 + $0x10] sm:$0xff] %v215_v2  ;;  %v221_v5 = vld [vmem:[%s198_s28 + $0xa0] sm:$0xff]  ;;  %218 = vst [vmem:[%s192_s26 + $0x18] sm:$0xff] %v217_v3 }
  0x2b   : > { %220 = vst [vmem:[%s192_s26 + $0x20] sm:$0xff] %v219_v4  ;;  %222 = vst [vmem:[%s192_s26 + $0x28] sm:$0xff] %v221_v5 }
  0x2c PF: > { %228 = sbr.rel (!%p2352_p9) target bundleno = 100 (0x64), region = 43  ;;  %s230_s5 = sand.u32 (%p2352_p9), 1, %s2212_s18  }
  0x2d   : > { %s1910_s30 = smul.u32 (%p2352_p9), 768, %s230_s5  ;;  %s1781_s6 = sshll.u32 (%p2352_p9), %s2236_s24, 1 }
  0x2e   : > { %s1904_s8 = smul.u32 (%p2352_p9), 384, %s2232_s23 }
  0x2f   : > { %s2396_s10 = scalar_lea.vmem (%p2352_p9), [#allocation4], %s1910_s30 }
  0x30   : > { %s236_s9 = sadd.s32 (%p2352_p9), %s1904_s8, %s1781_s6 }
  0x31   : > { %s1783_s11 = sshll.u32 %s236_s9, 2 }
  0x32   : > { %s2391_s28 = scalar_lea.vmem %s2774_s1, %s1783_s11 }
  0x33   : > { %v457_v6 = vld [vmem:[%s2391_s28] sm:$0xff]  ;;  %v459_v7 = vld [vmem:[%s2391_s28 + $0x10] sm:$0xff] }
  0x34   : > { %v461_v8 = vld [vmem:[%s2391_s28 + $0x20] sm:$0xff]  ;;  %458 = vst [vmem:[%s2396_s10] sm:$0xff] %v457_v6  ;;  %460 = vst [vmem:[%s2396_s10 + $0x8] sm:$0xff] %v459_v7  ;;  %v463_v9 = vld [vmem:[%s2391_s28 + $0x30] sm:$0xff] }
  0x35   : > { %462 = vst [vmem:[%s2396_s10 + $0x10] sm:$0xff] %v461_v8  ;;  %v465_v10 = vld [vmem:[%s2391_s28 + $0x40] sm:$0xff]  ;;  %v467_v11 = vld [vmem:[%s2391_s28 + $0x50] sm:$0xff]  ;;  %464 = vst [vmem:[%s2396_s10 + $0x18] sm:$0xff] %v463_v9 }
  0x36   : > { %466 = vst [vmem:[%s2396_s10 + $0x20] sm:$0xff] %v465_v10  ;;  %468 = vst [vmem:[%s2396_s10 + $0x28] sm:$0xff] %v467_v11  ;;  %v469_v12 = vld [vmem:[%s2391_s28 + $0x60] sm:$0xff]  ;;  %v471_v13 = vld [vmem:[%s2391_s28 + $0x70] sm:$0xff] }
  0x37   : > { %v473_v14 = vld [vmem:[%s2391_s28 + $0x80] sm:$0xff]  ;;  %470 = vst [vmem:[%s2396_s10 + $0x30] sm:$0xff] %v469_v12  ;;  %472 = vst [vmem:[%s2396_s10 + $0x38] sm:$0xff] %v471_v13  ;;  %v475_v15 = vld [vmem:[%s2391_s28 + $0x90] sm:$0xff] }
  0x38   : > { %474 = vst [vmem:[%s2396_s10 + $0x40] sm:$0xff] %v473_v14  ;;  %v477_v16 = vld [vmem:[%s2391_s28 + $0xa0] sm:$0xff]  ;;  %v479_v17 = vld [vmem:[%s2391_s28 + $0xb0] sm:$0xff]  ;;  %476 = vst [vmem:[%s2396_s10 + $0x48] sm:$0xff] %v475_v15 }
  0x39   : > { %478 = vst [vmem:[%s2396_s10 + $0x50] sm:$0xff] %v477_v16  ;;  %480 = vst [vmem:[%s2396_s10 + $0x58] sm:$0xff] %v479_v17  ;;  %v481_v18 = vld [vmem:[%s2391_s28 + $0xc0] sm:$0xff]  ;;  %v483_v19 = vld [vmem:[%s2391_s28 + $0xd0] sm:$0xff] }
  0x3a   : > { %v485_v20 = vld [vmem:[%s2391_s28 + $0xe0] sm:$0xff]  ;;  %482 = vst [vmem:[%s2396_s10 + $0x60] sm:$0xff] %v481_v18  ;;  %484 = vst [vmem:[%s2396_s10 + $0x68] sm:$0xff] %v483_v19  ;;  %v487_v21 = vld [vmem:[%s2391_s28 + $0xf0] sm:$0xff] }
  0x3b   : > { %486 = vst [vmem:[%s2396_s10 + $0x70] sm:$0xff] %v485_v20  ;;  %v489_v22 = vld [vmem:[%s2391_s28 + $0x100] sm:$0xff]  ;;  %v491_v23 = vld [vmem:[%s2391_s28 + $0x110] sm:$0xff]  ;;  %488 = vst [vmem:[%s2396_s10 + $0x78] sm:$0xff] %v487_v21 }
  0x3c   : > { %490 = vst [vmem:[%s2396_s10 + $0x80] sm:$0xff] %v489_v22  ;;  %492 = vst [vmem:[%s2396_s10 + $0x88] sm:$0xff] %v491_v23  ;;  %v493_v24 = vld [vmem:[%s2391_s28 + $0x120] sm:$0xff]  ;;  %v495_v25 = vld [vmem:[%s2391_s28 + $0x130] sm:$0xff] }
  0x3d   : > { %v497_v26 = vld [vmem:[%s2391_s28 + $0x140] sm:$0xff]  ;;  %494 = vst [vmem:[%s2396_s10 + $0x90] sm:$0xff] %v493_v24  ;;  %496 = vst [vmem:[%s2396_s10 + $0x98] sm:$0xff] %v495_v25  ;;  %v499_v27 = vld [vmem:[%s2391_s28 + $0x150] sm:$0xff] }
  0x3e   : > { %498 = vst [vmem:[%s2396_s10 + $0xa0] sm:$0xff] %v497_v26  ;;  %v501_v28 = vld [vmem:[%s2391_s28 + $0x160] sm:$0xff]  ;;  %v503_v29 = vld [vmem:[%s2391_s28 + $0x170] sm:$0xff]  ;;  %500 = vst [vmem:[%s2396_s10 + $0xa8] sm:$0xff] %v499_v27 }
  0x3f   : > { %502 = vst [vmem:[%s2396_s10 + $0xb0] sm:$0xff] %v501_v28  ;;  %504 = vst [vmem:[%s2396_s10 + $0xb8] sm:$0xff] %v503_v29  ;;  %v505_v30 = vld [vmem:[%s2391_s28 + $0x180] sm:$0xff]  ;;  %v507_v31 = vld [vmem:[%s2391_s28 + $0x190] sm:$0xff] }
  0x40   : > { %v509_v32 = vld [vmem:[%s2391_s28 + $0x1a0] sm:$0xff]  ;;  %506 = vst [vmem:[%s2396_s10 + $0xc0] sm:$0xff] %v505_v30  ;;  %508 = vst [vmem:[%s2396_s10 + $0xc8] sm:$0xff] %v507_v31  ;;  %v511_v33 = vld [vmem:[%s2391_s28 + $0x1b0] sm:$0xff] }
  0x41   : > { %510 = vst [vmem:[%s2396_s10 + $0xd0] sm:$0xff] %v509_v32  ;;  %v513_v34 = vld [vmem:[%s2391_s28 + $0x1c0] sm:$0xff]  ;;  %v515_v35 = vld [vmem:[%s2391_s28 + $0x1d0] sm:$0xff]  ;;  %512 = vst [vmem:[%s2396_s10 + $0xd8] sm:$0xff] %v511_v33 }
  0x42   : > { %514 = vst [vmem:[%s2396_s10 + $0xe0] sm:$0xff] %v513_v34  ;;  %516 = vst [vmem:[%s2396_s10 + $0xe8] sm:$0xff] %v515_v35  ;;  %v517_v36 = vld [vmem:[%s2391_s28 + $0x1e0] sm:$0xff]  ;;  %v519_v37 = vld [vmem:[%s2391_s28 + $0x1f0] sm:$0xff] }
  0x43   : > { %v521_v38 = vld [vmem:[%s2391_s28 + $0x200] sm:$0xff]  ;;  %518 = vst [vmem:[%s2396_s10 + $0xf0] sm:$0xff] %v517_v36  ;;  %520 = vst [vmem:[%s2396_s10 + $0xf8] sm:$0xff] %v519_v37  ;;  %v523_v39 = vld [vmem:[%s2391_s28 + $0x210] sm:$0xff] }
  0x44   : > { %522 = vst [vmem:[%s2396_s10 + $0x100] sm:$0xff] %v521_v38  ;;  %v525_v40 = vld [vmem:[%s2391_s28 + $0x220] sm:$0xff]  ;;  %v527_v41 = vld [vmem:[%s2391_s28 + $0x230] sm:$0xff]  ;;  %524 = vst [vmem:[%s2396_s10 + $0x108] sm:$0xff] %v523_v39 }
  0x45   : > { %526 = vst [vmem:[%s2396_s10 + $0x110] sm:$0xff] %v525_v40  ;;  %528 = vst [vmem:[%s2396_s10 + $0x118] sm:$0xff] %v527_v41  ;;  %v529_v42 = vld [vmem:[%s2391_s28 + $0x240] sm:$0xff]  ;;  %v531_v43 = vld [vmem:[%s2391_s28 + $0x250] sm:$0xff] }
  0x46   : > { %v533_v44 = vld [vmem:[%s2391_s28 + $0x260] sm:$0xff]  ;;  %530 = vst [vmem:[%s2396_s10 + $0x120] sm:$0xff] %v529_v42  ;;  %532 = vst [vmem:[%s2396_s10 + $0x128] sm:$0xff] %v531_v43  ;;  %v535_v45 = vld [vmem:[%s2391_s28 + $0x270] sm:$0xff] }
  0x47   : > { %534 = vst [vmem:[%s2396_s10 + $0x130] sm:$0xff] %v533_v44  ;;  %v537_v46 = vld [vmem:[%s2391_s28 + $0x280] sm:$0xff]  ;;  %v539_v47 = vld [vmem:[%s2391_s28 + $0x290] sm:$0xff]  ;;  %536 = vst [vmem:[%s2396_s10 + $0x138] sm:$0xff] %v535_v45 }
  0x48   : > { %538 = vst [vmem:[%s2396_s10 + $0x140] sm:$0xff] %v537_v46  ;;  %540 = vst [vmem:[%s2396_s10 + $0x148] sm:$0xff] %v539_v47  ;;  %v541_v48 = vld [vmem:[%s2391_s28 + $0x2a0] sm:$0xff]  ;;  %v543_v49 = vld [vmem:[%s2391_s28 + $0x2b0] sm:$0xff] }
  0x49   : > { %v545_v50 = vld [vmem:[%s2391_s28 + $0x2c0] sm:$0xff]  ;;  %542 = vst [vmem:[%s2396_s10 + $0x150] sm:$0xff] %v541_v48  ;;  %544 = vst [vmem:[%s2396_s10 + $0x158] sm:$0xff] %v543_v49  ;;  %v547_v51 = vld [vmem:[%s2391_s28 + $0x2d0] sm:$0xff] }
  0x4a   : > { %546 = vst [vmem:[%s2396_s10 + $0x160] sm:$0xff] %v545_v50  ;;  %v549_v52 = vld [vmem:[%s2391_s28 + $0x2e0] sm:$0xff]  ;;  %v551_v53 = vld [vmem:[%s2391_s28 + $0x2f0] sm:$0xff]  ;;  %548 = vst [vmem:[%s2396_s10 + $0x168] sm:$0xff] %v547_v51 }
  0x4b   : > { %550 = vst [vmem:[%s2396_s10 + $0x170] sm:$0xff] %v549_v52  ;;  %552 = vst [vmem:[%s2396_s10 + $0x178] sm:$0xff] %v551_v53  ;;  %v553_v54 = vld [vmem:[%s2391_s28 + $0x300] sm:$0xff]  ;;  %v555_v55 = vld [vmem:[%s2391_s28 + $0x310] sm:$0xff] }
  0x4c   : > { %v557_v56 = vld [vmem:[%s2391_s28 + $0x320] sm:$0xff]  ;;  %554 = vst [vmem:[%s2396_s10 + $0x180] sm:$0xff] %v553_v54  ;;  %556 = vst [vmem:[%s2396_s10 + $0x188] sm:$0xff] %v555_v55  ;;  %v559_v57 = vld [vmem:[%s2391_s28 + $0x330] sm:$0xff] }
  0x4d   : > { %558 = vst [vmem:[%s2396_s10 + $0x190] sm:$0xff] %v557_v56  ;;  %v561_v58 = vld [vmem:[%s2391_s28 + $0x340] sm:$0xff]  ;;  %v563_v59 = vld [vmem:[%s2391_s28 + $0x350] sm:$0xff]  ;;  %560 = vst [vmem:[%s2396_s10 + $0x198] sm:$0xff] %v559_v57 }
  0x4e   : > { %562 = vst [vmem:[%s2396_s10 + $0x1a0] sm:$0xff] %v561_v58  ;;  %564 = vst [vmem:[%s2396_s10 + $0x1a8] sm:$0xff] %v563_v59  ;;  %v565_v60 = vld [vmem:[%s2391_s28 + $0x360] sm:$0xff]  ;;  %v567_v61 = vld [vmem:[%s2391_s28 + $0x370] sm:$0xff] }
  0x4f   : > { %v569_v62 = vld [vmem:[%s2391_s28 + $0x380] sm:$0xff]  ;;  %566 = vst [vmem:[%s2396_s10 + $0x1b0] sm:$0xff] %v565_v60  ;;  %568 = vst [vmem:[%s2396_s10 + $0x1b8] sm:$0xff] %v567_v61  ;;  %v571_v63 = vld [vmem:[%s2391_s28 + $0x390] sm:$0xff] }
  0x50   : > { %570 = vst [vmem:[%s2396_s10 + $0x1c0] sm:$0xff] %v569_v62  ;;  %v573_v0 = vld [vmem:[%s2391_s28 + $0x3a0] sm:$0xff]  ;;  %v575_v1 = vld [vmem:[%s2391_s28 + $0x3b0] sm:$0xff]  ;;  %572 = vst [vmem:[%s2396_s10 + $0x1c8] sm:$0xff] %v571_v63 }
  0x51   : > { %574 = vst [vmem:[%s2396_s10 + $0x1d0] sm:$0xff] %v573_v0  ;;  %576 = vst [vmem:[%s2396_s10 + $0x1d8] sm:$0xff] %v575_v1  ;;  %v577_v2 = vld [vmem:[%s2391_s28 + $0x3c0] sm:$0xff]  ;;  %v579_v3 = vld [vmem:[%s2391_s28 + $0x3d0] sm:$0xff] }
  0x52   : > { %v581_v4 = vld [vmem:[%s2391_s28 + $0x3e0] sm:$0xff]  ;;  %578 = vst [vmem:[%s2396_s10 + $0x1e0] sm:$0xff] %v577_v2  ;;  %580 = vst [vmem:[%s2396_s10 + $0x1e8] sm:$0xff] %v579_v3  ;;  %v583_v5 = vld [vmem:[%s2391_s28 + $0x3f0] sm:$0xff] }
  0x53   : > { %582 = vst [vmem:[%s2396_s10 + $0x1f0] sm:$0xff] %v581_v4  ;;  %v585_v6 = vld [vmem:[%s2391_s28 + $0x400] sm:$0xff]  ;;  %v587_v7 = vld [vmem:[%s2391_s28 + $0x410] sm:$0xff]  ;;  %584 = vst [vmem:[%s2396_s10 + $0x1f8] sm:$0xff] %v583_v5 }
  0x54   : > { %586 = vst [vmem:[%s2396_s10 + $0x200] sm:$0xff] %v585_v6  ;;  %588 = vst [vmem:[%s2396_s10 + $0x208] sm:$0xff] %v587_v7  ;;  %v589_v8 = vld [vmem:[%s2391_s28 + $0x420] sm:$0xff]  ;;  %v591_v9 = vld [vmem:[%s2391_s28 + $0x430] sm:$0xff] }
  0x55   : > { %v593_v10 = vld [vmem:[%s2391_s28 + $0x440] sm:$0xff]  ;;  %590 = vst [vmem:[%s2396_s10 + $0x210] sm:$0xff] %v589_v8  ;;  %592 = vst [vmem:[%s2396_s10 + $0x218] sm:$0xff] %v591_v9  ;;  %v595_v11 = vld [vmem:[%s2391_s28 + $0x450] sm:$0xff] }
  0x56   : > { %594 = vst [vmem:[%s2396_s10 + $0x220] sm:$0xff] %v593_v10  ;;  %v597_v12 = vld [vmem:[%s2391_s28 + $0x460] sm:$0xff]  ;;  %v599_v13 = vld [vmem:[%s2391_s28 + $0x470] sm:$0xff]  ;;  %596 = vst [vmem:[%s2396_s10 + $0x228] sm:$0xff] %v595_v11 }
  0x57   : > { %598 = vst [vmem:[%s2396_s10 + $0x230] sm:$0xff] %v597_v12  ;;  %600 = vst [vmem:[%s2396_s10 + $0x238] sm:$0xff] %v599_v13  ;;  %v601_v14 = vld [vmem:[%s2391_s28 + $0x480] sm:$0xff]  ;;  %v603_v15 = vld [vmem:[%s2391_s28 + $0x490] sm:$0xff] }
  0x58   : > { %v605_v16 = vld [vmem:[%s2391_s28 + $0x4a0] sm:$0xff]  ;;  %602 = vst [vmem:[%s2396_s10 + $0x240] sm:$0xff] %v601_v14  ;;  %604 = vst [vmem:[%s2396_s10 + $0x248] sm:$0xff] %v603_v15  ;;  %v607_v17 = vld [vmem:[%s2391_s28 + $0x4b0] sm:$0xff] }
  0x59   : > { %606 = vst [vmem:[%s2396_s10 + $0x250] sm:$0xff] %v605_v16  ;;  %v609_v18 = vld [vmem:[%s2391_s28 + $0x4c0] sm:$0xff]  ;;  %v611_v19 = vld [vmem:[%s2391_s28 + $0x4d0] sm:$0xff]  ;;  %608 = vst [vmem:[%s2396_s10 + $0x258] sm:$0xff] %v607_v17 }
  0x5a   : > { %610 = vst [vmem:[%s2396_s10 + $0x260] sm:$0xff] %v609_v18  ;;  %612 = vst [vmem:[%s2396_s10 + $0x268] sm:$0xff] %v611_v19  ;;  %v613_v20 = vld [vmem:[%s2391_s28 + $0x4e0] sm:$0xff]  ;;  %v615_v21 = vld [vmem:[%s2391_s28 + $0x4f0] sm:$0xff] }
  0x5b   : > { %v617_v22 = vld [vmem:[%s2391_s28 + $0x500] sm:$0xff]  ;;  %614 = vst [vmem:[%s2396_s10 + $0x270] sm:$0xff] %v613_v20  ;;  %616 = vst [vmem:[%s2396_s10 + $0x278] sm:$0xff] %v615_v21  ;;  %v619_v23 = vld [vmem:[%s2391_s28 + $0x510] sm:$0xff] }
  0x5c   : > { %618 = vst [vmem:[%s2396_s10 + $0x280] sm:$0xff] %v617_v22  ;;  %v621_v24 = vld [vmem:[%s2391_s28 + $0x520] sm:$0xff]  ;;  %v623_v25 = vld [vmem:[%s2391_s28 + $0x530] sm:$0xff]  ;;  %620 = vst [vmem:[%s2396_s10 + $0x288] sm:$0xff] %v619_v23 }
  0x5d   : > { %622 = vst [vmem:[%s2396_s10 + $0x290] sm:$0xff] %v621_v24  ;;  %624 = vst [vmem:[%s2396_s10 + $0x298] sm:$0xff] %v623_v25  ;;  %v625_v26 = vld [vmem:[%s2391_s28 + $0x540] sm:$0xff]  ;;  %v627_v27 = vld [vmem:[%s2391_s28 + $0x550] sm:$0xff] }
  0x5e   : > { %v629_v28 = vld [vmem:[%s2391_s28 + $0x560] sm:$0xff]  ;;  %626 = vst [vmem:[%s2396_s10 + $0x2a0] sm:$0xff] %v625_v26  ;;  %628 = vst [vmem:[%s2396_s10 + $0x2a8] sm:$0xff] %v627_v27  ;;  %v631_v29 = vld [vmem:[%s2391_s28 + $0x570] sm:$0xff] }
  0x5f   : > { %630 = vst [vmem:[%s2396_s10 + $0x2b0] sm:$0xff] %v629_v28  ;;  %v633_v30 = vld [vmem:[%s2391_s28 + $0x580] sm:$0xff]  ;;  %v635_v31 = vld [vmem:[%s2391_s28 + $0x590] sm:$0xff]  ;;  %632 = vst [vmem:[%s2396_s10 + $0x2b8] sm:$0xff] %v631_v29 }
  0x60   : > { %634 = vst [vmem:[%s2396_s10 + $0x2c0] sm:$0xff] %v633_v30  ;;  %636 = vst [vmem:[%s2396_s10 + $0x2c8] sm:$0xff] %v635_v31  ;;  %v637_v32 = vld [vmem:[%s2391_s28 + $0x5a0] sm:$0xff]  ;;  %v639_v33 = vld [vmem:[%s2391_s28 + $0x5b0] sm:$0xff] }
  0x61   : > { %v641_v34 = vld [vmem:[%s2391_s28 + $0x5c0] sm:$0xff]  ;;  %638 = vst [vmem:[%s2396_s10 + $0x2d0] sm:$0xff] %v637_v32  ;;  %640 = vst [vmem:[%s2396_s10 + $0x2d8] sm:$0xff] %v639_v33  ;;  %v643_v35 = vld [vmem:[%s2391_s28 + $0x5d0] sm:$0xff] }
  0x62   : > { %642 = vst [vmem:[%s2396_s10 + $0x2e0] sm:$0xff] %v641_v34  ;;  %v645_v36 = vld [vmem:[%s2391_s28 + $0x5e0] sm:$0xff]  ;;  %v647_v37 = vld [vmem:[%s2391_s28 + $0x5f0] sm:$0xff]  ;;  %644 = vst [vmem:[%s2396_s10 + $0x2e8] sm:$0xff] %v643_v35 }
  0x63   : > { %646 = vst [vmem:[%s2396_s10 + $0x2f0] sm:$0xff] %v645_v36  ;;  %648 = vst [vmem:[%s2396_s10 + $0x2f8] sm:$0xff] %v647_v37 }
  0x64 PF: > { %662 = sbr.rel (!%p2367_p11) target bundleno = 105 (0x69), region = 85  ;;  %s664_s0 = sand.u32 (%p2367_p11), 1, %s2204_s16  }
  0x65   : > { %s1905_s27 = sshll.u32 (%p2367_p11), %s2236_s24, 3  ;;  %s1784_s26 = sshll.u32 (%p2367_p11), %s664_s0, 4 }
  0x66   : > { %s672_s6 = scalar_lea.vmem (%p2367_p11), %s2776_s3, %s1905_s27  ;;  %s666_s8 = scalar_lea.vmem (%p2367_p11), [#allocation5], %s1784_s26 }
  0x67   : > { %v703_v38 = vld [vmem:[%s672_s6] sm:$0xff] (%p2367_p11)  ;;  %v705_v39 = vld [vmem:[%s672_s6 + $0x10] sm:$0xff] (%p2367_p11) }
  0x68   : > { %704 = vst [vmem:[%s666_s8] sm:$0xff] (%p2367_p11), %v703_v38  ;;  %706 = vst [vmem:[%s666_s8 + $0x8] sm:$0xff] (%p2367_p11), %v705_v39 }
  0x69 PF: > { %p1787_p1 = scmp.ge.s32.totalorder %s2240_s25, 1  ;;  %p711_p2 = scmp.lt.s32.totalorder %s2240_s25, 13 }
  0x6b   : > { %p712_p3 = pnand %p1787_p1, %p711_p2 }
  0x6c   : > { %s725_s14 = sand.u32 (!%p712_p3), 1, %s2208_s17   ;;  %s732_s9 = sand.u32 (!%p712_p3), 1, %s2200_s15  }
  0x6d   : > { %715 = sbr.rel (%p712_p3) target bundleno = 489 (0x1e9), region = 123  ;;  %s2598_s28 = sshll.u32 (!%p712_p3), %s732_s9, 4 }
  0x6e   : > { %s1912_s11 = smul.u32 (!%p712_p3), 768, %s725_s14  ;;  %s1790_s10 = sshll.u32 (!%p712_p3), %s2228_s22, 1 }
  0x6f   : > { %p773_p4 = scmp.lt.s32.totalorder (!%p712_p3), %s1790_s10, 3  ;;  %s718_s26 = sand.u32 (!%p712_p3), 1, %s2216_s19  }
  0x70   : > { %s2601_s0 = scalar_lea.vmem (!%p712_p3), [#allocation4], %s1912_s11  ;;  %s1911_s5 = smul.u32 (!%p712_p3), 48, %s718_s26 }
  0x71   : > { %s734_s30 = scalar_lea.vmem (!%p712_p3), [#allocation5], %s2598_s28  ;;  %s2716_s6 = scalar_lea.vmem (!%p712_p3), [#allocation6], %s2598_s28 }
  0x72   : > { %v2001_v40 = vld [vmem:[%s2601_s0 + $0x74] ss:$8 sps:$4 sm:$0xff]   ;;  %s2807_s10 = smov (!%p773_p4, %s1790_s10), 3  ;;  %v2005_v42 = vld [vmem:[%s2601_s0 + $0x70] ss:$8 sps:$4 sm:$0xff]   ;;  %s2658_s19 = scalar_lea.vmem [#allocation3], %s1911_s5 }
  0x73   : > { %v2003_v41 = vld [vmem:[%s2601_s0 + $0x174] ss:$8 sps:$4 sm:$0xff]   ;;  %1393 = vmatprep.subr.bf16.mxu0 %v2001_v40  ;;  %v2006_v43 = vld [vmem:[%s2601_s0 + $0x170] ss:$8 sps:$4 sm:$0xff]   ;;  %v2007_v44 = vld [vmem:[%s2601_s0 + $0x64] ss:$8 sps:$4 sm:$0xff]   ;;  %s775_s27 = scalar_lea.vmem %s2775_s2, %s2807_s10 }
  0x74   : > { %1436 = vmatprep.subr.bf16.mxu1 %v2003_v41  ;;  %1394 = vmatpush1.bf16.msra.mxu0 %v2005_v42  ;;  %v2009_v45 = vld [vmem:[%s2601_s0 + $0x164] ss:$8 sps:$4 sm:$0xff]   ;;  %v2011_v46 = vld [vmem:[%s2601_s0 + $0x60] ss:$8 sps:$4 sm:$0xff]   ;;  %v2013_v48 = vld [vmem:[%s2601_s0 + $0x54] ss:$8 sps:$4 sm:$0xff]  }
  0x75   : > { %1437 = vmatpush1.bf16.msra.mxu1 %v2006_v43  ;;  %1395 = vmatprep.subr.bf16.mxu0 %v2007_v44  ;;  %v2012_v47 = vld [vmem:[%s2601_s0 + $0x160] ss:$8 sps:$4 sm:$0xff]   ;;  %v2015_v49 = vld [vmem:[%s2601_s0 + $0x154] ss:$8 sps:$4 sm:$0xff]   ;;  %v2017_v50 = vld [vmem:[%s2601_s0 + $0x50] ss:$8 sps:$4 sm:$0xff]  }
  0x76   : > { %1438 = vmatprep.subr.bf16.mxu1 %v2009_v45  ;;  %v2018_v51 = vld [vmem:[%s2601_s0 + $0x150] ss:$8 sps:$4 sm:$0xff]   ;;  %v2019_v52 = vld [vmem:[%s2601_s0 + $0x44] ss:$8 sps:$4 sm:$0xff]   ;;  %v2023_v54 = vld [vmem:[%s2601_s0 + $0x40] ss:$8 sps:$4 sm:$0xff]  }
  0x77   : > { %v2021_v53 = vld [vmem:[%s2601_s0 + $0x144] ss:$8 sps:$4 sm:$0xff]   ;;  %v2024_v55 = vld [vmem:[%s2601_s0 + $0x140] ss:$8 sps:$4 sm:$0xff]   ;;  %v2025_v56 = vld [vmem:[%s2601_s0 + $0x34] ss:$8 sps:$4 sm:$0xff]  }
  0x78   : > { %1396 = vmatpush1.bf16.msra.mxu0 %v2011_v46  ;;  %v2027_v57 = vld [vmem:[%s2601_s0 + $0x134] ss:$8 sps:$4 sm:$0xff]   ;;  %v2029_v58 = vld [vmem:[%s2601_s0 + $0x30] ss:$8 sps:$4 sm:$0xff]   ;;  %v2031_v60 = vld [vmem:[%s2601_s0 + $0x24] ss:$8 sps:$4 sm:$0xff]  }
  0x79   : > { %1439 = vmatpush1.bf16.msra.mxu1 %v2012_v47  ;;  %1397 = vmatprep.subr.bf16.mxu0 %v2013_v48  ;;  %v2030_v59 = vld [vmem:[%s2601_s0 + $0x130] ss:$8 sps:$4 sm:$0xff]   ;;  %v2033_v61 = vld [vmem:[%s2601_s0 + $0x124] ss:$8 sps:$4 sm:$0xff]   ;;  %v2035_v62 = vld [vmem:[%s2601_s0 + $0x20] ss:$8 sps:$4 sm:$0xff]  }
  0x7a   : > { %1440 = vmatprep.subr.bf16.mxu1 %v2015_v49  ;;  %v2036_v63 = vld [vmem:[%s2601_s0 + $0x120] ss:$8 sps:$4 sm:$0xff]   ;;  %v2037_v0 = vld [vmem:[%s2601_s0 + $0x14] ss:$8 sps:$4 sm:$0xff]   ;;  %v2041_v2 = vld [vmem:[%s2601_s0 + $0x10] ss:$8 sps:$4 sm:$0xff]  }
  0x7b   : > { %v2039_v1 = vld [vmem:[%s2601_s0 + $0x114] ss:$8 sps:$4 sm:$0xff]   ;;  %v2042_v3 = vld [vmem:[%s2601_s0 + $0x110] ss:$8 sps:$4 sm:$0xff]   ;;  %v2043_v4 = vld [vmem:[%s2601_s0 + $0x4] ss:$8 sps:$4 sm:$0xff]  }
  0x7c   : > { %1398 = vmatpush1.bf16.msra.mxu0 %v2017_v50  ;;  %v2045_v5 = vld [vmem:[%s2601_s0 + $0x104] ss:$8 sps:$4 sm:$0xff]   ;;  %v2047_v6 = vld [vmem:[%s2601_s0] ss:$8 sps:$4 sm:$0xff]   ;;  %v2049_v8 = vld [vmem:[%s2601_s0 + $0xf4] ss:$8 sps:$4 sm:$0xff]  }
  0x7d   : > { %1441 = vmatpush1.bf16.msra.mxu1 %v2018_v51  ;;  %1399 = vmatprep.subr.bf16.mxu0 %v2019_v52  ;;  %v2048_v7 = vld [vmem:[%s2601_s0 + $0x100] ss:$8 sps:$4 sm:$0xff]   ;;  %v2051_v9 = vld [vmem:[%s2601_s0 + $0x1f4] ss:$8 sps:$4 sm:$0xff]   ;;  %v2053_v10 = vld [vmem:[%s2601_s0 + $0xf0] ss:$8 sps:$4 sm:$0xff]  }
  0x7e   : > { %1442 = vmatprep.subr.bf16.mxu1 %v2021_v53  ;;  %v2054_v11 = vld [vmem:[%s2601_s0 + $0x1f0] ss:$8 sps:$4 sm:$0xff]   ;;  %v2055_v12 = vld [vmem:[%s2601_s0 + $0xe4] ss:$8 sps:$4 sm:$0xff]   ;;  %v2059_v14 = vld [vmem:[%s2601_s0 + $0xe0] ss:$8 sps:$4 sm:$0xff]  }
  0x7f   : > { %v2057_v13 = vld [vmem:[%s2601_s0 + $0x1e4] ss:$8 sps:$4 sm:$0xff]   ;;  %v2060_v15 = vld [vmem:[%s2601_s0 + $0x1e0] ss:$8 sps:$4 sm:$0xff]   ;;  %v2061_v16 = vld [vmem:[%s2601_s0 + $0xd4] ss:$8 sps:$4 sm:$0xff]  }
  0x80   : > { %1400 = vmatpush1.bf16.msra.mxu0 %v2023_v54  ;;  %v2063_v17 = vld [vmem:[%s2601_s0 + $0x1d4] ss:$8 sps:$4 sm:$0xff]   ;;  %v2065_v18 = vld [vmem:[%s2601_s0 + $0xd0] ss:$8 sps:$4 sm:$0xff]   ;;  %v2067_v20 = vld [vmem:[%s2601_s0 + $0xc4] ss:$8 sps:$4 sm:$0xff]  }
  0x81   : > { %1443 = vmatpush1.bf16.msra.mxu1 %v2024_v55  ;;  %1401 = vmatprep.subr.bf16.mxu0 %v2025_v56  ;;  %v2066_v19 = vld [vmem:[%s2601_s0 + $0x1d0] ss:$8 sps:$4 sm:$0xff]   ;;  %v2069_v21 = vld [vmem:[%s2601_s0 + $0x1c4] ss:$8 sps:$4 sm:$0xff]   ;;  %v2071_v22 = vld [vmem:[%s2601_s0 + $0xc0] ss:$8 sps:$4 sm:$0xff]  }
  0x82   : > { %1444 = vmatprep.subr.bf16.mxu1 %v2027_v57  ;;  %v2072_v23 = vld [vmem:[%s2601_s0 + $0x1c0] ss:$8 sps:$4 sm:$0xff]   ;;  %v2073_v24 = vld [vmem:[%s2601_s0 + $0xb4] ss:$8 sps:$4 sm:$0xff]   ;;  %v2077_v28 = vld [vmem:[%s2601_s0 + $0xb0] ss:$8 sps:$4 sm:$0xff]  }
  0x83   : > { %v2099_v25 = vld [vmem:[%s2658_s19 + $0x4] ss:$24 sps:$4 sm:$0xff]   ;;  %v2078_v29 = vld [vmem:[%s2601_s0 + $0x1b0] ss:$8 sps:$4 sm:$0xff]   ;;  %v2083_v32 = vld [vmem:[%s2601_s0 + $0xa0] ss:$8 sps:$4 sm:$0xff]  }
  0x84   : > { %1402 = vmatpush1.bf16.msra.mxu0 %v2029_v58  ;;  %v2075_v26 = vld [vmem:[%s2601_s0 + $0x1b4] ss:$8 sps:$4 sm:$0xff]   ;;  %1425 = vmatprep.mubr.bf16.mxu0 %v2099_v25  ;;  %v2079_v30 = vld [vmem:[%s2601_s0 + $0xa4] ss:$8 sps:$4 sm:$0xff]   ;;  %v2084_v33 = vld [vmem:[%s2601_s0 + $0x1a0] ss:$8 sps:$4 sm:$0xff]  }
  0x85   : > { %1445 = vmatpush1.bf16.msra.mxu1 %v2030_v59  ;;  %1403 = vmatprep.subr.bf16.mxu0 %v2031_v60  ;;  %v2102_v27 = vld [vmem:[%s2658_s19 + $0xc] ss:$24 sps:$4 sm:$0xff]   ;;  %v2089_v36 = vld [vmem:[%s2601_s0 + $0x90] ss:$8 sps:$4 sm:$0xff]   ;;  %v2095_v40 = vld [vmem:[%s2601_s0 + $0x80] ss:$8 sps:$4 sm:$0xff]  }
  0x86   : > { %1446 = vmatprep.subr.bf16.mxu1 %v2033_v61  ;;  %1468 = vmatprep.mubr.bf16.mxu1 %v2102_v27  ;;  %v2081_v31 = vld [vmem:[%s2601_s0 + $0x1a4] ss:$8 sps:$4 sm:$0xff]   ;;  %v2085_v34 = vld [vmem:[%s2601_s0 + $0x94] ss:$8 sps:$4 sm:$0xff]   ;;  %v2090_v37 = vld [vmem:[%s2601_s0 + $0x190] ss:$8 sps:$4 sm:$0xff]  }
  0x87   : > { %v2087_v35 = vld [vmem:[%s2601_s0 + $0x194] ss:$8 sps:$4 sm:$0xff]   ;;  %v2091_v38 = vld [vmem:[%s2601_s0 + $0x84] ss:$8 sps:$4 sm:$0xff]   ;;  %v2096_v41 = vld [vmem:[%s2601_s0 + $0x180] ss:$8 sps:$4 sm:$0xff]  }
  0x88   : > { %1404 = vmatpush1.bf16.msra.mxu0 %v2035_v62  ;;  %v2093_v39 = vld [vmem:[%s2601_s0 + $0x184] ss:$8 sps:$4 sm:$0xff]   ;;  %v2105_v42 = vld [vmem:[%s2601_s0 + $0x274] ss:$8 sps:$4 sm:$0xff]   ;;  %v2097_v43 = vld [vmem:[%s2658_s19] ss:$24 sps:$4 sm:$0xff]  }
  0x89   : > { %1447 = vmatpush1.bf16.msra.mxu1 %v2036_v63  ;;  %1405 = vmatprep.subr.bf16.mxu0 %v2037_v0  ;;  %v2100_v44 = vld [vmem:[%s2658_s19 + $0x8] ss:$24 sps:$4 sm:$0xff]   ;;  %v2108_v46 = vld [vmem:[%s2601_s0 + $0x264] ss:$8 sps:$4 sm:$0xff]   ;;  %v2111_v49 = vld [vmem:[%s2601_s0 + $0x254] ss:$8 sps:$4 sm:$0xff]  }
  0x8a   : > { %1448 = vmatprep.subr.bf16.mxu1 %v2039_v1  ;;  %v2103_v45 = vld [vmem:[%s2601_s0 + $0x270] ss:$8 sps:$4 sm:$0xff]   ;;  %v2153_v47 = vld [vmem:[%s2658_s19 + $0x14] ss:$24 sps:$4 sm:$0xff]   ;;  %v2106_v48 = vld [vmem:[%s2601_s0 + $0x260] ss:$8 sps:$4 sm:$0xff]  }
  0x8b   : > { %v2109_v50 = vld [vmem:[%s2601_s0 + $0x250] ss:$8 sps:$4 sm:$0xff]   ;;  %v2114_v51 = vld [vmem:[%s2601_s0 + $0x244] ss:$8 sps:$4 sm:$0xff]   ;;  %v2112_v52 = vld [vmem:[%s2601_s0 + $0x240] ss:$8 sps:$4 sm:$0xff]  }
  0x8c   : > { %1406 = vmatpush1.bf16.msra.mxu0 %v2041_v2  ;;  %v2117_v53 = vld [vmem:[%s2601_s0 + $0x234] ss:$8 sps:$4 sm:$0xff]   ;;  %v2115_v54 = vld [vmem:[%s2601_s0 + $0x230] ss:$8 sps:$4 sm:$0xff]   ;;  %v2120_v55 = vld [vmem:[%s2601_s0 + $0x224] ss:$8 sps:$4 sm:$0xff]  }
  0x8d   : > { %1449 = vmatpush1.bf16.msra.mxu1 %v2042_v3  ;;  %1407 = vmatprep.subr.bf16.mxu0 %v2043_v4  ;;  %v2118_v56 = vld [vmem:[%s2601_s0 + $0x220] ss:$8 sps:$4 sm:$0xff]   ;;  %v2123_v57 = vld [vmem:[%s2601_s0 + $0x214] ss:$8 sps:$4 sm:$0xff]   ;;  %v2121_v58 = vld [vmem:[%s2601_s0 + $0x210] ss:$8 sps:$4 sm:$0xff]  }
  0x8e   : > { %1450 = vmatprep.subr.bf16.mxu1 %v2045_v5  ;;  %v2126_v59 = vld [vmem:[%s2601_s0 + $0x204] ss:$8 sps:$4 sm:$0xff]   ;;  %v2124_v60 = vld [vmem:[%s2601_s0 + $0x200] ss:$8 sps:$4 sm:$0xff]   ;;  %v2129_v61 = vld [vmem:[%s2601_s0 + $0x2f4] ss:$8 sps:$4 sm:$0xff]  }
  0x8f   : > { %v2127_v62 = vld [vmem:[%s2601_s0 + $0x2f0] ss:$8 sps:$4 sm:$0xff]   ;;  %v2132_v63 = vld [vmem:[%s2601_s0 + $0x2e4] ss:$8 sps:$4 sm:$0xff]   ;;  %v2130_v0 = vld [vmem:[%s2601_s0 + $0x2e0] ss:$8 sps:$4 sm:$0xff]  }
  0x90   : > { %1408 = vmatpush1.bf16.msra.mxu0 %v2047_v6  ;;  %v2135_v1 = vld [vmem:[%s2601_s0 + $0x2d4] ss:$8 sps:$4 sm:$0xff]   ;;  %v2133_v2 = vld [vmem:[%s2601_s0 + $0x2d0] ss:$8 sps:$4 sm:$0xff]   ;;  %v2138_v3 = vld [vmem:[%s2601_s0 + $0x2c4] ss:$8 sps:$4 sm:$0xff]  }
  0x91   : > { %1451 = vmatpush1.bf16.msra.mxu1 %v2048_v7  ;;  %1409 = vmatprep.subr.bf16.mxu0 %v2049_v8  ;;  %v2136_v4 = vld [vmem:[%s2601_s0 + $0x2c0] ss:$8 sps:$4 sm:$0xff]   ;;  %v2141_v5 = vld [vmem:[%s2601_s0 + $0x2b4] ss:$8 sps:$4 sm:$0xff]   ;;  %v2139_v6 = vld [vmem:[%s2601_s0 + $0x2b0] ss:$8 sps:$4 sm:$0xff]  }
  0x92   : > { %1452 = vmatprep.subr.bf16.mxu1 %v2051_v9  ;;  %v2144_v7 = vld [vmem:[%s2601_s0 + $0x2a4] ss:$8 sps:$4 sm:$0xff]   ;;  %v2142_v8 = vld [vmem:[%s2601_s0 + $0x2a0] ss:$8 sps:$4 sm:$0xff]   ;;  %v2147_v9 = vld [vmem:[%s2601_s0 + $0x294] ss:$8 sps:$4 sm:$0xff]  }
  0x93   : > { %p1893_p5 = scmp.ne.s32.totalorder %s2224_s21, 0 }
  0x94   : > { %1410 = vmatpush2.bf16.msra.mxu0 %v2053_v10  ;;  %v2145_v10 = vld [vmem:[%s2601_s0 + $0x290] ss:$8 sps:$4 sm:$0xff]  }
  0x95   : > { %1453 = vmatpush2.bf16.msra.mxu1 %v2054_v11  ;;  %1411 = vmatprep.subr.bf16.mxu0 %v2055_v12  ;;  %v2150_v11 = vld [vmem:[%s2601_s0 + $0x284] ss:$8 sps:$4 sm:$0xff]   ;;  %v2148_v12 = vld [vmem:[%s2601_s0 + $0x280] ss:$8 sps:$4 sm:$0xff]  }
  0x96   : > { %1454 = vmatprep.subr.bf16.mxu1 %v2057_v13  ;;  %v2151_v13 = vld [vmem:[%s2658_s19 + $0x10] ss:$24 sps:$4 sm:$0xff]  }
  0x98   : > { %1412 = vmatpush2.bf16.msra.mxu0 %v2059_v14 }
  0x99   : > { %1455 = vmatpush2.bf16.msra.mxu1 %v2060_v15  ;;  %1413 = vmatprep.subr.bf16.mxu0 %v2061_v16 }
  0x9a   : > { %1456 = vmatprep.subr.bf16.mxu1 %v2063_v17 }
  0x9c   : > { %1414 = vmatpush2.bf16.msra.mxu0 %v2065_v18 }
  0x9d   : > { %1457 = vmatpush2.bf16.msra.mxu1 %v2066_v19  ;;  %1415 = vmatprep.subr.bf16.mxu0 %v2067_v20 }
  0x9e   : > { %1458 = vmatprep.subr.bf16.mxu1 %v2069_v21 }
  0xa0   : > { %1416 = vmatpush2.bf16.msra.mxu0 %v2071_v22 }
  0xa1   : > { %1459 = vmatpush2.bf16.msra.mxu1 %v2072_v23  ;;  %1417 = vmatprep.subr.bf16.mxu0 %v2073_v24 }
  0xa2   : > { %1460 = vmatprep.subr.bf16.mxu1 %v2075_v26 }
  0xa4   : > { %1418 = vmatpush2.bf16.msra.mxu0 %v2077_v28 }
  0xa5   : > { %1461 = vmatpush2.bf16.msra.mxu1 %v2078_v29  ;;  %1419 = vmatprep.subr.bf16.mxu0 %v2079_v30 }
  0xa6   : > { %1462 = vmatprep.subr.bf16.mxu1 %v2081_v31 }
  0xa8   : > { %1420 = vmatpush2.bf16.msra.mxu0 %v2083_v32 }
  0xa9   : > { %1463 = vmatpush2.bf16.msra.mxu1 %v2084_v33  ;;  %1421 = vmatprep.subr.bf16.mxu0 %v2085_v34 }
  0xaa   : > { %1464 = vmatprep.subr.bf16.mxu1 %v2087_v35 }
  0xac   : > { %1422 = vmatpush2.bf16.msra.mxu0 %v2089_v36 }
  0xad   : > { %1465 = vmatpush2.bf16.msra.mxu1 %v2090_v37  ;;  %1423 = vmatprep.subr.bf16.mxu0 %v2091_v38 }
  0xae   : > { %1466 = vmatprep.subr.bf16.mxu1 %v2093_v39 }
  0xb0   : > { %1424 = vmatpush2.bf16.msra.mxu0 %v2095_v40 }
  0xb1   : > { %1467 = vmatpush2.bf16.msra.mxu1 %v2096_v41  ;;  %1479 = vmatprep.subr.bf16.mxu0 %v2105_v42 }
  0xb3   : > { %1426 = vmatmul.mubr.bf16.vlgmr.msra.gmra.mxu0 %v2097_v43 }
  0xb4   : > { %1469 = vmatmul.mubr.bf16.vlgmr.msra.gmra.mxu1 %v2100_v44  ;;  %1480 = vmatpush1.bf16.msra.mxu0 %v2103_v45 }
  0xb5   : > { %1481 = vmatprep.subr.bf16.mxu0 %v2108_v46  ;;  %1511 = vmatprep.mubr.bf16.mxu0 %v2153_v47 }
  0xb8   : > { %1482 = vmatpush1.bf16.msra.mxu0 %v2106_v48 }
  0xb9   : > { %1483 = vmatprep.subr.bf16.mxu0 %v2111_v49 }
  0xbc   : > { %1484 = vmatpush1.bf16.msra.mxu0 %v2109_v50 }
  0xbd   : > { %1485 = vmatprep.subr.bf16.mxu0 %v2114_v51 }
  0xc0   : > { %1486 = vmatpush1.bf16.msra.mxu0 %v2112_v52 }
  0xc1   : > { %1487 = vmatprep.subr.bf16.mxu0 %v2117_v53 }
  0xc4   : > { %1488 = vmatpush1.bf16.msra.mxu0 %v2115_v54 }
  0xc5   : > { %1489 = vmatprep.subr.bf16.mxu0 %v2120_v55 }
  0xc8   : > { %1490 = vmatpush1.bf16.msra.mxu0 %v2118_v56 }
  0xc9   : > { %1491 = vmatprep.subr.bf16.mxu0 %v2123_v57 }
  0xcc   : > { %1492 = vmatpush1.bf16.msra.mxu0 %v2121_v58 }
  0xcd   : > { %1493 = vmatprep.subr.bf16.mxu0 %v2126_v59 }
  0xd0   : > { %1494 = vmatpush1.bf16.msra.mxu0 %v2124_v60 }
  0xd1   : > { %1495 = vmatprep.subr.bf16.mxu0 %v2129_v61 }
  0xd4   : > { %1496 = vmatpush2.bf16.msra.mxu0 %v2127_v62 }
  0xd5   : > { %1497 = vmatprep.subr.bf16.mxu0 %v2132_v63 }
  0xd8   : > { %1498 = vmatpush2.bf16.msra.mxu0 %v2130_v0 }
  0xd9   : > { %1499 = vmatprep.subr.bf16.mxu0 %v2135_v1 }
  0xdc   : > { %1500 = vmatpush2.bf16.msra.mxu0 %v2133_v2 }
  0xdd   : > { %1501 = vmatprep.subr.bf16.mxu0 %v2138_v3 }
  0xe0   : > { %1502 = vmatpush2.bf16.msra.mxu0 %v2136_v4 }
  0xe1   : > { %1503 = vmatprep.subr.bf16.mxu0 %v2141_v5 }
  0xe4   : > { %1504 = vmatpush2.bf16.msra.mxu0 %v2139_v6 }
  0xe5   : > { %1505 = vmatprep.subr.bf16.mxu0 %v2144_v7 }
  0xe8   : > { %1506 = vmatpush2.bf16.msra.mxu0 %v2142_v8 }
  0xe9   : > { %1507 = vmatprep.subr.bf16.mxu0 %v2147_v9 }
  0xec   : > { %1508 = vmatpush2.bf16.msra.mxu0 %v2145_v10 }
  0xed   : > { %1509 = vmatprep.subr.bf16.mxu0 %v2150_v11 }
  0xf0   : > { %1510 = vmatpush2.bf16.msra.mxu0 %v2148_v12 }
  0xf3   : > { %1512 = vmatmul.mubr.bf16.vlgmr.msra.gmra.mxu0 %v2151_v13 }
 0x173   : > { %v1427_v14 = vpop.f32.mrf.mxu0 }
 0x174   : > { %v1470_v15 = vpop.f32.mrf.mxu1 }
 0x175   : > { %v1429_v16 = vpop.f32.mrf.mxu0  ;;  %v1471_v21 = vadd.f32 %v1470_v15, %v1427_v14 }
 0x176   : > { %v1472_v17 = vpop.f32.mrf.mxu1 }
 0x177   : > { %v1431_v18 = vpop.f32.mrf.mxu0  ;;  %v1473_v23 = vadd.f32 %v1472_v17, %v1429_v16 }
 0x178   : > { %v1474_v19 = vpop.f32.mrf.mxu1 }
 0x179   : > { %v1433_v20 = vpop.f32.mrf.mxu0  ;;  %v1475_v27 = vadd.f32 %v1474_v19, %v1431_v18 }
 0x17a   : > { %v1476_v25 = vpop.f32.mrf.mxu1 }
 0x17b   : > { %v1477_v30 = vadd.f32 %v1476_v25, %v1433_v20 }
 0x1b3   : > { %v1513_v22 = vpop.f32.mrf.mxu0 }
 0x1b4   : > { %v1514_v24 = vadd.f32 %v1513_v22, %v1471_v21 }
 0x1b5   : > { %v1515_v26 = vpop.f32.mrf.mxu0 }
 0x1b6   : > { %v1516_v28 = vadd.f32 %v1515_v26, %v1473_v23  ;;  %1525 = sbr.rel (%p1893_p5) target bundleno = 445 (0x1bd), region = 139 }
 0x1b7   : > { %v1517_v29 = vpop.f32.mrf.mxu0 }
 0x1b8   : > { %v1518_v31 = vadd.f32 %v1517_v29, %v1475_v27 }
 0x1b9   : > { %v1519_v32 = vpop.f32.mrf.mxu0 }
 0x1ba   : > { %v1520_v33 = vadd.f32 %v1519_v32, %v1477_v30 }
 0x1bb   : > { %1526 = vst [vmem:[#allocation2 + $0x10] sm:$0xff] %v1514_v24  ;;  %1527 = vst [vmem:[#allocation2] sm:$0xff] %v1516_v28 }
 0x1bc   : > { %1528 = vst [vmem:[#allocation2 + $0x18] sm:$0xff] %v1518_v31  ;;  %1529 = vst [vmem:[#allocation2 + $0x8] sm:$0xff] %v1520_v33 }
 0x1bd PF: > { %p1894_p6 = scmp.le.s32.totalorder %s2224_s21, 0 }
 0x1bf   : > { %1533 = sbr.rel (%p1894_p6) target bundleno = 457 (0x1c9), region = 143 }
 0x1c4   : > { %v1534_v34 = vld [vmem:[#allocation2 + $0x10] sm:$0xff]  ;;  %v1535_v35 = vld [vmem:[#allocation2] sm:$0xff]  ;;  %v1536_v36 = vld [vmem:[#allocation2 + $0x18] sm:$0xff] }
 0x1c5   : > { %v1538_v37 = vadd.f32 %v1534_v34, %v1514_v24  ;;  %v1539_v38 = vadd.f32 %v1535_v35, %v1516_v28  ;;  %v1540_v39 = vadd.f32 %v1536_v36, %v1518_v31  ;;  %v1537_v40 = vld [vmem:[#allocation2 + $0x8] sm:$0xff] }
 0x1c6   : > { %v1541_v41 = vadd.f32 %v1537_v40, %v1520_v33 }
 0x1c7   : > { %1542 = vst [vmem:[#allocation2 + $0x10] sm:$0xff] %v1538_v37  ;;  %1543 = vst [vmem:[#allocation2] sm:$0xff] %v1539_v38 }
 0x1c8   : > { %1544 = vst [vmem:[#allocation2 + $0x18] sm:$0xff] %v1540_v39  ;;  %1545 = vst [vmem:[#allocation2 + $0x8] sm:$0xff] %v1541_v41 }
 0x1c9 PF: > { %p1895_p7 = scmp.ne.s32.totalorder %s2224_s21, 5 }
 0x1cb   : > { %1549 = sbr.rel (%p1895_p7) target bundleno = 481 (0x1e1), region = 147 }
 0x1d0   : > { %v1556_v42 = vlaneseq  ;;  %v1570_v44 = vld [vmem:[%s734_s30] sm:$0xff]  ;;  %v1571_v46 = vld [vmem:[%s734_s30 + $0x8] sm:$0xff] }
 0x1d1   : > { %v1554_v45 = vld [vmem:[%s775_s27] sm:$0x3]  ;;  %v1550_v47 = vld [vmem:[#allocation2 + $0x10] sm:$0xff]  ;;  %v1572_v51 = vunpack.c.l.bf16 %v1570_v44  ;;  %v1573_v52 = vunpack.c.h.bf16 %v1570_v44  ;;  %v1552_v53 = vld [vmem:[#allocation2 + $0x18] sm:$0xff]  ;;  %v1574_v57 = vunpack.c.l.bf16 %v1571_v46  ;;  %v1575_v58 = vunpack.c.h.bf16 %v1571_v46 }
 0x1d2   : > { %v1557_v43 = vshrl.u32 %v1556_v42, 7  ;;  %v1551_v50 = vld [vmem:[#allocation2] sm:$0xff]  ;;  %v1553_v54 = vld [vmem:[#allocation2 + $0x8] sm:$0xff] }
 0x1d4   : > { %v1558_v48 = vsub.s32 0, %v1557_v43  ;;  %v1562_v49 = vsub.s32 1, %v1557_v43 }
 0x1d6   : > { %v1559_v55 = vrot.slane %v1554_v45, %v1558_v48  ;;  %v1563_v56 = vrot.slane %v1554_v45, %v1562_v49 }
 0x1d8   : > { %v1566_v59 = vadd.f32 %v1559_v55, %v1550_v47  ;;  %v1567_v60 = vadd.f32 %v1563_v56, %v1551_v50  ;;  %v1568_v61 = vadd.f32 %v1559_v55, %v1552_v53  ;;  %v1569_v62 = vadd.f32 %v1563_v56, %v1553_v54 }
 0x1da   : > { %v1576_v63 = vadd.f32 %v1572_v51, %v1566_v59  ;;  %v1577_v0 = vadd.f32 %v1573_v52, %v1567_v60  ;;  %v1578_v1 = vadd.f32 %v1574_v57, %v1568_v61  ;;  %v1579_v2 = vadd.f32 %v1575_v58, %v1569_v62 }
 0x1dc   : > { %v1580_v3 = vmax.f32 %v1576_v63, 0.0  ;;  %v1581_v4 = vmax.f32 %v1577_v0, 0.0  ;;  %v1582_v5 = vmax.f32 %v1578_v1, 0.0  ;;  %v1583_v6 = vmax.f32 %v1579_v2, 0.0 }
 0x1de   : > { %v1906_v7 = vpack.c.bf16 %v1581_v4, %v1580_v3  ;;  %v1907_v8 = vpack.c.bf16 %v1583_v6, %v1582_v5 }
 0x1e0   : > { %1596 = vst [vmem:[%s2716_s6] sm:$0xff] %v1906_v7  ;;  %1597 = vst [vmem:[%s2716_s6 + $0x8] sm:$0xff] %v1907_v8 }
 0x1e1 PF: > { %1604 = sbr.rel (!%p2371_p13) target bundleno = 489 (0x1e9), region = 151  ;;  %s1908_s21 = sshll.u32 (%p2371_p13), %s2228_s22, 3 }
 0x1e2   : > { %s1610_s28 = scalar_lea.vmem (%p2371_p13), %s2777_s4, %s1908_s21 }
 0x1e7   : > { %v1641_v9 = vld [vmem:[%s2716_s6] sm:$0xff]  ;;  %v1643_v10 = vld [vmem:[%s2716_s6 + $0x8] sm:$0xff] }
 0x1e8   : > { %1642 = vst [vmem:[%s1610_s28] sm:$0xff] %v1641_v9  ;;  %1644 = vst [vmem:[%s1610_s28 + $0x10] sm:$0xff] %v1643_v10 }
 0x1e9 PF: > { %s14_s25 = sadd.s32 1, %s2240_s25   ;;  %s2788_s29 = sld [smem:[#allocation7_spill]] }
 0x1ea   : > { %p11_p8 = scmp.ge.s32.totalorder %s14_s25, 14   ;;  %s2789_s10 = sld [smem:[#allocation8_spill]] }
 0x1eb   : > { %s2790_s15 = smov %s2204_s16  ;;  %s2791_s16 = smov %s2363_s13 }
 0x1ec   : > { %s2792_s17 = smov %s2212_s18  ;;  %s2793_s18 = smov %s2360_s12 }
 0x1ed   : > { %s2794_s19 = smov %s2220_s20  ;;  %s2795_s20 = smov %s2344_s7 }
 0x1ee   : > { %s2796_s21 = smov %s2232_s23  ;;  %s2797_s22 = smov %s2236_s24 }
 0x1ef   : > { %s2798_s23 = smov %s2788_s29  ;;  %13 = sbr.rel (!%p11_p8) target bundleno = 8 (0x8), region = 239 }
 0x1f0   : > { %s2799_s24 = smov %s2789_s10 }

// kernel: resnet_forward.39
= control target key start
LH: loop header
LB: loop body
LE: loop exit
PB: predicated region body
PF: predicated region fallthrough
CT: control target
= control target key end

     0   :  { %s2616_s0 = inlined_call_operand.vmem [shape: bf16[16,4608], index: 0, kind: input, shape index: {}]   ;;  %s2617_s1 = inlined_call_operand.vmem [shape: bf16[4608,512], index: 1, kind: input, shape index: {}]   ;;  %s2618_s2 = inlined_call_operand.vmem [shape: f32[1,512], index: 2, kind: input, shape index: {}]   ;;  %s2619_s3 = inlined_call_operand.vmem [shape: bf16[16,512], index: 3, kind: output, shape index: {}]  }
   0x1   :  { %2620 = sst [smem:[#allocation6_spill]] %s2616_s0 }
   0x2   :  { %s2132_s12 = smov 0   ;;  %s2134_s13 = smov 0  }
   0x3   :  { %s2136_s14 = smov 0   ;;  %s2138_s15 = smov 0  }
   0x4   :  { %s2140_s16 = smov 0   ;;  %s2142_s17 = smov 0  }
   0x5   :  { %s2144_s18 = smov 0   ;;  %s2146_s19 = smov 0  }
   0x6   :  { %s2148_s20 = smov 0   ;;  %s2150_s21 = smov 0  }
   0x7   :  { %s2152_s22 = smov 0  }
   0x8 LB: > { %s1651_s23 = sadd.s32 4294967295, %s2110_s22   ;;  %s25_s24 = sadd.s32 1, %s2102_s20  ;;  %s2110_s22 = sphi %s2152_s22, %s13_s22   ;;  %s2106_s21 = sphi %s2150_s21, %s2634_s21   ;;  %s2102_s20 = sphi %s2148_s20, %s2633_s20   ;;  %s2098_s19 = sphi %s2146_s19, %s2632_s19   ;;  %s2094_s18 = sphi %s2144_s18, %s2631_s18   ;;  %s2090_s17 = sphi %s2142_s17, %s2630_s17   ;;  %s2086_s16 = sphi %s2140_s16, %s2629_s16   ;;  %s2082_s15 = sphi %s2138_s15, %s2628_s15   ;;  %s2078_s14 = sphi %s2136_s14, %s2627_s14   ;;  %s2074_s13 = sphi %s2134_s13, %s2626_s13   ;;  %s2070_s12 = sphi %s2132_s12, %s2625_s12  }
   0x9   : > { %p26_p0 = scmp.ge.s32.totalorder %s25_s24, 6  ;;  %s28_s25 = sadd.s32 1, %s2106_s21 }
   0xa   : > { %s41_s26 = sadd.s32 1, %s2090_s17  ;;  %p48_p1 = scmp.ne.s32.totalorder %s2090_s17, %s2086_s16 }
   0xb   : > { %s2636_s24 = smov (%p26_p0, %s25_s24), 0  ;;  %s2638_s25 = smov (!%p26_p0, %s28_s25), %s2106_s21 }
   0xc   : > { %s37_s27 = ssub.s32 %s2102_s20, %s2636_s24  ;;  %p49_p2 = scmp.eq.s32.totalorder %s2110_s22, 0 }
   0xd   : > { %p30_p3 = scmp.ge.s32.totalorder %s2638_s25, 2  ;;  %p39_p4 = scmp.eq.s32.totalorder %s37_s27, 0 }
   0xe   : > { %p2199_p5 = por %p49_p2, %p48_p1  ;;  %s69_s29 = sadd.s32 1, %s2082_s15 }
   0xf   : > { %s2640_s25 = smov (%p30_p3, %s2638_s25), 0  ;;  %p76_p6 = scmp.ne.s32.totalorder %s2082_s15, %s2078_s14 }
  0x10   : > { %s2207_s30 = scalar_select %p39_p4, %s2090_s17, %s41_s26  }
  0x11   : > { %s65_s4 = ssub.s32 %s2106_s21, %s2640_s25  ;;  %p2213_p9 = por %p76_p6, %p49_p2 }
  0x12   : > { %s66_s5 = sor.u32 %s65_s4, %s37_s27  ;;  %p121_p7 = scmp.eq.s32.totalorder %s65_s4, 0 }
  0x13   : > { %p67_p8 = scmp.eq.s32.totalorder %s66_s5, 0  ;;  %s123_s7 = sadd.s32 1, %s2074_s13 }
  0x14   : > { %p133_p10 = scmp.ne.s32.totalorder %s2074_s13, %s2070_s12  ;;  %p134_p11 = scmp.eq.s32.totalorder %s1651_s23, 11 }
  0x15   : > { %s2221_s8 = scalar_select %p67_p8, %s2082_s15, %s69_s29  }
  0x16   : > { %s2224_s9 = scalar_select %p121_p7, %s2074_s13, %s123_s7  }
  0x17   : > { %p2226_p12 = por %p134_p11, %p133_p10  ;;  %p1654_p13 = scmp.ge.s32.totalorder %s2110_s22, 12 }
  0x19   : > { %156 = sbr.rel (%p1654_p13) target bundleno = 98 (0x62), region = 16 }
  0x1e   : > { %159 = sbr.rel (!%p2199_p5) target bundleno = 42 (0x2a), region = 20  ;;  %s161_s11 = sand.u32 (%p2199_p5), 1, %s2090_s17  }
  0x1f   : > { %s1774_s26 = smul.u32 (%p2199_p5), 24, %s2102_s20  ;;  %s2624_s0 = sld [smem:[#allocation6_spill]] (%p2199_p5) }
  0x20   : > { %s1779_s27 = smul.u32 (%p2199_p5), 48, %s161_s11 }
  0x22   : > { %s163_s23 = scalar_lea.vmem (%p2199_p5), [#allocation3], %s1779_s27 }
  0x25   : > { %s169_s5 = scalar_lea.vmem %s2624_s0, %s1774_s26 }
  0x26   : > { %v182_v0 = vld [vmem:[%s169_s5] sm:$0xff]  ;;  %v184_v1 = vld [vmem:[%s169_s5 + $0x8] sm:$0xff]  ;;  %v186_v2 = vld [vmem:[%s169_s5 + $0x10] sm:$0xff] }
  0x27   : > { %183 = vst [vmem:[%s163_s23] sm:$0xff] %v182_v0  ;;  %185 = vst [vmem:[%s163_s23 + $0x8] sm:$0xff] %v184_v1  ;;  %v188_v3 = vld [vmem:[%s169_s5 + $0x90] sm:$0xff]  ;;  %v190_v4 = vld [vmem:[%s169_s5 + $0x98] sm:$0xff] }
  0x28   : > { %187 = vst [vmem:[%s163_s23 + $0x10] sm:$0xff] %v186_v2  ;;  %v192_v5 = vld [vmem:[%s169_s5 + $0xa0] sm:$0xff]  ;;  %189 = vst [vmem:[%s163_s23 + $0x18] sm:$0xff] %v188_v3 }
  0x29   : > { %191 = vst [vmem:[%s163_s23 + $0x20] sm:$0xff] %v190_v4  ;;  %193 = vst [vmem:[%s163_s23 + $0x28] sm:$0xff] %v192_v5 }
  0x2a PF: > { %199 = sbr.rel (!%p2213_p9) target bundleno = 98 (0x62), region = 43  ;;  %s201_s28 = sand.u32 (%p2213_p9), 1, %s2082_s15  }
  0x2b   : > { %s1780_s7 = smul.u32 (%p2213_p9), 768, %s201_s28  ;;  %s1656_s11 = sshll.u32 (%p2213_p9), %s2106_s21, 1 }
  0x2c   : > { %s1775_s26 = smul.u32 (%p2213_p9), 384, %s2102_s20 }
  0x2d   : > { %s2251_s6 = scalar_lea.vmem (%p2213_p9), [#allocation4], %s1780_s7 }
  0x2e   : > { %s207_s27 = sadd.s32 (%p2213_p9), %s1775_s26, %s1656_s11 }
  0x2f   : > { %s1658_s29 = sshll.u32 %s207_s27, 2 }
  0x30   : > { %s2246_s5 = scalar_lea.vmem %s2617_s1, %s1658_s29 }
  0x31   : > { %v428_v6 = vld [vmem:[%s2246_s5] sm:$0xff]  ;;  %v430_v7 = vld [vmem:[%s2246_s5 + $0x10] sm:$0xff] }
  0x32   : > { %v432_v8 = vld [vmem:[%s2246_s5 + $0x20] sm:$0xff]  ;;  %429 = vst [vmem:[%s2251_s6] sm:$0xff] %v428_v6  ;;  %431 = vst [vmem:[%s2251_s6 + $0x8] sm:$0xff] %v430_v7  ;;  %v434_v9 = vld [vmem:[%s2246_s5 + $0x30] sm:$0xff] }
  0x33   : > { %433 = vst [vmem:[%s2251_s6 + $0x10] sm:$0xff] %v432_v8  ;;  %v436_v10 = vld [vmem:[%s2246_s5 + $0x40] sm:$0xff]  ;;  %v438_v11 = vld [vmem:[%s2246_s5 + $0x50] sm:$0xff]  ;;  %435 = vst [vmem:[%s2251_s6 + $0x18] sm:$0xff] %v434_v9 }
  0x34   : > { %437 = vst [vmem:[%s2251_s6 + $0x20] sm:$0xff] %v436_v10  ;;  %439 = vst [vmem:[%s2251_s6 + $0x28] sm:$0xff] %v438_v11  ;;  %v440_v12 = vld [vmem:[%s2246_s5 + $0x60] sm:$0xff]  ;;  %v442_v13 = vld [vmem:[%s2246_s5 + $0x70] sm:$0xff] }
  0x35   : > { %v444_v14 = vld [vmem:[%s2246_s5 + $0x80] sm:$0xff]  ;;  %441 = vst [vmem:[%s2251_s6 + $0x30] sm:$0xff] %v440_v12  ;;  %443 = vst [vmem:[%s2251_s6 + $0x38] sm:$0xff] %v442_v13  ;;  %v446_v15 = vld [vmem:[%s2246_s5 + $0x90] sm:$0xff] }
  0x36   : > { %445 = vst [vmem:[%s2251_s6 + $0x40] sm:$0xff] %v444_v14  ;;  %v448_v16 = vld [vmem:[%s2246_s5 + $0xa0] sm:$0xff]  ;;  %v450_v17 = vld [vmem:[%s2246_s5 + $0xb0] sm:$0xff]  ;;  %447 = vst [vmem:[%s2251_s6 + $0x48] sm:$0xff] %v446_v15 }
  0x37   : > { %449 = vst [vmem:[%s2251_s6 + $0x50] sm:$0xff] %v448_v16  ;;  %451 = vst [vmem:[%s2251_s6 + $0x58] sm:$0xff] %v450_v17  ;;  %v452_v18 = vld [vmem:[%s2246_s5 + $0xc0] sm:$0xff]  ;;  %v454_v19 = vld [vmem:[%s2246_s5 + $0xd0] sm:$0xff] }
  0x38   : > { %v456_v20 = vld [vmem:[%s2246_s5 + $0xe0] sm:$0xff]  ;;  %453 = vst [vmem:[%s2251_s6 + $0x60] sm:$0xff] %v452_v18  ;;  %455 = vst [vmem:[%s2251_s6 + $0x68] sm:$0xff] %v454_v19  ;;  %v458_v21 = vld [vmem:[%s2246_s5 + $0xf0] sm:$0xff] }
  0x39   : > { %457 = vst [vmem:[%s2251_s6 + $0x70] sm:$0xff] %v456_v20  ;;  %v460_v22 = vld [vmem:[%s2246_s5 + $0x100] sm:$0xff]  ;;  %v462_v23 = vld [vmem:[%s2246_s5 + $0x110] sm:$0xff]  ;;  %459 = vst [vmem:[%s2251_s6 + $0x78] sm:$0xff] %v458_v21 }
  0x3a   : > { %461 = vst [vmem:[%s2251_s6 + $0x80] sm:$0xff] %v460_v22  ;;  %463 = vst [vmem:[%s2251_s6 + $0x88] sm:$0xff] %v462_v23  ;;  %v464_v24 = vld [vmem:[%s2246_s5 + $0x120] sm:$0xff]  ;;  %v466_v25 = vld [vmem:[%s2246_s5 + $0x130] sm:$0xff] }
  0x3b   : > { %v468_v26 = vld [vmem:[%s2246_s5 + $0x140] sm:$0xff]  ;;  %465 = vst [vmem:[%s2251_s6 + $0x90] sm:$0xff] %v464_v24  ;;  %467 = vst [vmem:[%s2251_s6 + $0x98] sm:$0xff] %v466_v25  ;;  %v470_v27 = vld [vmem:[%s2246_s5 + $0x150] sm:$0xff] }
  0x3c   : > { %469 = vst [vmem:[%s2251_s6 + $0xa0] sm:$0xff] %v468_v26  ;;  %v472_v28 = vld [vmem:[%s2246_s5 + $0x160] sm:$0xff]  ;;  %v474_v29 = vld [vmem:[%s2246_s5 + $0x170] sm:$0xff]  ;;  %471 = vst [vmem:[%s2251_s6 + $0xa8] sm:$0xff] %v470_v27 }
  0x3d   : > { %473 = vst [vmem:[%s2251_s6 + $0xb0] sm:$0xff] %v472_v28  ;;  %475 = vst [vmem:[%s2251_s6 + $0xb8] sm:$0xff] %v474_v29  ;;  %v476_v30 = vld [vmem:[%s2246_s5 + $0x180] sm:$0xff]  ;;  %v478_v31 = vld [vmem:[%s2246_s5 + $0x190] sm:$0xff] }
  0x3e   : > { %v480_v32 = vld [vmem:[%s2246_s5 + $0x1a0] sm:$0xff]  ;;  %477 = vst [vmem:[%s2251_s6 + $0xc0] sm:$0xff] %v476_v30  ;;  %479 = vst [vmem:[%s2251_s6 + $0xc8] sm:$0xff] %v478_v31  ;;  %v482_v33 = vld [vmem:[%s2246_s5 + $0x1b0] sm:$0xff] }
  0x3f   : > { %481 = vst [vmem:[%s2251_s6 + $0xd0] sm:$0xff] %v480_v32  ;;  %v484_v34 = vld [vmem:[%s2246_s5 + $0x1c0] sm:$0xff]  ;;  %v486_v35 = vld [vmem:[%s2246_s5 + $0x1d0] sm:$0xff]  ;;  %483 = vst [vmem:[%s2251_s6 + $0xd8] sm:$0xff] %v482_v33 }
  0x40   : > { %485 = vst [vmem:[%s2251_s6 + $0xe0] sm:$0xff] %v484_v34  ;;  %487 = vst [vmem:[%s2251_s6 + $0xe8] sm:$0xff] %v486_v35  ;;  %v488_v36 = vld [vmem:[%s2246_s5 + $0x1e0] sm:$0xff]  ;;  %v490_v37 = vld [vmem:[%s2246_s5 + $0x1f0] sm:$0xff] }
  0x41   : > { %v492_v38 = vld [vmem:[%s2246_s5 + $0x200] sm:$0xff]  ;;  %489 = vst [vmem:[%s2251_s6 + $0xf0] sm:$0xff] %v488_v36  ;;  %491 = vst [vmem:[%s2251_s6 + $0xf8] sm:$0xff] %v490_v37  ;;  %v494_v39 = vld [vmem:[%s2246_s5 + $0x210] sm:$0xff] }
  0x42   : > { %493 = vst [vmem:[%s2251_s6 + $0x100] sm:$0xff] %v492_v38  ;;  %v496_v40 = vld [vmem:[%s2246_s5 + $0x220] sm:$0xff]  ;;  %v498_v41 = vld [vmem:[%s2246_s5 + $0x230] sm:$0xff]  ;;  %495 = vst [vmem:[%s2251_s6 + $0x108] sm:$0xff] %v494_v39 }
  0x43   : > { %497 = vst [vmem:[%s2251_s6 + $0x110] sm:$0xff] %v496_v40  ;;  %499 = vst [vmem:[%s2251_s6 + $0x118] sm:$0xff] %v498_v41  ;;  %v500_v42 = vld [vmem:[%s2246_s5 + $0x240] sm:$0xff]  ;;  %v502_v43 = vld [vmem:[%s2246_s5 + $0x250] sm:$0xff] }
  0x44   : > { %v504_v44 = vld [vmem:[%s2246_s5 + $0x260] sm:$0xff]  ;;  %501 = vst [vmem:[%s2251_s6 + $0x120] sm:$0xff] %v500_v42  ;;  %503 = vst [vmem:[%s2251_s6 + $0x128] sm:$0xff] %v502_v43  ;;  %v506_v45 = vld [vmem:[%s2246_s5 + $0x270] sm:$0xff] }
  0x45   : > { %505 = vst [vmem:[%s2251_s6 + $0x130] sm:$0xff] %v504_v44  ;;  %v508_v46 = vld [vmem:[%s2246_s5 + $0x280] sm:$0xff]  ;;  %v510_v47 = vld [vmem:[%s2246_s5 + $0x290] sm:$0xff]  ;;  %507 = vst [vmem:[%s2251_s6 + $0x138] sm:$0xff] %v506_v45 }
  0x46   : > { %509 = vst [vmem:[%s2251_s6 + $0x140] sm:$0xff] %v508_v46  ;;  %511 = vst [vmem:[%s2251_s6 + $0x148] sm:$0xff] %v510_v47  ;;  %v512_v48 = vld [vmem:[%s2246_s5 + $0x2a0] sm:$0xff]  ;;  %v514_v49 = vld [vmem:[%s2246_s5 + $0x2b0] sm:$0xff] }
  0x47   : > { %v516_v50 = vld [vmem:[%s2246_s5 + $0x2c0] sm:$0xff]  ;;  %513 = vst [vmem:[%s2251_s6 + $0x150] sm:$0xff] %v512_v48  ;;  %515 = vst [vmem:[%s2251_s6 + $0x158] sm:$0xff] %v514_v49  ;;  %v518_v51 = vld [vmem:[%s2246_s5 + $0x2d0] sm:$0xff] }
  0x48   : > { %517 = vst [vmem:[%s2251_s6 + $0x160] sm:$0xff] %v516_v50  ;;  %v520_v52 = vld [vmem:[%s2246_s5 + $0x2e0] sm:$0xff]  ;;  %v522_v53 = vld [vmem:[%s2246_s5 + $0x2f0] sm:$0xff]  ;;  %519 = vst [vmem:[%s2251_s6 + $0x168] sm:$0xff] %v518_v51 }
  0x49   : > { %521 = vst [vmem:[%s2251_s6 + $0x170] sm:$0xff] %v520_v52  ;;  %523 = vst [vmem:[%s2251_s6 + $0x178] sm:$0xff] %v522_v53  ;;  %v524_v54 = vld [vmem:[%s2246_s5 + $0x300] sm:$0xff]  ;;  %v526_v55 = vld [vmem:[%s2246_s5 + $0x310] sm:$0xff] }
  0x4a   : > { %v528_v56 = vld [vmem:[%s2246_s5 + $0x320] sm:$0xff]  ;;  %525 = vst [vmem:[%s2251_s6 + $0x180] sm:$0xff] %v524_v54  ;;  %527 = vst [vmem:[%s2251_s6 + $0x188] sm:$0xff] %v526_v55  ;;  %v530_v57 = vld [vmem:[%s2246_s5 + $0x330] sm:$0xff] }
  0x4b   : > { %529 = vst [vmem:[%s2251_s6 + $0x190] sm:$0xff] %v528_v56  ;;  %v532_v58 = vld [vmem:[%s2246_s5 + $0x340] sm:$0xff]  ;;  %v534_v59 = vld [vmem:[%s2246_s5 + $0x350] sm:$0xff]  ;;  %531 = vst [vmem:[%s2251_s6 + $0x198] sm:$0xff] %v530_v57 }
  0x4c   : > { %533 = vst [vmem:[%s2251_s6 + $0x1a0] sm:$0xff] %v532_v58  ;;  %535 = vst [vmem:[%s2251_s6 + $0x1a8] sm:$0xff] %v534_v59  ;;  %v536_v60 = vld [vmem:[%s2246_s5 + $0x360] sm:$0xff]  ;;  %v538_v61 = vld [vmem:[%s2246_s5 + $0x370] sm:$0xff] }
  0x4d   : > { %v540_v62 = vld [vmem:[%s2246_s5 + $0x380] sm:$0xff]  ;;  %537 = vst [vmem:[%s2251_s6 + $0x1b0] sm:$0xff] %v536_v60  ;;  %539 = vst [vmem:[%s2251_s6 + $0x1b8] sm:$0xff] %v538_v61  ;;  %v542_v63 = vld [vmem:[%s2246_s5 + $0x390] sm:$0xff] }
  0x4e   : > { %541 = vst [vmem:[%s2251_s6 + $0x1c0] sm:$0xff] %v540_v62  ;;  %v544_v0 = vld [vmem:[%s2246_s5 + $0x3a0] sm:$0xff]  ;;  %v546_v1 = vld [vmem:[%s2246_s5 + $0x3b0] sm:$0xff]  ;;  %543 = vst [vmem:[%s2251_s6 + $0x1c8] sm:$0xff] %v542_v63 }
  0x4f   : > { %545 = vst [vmem:[%s2251_s6 + $0x1d0] sm:$0xff] %v544_v0  ;;  %547 = vst [vmem:[%s2251_s6 + $0x1d8] sm:$0xff] %v546_v1  ;;  %v548_v2 = vld [vmem:[%s2246_s5 + $0x3c0] sm:$0xff]  ;;  %v550_v3 = vld [vmem:[%s2246_s5 + $0x3d0] sm:$0xff] }
  0x50   : > { %v552_v4 = vld [vmem:[%s2246_s5 + $0x3e0] sm:$0xff]  ;;  %549 = vst [vmem:[%s2251_s6 + $0x1e0] sm:$0xff] %v548_v2  ;;  %551 = vst [vmem:[%s2251_s6 + $0x1e8] sm:$0xff] %v550_v3  ;;  %v554_v5 = vld [vmem:[%s2246_s5 + $0x3f0] sm:$0xff] }
  0x51   : > { %553 = vst [vmem:[%s2251_s6 + $0x1f0] sm:$0xff] %v552_v4  ;;  %v556_v6 = vld [vmem:[%s2246_s5 + $0x400] sm:$0xff]  ;;  %v558_v7 = vld [vmem:[%s2246_s5 + $0x410] sm:$0xff]  ;;  %555 = vst [vmem:[%s2251_s6 + $0x1f8] sm:$0xff] %v554_v5 }
  0x52   : > { %557 = vst [vmem:[%s2251_s6 + $0x200] sm:$0xff] %v556_v6  ;;  %559 = vst [vmem:[%s2251_s6 + $0x208] sm:$0xff] %v558_v7  ;;  %v560_v8 = vld [vmem:[%s2246_s5 + $0x420] sm:$0xff]  ;;  %v562_v9 = vld [vmem:[%s2246_s5 + $0x430] sm:$0xff] }
  0x53   : > { %v564_v10 = vld [vmem:[%s2246_s5 + $0x440] sm:$0xff]  ;;  %561 = vst [vmem:[%s2251_s6 + $0x210] sm:$0xff] %v560_v8  ;;  %563 = vst [vmem:[%s2251_s6 + $0x218] sm:$0xff] %v562_v9  ;;  %v566_v11 = vld [vmem:[%s2246_s5 + $0x450] sm:$0xff] }
  0x54   : > { %565 = vst [vmem:[%s2251_s6 + $0x220] sm:$0xff] %v564_v10  ;;  %v568_v12 = vld [vmem:[%s2246_s5 + $0x460] sm:$0xff]  ;;  %v570_v13 = vld [vmem:[%s2246_s5 + $0x470] sm:$0xff]  ;;  %567 = vst [vmem:[%s2251_s6 + $0x228] sm:$0xff] %v566_v11 }
  0x55   : > { %569 = vst [vmem:[%s2251_s6 + $0x230] sm:$0xff] %v568_v12  ;;  %571 = vst [vmem:[%s2251_s6 + $0x238] sm:$0xff] %v570_v13  ;;  %v572_v14 = vld [vmem:[%s2246_s5 + $0x480] sm:$0xff]  ;;  %v574_v15 = vld [vmem:[%s2246_s5 + $0x490] sm:$0xff] }
  0x56   : > { %v576_v16 = vld [vmem:[%s2246_s5 + $0x4a0] sm:$0xff]  ;;  %573 = vst [vmem:[%s2251_s6 + $0x240] sm:$0xff] %v572_v14  ;;  %575 = vst [vmem:[%s2251_s6 + $0x248] sm:$0xff] %v574_v15  ;;  %v578_v17 = vld [vmem:[%s2246_s5 + $0x4b0] sm:$0xff] }
  0x57   : > { %577 = vst [vmem:[%s2251_s6 + $0x250] sm:$0xff] %v576_v16  ;;  %v580_v18 = vld [vmem:[%s2246_s5 + $0x4c0] sm:$0xff]  ;;  %v582_v19 = vld [vmem:[%s2246_s5 + $0x4d0] sm:$0xff]  ;;  %579 = vst [vmem:[%s2251_s6 + $0x258] sm:$0xff] %v578_v17 }
  0x58   : > { %581 = vst [vmem:[%s2251_s6 + $0x260] sm:$0xff] %v580_v18  ;;  %583 = vst [vmem:[%s2251_s6 + $0x268] sm:$0xff] %v582_v19  ;;  %v584_v20 = vld [vmem:[%s2246_s5 + $0x4e0] sm:$0xff]  ;;  %v586_v21 = vld [vmem:[%s2246_s5 + $0x4f0] sm:$0xff] }
  0x59   : > { %v588_v22 = vld [vmem:[%s2246_s5 + $0x500] sm:$0xff]  ;;  %585 = vst [vmem:[%s2251_s6 + $0x270] sm:$0xff] %v584_v20  ;;  %587 = vst [vmem:[%s2251_s6 + $0x278] sm:$0xff] %v586_v21  ;;  %v590_v23 = vld [vmem:[%s2246_s5 + $0x510] sm:$0xff] }
  0x5a   : > { %589 = vst [vmem:[%s2251_s6 + $0x280] sm:$0xff] %v588_v22  ;;  %v592_v24 = vld [vmem:[%s2246_s5 + $0x520] sm:$0xff]  ;;  %v594_v25 = vld [vmem:[%s2246_s5 + $0x530] sm:$0xff]  ;;  %591 = vst [vmem:[%s2251_s6 + $0x288] sm:$0xff] %v590_v23 }
  0x5b   : > { %593 = vst [vmem:[%s2251_s6 + $0x290] sm:$0xff] %v592_v24  ;;  %595 = vst [vmem:[%s2251_s6 + $0x298] sm:$0xff] %v594_v25  ;;  %v596_v26 = vld [vmem:[%s2246_s5 + $0x540] sm:$0xff]  ;;  %v598_v27 = vld [vmem:[%s2246_s5 + $0x550] sm:$0xff] }
  0x5c   : > { %v600_v28 = vld [vmem:[%s2246_s5 + $0x560] sm:$0xff]  ;;  %597 = vst [vmem:[%s2251_s6 + $0x2a0] sm:$0xff] %v596_v26  ;;  %599 = vst [vmem:[%s2251_s6 + $0x2a8] sm:$0xff] %v598_v27  ;;  %v602_v29 = vld [vmem:[%s2246_s5 + $0x570] sm:$0xff] }
  0x5d   : > { %601 = vst [vmem:[%s2251_s6 + $0x2b0] sm:$0xff] %v600_v28  ;;  %v604_v30 = vld [vmem:[%s2246_s5 + $0x580] sm:$0xff]  ;;  %v606_v31 = vld [vmem:[%s2246_s5 + $0x590] sm:$0xff]  ;;  %603 = vst [vmem:[%s2251_s6 + $0x2b8] sm:$0xff] %v602_v29 }
  0x5e   : > { %605 = vst [vmem:[%s2251_s6 + $0x2c0] sm:$0xff] %v604_v30  ;;  %607 = vst [vmem:[%s2251_s6 + $0x2c8] sm:$0xff] %v606_v31  ;;  %v608_v32 = vld [vmem:[%s2246_s5 + $0x5a0] sm:$0xff]  ;;  %v610_v33 = vld [vmem:[%s2246_s5 + $0x5b0] sm:$0xff] }
  0x5f   : > { %v612_v34 = vld [vmem:[%s2246_s5 + $0x5c0] sm:$0xff]  ;;  %609 = vst [vmem:[%s2251_s6 + $0x2d0] sm:$0xff] %v608_v32  ;;  %611 = vst [vmem:[%s2251_s6 + $0x2d8] sm:$0xff] %v610_v33  ;;  %v614_v35 = vld [vmem:[%s2246_s5 + $0x5d0] sm:$0xff] }
  0x60   : > { %613 = vst [vmem:[%s2251_s6 + $0x2e0] sm:$0xff] %v612_v34  ;;  %v616_v36 = vld [vmem:[%s2246_s5 + $0x5e0] sm:$0xff]  ;;  %v618_v37 = vld [vmem:[%s2246_s5 + $0x5f0] sm:$0xff]  ;;  %615 = vst [vmem:[%s2251_s6 + $0x2e8] sm:$0xff] %v614_v35 }
  0x61   : > { %617 = vst [vmem:[%s2251_s6 + $0x2f0] sm:$0xff] %v616_v36  ;;  %619 = vst [vmem:[%s2251_s6 + $0x2f8] sm:$0xff] %v618_v37 }
  0x62 PF: > { %p1659_p0 = scmp.ge.s32.totalorder %s2110_s22, 1  ;;  %p632_p1 = scmp.lt.s32.totalorder %s2110_s22, 13 }
  0x64   : > { %p633_p2 = pnand %p1659_p0, %p632_p1 }
  0x65   : > { %s646_s0 = sand.u32 (!%p633_p2), 1, %s2078_s14   ;;  %s673_s23 = sand.u32 (!%p633_p2), 1, %s2070_s12  }
  0x66   : > { %636 = sbr.rel (%p633_p2) target bundleno = 480 (0x1e0), region = 85  ;;  %s2446_s7 = sshll.u32 (!%p633_p2), %s673_s23, 4 }
  0x67   : > { %s1782_s28 = smul.u32 (!%p633_p2), 768, %s646_s0  ;;  %s1661_s11 = sshll.u32 (!%p633_p2), %s2098_s19, 1 }
  0x68   : > { %p681_p3 = scmp.lt.s32.totalorder (!%p633_p2), %s1661_s11, 3  ;;  %s639_s29 = sand.u32 (!%p633_p2), 1, %s2086_s16  }
  0x69   : > { %s2449_s26 = scalar_lea.vmem (!%p633_p2), [#allocation4], %s1782_s28  ;;  %s1781_s4 = smul.u32 (!%p633_p2), 48, %s639_s29 }
  0x6a   : > { %s2563_s5 = scalar_lea.vmem (!%p633_p2), [#allocation5], %s2446_s7  ;;  %p1764_p4 = scmp.ne.s32.totalorder (!%p633_p2), %s2094_s18, 0 }
  0x6b   : > { %v1871_v38 = vld [vmem:[%s2449_s26 + $0x74] ss:$8 sps:$4 sm:$0xff]   ;;  %s2642_s11 = smov (!%p681_p3, %s1661_s11), 3  ;;  %v1875_v40 = vld [vmem:[%s2449_s26 + $0x70] ss:$8 sps:$4 sm:$0xff]   ;;  %s2506_s16 = scalar_lea.vmem [#allocation3], %s1781_s4 }
  0x6c   : > { %v1873_v39 = vld [vmem:[%s2449_s26 + $0x174] ss:$8 sps:$4 sm:$0xff]   ;;  %1299 = vmatprep.subr.bf16.mxu0 %v1871_v38  ;;  %v1876_v41 = vld [vmem:[%s2449_s26 + $0x170] ss:$8 sps:$4 sm:$0xff]   ;;  %s683_s27 = scalar_lea.vmem %s2618_s2, %s2642_s11  ;;  %v1877_v42 = vld [vmem:[%s2449_s26 + $0x64] ss:$8 sps:$4 sm:$0xff]  }
  0x6d   : > { %1342 = vmatprep.subr.bf16.mxu1 %v1873_v39  ;;  %1300 = vmatpush1.bf16.msra.mxu0 %v1875_v40  ;;  %v1879_v43 = vld [vmem:[%s2449_s26 + $0x164] ss:$8 sps:$4 sm:$0xff]   ;;  %v1881_v44 = vld [vmem:[%s2449_s26 + $0x60] ss:$8 sps:$4 sm:$0xff]   ;;  %v1883_v46 = vld [vmem:[%s2449_s26 + $0x54] ss:$8 sps:$4 sm:$0xff]  }
  0x6e   : > { %1343 = vmatpush1.bf16.msra.mxu1 %v1876_v41  ;;  %1301 = vmatprep.subr.bf16.mxu0 %v1877_v42  ;;  %v1882_v45 = vld [vmem:[%s2449_s26 + $0x160] ss:$8 sps:$4 sm:$0xff]   ;;  %v1885_v47 = vld [vmem:[%s2449_s26 + $0x154] ss:$8 sps:$4 sm:$0xff]   ;;  %v1887_v48 = vld [vmem:[%s2449_s26 + $0x50] ss:$8 sps:$4 sm:$0xff]  }
  0x6f   : > { %1344 = vmatprep.subr.bf16.mxu1 %v1879_v43  ;;  %v1888_v49 = vld [vmem:[%s2449_s26 + $0x150] ss:$8 sps:$4 sm:$0xff]   ;;  %v1889_v50 = vld [vmem:[%s2449_s26 + $0x44] ss:$8 sps:$4 sm:$0xff]   ;;  %v1893_v52 = vld [vmem:[%s2449_s26 + $0x40] ss:$8 sps:$4 sm:$0xff]  }
  0x70   : > { %v1891_v51 = vld [vmem:[%s2449_s26 + $0x144] ss:$8 sps:$4 sm:$0xff]   ;;  %v1894_v53 = vld [vmem:[%s2449_s26 + $0x140] ss:$8 sps:$4 sm:$0xff]   ;;  %v1895_v54 = vld [vmem:[%s2449_s26 + $0x34] ss:$8 sps:$4 sm:$0xff]  }
  0x71   : > { %1302 = vmatpush1.bf16.msra.mxu0 %v1881_v44  ;;  %v1897_v55 = vld [vmem:[%s2449_s26 + $0x134] ss:$8 sps:$4 sm:$0xff]   ;;  %v1899_v56 = vld [vmem:[%s2449_s26 + $0x30] ss:$8 sps:$4 sm:$0xff]   ;;  %v1901_v58 = vld [vmem:[%s2449_s26 + $0x24] ss:$8 sps:$4 sm:$0xff]  }
  0x72   : > { %1345 = vmatpush1.bf16.msra.mxu1 %v1882_v45  ;;  %1303 = vmatprep.subr.bf16.mxu0 %v1883_v46  ;;  %v1900_v57 = vld [vmem:[%s2449_s26 + $0x130] ss:$8 sps:$4 sm:$0xff]   ;;  %v1903_v59 = vld [vmem:[%s2449_s26 + $0x124] ss:$8 sps:$4 sm:$0xff]   ;;  %v1905_v60 = vld [vmem:[%s2449_s26 + $0x20] ss:$8 sps:$4 sm:$0xff]  }
  0x73   : > { %1346 = vmatprep.subr.bf16.mxu1 %v1885_v47  ;;  %v1906_v61 = vld [vmem:[%s2449_s26 + $0x120] ss:$8 sps:$4 sm:$0xff]   ;;  %v1907_v62 = vld [vmem:[%s2449_s26 + $0x14] ss:$8 sps:$4 sm:$0xff]   ;;  %v1911_v0 = vld [vmem:[%s2449_s26 + $0x10] ss:$8 sps:$4 sm:$0xff]  }
  0x74   : > { %v1909_v63 = vld [vmem:[%s2449_s26 + $0x114] ss:$8 sps:$4 sm:$0xff]   ;;  %v1912_v1 = vld [vmem:[%s2449_s26 + $0x110] ss:$8 sps:$4 sm:$0xff]   ;;  %v1913_v2 = vld [vmem:[%s2449_s26 + $0x4] ss:$8 sps:$4 sm:$0xff]  }
  0x75   : > { %1304 = vmatpush1.bf16.msra.mxu0 %v1887_v48  ;;  %v1915_v3 = vld [vmem:[%s2449_s26 + $0x104] ss:$8 sps:$4 sm:$0xff]   ;;  %v1917_v4 = vld [vmem:[%s2449_s26] ss:$8 sps:$4 sm:$0xff]   ;;  %v1919_v6 = vld [vmem:[%s2449_s26 + $0xf4] ss:$8 sps:$4 sm:$0xff]  }
  0x76   : > { %1347 = vmatpush1.bf16.msra.mxu1 %v1888_v49  ;;  %1305 = vmatprep.subr.bf16.mxu0 %v1889_v50  ;;  %v1918_v5 = vld [vmem:[%s2449_s26 + $0x100] ss:$8 sps:$4 sm:$0xff]   ;;  %v1921_v7 = vld [vmem:[%s2449_s26 + $0x1f4] ss:$8 sps:$4 sm:$0xff]   ;;  %v1923_v8 = vld [vmem:[%s2449_s26 + $0xf0] ss:$8 sps:$4 sm:$0xff]  }
  0x77   : > { %1348 = vmatprep.subr.bf16.mxu1 %v1891_v51  ;;  %v1924_v9 = vld [vmem:[%s2449_s26 + $0x1f0] ss:$8 sps:$4 sm:$0xff]   ;;  %v1925_v10 = vld [vmem:[%s2449_s26 + $0xe4] ss:$8 sps:$4 sm:$0xff]   ;;  %v1929_v12 = vld [vmem:[%s2449_s26 + $0xe0] ss:$8 sps:$4 sm:$0xff]  }
  0x78   : > { %v1927_v11 = vld [vmem:[%s2449_s26 + $0x1e4] ss:$8 sps:$4 sm:$0xff]   ;;  %v1930_v13 = vld [vmem:[%s2449_s26 + $0x1e0] ss:$8 sps:$4 sm:$0xff]   ;;  %v1931_v14 = vld [vmem:[%s2449_s26 + $0xd4] ss:$8 sps:$4 sm:$0xff]  }
  0x79   : > { %1306 = vmatpush1.bf16.msra.mxu0 %v1893_v52  ;;  %v1933_v15 = vld [vmem:[%s2449_s26 + $0x1d4] ss:$8 sps:$4 sm:$0xff]   ;;  %v1935_v16 = vld [vmem:[%s2449_s26 + $0xd0] ss:$8 sps:$4 sm:$0xff]   ;;  %v1937_v18 = vld [vmem:[%s2449_s26 + $0xc4] ss:$8 sps:$4 sm:$0xff]  }
  0x7a   : > { %1349 = vmatpush1.bf16.msra.mxu1 %v1894_v53  ;;  %1307 = vmatprep.subr.bf16.mxu0 %v1895_v54  ;;  %v1936_v17 = vld [vmem:[%s2449_s26 + $0x1d0] ss:$8 sps:$4 sm:$0xff]   ;;  %v1939_v19 = vld [vmem:[%s2449_s26 + $0x1c4] ss:$8 sps:$4 sm:$0xff]   ;;  %v1941_v20 = vld [vmem:[%s2449_s26 + $0xc0] ss:$8 sps:$4 sm:$0xff]  }
  0x7b   : > { %1350 = vmatprep.subr.bf16.mxu1 %v1897_v55  ;;  %v1942_v21 = vld [vmem:[%s2449_s26 + $0x1c0] ss:$8 sps:$4 sm:$0xff]   ;;  %v1943_v22 = vld [vmem:[%s2449_s26 + $0xb4] ss:$8 sps:$4 sm:$0xff]   ;;  %v1947_v26 = vld [vmem:[%s2449_s26 + $0xb0] ss:$8 sps:$4 sm:$0xff]  }
  0x7c   : > { %v1969_v23 = vld [vmem:[%s2506_s16 + $0x4] ss:$24 sps:$4 sm:$0xff]   ;;  %v1948_v27 = vld [vmem:[%s2449_s26 + $0x1b0] ss:$8 sps:$4 sm:$0xff]   ;;  %v1953_v30 = vld [vmem:[%s2449_s26 + $0xa0] ss:$8 sps:$4 sm:$0xff]  }
  0x7d   : > { %1308 = vmatpush1.bf16.msra.mxu0 %v1899_v56  ;;  %v1945_v24 = vld [vmem:[%s2449_s26 + $0x1b4] ss:$8 sps:$4 sm:$0xff]   ;;  %1331 = vmatprep.mubr.bf16.mxu0 %v1969_v23  ;;  %v1949_v28 = vld [vmem:[%s2449_s26 + $0xa4] ss:$8 sps:$4 sm:$0xff]   ;;  %v1954_v31 = vld [vmem:[%s2449_s26 + $0x1a0] ss:$8 sps:$4 sm:$0xff]  }
  0x7e   : > { %1351 = vmatpush1.bf16.msra.mxu1 %v1900_v57  ;;  %1309 = vmatprep.subr.bf16.mxu0 %v1901_v58  ;;  %v1972_v25 = vld [vmem:[%s2506_s16 + $0xc] ss:$24 sps:$4 sm:$0xff]   ;;  %v1959_v34 = vld [vmem:[%s2449_s26 + $0x90] ss:$8 sps:$4 sm:$0xff]   ;;  %v1965_v38 = vld [vmem:[%s2449_s26 + $0x80] ss:$8 sps:$4 sm:$0xff]  }
  0x7f   : > { %1352 = vmatprep.subr.bf16.mxu1 %v1903_v59  ;;  %1374 = vmatprep.mubr.bf16.mxu1 %v1972_v25  ;;  %v1951_v29 = vld [vmem:[%s2449_s26 + $0x1a4] ss:$8 sps:$4 sm:$0xff]   ;;  %v1955_v32 = vld [vmem:[%s2449_s26 + $0x94] ss:$8 sps:$4 sm:$0xff]   ;;  %v1960_v35 = vld [vmem:[%s2449_s26 + $0x190] ss:$8 sps:$4 sm:$0xff]  }
  0x80   : > { %v1957_v33 = vld [vmem:[%s2449_s26 + $0x194] ss:$8 sps:$4 sm:$0xff]   ;;  %v1961_v36 = vld [vmem:[%s2449_s26 + $0x84] ss:$8 sps:$4 sm:$0xff]   ;;  %v1966_v39 = vld [vmem:[%s2449_s26 + $0x180] ss:$8 sps:$4 sm:$0xff]  }
  0x81   : > { %1310 = vmatpush1.bf16.msra.mxu0 %v1905_v60  ;;  %v1963_v37 = vld [vmem:[%s2449_s26 + $0x184] ss:$8 sps:$4 sm:$0xff]   ;;  %v1975_v40 = vld [vmem:[%s2449_s26 + $0x274] ss:$8 sps:$4 sm:$0xff]   ;;  %v1967_v41 = vld [vmem:[%s2506_s16] ss:$24 sps:$4 sm:$0xff]  }
  0x82   : > { %1353 = vmatpush1.bf16.msra.mxu1 %v1906_v61  ;;  %1311 = vmatprep.subr.bf16.mxu0 %v1907_v62  ;;  %v1970_v42 = vld [vmem:[%s2506_s16 + $0x8] ss:$24 sps:$4 sm:$0xff]   ;;  %v1978_v44 = vld [vmem:[%s2449_s26 + $0x264] ss:$8 sps:$4 sm:$0xff]   ;;  %v1981_v47 = vld [vmem:[%s2449_s26 + $0x254] ss:$8 sps:$4 sm:$0xff]  }
  0x83   : > { %1354 = vmatprep.subr.bf16.mxu1 %v1909_v63  ;;  %v1973_v43 = vld [vmem:[%s2449_s26 + $0x270] ss:$8 sps:$4 sm:$0xff]   ;;  %v2023_v45 = vld [vmem:[%s2506_s16 + $0x14] ss:$24 sps:$4 sm:$0xff]   ;;  %v1976_v46 = vld [vmem:[%s2449_s26 + $0x260] ss:$8 sps:$4 sm:$0xff]  }
  0x84   : > { %v1979_v48 = vld [vmem:[%s2449_s26 + $0x250] ss:$8 sps:$4 sm:$0xff]   ;;  %v1984_v49 = vld [vmem:[%s2449_s26 + $0x244] ss:$8 sps:$4 sm:$0xff]   ;;  %v1982_v50 = vld [vmem:[%s2449_s26 + $0x240] ss:$8 sps:$4 sm:$0xff]  }
  0x85   : > { %1312 = vmatpush1.bf16.msra.mxu0 %v1911_v0  ;;  %v1987_v51 = vld [vmem:[%s2449_s26 + $0x234] ss:$8 sps:$4 sm:$0xff]   ;;  %v1985_v52 = vld [vmem:[%s2449_s26 + $0x230] ss:$8 sps:$4 sm:$0xff]   ;;  %v1990_v53 = vld [vmem:[%s2449_s26 + $0x224] ss:$8 sps:$4 sm:$0xff]  }
  0x86   : > { %1355 = vmatpush1.bf16.msra.mxu1 %v1912_v1  ;;  %1313 = vmatprep.subr.bf16.mxu0 %v1913_v2  ;;  %v1988_v54 = vld [vmem:[%s2449_s26 + $0x220] ss:$8 sps:$4 sm:$0xff]   ;;  %v1993_v55 = vld [vmem:[%s2449_s26 + $0x214] ss:$8 sps:$4 sm:$0xff]   ;;  %v1991_v56 = vld [vmem:[%s2449_s26 + $0x210] ss:$8 sps:$4 sm:$0xff]  }
  0x87   : > { %1356 = vmatprep.subr.bf16.mxu1 %v1915_v3  ;;  %v1996_v57 = vld [vmem:[%s2449_s26 + $0x204] ss:$8 sps:$4 sm:$0xff]   ;;  %v1994_v58 = vld [vmem:[%s2449_s26 + $0x200] ss:$8 sps:$4 sm:$0xff]   ;;  %v1999_v59 = vld [vmem:[%s2449_s26 + $0x2f4] ss:$8 sps:$4 sm:$0xff]  }
  0x88   : > { %v1997_v60 = vld [vmem:[%s2449_s26 + $0x2f0] ss:$8 sps:$4 sm:$0xff]   ;;  %v2002_v61 = vld [vmem:[%s2449_s26 + $0x2e4] ss:$8 sps:$4 sm:$0xff]   ;;  %v2000_v62 = vld [vmem:[%s2449_s26 + $0x2e0] ss:$8 sps:$4 sm:$0xff]  }
  0x89   : > { %1314 = vmatpush1.bf16.msra.mxu0 %v1917_v4  ;;  %v2005_v63 = vld [vmem:[%s2449_s26 + $0x2d4] ss:$8 sps:$4 sm:$0xff]   ;;  %v2003_v0 = vld [vmem:[%s2449_s26 + $0x2d0] ss:$8 sps:$4 sm:$0xff]   ;;  %v2008_v1 = vld [vmem:[%s2449_s26 + $0x2c4] ss:$8 sps:$4 sm:$0xff]  }
  0x8a   : > { %1357 = vmatpush1.bf16.msra.mxu1 %v1918_v5  ;;  %1315 = vmatprep.subr.bf16.mxu0 %v1919_v6  ;;  %v2006_v2 = vld [vmem:[%s2449_s26 + $0x2c0] ss:$8 sps:$4 sm:$0xff]   ;;  %v2011_v3 = vld [vmem:[%s2449_s26 + $0x2b4] ss:$8 sps:$4 sm:$0xff]   ;;  %v2009_v4 = vld [vmem:[%s2449_s26 + $0x2b0] ss:$8 sps:$4 sm:$0xff]  }
  0x8b   : > { %1358 = vmatprep.subr.bf16.mxu1 %v1921_v7  ;;  %v2014_v5 = vld [vmem:[%s2449_s26 + $0x2a4] ss:$8 sps:$4 sm:$0xff]   ;;  %v2012_v6 = vld [vmem:[%s2449_s26 + $0x2a0] ss:$8 sps:$4 sm:$0xff]   ;;  %v2017_v7 = vld [vmem:[%s2449_s26 + $0x294] ss:$8 sps:$4 sm:$0xff]  }
  0x8d   : > { %1316 = vmatpush2.bf16.msra.mxu0 %v1923_v8  ;;  %v2015_v8 = vld [vmem:[%s2449_s26 + $0x290] ss:$8 sps:$4 sm:$0xff]  }
  0x8e   : > { %1359 = vmatpush2.bf16.msra.mxu1 %v1924_v9  ;;  %1317 = vmatprep.subr.bf16.mxu0 %v1925_v10  ;;  %v2020_v9 = vld [vmem:[%s2449_s26 + $0x284] ss:$8 sps:$4 sm:$0xff]   ;;  %v2018_v10 = vld [vmem:[%s2449_s26 + $0x280] ss:$8 sps:$4 sm:$0xff]  }
  0x8f   : > { %1360 = vmatprep.subr.bf16.mxu1 %v1927_v11  ;;  %v2021_v11 = vld [vmem:[%s2506_s16 + $0x10] ss:$24 sps:$4 sm:$0xff]  }
  0x91   : > { %1318 = vmatpush2.bf16.msra.mxu0 %v1929_v12 }
  0x92   : > { %1361 = vmatpush2.bf16.msra.mxu1 %v1930_v13  ;;  %1319 = vmatprep.subr.bf16.mxu0 %v1931_v14 }
  0x93   : > { %1362 = vmatprep.subr.bf16.mxu1 %v1933_v15 }
  0x95   : > { %1320 = vmatpush2.bf16.msra.mxu0 %v1935_v16 }
  0x96   : > { %1363 = vmatpush2.bf16.msra.mxu1 %v1936_v17  ;;  %1321 = vmatprep.subr.bf16.mxu0 %v1937_v18 }
  0x97   : > { %1364 = vmatprep.subr.bf16.mxu1 %v1939_v19 }
  0x99   : > { %1322 = vmatpush2.bf16.msra.mxu0 %v1941_v20 }
  0x9a   : > { %1365 = vmatpush2.bf16.msra.mxu1 %v1942_v21  ;;  %1323 = vmatprep.subr.bf16.mxu0 %v1943_v22 }
  0x9b   : > { %1366 = vmatprep.subr.bf16.mxu1 %v1945_v24 }
  0x9d   : > { %1324 = vmatpush2.bf16.msra.mxu0 %v1947_v26 }
  0x9e   : > { %1367 = vmatpush2.bf16.msra.mxu1 %v1948_v27  ;;  %1325 = vmatprep.subr.bf16.mxu0 %v1949_v28 }
  0x9f   : > { %1368 = vmatprep.subr.bf16.mxu1 %v1951_v29 }
  0xa1   : > { %1326 = vmatpush2.bf16.msra.mxu0 %v1953_v30 }
  0xa2   : > { %1369 = vmatpush2.bf16.msra.mxu1 %v1954_v31  ;;  %1327 = vmatprep.subr.bf16.mxu0 %v1955_v32 }
  0xa3   : > { %1370 = vmatprep.subr.bf16.mxu1 %v1957_v33 }
  0xa5   : > { %1328 = vmatpush2.bf16.msra.mxu0 %v1959_v34 }
  0xa6   : > { %1371 = vmatpush2.bf16.msra.mxu1 %v1960_v35  ;;  %1329 = vmatprep.subr.bf16.mxu0 %v1961_v36 }
  0xa7   : > { %1372 = vmatprep.subr.bf16.mxu1 %v1963_v37 }
  0xa9   : > { %1330 = vmatpush2.bf16.msra.mxu0 %v1965_v38 }
  0xaa   : > { %1373 = vmatpush2.bf16.msra.mxu1 %v1966_v39  ;;  %1385 = vmatprep.subr.bf16.mxu0 %v1975_v40 }
  0xac   : > { %1332 = vmatmul.mubr.bf16.vlgmr.msra.gmra.mxu0 %v1967_v41 }
  0xad   : > { %1375 = vmatmul.mubr.bf16.vlgmr.msra.gmra.mxu1 %v1970_v42  ;;  %1386 = vmatpush1.bf16.msra.mxu0 %v1973_v43 }
  0xae   : > { %1387 = vmatprep.subr.bf16.mxu0 %v1978_v44  ;;  %1417 = vmatprep.mubr.bf16.mxu0 %v2023_v45 }
  0xb1   : > { %1388 = vmatpush1.bf16.msra.mxu0 %v1976_v46 }
  0xb2   : > { %1389 = vmatprep.subr.bf16.mxu0 %v1981_v47 }
  0xb5   : > { %1390 = vmatpush1.bf16.msra.mxu0 %v1979_v48 }
  0xb6   : > { %1391 = vmatprep.subr.bf16.mxu0 %v1984_v49 }
  0xb9   : > { %1392 = vmatpush1.bf16.msra.mxu0 %v1982_v50 }
  0xba   : > { %1393 = vmatprep.subr.bf16.mxu0 %v1987_v51 }
  0xbd   : > { %1394 = vmatpush1.bf16.msra.mxu0 %v1985_v52 }
  0xbe   : > { %1395 = vmatprep.subr.bf16.mxu0 %v1990_v53 }
  0xc1   : > { %1396 = vmatpush1.bf16.msra.mxu0 %v1988_v54 }
  0xc2   : > { %1397 = vmatprep.subr.bf16.mxu0 %v1993_v55 }
  0xc5   : > { %1398 = vmatpush1.bf16.msra.mxu0 %v1991_v56 }
  0xc6   : > { %1399 = vmatprep.subr.bf16.mxu0 %v1996_v57 }
  0xc9   : > { %1400 = vmatpush1.bf16.msra.mxu0 %v1994_v58 }
  0xca   : > { %1401 = vmatprep.subr.bf16.mxu0 %v1999_v59 }
  0xcd   : > { %1402 = vmatpush2.bf16.msra.mxu0 %v1997_v60 }
  0xce   : > { %1403 = vmatprep.subr.bf16.mxu0 %v2002_v61 }
  0xd1   : > { %1404 = vmatpush2.bf16.msra.mxu0 %v2000_v62 }
  0xd2   : > { %1405 = vmatprep.subr.bf16.mxu0 %v2005_v63 }
  0xd5   : > { %1406 = vmatpush2.bf16.msra.mxu0 %v2003_v0 }
  0xd6   : > { %1407 = vmatprep.subr.bf16.mxu0 %v2008_v1 }
  0xd9   : > { %1408 = vmatpush2.bf16.msra.mxu0 %v2006_v2 }
  0xda   : > { %1409 = vmatprep.subr.bf16.mxu0 %v2011_v3 }
  0xdd   : > { %1410 = vmatpush2.bf16.msra.mxu0 %v2009_v4 }
  0xde   : > { %1411 = vmatprep.subr.bf16.mxu0 %v2014_v5 }
  0xe1   : > { %1412 = vmatpush2.bf16.msra.mxu0 %v2012_v6 }
  0xe2   : > { %1413 = vmatprep.subr.bf16.mxu0 %v2017_v7 }
  0xe5   : > { %1414 = vmatpush2.bf16.msra.mxu0 %v2015_v8 }
  0xe6   : > { %1415 = vmatprep.subr.bf16.mxu0 %v2020_v9 }
  0xe9   : > { %1416 = vmatpush2.bf16.msra.mxu0 %v2018_v10 }
  0xec   : > { %1418 = vmatmul.mubr.bf16.vlgmr.msra.gmra.mxu0 %v2021_v11 }
 0x16c   : > { %v1333_v12 = vpop.f32.mrf.mxu0 }
 0x16d   : > { %v1376_v13 = vpop.f32.mrf.mxu1 }
 0x16e   : > { %v1335_v14 = vpop.f32.mrf.mxu0  ;;  %v1377_v19 = vadd.f32 %v1376_v13, %v1333_v12 }
 0x16f   : > { %v1378_v15 = vpop.f32.mrf.mxu1 }
 0x170   : > { %v1337_v16 = vpop.f32.mrf.mxu0  ;;  %v1379_v21 = vadd.f32 %v1378_v15, %v1335_v14 }
 0x171   : > { %v1380_v17 = vpop.f32.mrf.mxu1 }
 0x172   : > { %v1339_v18 = vpop.f32.mrf.mxu0  ;;  %v1381_v25 = vadd.f32 %v1380_v17, %v1337_v16 }
 0x173   : > { %v1382_v23 = vpop.f32.mrf.mxu1 }
 0x174   : > { %v1383_v28 = vadd.f32 %v1382_v23, %v1339_v18 }
 0x1ac   : > { %v1419_v20 = vpop.f32.mrf.mxu0 }
 0x1ad   : > { %v1420_v22 = vadd.f32 %v1419_v20, %v1377_v19 }
 0x1ae   : > { %v1421_v24 = vpop.f32.mrf.mxu0 }
 0x1af   : > { %v1422_v26 = vadd.f32 %v1421_v24, %v1379_v21  ;;  %1431 = sbr.rel (%p1764_p4) target bundleno = 438 (0x1b6), region = 97 }
 0x1b0   : > { %v1423_v27 = vpop.f32.mrf.mxu0 }
 0x1b1   : > { %v1424_v29 = vadd.f32 %v1423_v27, %v1381_v25 }
 0x1b2   : > { %v1425_v30 = vpop.f32.mrf.mxu0 }
 0x1b3   : > { %v1426_v31 = vadd.f32 %v1425_v30, %v1383_v28 }
 0x1b4   : > { %1432 = vst [vmem:[#allocation2 + $0x10] sm:$0xff] %v1420_v22  ;;  %1433 = vst [vmem:[#allocation2] sm:$0xff] %v1422_v26 }
 0x1b5   : > { %1434 = vst [vmem:[#allocation2 + $0x18] sm:$0xff] %v1424_v29  ;;  %1435 = vst [vmem:[#allocation2 + $0x8] sm:$0xff] %v1426_v31 }
 0x1b6 PF: > { %p1765_p5 = scmp.le.s32.totalorder %s2094_s18, 0 }
 0x1b8   : > { %1439 = sbr.rel (%p1765_p5) target bundleno = 450 (0x1c2), region = 101 }
 0x1bd   : > { %v1440_v32 = vld [vmem:[#allocation2 + $0x10] sm:$0xff]  ;;  %v1441_v33 = vld [vmem:[#allocation2] sm:$0xff]  ;;  %v1442_v34 = vld [vmem:[#allocation2 + $0x18] sm:$0xff] }
 0x1be   : > { %v1444_v35 = vadd.f32 %v1440_v32, %v1420_v22  ;;  %v1445_v36 = vadd.f32 %v1441_v33, %v1422_v26  ;;  %v1446_v37 = vadd.f32 %v1442_v34, %v1424_v29  ;;  %v1443_v38 = vld [vmem:[#allocation2 + $0x8] sm:$0xff] }
 0x1bf   : > { %v1447_v39 = vadd.f32 %v1443_v38, %v1426_v31 }
 0x1c0   : > { %1448 = vst [vmem:[#allocation2 + $0x10] sm:$0xff] %v1444_v35  ;;  %1449 = vst [vmem:[#allocation2] sm:$0xff] %v1445_v36 }
 0x1c1   : > { %1450 = vst [vmem:[#allocation2 + $0x18] sm:$0xff] %v1446_v37  ;;  %1451 = vst [vmem:[#allocation2 + $0x8] sm:$0xff] %v1447_v39 }
 0x1c2 PF: > { %p1766_p6 = scmp.ne.s32.totalorder %s2094_s18, 5 }
 0x1c4   : > { %1455 = sbr.rel (%p1766_p6) target bundleno = 472 (0x1d8), region = 105 }
 0x1c9   : > { %v1462_v40 = vlaneseq  ;;  %v1460_v42 = vld [vmem:[%s683_s27] sm:$0x3]  ;;  %v1456_v43 = vld [vmem:[#allocation2 + $0x10] sm:$0xff]  ;;  %v1458_v47 = vld [vmem:[#allocation2 + $0x18] sm:$0xff] }
 0x1ca   : > { %v1457_v46 = vld [vmem:[#allocation2] sm:$0xff]  ;;  %v1459_v48 = vld [vmem:[#allocation2 + $0x8] sm:$0xff] }
 0x1cb   : > { %v1463_v41 = vshrl.u32 %v1462_v40, 7 }
 0x1cd   : > { %v1464_v44 = vsub.s32 0, %v1463_v41  ;;  %v1468_v45 = vsub.s32 1, %v1463_v41 }
 0x1cf   : > { %v1465_v49 = vrot.slane %v1460_v42, %v1464_v44  ;;  %v1469_v50 = vrot.slane %v1460_v42, %v1468_v45 }
 0x1d1   : > { %v1472_v51 = vadd.f32 %v1465_v49, %v1456_v43  ;;  %v1473_v52 = vadd.f32 %v1469_v50, %v1457_v46  ;;  %v1474_v53 = vadd.f32 %v1465_v49, %v1458_v47  ;;  %v1475_v54 = vadd.f32 %v1469_v50, %v1459_v48 }
 0x1d3   : > { %v1476_v55 = vmax.f32 %v1472_v51, 0.0  ;;  %v1477_v56 = vmax.f32 %v1473_v52, 0.0  ;;  %v1478_v57 = vmax.f32 %v1474_v53, 0.0  ;;  %v1479_v58 = vmax.f32 %v1475_v54, 0.0 }
 0x1d5   : > { %v1776_v59 = vpack.c.bf16 %v1477_v56, %v1476_v55  ;;  %v1777_v60 = vpack.c.bf16 %v1479_v58, %v1478_v57 }
 0x1d7   : > { %1492 = vst [vmem:[%s2563_s5] sm:$0xff] %v1776_v59  ;;  %1493 = vst [vmem:[%s2563_s5 + $0x8] sm:$0xff] %v1777_v60 }
 0x1d8 PF: > { %1500 = sbr.rel (!%p2226_p12) target bundleno = 480 (0x1e0), region = 109  ;;  %s1778_s18 = sshll.u32 (%p2226_p12), %s2098_s19, 3 }
 0x1d9   : > { %s1506_s7 = scalar_lea.vmem (%p2226_p12), %s2619_s3, %s1778_s18 }
 0x1de   : > { %v1537_v61 = vld [vmem:[%s2563_s5] sm:$0xff]  ;;  %v1539_v62 = vld [vmem:[%s2563_s5 + $0x8] sm:$0xff] }
 0x1df   : > { %1538 = vst [vmem:[%s1506_s7] sm:$0xff] %v1537_v61  ;;  %1540 = vst [vmem:[%s1506_s7 + $0x10] sm:$0xff] %v1539_v62 }
 0x1e0 PF: > { %s13_s22 = sadd.s32 1, %s2110_s22   ;;  %s2625_s12 = smov %s2074_s13 }
 0x1e1   : > { %p10_p7 = scmp.ge.s32.totalorder %s13_s22, 14   ;;  %s2626_s13 = smov %s2224_s9 }
 0x1e2   : > { %s2627_s14 = smov %s2082_s15  ;;  %s2628_s15 = smov %s2221_s8 }
 0x1e3   : > { %s2629_s16 = smov %s2090_s17  ;;  %s2630_s17 = smov %s2207_s30 }
 0x1e4   : > { %s2631_s18 = smov %s2102_s20  ;;  %s2632_s19 = smov %s2106_s21 }
 0x1e5   : > { %s2633_s20 = smov %s2636_s24  ;;  %s2634_s21 = smov %s2640_s25 }
 0x1e6   :  { %12 = sbr.rel (!%p10_p7) target bundleno = 8 (0x8), region = 189 }

// kernel: resnet_forward.41
= control target key start
LH: loop header
LB: loop body
LE: loop exit
PB: predicated region body
PF: predicated region fallthrough
CT: control target
= control target key end

     0   :  { %v85_v41 = vlaneseq  ;;  %vm748_vm0 = vcmask 1041409   ;;  %vm751_vm1 = vcmask 1042434   ;;  %vm754_vm2 = vcmask 1043459   ;;  %s3317_s1 = inlined_call_operand.vmem [shape: bf16[512,512], index: 1, kind: input, shape index: {}]   ;;  %s3318_s0 = inlined_call_operand.vmem [shape: bf16[16,1,512], index: 0, kind: input, shape index: {}]   ;;  %s3319_s3 = inlined_call_operand.vmem [shape: bf16[512,128], index: 3, kind: input, shape index: {}]   ;;  %s3320_s2 = inlined_call_operand.vmem [shape: f32[1,512], index: 2, kind: input, shape index: {}]   ;;  %s3321_s4 = inlined_call_operand.vmem [shape: f32[1,128], index: 4, kind: input, shape index: {}]   ;;  %s3322_s5 = inlined_call_operand.vmem [shape: f32[16,128], index: 5, kind: output, shape index: {}]  }
   0x1   :  { %v2293_v0 = vld [vmem:[%s3317_s1 + $0xe4] ss:$16 sps:$4 sm:$0xff]   ;;  %v2297_v2 = vld [vmem:[%s3317_s1 + $0xe0] ss:$16 sps:$4 sm:$0xff]   ;;  %v2242_v54 = vld [vmem:[%s3318_s0 + $0x8] sm:$0xff]   ;;  %vm757_vm3 = vcmask 1044484  }
   0x2   :  { %v2295_v1 = vld [vmem:[%s3317_s1 + $0x2e4] ss:$16 sps:$4 sm:$0xff]   ;;  %1514 = vmatprep.subr.bf16.mxu0 %v2293_v0  ;;  %v2298_v3 = vld [vmem:[%s3317_s1 + $0x2e0] ss:$16 sps:$4 sm:$0xff]   ;;  %v2682_v46 = vshrl.u32 %v85_v41, 7  ;;  %v2244_v56 = vld [vmem:[%s3318_s0 + $0x18] sm:$0xff]   ;;  %v2715_v58 = vunpack.c.l.bf16 %v2242_v54  ;;  %v2717_v59 = vunpack.c.h.bf16 %v2242_v54 }
   0x3   :  { %1557 = vmatprep.subr.bf16.mxu1 %v2295_v1  ;;  %v2299_v4 = vld [vmem:[%s3317_s1 + $0xc4] ss:$16 sps:$4 sm:$0xff]   ;;  %1515 = vmatpush1.bf16.msra.mxu0 %v2297_v2  ;;  %v2303_v6 = vld [vmem:[%s3317_s1 + $0xc0] ss:$16 sps:$4 sm:$0xff]   ;;  %v2246_v61 = vld [vmem:[%s3318_s0 + $0x28] sm:$0xff]   ;;  %v2735_v2 = vunpack.c.l.bf16 %v2244_v56  ;;  %vm760_vm4 = vcmask 1045509  }
   0x4   :  { %1558 = vmatpush1.bf16.msra.mxu1 %v2298_v3  ;;  %v2301_v5 = vld [vmem:[%s3317_s1 + $0x2c4] ss:$16 sps:$4 sm:$0xff]   ;;  %1516 = vmatprep.subr.bf16.mxu0 %v2299_v4  ;;  %v2304_v7 = vld [vmem:[%s3317_s1 + $0x2c0] ss:$16 sps:$4 sm:$0xff]   ;;  %v2729_v63 = vsub.s32 2, %v2682_v46  ;;  %v2737_v3 = vunpack.c.h.bf16 %v2244_v56  ;;  %v2248_v4 = vld [vmem:[%s3318_s0 + $0x38] sm:$0xff]  }
   0x5   :  { %1559 = vmatprep.subr.bf16.mxu1 %v2301_v5  ;;  %v2305_v8 = vld [vmem:[%s3317_s1 + $0xa4] ss:$16 sps:$4 sm:$0xff]   ;;  %v2309_v10 = vld [vmem:[%s3317_s1 + $0xa0] ss:$16 sps:$4 sm:$0xff]   ;;  %vm763_vm5 = vcmask 1046534   ;;  %vm766_vm6 = vcmask 1047559  }
   0x6   :  { %v2307_v9 = vld [vmem:[%s3317_s1 + $0x2a4] ss:$16 sps:$4 sm:$0xff]   ;;  %v2310_v11 = vld [vmem:[%s3317_s1 + $0x2a0] ss:$16 sps:$4 sm:$0xff]  }
   0x7   :  { %1517 = vmatpush1.bf16.msra.mxu0 %v2303_v6  ;;  %v2311_v12 = vld [vmem:[%s3317_s1 + $0x84] ss:$16 sps:$4 sm:$0xff]   ;;  %v2315_v14 = vld [vmem:[%s3317_s1 + $0x80] ss:$16 sps:$4 sm:$0xff]  }
   0x8   :  { %1560 = vmatpush1.bf16.msra.mxu1 %v2304_v7  ;;  %1518 = vmatprep.subr.bf16.mxu0 %v2305_v8  ;;  %v2313_v13 = vld [vmem:[%s3317_s1 + $0x284] ss:$16 sps:$4 sm:$0xff]   ;;  %v2316_v15 = vld [vmem:[%s3317_s1 + $0x280] ss:$16 sps:$4 sm:$0xff]   ;;  %v2746_v7 = vunpack.c.l.bf16 %v2246_v61  ;;  %v2748_v8 = vunpack.c.h.bf16 %v2246_v61 }
   0x9   :  { %1561 = vmatprep.subr.bf16.mxu1 %v2307_v9  ;;  %v2317_v16 = vld [vmem:[%s3317_s1 + $0x64] ss:$16 sps:$4 sm:$0xff]   ;;  %v2321_v18 = vld [vmem:[%s3317_s1 + $0x60] ss:$16 sps:$4 sm:$0xff]  }
   0xa   :  { %v2319_v17 = vld [vmem:[%s3317_s1 + $0x264] ss:$16 sps:$4 sm:$0xff]   ;;  %v2322_v19 = vld [vmem:[%s3317_s1 + $0x260] ss:$16 sps:$4 sm:$0xff]  }
   0xb   :  { %1519 = vmatpush1.bf16.msra.mxu0 %v2309_v10  ;;  %v2323_v20 = vld [vmem:[%s3317_s1 + $0x44] ss:$16 sps:$4 sm:$0xff]   ;;  %v2327_v22 = vld [vmem:[%s3317_s1 + $0x40] ss:$16 sps:$4 sm:$0xff]  }
   0xc   :  { %1562 = vmatpush1.bf16.msra.mxu1 %v2310_v11  ;;  %1520 = vmatprep.subr.bf16.mxu0 %v2311_v12  ;;  %v2325_v21 = vld [vmem:[%s3317_s1 + $0x244] ss:$16 sps:$4 sm:$0xff]   ;;  %v2328_v23 = vld [vmem:[%s3317_s1 + $0x240] ss:$16 sps:$4 sm:$0xff]  }
   0xd   :  { %1563 = vmatprep.subr.bf16.mxu1 %v2313_v13  ;;  %v2329_v24 = vld [vmem:[%s3317_s1 + $0x24] ss:$16 sps:$4 sm:$0xff]   ;;  %v2333_v26 = vld [vmem:[%s3317_s1 + $0x20] ss:$16 sps:$4 sm:$0xff]   ;;  %v2760_v13 = vunpack.c.l.bf16 %v2248_v4 }
   0xe   :  { %v2331_v25 = vld [vmem:[%s3317_s1 + $0x224] ss:$16 sps:$4 sm:$0xff]   ;;  %v2334_v27 = vld [vmem:[%s3317_s1 + $0x220] ss:$16 sps:$4 sm:$0xff]  }
   0xf   :  { %1521 = vmatpush1.bf16.msra.mxu0 %v2315_v14  ;;  %v2335_v28 = vld [vmem:[%s3317_s1 + $0x4] ss:$16 sps:$4 sm:$0xff]   ;;  %v2339_v30 = vld [vmem:[%s3317_s1] ss:$16 sps:$4 sm:$0xff]  }
  0x10   :  { %1564 = vmatpush1.bf16.msra.mxu1 %v2316_v15  ;;  %1522 = vmatprep.subr.bf16.mxu0 %v2317_v16  ;;  %v2337_v29 = vld [vmem:[%s3317_s1 + $0x204] ss:$16 sps:$4 sm:$0xff]   ;;  %v2340_v31 = vld [vmem:[%s3317_s1 + $0x200] ss:$16 sps:$4 sm:$0xff]   ;;  %v2769_v16 = vunpack.c.h.bf16 %v2248_v4 }
  0x11   :  { %1565 = vmatprep.subr.bf16.mxu1 %v2319_v17  ;;  %v2341_v32 = vld [vmem:[%s3317_s1 + $0x1e4] ss:$16 sps:$4 sm:$0xff]   ;;  %v2345_v34 = vld [vmem:[%s3317_s1 + $0x1e0] ss:$16 sps:$4 sm:$0xff]  }
  0x12   :  { %v2343_v33 = vld [vmem:[%s3317_s1 + $0x3e4] ss:$16 sps:$4 sm:$0xff]   ;;  %v2346_v35 = vld [vmem:[%s3317_s1 + $0x3e0] ss:$16 sps:$4 sm:$0xff]  }
  0x13   :  { %1523 = vmatpush1.bf16.msra.mxu0 %v2321_v18  ;;  %v2347_v36 = vld [vmem:[%s3317_s1 + $0x1c4] ss:$16 sps:$4 sm:$0xff]   ;;  %v2351_v38 = vld [vmem:[%s3317_s1 + $0x1c0] ss:$16 sps:$4 sm:$0xff]   ;;  %v124_v18 = vrot.slane %v2715_v58, %v2729_v63 }
  0x14   :  { %1566 = vmatpush1.bf16.msra.mxu1 %v2322_v19  ;;  %1524 = vmatprep.subr.bf16.mxu0 %v2323_v20  ;;  %v2349_v37 = vld [vmem:[%s3317_s1 + $0x3c4] ss:$16 sps:$4 sm:$0xff]   ;;  %v2352_v39 = vld [vmem:[%s3317_s1 + $0x3c0] ss:$16 sps:$4 sm:$0xff]   ;;  %v140_v19 = vrot.slane %v2717_v59, %v2729_v63 }
  0x15   :  { %1567 = vmatprep.subr.bf16.mxu1 %v2325_v21  ;;  %v2353_v40 = vld [vmem:[%s3317_s1 + $0x1a4] ss:$16 sps:$4 sm:$0xff]   ;;  %v2357_v43 = vld [vmem:[%s3317_s1 + $0x1a0] ss:$16 sps:$4 sm:$0xff]  }
  0x16   :  { %v2355_v42 = vld [vmem:[%s3317_s1 + $0x3a4] ss:$16 sps:$4 sm:$0xff]   ;;  %v2358_v44 = vld [vmem:[%s3317_s1 + $0x3a0] ss:$16 sps:$4 sm:$0xff]   ;;  %v418_v41 = vpack.c.bf16 %v140_v19, %v140_v19 }
  0x17   :  { %1525 = vmatpush1.bf16.msra.mxu0 %v2327_v22  ;;  %v2359_v45 = vld [vmem:[%s3317_s1 + $0x184] ss:$16 sps:$4 sm:$0xff]   ;;  %v2363_v48 = vld [vmem:[%s3317_s1 + $0x180] ss:$16 sps:$4 sm:$0xff]  }
  0x18   :  { %1568 = vmatpush1.bf16.msra.mxu1 %v2328_v23  ;;  %1526 = vmatprep.subr.bf16.mxu0 %v2329_v24  ;;  %v2361_v47 = vld [vmem:[%s3317_s1 + $0x384] ss:$16 sps:$4 sm:$0xff]   ;;  %v2364_v49 = vld [vmem:[%s3317_s1 + $0x380] ss:$16 sps:$4 sm:$0xff]   ;;  %v188_v23 = vrot.slane %v2735_v2, %v2729_v63  ;;  %v2787_v24 = vsub.s32 6, %v2682_v46 }
  0x19   :  { %1569 = vmatprep.subr.bf16.mxu1 %v2331_v25  ;;  %v2211_v50 = vld [vmem:[%s3318_s0] sm:$0xff]   ;;  %v2243_v55 = vld [vmem:[%s3318_s0 + $0x10] sm:$0xff]   ;;  %v204_v25 = vrot.slane %v2737_v3, %v2729_v63 }
  0x1a   :  { %v2365_v51 = vld [vmem:[%s3317_s1 + $0x164] ss:$16 sps:$4 sm:$0xff]   ;;  %v2702_v53 = vunpack.c.l.bf16 %v2211_v50  ;;  %v2713_v57 = vunpack.c.h.bf16 %v2211_v50  ;;  %v2731_v0 = vunpack.c.l.bf16 %v2243_v55  ;;  %v2733_v1 = vunpack.c.h.bf16 %v2243_v55  ;;  %v2369_v9 = vld [vmem:[%s3317_s1 + $0x160] ss:$16 sps:$4 sm:$0xff]  }
  0x1b   :  { %1527 = vmatpush1.bf16.msra.mxu0 %v2333_v26  ;;  %v2367_v52 = vld [vmem:[%s3317_s1 + $0x364] ss:$16 sps:$4 sm:$0xff]   ;;  %v2370_v10 = vld [vmem:[%s3317_s1 + $0x360] ss:$16 sps:$4 sm:$0xff]  }
  0x1c   :  { %1570 = vmatpush1.bf16.msra.mxu1 %v2334_v27  ;;  %1528 = vmatprep.subr.bf16.mxu0 %v2335_v28  ;;  %v2245_v60 = vld [vmem:[%s3318_s0 + $0x20] sm:$0xff]   ;;  %v2247_v62 = vld [vmem:[%s3318_s0 + $0x30] sm:$0xff]   ;;  %v2764_v14 = vrot.slane %v2702_v53, %v2729_v63  ;;  %v108_v17 = vrot.slane %v2713_v57, %v2729_v63  ;;  %v156_v21 = vrot.slane %v2731_v0, %v2729_v63 }
  0x1d   :  { %1571 = vmatprep.subr.bf16.mxu1 %v2337_v29  ;;  %v2742_v5 = vunpack.c.l.bf16 %v2245_v60  ;;  %v2744_v6 = vunpack.c.h.bf16 %v2245_v60  ;;  %v2756_v11 = vunpack.c.l.bf16 %v2247_v62  ;;  %v2758_v12 = vunpack.c.h.bf16 %v2247_v62  ;;  %v2371_v15 = vld [vmem:[%s3317_s1 + $0x144] ss:$16 sps:$4 sm:$0xff]   ;;  %v2375_v29 = vld [vmem:[%s3317_s1 + $0x140] ss:$16 sps:$4 sm:$0xff]  }
  0x1e   :  { %v2373_v20 = vld [vmem:[%s3317_s1 + $0x344] ss:$16 sps:$4 sm:$0xff]   ;;  %v172_v22 = vrot.slane %v2733_v1, %v2729_v63  ;;  %v252_v28 = vrot.slane %v2746_v7, %v2729_v63  ;;  %v2381_v50 = vld [vmem:[%s3317_s1 + $0x120] ss:$16 sps:$4 sm:$0xff]  }
  0x1f   :  { %1529 = vmatpush1.bf16.msra.mxu0 %v2339_v30  ;;  %v220_v26 = vrot.slane %v2742_v5, %v2729_v63  ;;  %v236_v27 = vrot.slane %v2744_v6, %v2729_v63  ;;  %v2376_v30 = vld [vmem:[%s3317_s1 + $0x340] ss:$16 sps:$4 sm:$0xff]   ;;  %v2383_v60 = vld [vmem:[%s3317_s1 + $0x104] ss:$16 sps:$4 sm:$0xff]  }
  0x20   :  { %1572 = vmatpush1.bf16.msra.mxu1 %v2340_v31  ;;  %1530 = vmatprep.subr.bf16.mxu0 %v2341_v32  ;;  %v268_v31 = vrot.slane %v2748_v8, %v2729_v63  ;;  %v284_v32 = vrot.slane %v2756_v11, %v2729_v63  ;;  %v446_v54 = vpack.c.bf16 %v252_v28, %v252_v28 }
  0x21   :  { %1573 = vmatprep.subr.bf16.mxu1 %v2343_v33  ;;  %v300_v33 = vrot.slane %v2758_v12, %v2729_v63 }
  0x22   :  { %v450_v55 = vpack.c.bf16 %v268_v31, %v268_v31  ;;  %v454_v56 = vpack.c.bf16 %v284_v32, %v284_v32 }
  0x23   :  { %1531 = vmatpush2.bf16.msra.mxu0 %v2345_v34  ;;  %v316_v34 = vrot.slane %v2760_v13, %v2729_v63  ;;  %v458_v61 = vpack.c.bf16 %v300_v33, %v300_v33 }
  0x24   :  { %1574 = vmatpush2.bf16.msra.mxu1 %v2346_v35  ;;  %1532 = vmatprep.subr.bf16.mxu0 %v2347_v36  ;;  %v2377_v35 = vld [vmem:[%s3317_s1 + $0x124] ss:$16 sps:$4 sm:$0xff]   ;;  %v332_v36 = vrot.slane %v2769_v16, %v2729_v63  ;;  %v728_v28 = vunpack.c.l.b16 %v450_v55 }
  0x25   :  { %1575 = vmatprep.subr.bf16.mxu1 %v2349_v37  ;;  %v410_v37 = vpack.c.bf16 %v108_v17, %v108_v17  ;;  %v462_v62 = vpack.c.bf16 %v316_v34, %v316_v34  ;;  %v2391_v34 = vld [vmem:[%s3317_s1 + $0xec] ss:$16 sps:$4 sm:$0xff]  }
  0x26   :  { %v466_v4 = vpack.c.bf16 %v332_v36, %v332_v36 }
  0x27   :  { %1533 = vmatpush2.bf16.msra.mxu0 %v2351_v38  ;;  %v414_v38 = vpack.c.bf16 %v124_v18, %v124_v18  ;;  %v740_v31 = vunpack.c.l.b16 %v462_v62  ;;  %v100_v62 = vrot.slane %v2702_v53, %v2787_v24 }
  0x28   :  { %1576 = vmatpush2.bf16.msra.mxu1 %v2352_v39  ;;  %1534 = vmatprep.subr.bf16.mxu0 %v2353_v40  ;;  %v2817_v39 = vsub.s32 0, %v2682_v46  ;;  %v2379_v40 = vld [vmem:[%s3317_s1 + $0x324] ss:$16 sps:$4 sm:$0xff]  }
  0x29   :  { %1577 = vmatprep.subr.bf16.mxu1 %v2355_v42  ;;  %v422_v42 = vpack.c.bf16 %v156_v21, %v156_v21  ;;  %v834_v55 = vrot.slane %v740_v31, 2  ;;  %v276_v31 = vrot.slane %v2748_v8, %v2787_v24 }
  0x2b   :  { %1535 = vmatpush2.bf16.msra.mxu0 %v2357_v43  ;;  %v426_v43 = vpack.c.bf16 %v172_v22, %v172_v22  ;;  %v700_v17 = vunpack.c.l.b16 %v422_v42 }
  0x2c   :  { %1578 = vmatpush2.bf16.msra.mxu1 %v2358_v44  ;;  %1536 = vmatprep.subr.bf16.mxu0 %v2359_v45  ;;  %v2823_v44 = vsub.s32 4, %v2682_v46  ;;  %v406_v45 = vpack.c.bf16 %v2764_v14, %v2764_v14  ;;  %v692_v14 = vunpack.c.l.b16 %v414_v38 }
  0x2d   :  { %1579 = vmatprep.subr.bf16.mxu1 %v2361_v47  ;;  %v430_v47 = vpack.c.bf16 %v188_v23, %v188_v23  ;;  %v704_v18 = vunpack.c.l.b16 %v426_v43  ;;  %v2387_v23 = vld [vmem:[%s3317_s1 + $0x100] ss:$16 sps:$4 sm:$0xff]  }
  0x2e   :  { %v684_v19 = vunpack.c.l.b16 %v406_v45  ;;  %v770_v33 = vrot.slane %v692_v14, 6  ;;  %v132_v14 = vrot.slane %v2715_v58, %v2787_v24 }
  0x2f   :  { %1537 = vmatpush2.bf16.msra.mxu0 %v2363_v48  ;;  %v434_v48 = vpack.c.bf16 %v204_v25, %v204_v25  ;;  %v2388_v25 = vld [vmem:[%s3317_s1 + $0x300] ss:$16 sps:$4 sm:$0xff]   ;;  %v776_v38 = vrot.slane %v704_v18, 3  ;;  %v148_v18 = vrot.slane %v2717_v59, %v2787_v24 }
  0x30   :  { %1580 = vmatpush2.bf16.msra.mxu1 %v2364_v49  ;;  %1538 = vmatprep.subr.bf16.mxu0 %v2365_v51  ;;  %v442_v49 = vpack.c.bf16 %v236_v27, %v236_v27  ;;  %v2382_v51 = vld [vmem:[%s3317_s1 + $0x320] ss:$16 sps:$4 sm:$0xff]   ;;  %v724_v27 = vunpack.c.l.b16 %v446_v54 }
  0x31   :  { %1581 = vmatprep.subr.bf16.mxu1 %v2367_v52  ;;  %v438_v52 = vpack.c.bf16 %v220_v26, %v220_v26  ;;  %v712_v21 = vunpack.c.l.b16 %v434_v48 }
  0x32   :  { %v720_v22 = vunpack.c.l.b16 %v442_v49  ;;  %v826_v45 = vrot.slane %v724_v27, 6  ;;  %v828_v49 = vrot.slane %v728_v28, 5  ;;  %v228_v27 = vrot.slane %v2742_v5, %v2787_v24 }
  0x33   :  { %1539 = vmatpush2.bf16.msra.mxu0 %v2369_v9  ;;  %v688_v9 = vunpack.c.l.b16 %v410_v37  ;;  %v716_v26 = vunpack.c.l.b16 %v438_v52  ;;  %v774_v37 = vrot.slane %v700_v17, 4  ;;  %v780_v48 = vrot.slane %v712_v21, 1 }
  0x34   :  { %1582 = vmatpush2.bf16.msra.mxu1 %v2370_v10  ;;  %1540 = vmatprep.subr.bf16.mxu0 %v2371_v15  ;;  %v2385_v10 = vld [vmem:[%s3317_s1 + $0x304] ss:$16 sps:$4 sm:$0xff]   ;;  %v696_v15 = vunpack.c.l.b16 %v418_v41  ;;  %v824_v43 = vrot.slane %v720_v22, 7  ;;  %v180_v22 = vrot.slane %v2733_v1, %v2787_v24  ;;  %v244_v28 = vrot.slane %v2744_v6, %v2787_v24 }
  0x35   :  { %1583 = vmatprep.subr.bf16.mxu1 %v2373_v20  ;;  %v708_v20 = vunpack.c.l.b16 %v430_v47  ;;  %v768_v32 = vrot.slane %v688_v9, 7 }
  0x36   :  { %v772_v36 = vrot.slane %v696_v15, 5  ;;  %v825_v52 = vsel %vm748_vm0, %v824_v43, %v716_v26  ;;  %v212_v26 = vrot.slane %v2737_v3, %v2787_v24  ;;  %v428_v43 = vpack.c.bf16 %v180_v22, %v180_v22 }
  0x37   :  { %1541 = vmatpush2.bf16.msra.mxu0 %v2375_v29  ;;  %v732_v29 = vunpack.c.l.b16 %v454_v56  ;;  %v769_v41 = vsel %vm748_vm0, %v768_v32, %v684_v19  ;;  %v778_v42 = vrot.slane %v708_v20, 2  ;;  %v164_v19 = vrot.slane %v2731_v0, %v2787_v24 }
  0x38   :  { %1584 = vmatpush2.bf16.msra.mxu1 %v2376_v30  ;;  %1542 = vmatprep.subr.bf16.mxu0 %v2377_v35  ;;  %v736_v30 = vunpack.c.l.b16 %v458_v61  ;;  %v744_v35 = vunpack.c.l.b16 %v466_v4  ;;  %v771_v47 = vsel %vm751_vm1, %v770_v33, %v769_v41  ;;  %v292_v32 = vrot.slane %v2756_v11, %v2787_v24 }
  0x39   :  { %1585 = vmatprep.subr.bf16.mxu1 %v2379_v40  ;;  %v2394_v40 = vld [vmem:[%s3317_s1 + $0x2ec] ss:$16 sps:$4 sm:$0xff]   ;;  %v424_v41 = vpack.c.bf16 %v164_v19, %v164_v19 }
  0x3a   :  { %v832_v54 = vrot.slane %v736_v30, 3  ;;  %v836_v61 = vrot.slane %v744_v35, 1  ;;  %v260_v30 = vrot.slane %v2746_v7, %v2787_v24  ;;  %v324_v35 = vrot.slane %v2760_v13, %v2787_v24 }
  0x3b   :  { %1543 = vmatpush2.bf16.msra.mxu0 %v2381_v50  ;;  %v830_v50 = vrot.slane %v732_v29, 4 }
  0x3c   :  { %1586 = vmatpush2.bf16.msra.mxu1 %v2382_v51  ;;  %1544 = vmatprep.subr.bf16.mxu0 %v2383_v60  ;;  %v773_v51 = vsel %vm754_vm2, %v772_v36, %v771_v47  ;;  %v827_v60 = vsel %vm751_vm1, %v826_v45, %v825_v52  ;;  %v340_v36 = vrot.slane %v2769_v16, %v2787_v24 }
  0x3d   :  { %1587 = vmatprep.subr.bf16.mxu1 %v2385_v10  ;;  %v775_v56 = vsel %vm757_vm3, %v774_v37, %v773_v51  ;;  %v829_v9 = vsel %vm754_vm2, %v828_v49, %v827_v60  ;;  %v116_v10 = vrot.slane %v2713_v57, %v2787_v24  ;;  %v436_v47 = vpack.c.bf16 %v212_v26, %v212_v26 }
  0x3e   :  { %v777_v4 = vsel %vm760_vm4, %v776_v38, %v775_v56  ;;  %v831_v17 = vsel %vm757_vm3, %v830_v50, %v829_v9  ;;  %v416_v38 = vpack.c.bf16 %v132_v14, %v132_v14  ;;  %v448_v49 = vpack.c.bf16 %v260_v30, %v260_v30 }
  0x3f   :  { %1545 = vmatpush2.bf16.msra.mxu0 %v2387_v23  ;;  %v779_v15 = vsel %vm763_vm5, %v778_v42, %v777_v4  ;;  %v833_v21 = vsel %vm760_vm4, %v832_v54, %v831_v17  ;;  %v196_v23 = vrot.slane %v2735_v2, %v2787_v24  ;;  %v412_v37 = vpack.c.bf16 %v116_v10, %v116_v10 }
  0x40   :  { %1588 = vmatpush2.bf16.msra.mxu1 %v2388_v25  ;;  %1600 = vmatprep.subr.bf16.mxu0 %v2391_v34  ;;  %v781_v20 = vsel %vm766_vm6, %v780_v48, %v779_v15  ;;  %v835_v25 = vsel %vm763_vm5, %v834_v55, %v833_v21  ;;  %v308_v34 = vrot.slane %v2758_v12, %v2787_v24  ;;  %v694_v24 = vunpack.c.l.b16 %v416_v38 }
  0x41   :  { %1643 = vmatprep.subr.bf16.mxu1 %v2394_v40  ;;  %v837_v29 = vsel %vm766_vm6, %v836_v61, %v835_v25  ;;  %v420_v40 = vpack.c.bf16 %v148_v18, %v148_v18  ;;  %v408_v42 = vpack.c.bf16 %v100_v62, %v100_v62  ;;  %v432_v45 = vpack.c.bf16 %v196_v23, %v196_v23 }
  0x42   :  { %v2891_v33 = vpack.c.b16 %v837_v29, %v781_v20  ;;  %v444_v48 = vpack.c.bf16 %v244_v28, %v244_v28  ;;  %v452_v50 = vpack.c.bf16 %v276_v31, %v276_v31  ;;  %v456_v51 = vpack.c.bf16 %v292_v32, %v292_v32 }
  0x43   :  { %v440_v52 = vpack.c.bf16 %v228_v27, %v228_v27  ;;  %v460_v54 = vpack.c.bf16 %v308_v34, %v308_v34  ;;  %v464_v55 = vpack.c.bf16 %v324_v35, %v324_v35  ;;  %v468_v56 = vpack.c.bf16 %v340_v36, %v340_v36 }
  0x44   :  { %1546 = vmatprep.mubr.bf16.mxu0 %v2891_v33  ;;  %v690_v60 = vunpack.c.l.b16 %v412_v37  ;;  %v698_v61 = vunpack.c.l.b16 %v420_v40  ;;  %v702_v4 = vunpack.c.l.b16 %v424_v41  ;;  %v686_v9 = vunpack.c.l.b16 %v408_v42 }
  0x45   :  { %v706_v10 = vunpack.c.l.b16 %v428_v43  ;;  %v710_v14 = vunpack.c.l.b16 %v432_v45  ;;  %v714_v15 = vunpack.c.l.b16 %v436_v47  ;;  %v722_v62 = vunpack.c.l.b16 %v444_v48 }
  0x46   :  { %v726_v17 = vunpack.c.l.b16 %v448_v49  ;;  %v730_v18 = vunpack.c.l.b16 %v452_v50  ;;  %v734_v19 = vunpack.c.l.b16 %v456_v51  ;;  %v718_v20 = vunpack.c.l.b16 %v440_v52 }
  0x47   :  { %v738_v21 = vunpack.c.l.b16 %v460_v54  ;;  %v742_v22 = vunpack.c.l.b16 %v464_v55  ;;  %v796_v23 = vrot.slane %v690_v60, 7  ;;  %v746_v25 = vunpack.c.l.b16 %v468_v56 }
  0x48   :  { %v798_v26 = vrot.slane %v694_v24, 6  ;;  %v800_v27 = vrot.slane %v698_v61, 5  ;;  %v802_v28 = vrot.slane %v702_v4, 4  ;;  %v804_v30 = vrot.slane %v706_v10, 3 }
  0x49   :  { %v797_v29 = vsel %vm748_vm0, %v796_v23, %v686_v9  ;;  %v806_v31 = vrot.slane %v710_v14, 2  ;;  %v852_v32 = vrot.slane %v722_v62, 7  ;;  %v854_v35 = vrot.slane %v726_v17, 6 }
  0x4a   :  { %v799_v34 = vsel %vm751_vm1, %v798_v26, %v797_v29  ;;  %v856_v36 = vrot.slane %v730_v18, 5  ;;  %v858_v37 = vrot.slane %v734_v19, 4  ;;  %v808_v40 = vrot.slane %v714_v15, 1 }
  0x4b   :  { %v801_v38 = vsel %vm754_vm2, %v800_v27, %v799_v34  ;;  %v853_v41 = vsel %vm748_vm0, %v852_v32, %v718_v20  ;;  %v860_v42 = vrot.slane %v738_v21, 3  ;;  %v862_v47 = vrot.slane %v742_v22, 2 }
  0x4c   :  { %v803_v43 = vsel %vm757_vm3, %v802_v28, %v801_v38  ;;  %v855_v45 = vsel %vm751_vm1, %v854_v35, %v853_v41  ;;  %v864_v48 = vrot.slane %v746_v25, 1  ;;  %v88_v51 = vrot.slane %v2702_v53, %v2817_v39 }
  0x4d   :  { %v805_v49 = vsel %vm760_vm4, %v804_v30, %v803_v43  ;;  %v857_v50 = vsel %vm754_vm2, %v856_v36, %v855_v45  ;;  %v104_v52 = vrot.slane %v2713_v57, %v2817_v39  ;;  %v120_v56 = vrot.slane %v2715_v58, %v2817_v39 }
  0x4e   :  { %v807_v54 = vsel %vm763_vm5, %v806_v31, %v805_v49  ;;  %v859_v55 = vsel %vm757_vm3, %v858_v37, %v857_v50  ;;  %v136_v60 = vrot.slane %v2717_v59, %v2817_v39  ;;  %v152_v4 = vrot.slane %v2731_v0, %v2817_v39 }
  0x4f   :  { %v809_v24 = vsel %vm766_vm6, %v808_v40, %v807_v54  ;;  %v861_v61 = vsel %vm760_vm4, %v860_v42, %v859_v55  ;;  %v168_v9 = vrot.slane %v2733_v1, %v2817_v39  ;;  %v184_v14 = vrot.slane %v2735_v2, %v2817_v39 }
  0x50   :  { %v863_v10 = vsel %vm763_vm5, %v862_v47, %v861_v61  ;;  %v200_v15 = vrot.slane %v2737_v3, %v2817_v39  ;;  %v216_v62 = vrot.slane %v2742_v5, %v2817_v39  ;;  %v232_v18 = vrot.slane %v2744_v6, %v2817_v39 }
  0x51   :  { %v865_v17 = vsel %vm766_vm6, %v864_v48, %v863_v10  ;;  %v248_v19 = vrot.slane %v2746_v7, %v2817_v39  ;;  %v264_v20 = vrot.slane %v2748_v8, %v2817_v39  ;;  %v280_v22 = vrot.slane %v2756_v11, %v2817_v39 }
  0x52   :  { %v2938_v21 = vpack.c.b16 %v865_v17, %v809_v24  ;;  %v296_v23 = vrot.slane %v2758_v12, %v2817_v39  ;;  %v312_v25 = vrot.slane %v2760_v13, %v2817_v39  ;;  %v328_v26 = vrot.slane %v2769_v16, %v2817_v39 }
  0x53   :  { %v409_v27 = vpack.c.bf16 %v104_v52, %v104_v52  ;;  %v413_v28 = vpack.c.bf16 %v120_v56, %v120_v56  ;;  %v417_v29 = vpack.c.bf16 %v136_v60, %v136_v60  ;;  %v405_v30 = vpack.c.bf16 %v88_v51, %v88_v51 }
  0x54   :  { %1589 = vmatprep.mubr.bf16.mxu1 %v2938_v21  ;;  %v421_v31 = vpack.c.bf16 %v152_v4, %v152_v4  ;;  %v425_v32 = vpack.c.bf16 %v168_v9, %v168_v9  ;;  %v429_v34 = vpack.c.bf16 %v184_v14, %v184_v14  ;;  %v433_v35 = vpack.c.bf16 %v200_v15, %v200_v15 }
  0x55   :  { %v441_v36 = vpack.c.bf16 %v232_v18, %v232_v18  ;;  %v445_v37 = vpack.c.bf16 %v248_v19, %v248_v19  ;;  %v449_v38 = vpack.c.bf16 %v264_v20, %v264_v20  ;;  %v437_v40 = vpack.c.bf16 %v216_v62, %v216_v62 }
  0x56   :  { %v453_v41 = vpack.c.bf16 %v280_v22, %v280_v22  ;;  %v457_v42 = vpack.c.bf16 %v296_v23, %v296_v23  ;;  %v461_v43 = vpack.c.bf16 %v312_v25, %v312_v25  ;;  %v465_v45 = vpack.c.bf16 %v328_v26, %v328_v26 }
  0x57   :  { %v687_v47 = vunpack.c.l.b16 %v409_v27  ;;  %v691_v48 = vunpack.c.l.b16 %v413_v28  ;;  %v695_v49 = vunpack.c.l.b16 %v417_v29  ;;  %v683_v50 = vunpack.c.l.b16 %v405_v30 }
  0x58   :  { %v699_v52 = vunpack.c.l.b16 %v421_v31  ;;  %v703_v54 = vunpack.c.l.b16 %v425_v32  ;;  %v707_v55 = vunpack.c.l.b16 %v429_v34  ;;  %v711_v51 = vunpack.c.l.b16 %v433_v35 }
  0x59   :  { %v719_v56 = vunpack.c.l.b16 %v441_v36  ;;  %v723_v60 = vunpack.c.l.b16 %v445_v37  ;;  %v727_v24 = vunpack.c.l.b16 %v449_v38  ;;  %v715_v61 = vunpack.c.l.b16 %v437_v40 }
  0x5a   :  { %v731_v4 = vunpack.c.l.b16 %v453_v41  ;;  %v735_v9 = vunpack.c.l.b16 %v457_v42  ;;  %v739_v10 = vunpack.c.l.b16 %v461_v43  ;;  %v743_v14 = vunpack.c.l.b16 %v465_v45 }
  0x5b   :  { %v747_v15 = vrot.slane %v687_v47, 7  ;;  %v750_v62 = vrot.slane %v691_v48, 6  ;;  %v753_v17 = vrot.slane %v695_v49, 5  ;;  %v756_v18 = vrot.slane %v699_v52, 4 }
  0x5c   :  { %v759_v19 = vrot.slane %v703_v54, 3  ;;  %v762_v20 = vrot.slane %v707_v55, 2  ;;  %v810_v22 = vrot.slane %v719_v56, 7  ;;  %v812_v25 = vrot.slane %v723_v60, 6 }
  0x5d   :  { %v749_v23 = vsel %vm748_vm0, %v747_v15, %v683_v50  ;;  %v814_v26 = vrot.slane %v727_v24, 5  ;;  %v816_v27 = vrot.slane %v731_v4, 4  ;;  %v765_v29 = vrot.slane %v711_v51, 1  ;;  %v2389_v50 = vld [vmem:[%s3317_s1 + $0xe8] ss:$16 sps:$4 sm:$0xff]  }
  0x5e   :  { %v752_v28 = vsel %vm751_vm1, %v750_v62, %v749_v23  ;;  %v811_v30 = vsel %vm748_vm0, %v810_v22, %v715_v61  ;;  %v818_v31 = vrot.slane %v735_v9, 3  ;;  %v820_v35 = vrot.slane %v739_v10, 2  ;;  %v2401_v23 = vld [vmem:[%s3317_s1 + $0xa8] ss:$16 sps:$4 sm:$0xff]  }
  0x5f   :  { %v755_v32 = vsel %vm754_vm2, %v753_v17, %v752_v28  ;;  %v813_v34 = vsel %vm751_vm1, %v812_v25, %v811_v30  ;;  %v822_v36 = vrot.slane %v743_v14, 1  ;;  %v96_v40 = vrot.slane %v2702_v53, %v2823_v44 }
  0x60   :  { %v758_v37 = vsel %vm757_vm3, %v756_v18, %v755_v32  ;;  %v815_v38 = vsel %vm754_vm2, %v814_v26, %v813_v34  ;;  %v112_v43 = vrot.slane %v2713_v57, %v2823_v44  ;;  %v128_v45 = vrot.slane %v2715_v58, %v2823_v44 }
  0x61   :  { %v761_v41 = vsel %vm760_vm4, %v759_v19, %v758_v37  ;;  %v817_v42 = vsel %vm757_vm3, %v816_v27, %v815_v38  ;;  %v144_v49 = vrot.slane %v2717_v59, %v2823_v44  ;;  %v160_v53 = vrot.slane %v2731_v0, %v2823_v44  ;;  %v2397_v59 = vld [vmem:[%s3317_s1 + $0xcc] ss:$16 sps:$4 sm:$0xff]  }
  0x62   :  { %v764_v47 = vsel %vm763_vm5, %v762_v20, %v761_v41  ;;  %v819_v48 = vsel %vm760_vm4, %v818_v31, %v817_v42  ;;  %v176_v58 = vrot.slane %v2733_v1, %v2823_v44  ;;  %v192_v54 = vrot.slane %v2735_v2, %v2823_v44  ;;  %v2409_v38 = vld [vmem:[%s3317_s1 + $0x8c] ss:$16 sps:$4 sm:$0xff]  }
  0x63   :  { %v767_v52 = vsel %vm766_vm6, %v765_v29, %v764_v47  ;;  %v821_v57 = vsel %vm763_vm5, %v820_v35, %v819_v48  ;;  %v208_v55 = vrot.slane %v2737_v3, %v2823_v44  ;;  %v240_v51 = vrot.slane %v2744_v6, %v2823_v44 }
  0x64   :  { %v823_v0 = vsel %vm766_vm6, %v822_v36, %v821_v57  ;;  %v256_v56 = vrot.slane %v2746_v7, %v2823_v44  ;;  %v224_v1 = vrot.slane %v2742_v5, %v2823_v44  ;;  %v272_v2 = vrot.slane %v2748_v8, %v2823_v44  ;;  %v2395_v7 = vld [vmem:[%s3317_s1 + $0xc8] ss:$16 sps:$4 sm:$0xff]  }
  0x65   :  { %v2989_v60 = vpack.c.b16 %v823_v0, %v767_v52  ;;  %v288_v24 = vrot.slane %v2756_v11, %v2823_v44  ;;  %v304_v3 = vrot.slane %v2758_v12, %v2823_v44  ;;  %v320_v6 = vrot.slane %v2760_v13, %v2823_v44  ;;  %v2403_v12 = vld [vmem:[%s3317_s1 + $0xac] ss:$16 sps:$4 sm:$0xff]   ;;  %v2407_v57 = vld [vmem:[%s3317_s1 + $0x88] ss:$16 sps:$4 sm:$0xff]  }
  0x66   :  { %v411_v61 = vpack.c.bf16 %v112_v43, %v112_v43  ;;  %v415_v4 = vpack.c.bf16 %v128_v45, %v128_v45  ;;  %v336_v5 = vrot.slane %v2769_v16, %v2823_v44  ;;  %v419_v8 = vpack.c.bf16 %v144_v49, %v144_v49  ;;  %v2415_v0 = vld [vmem:[%s3317_s1 + $0x6c] ss:$16 sps:$4 sm:$0xff]  }
  0x67   :  { %1547 = vmatmul.mubr.bf16.vlgmr.msra.gmra.mxu0 %v2989_v60  ;;  %v423_v9 = vpack.c.bf16 %v160_v53, %v160_v53  ;;  %v427_v11 = vpack.c.bf16 %v176_v58, %v176_v58  ;;  %v407_v10 = vpack.c.bf16 %v96_v40, %v96_v40  ;;  %v431_v13 = vpack.c.bf16 %v192_v54, %v192_v54 }
  0x68   :  { %v443_v14 = vpack.c.bf16 %v240_v51, %v240_v51  ;;  %v447_v15 = vpack.c.bf16 %v256_v56, %v256_v56  ;;  %1601 = vmatpush1.bf16.msra.mxu0 %v2389_v50  ;;  %v435_v62 = vpack.c.bf16 %v208_v55, %v208_v55  ;;  %v439_v17 = vpack.c.bf16 %v224_v1, %v224_v1 }
  0x69   :  { %v451_v18 = vpack.c.bf16 %v272_v2, %v272_v2  ;;  %v455_v19 = vpack.c.bf16 %v288_v24, %v288_v24  ;;  %1602 = vmatprep.subr.bf16.mxu0 %v2397_v59  ;;  %v459_v20 = vpack.c.bf16 %v304_v3, %v304_v3  ;;  %v463_v22 = vpack.c.bf16 %v320_v6, %v320_v6 }
  0x6a   :  { %v689_v16 = vunpack.c.l.b16 %v411_v61  ;;  %v693_v44 = vunpack.c.l.b16 %v415_v4  ;;  %1632 = vmatprep.mubr.bf16.mxu0 %v2891_v33  ;;  %v467_v25 = vpack.c.bf16 %v336_v5, %v336_v5  ;;  %v697_v26 = vunpack.c.l.b16 %v419_v8 }
  0x6b   :  { %v701_v27 = vunpack.c.l.b16 %v423_v9  ;;  %v705_v28 = vunpack.c.l.b16 %v427_v11  ;;  %v685_v29 = vunpack.c.l.b16 %v407_v10  ;;  %v709_v30 = vunpack.c.l.b16 %v431_v13  ;;  %v2421_v9 = vld [vmem:[%s3317_s1 + $0x4c] ss:$16 sps:$4 sm:$0xff]  }
  0x6c   :  { %v721_v31 = vunpack.c.l.b16 %v443_v14  ;;  %v725_v32 = vunpack.c.l.b16 %v447_v15  ;;  %1603 = vmatpush1.bf16.msra.mxu0 %v2395_v7  ;;  %v713_v34 = vunpack.c.l.b16 %v435_v62  ;;  %v717_v35 = vunpack.c.l.b16 %v439_v17  ;;  %v2413_v7 = vld [vmem:[%s3317_s1 + $0x68] ss:$16 sps:$4 sm:$0xff]   ;;  %v2400_v17 = vld [vmem:[%s3317_s1 + $0x2cc] ss:$16 sps:$4 sm:$0xff]  }
  0x6d   :  { %v729_v36 = vunpack.c.l.b16 %v451_v18  ;;  %v733_v37 = vunpack.c.l.b16 %v455_v19  ;;  %1604 = vmatprep.subr.bf16.mxu0 %v2403_v12  ;;  %v737_v40 = vunpack.c.l.b16 %v459_v20  ;;  %v782_v33 = vrot.slane %v689_v16, 7  ;;  %v2392_v14 = vld [vmem:[%s3317_s1 + $0x2e8] ss:$16 sps:$4 sm:$0xff]   ;;  %v2427_v18 = vld [vmem:[%s3317_s1 + $0x2c] ss:$16 sps:$4 sm:$0xff]  }
  0x6e   :  { %v784_v41 = vrot.slane %v693_v44, 6  ;;  %v786_v42 = vrot.slane %v697_v26, 5  ;;  %v741_v43 = vunpack.c.l.b16 %v463_v22  ;;  %v745_v45 = vunpack.c.l.b16 %v467_v25  ;;  %v2419_v15 = vld [vmem:[%s3317_s1 + $0x48] ss:$16 sps:$4 sm:$0xff]   ;;  %v2406_v22 = vld [vmem:[%s3317_s1 + $0x2ac] ss:$16 sps:$4 sm:$0xff]  }
  0x6f   :  { %v788_v47 = vrot.slane %v701_v27, 4  ;;  %v790_v48 = vrot.slane %v705_v28, 3  ;;  %v783_v49 = vsel %vm748_vm0, %v782_v33, %v685_v29  ;;  %v838_v53 = vrot.slane %v721_v31, 7  ;;  %v2398_v19 = vld [vmem:[%s3317_s1 + $0x2c8] ss:$16 sps:$4 sm:$0xff]  }
  0x70   :  { %v840_v50 = vrot.slane %v725_v32, 6  ;;  %v842_v52 = vrot.slane %v729_v36, 5  ;;  %1605 = vmatpush1.bf16.msra.mxu0 %v2401_v23  ;;  %v785_v58 = vsel %vm751_vm1, %v784_v41, %v783_v49  ;;  %v792_v54 = vrot.slane %v709_v30, 2  ;;  %v2425_v20 = vld [vmem:[%s3317_s1 + $0x28] ss:$16 sps:$4 sm:$0xff]  }
  0x71   :  { %v844_v59 = vrot.slane %v733_v37, 4  ;;  %1606 = vmatprep.subr.bf16.mxu0 %v2409_v38  ;;  %v787_v55 = vsel %vm754_vm2, %v786_v42, %v785_v58  ;;  %v794_v51 = vrot.slane %v713_v34, 1  ;;  %v839_v56 = vsel %vm748_vm0, %v838_v53, %v717_v35  ;;  %v2433_v16 = vld [vmem:[%s3317_s1 + $0xc] ss:$16 sps:$4 sm:$0xff]   ;;  %v2404_v44 = vld [vmem:[%s3317_s1 + $0x2a8] ss:$16 sps:$4 sm:$0xff]  }
  0x72   :  { %v846_v1 = vrot.slane %v737_v40, 3  ;;  %v789_v2 = vsel %vm757_vm3, %v788_v47, %v787_v55  ;;  %v841_v24 = vsel %vm751_vm1, %v840_v50, %v839_v56  ;;  %v848_v3 = vrot.slane %v741_v43, 2  ;;  %v2431_v23 = vld [vmem:[%s3317_s1 + $0x8] ss:$16 sps:$4 sm:$0xff]   ;;  %v2412_v25 = vld [vmem:[%s3317_s1 + $0x28c] ss:$16 sps:$4 sm:$0xff]  }
  0x73   :  { %v791_v6 = vsel %vm760_vm4, %v790_v48, %v789_v2  ;;  %v843_v61 = vsel %vm754_vm2, %v842_v52, %v841_v24  ;;  %v850_v4 = vrot.slane %v745_v45, 1  ;;  %v2410_v26 = vld [vmem:[%s3317_s1 + $0x288] ss:$16 sps:$4 sm:$0xff]   ;;  %v2418_v28 = vld [vmem:[%s3317_s1 + $0x26c] ss:$16 sps:$4 sm:$0xff]  }
  0x74   :  { %1607 = vmatpush1.bf16.msra.mxu0 %v2407_v57  ;;  %v793_v5 = vsel %vm763_vm5, %v792_v54, %v791_v6  ;;  %v845_v8 = vsel %vm757_vm3, %v844_v59, %v843_v61  ;;  %v2437_v27 = vld [vmem:[%s3317_s1 + $0x1e8] ss:$16 sps:$4 sm:$0xff]   ;;  %v2445_v29 = vld [vmem:[%s3317_s1 + $0x1cc] ss:$16 sps:$4 sm:$0xff]   ;;  %v2488_v61 = vld [vmem:[%s3319_s3 + $0x30] sm:$0xff]  }
  0x75   :  { %1608 = vmatprep.subr.bf16.mxu0 %v2415_v0  ;;  %v795_v11 = vsel %vm766_vm6, %v794_v51, %v793_v5  ;;  %v847_v12 = vsel %vm760_vm4, %v846_v1, %v845_v8  ;;  %v2416_v30 = vld [vmem:[%s3317_s1 + $0x268] ss:$16 sps:$4 sm:$0xff]   ;;  %v2424_v32 = vld [vmem:[%s3317_s1 + $0x24c] ss:$16 sps:$4 sm:$0xff]  }
  0x76   :  { %v849_v10 = vsel %vm763_vm5, %v848_v3, %v847_v12  ;;  %v2443_v31 = vld [vmem:[%s3317_s1 + $0x1c8] ss:$16 sps:$4 sm:$0xff]   ;;  %v2451_v34 = vld [vmem:[%s3317_s1 + $0x1ac] ss:$16 sps:$4 sm:$0xff]   ;;  %v2487_v3 = vld [vmem:[%s3319_s3 + $0x70] sm:$0xff]  }
  0x77   :  { %v851_v13 = vsel %vm766_vm6, %v850_v4, %v849_v10  ;;  %v2422_v35 = vld [vmem:[%s3317_s1 + $0x248] ss:$16 sps:$4 sm:$0xff]   ;;  %v2430_v37 = vld [vmem:[%s3317_s1 + $0x22c] ss:$16 sps:$4 sm:$0xff]   ;;  %v2492_v12 = vld [vmem:[%s3319_s3 + $0x20] sm:$0xff]  }
  0x78   :  { %1609 = vmatpush1.bf16.msra.mxu0 %v2413_v7  ;;  %v3049_v62 = vpack.c.b16 %v851_v13, %v795_v11  ;;  %v2449_v36 = vld [vmem:[%s3317_s1 + $0x1a8] ss:$16 sps:$4 sm:$0xff]   ;;  %v2457_v38 = vld [vmem:[%s3317_s1 + $0x18c] ss:$16 sps:$4 sm:$0xff]  }
  0x79   :  { %1610 = vmatprep.subr.bf16.mxu0 %v2421_v9  ;;  %v2428_v40 = vld [vmem:[%s3317_s1 + $0x228] ss:$16 sps:$4 sm:$0xff]   ;;  %v2436_v41 = vld [vmem:[%s3317_s1 + $0x20c] ss:$16 sps:$4 sm:$0xff]   ;;  %v2491_v9 = vld [vmem:[%s3319_s3 + $0x60] sm:$0xff]  }
  0x7a   :  { %1590 = vmatmul.mubr.bf16.vlgmr.msra.gmra.mxu1 %v3049_v62  ;;  %v2455_v33 = vld [vmem:[%s3317_s1 + $0x188] ss:$16 sps:$4 sm:$0xff]   ;;  %v2463_v42 = vld [vmem:[%s3317_s1 + $0x16c] ss:$16 sps:$4 sm:$0xff]  }
  0x7b   :  { %1644 = vmatpush1.bf16.msra.mxu1 %v2392_v14  ;;  %1675 = vmatprep.mubr.bf16.mxu1 %v2938_v21  ;;  %v2439_v21 = vld [vmem:[%s3317_s1 + $0x1ec] ss:$16 sps:$4 sm:$0xff]   ;;  %v2434_v43 = vld [vmem:[%s3317_s1 + $0x208] ss:$16 sps:$4 sm:$0xff]  }
  0x7c   :  { %1611 = vmatpush1.bf16.msra.mxu0 %v2419_v15  ;;  %1645 = vmatprep.subr.bf16.mxu1 %v2400_v17  ;;  %v2461_v45 = vld [vmem:[%s3317_s1 + $0x168] ss:$16 sps:$4 sm:$0xff]   ;;  %v2442_v47 = vld [vmem:[%s3317_s1 + $0x3ec] ss:$16 sps:$4 sm:$0xff]   ;;  %v2495_v17 = vld [vmem:[%s3319_s3 + $0x50] sm:$0xff]  }
  0x7d   :  { %1612 = vmatprep.subr.bf16.mxu0 %v2427_v18  ;;  %v2469_v48 = vld [vmem:[%s3317_s1 + $0x14c] ss:$16 sps:$4 sm:$0xff]   ;;  %v2440_v49 = vld [vmem:[%s3317_s1 + $0x3e8] ss:$16 sps:$4 sm:$0xff]   ;;  %v2496_v18 = vld [vmem:[%s3319_s3 + $0x10] sm:$0xff]  }
  0x7e   :  { %v2467_v53 = vld [vmem:[%s3317_s1 + $0x148] ss:$16 sps:$4 sm:$0xff]   ;;  %v2448_v50 = vld [vmem:[%s3317_s1 + $0x3cc] ss:$16 sps:$4 sm:$0xff]  }
  0x7f   :  { %1646 = vmatpush1.bf16.msra.mxu1 %v2398_v19  ;;  %v2475_v52 = vld [vmem:[%s3317_s1 + $0x12c] ss:$16 sps:$4 sm:$0xff]   ;;  %v2446_v57 = vld [vmem:[%s3317_s1 + $0x3c8] ss:$16 sps:$4 sm:$0xff]  }
  0x80   :  { %1613 = vmatpush1.bf16.msra.mxu0 %v2425_v20  ;;  %1647 = vmatprep.subr.bf16.mxu1 %v2406_v22  ;;  %v2473_v58 = vld [vmem:[%s3317_s1 + $0x128] ss:$16 sps:$4 sm:$0xff]   ;;  %v2454_v54 = vld [vmem:[%s3317_s1 + $0x3ac] ss:$16 sps:$4 sm:$0xff]   ;;  %v2499_v20 = vld [vmem:[%s3319_s3 + $0x40] sm:$0xff]  }
  0x81   :  { %1614 = vmatprep.subr.bf16.mxu0 %v2433_v16  ;;  %v2481_v59 = vld [vmem:[%s3317_s1 + $0x10c] ss:$16 sps:$4 sm:$0xff]   ;;  %v2452_v0 = vld [vmem:[%s3317_s1 + $0x3a8] ss:$16 sps:$4 sm:$0xff]   ;;  %v2500_v22 = vld [vmem:[%s3319_s3] sm:$0xff]  }
  0x82   :  { %v2479_v55 = vld [vmem:[%s3317_s1 + $0x108] ss:$16 sps:$4 sm:$0xff]   ;;  %v2460_v51 = vld [vmem:[%s3317_s1 + $0x38c] ss:$16 sps:$4 sm:$0xff]  }
  0x83   :  { %1648 = vmatpush1.bf16.msra.mxu1 %v2404_v44  ;;  %v2485_v56 = vld [vmem:[%s3319_s3 + $0x78] sm:$0xff]   ;;  %v2490_v5 = vld [vmem:[%s3319_s3 + $0x28] sm:$0xff]  }
  0x84   :  { %1615 = vmatpush1.bf16.msra.mxu0 %v2431_v23  ;;  %1649 = vmatprep.subr.bf16.mxu1 %v2412_v25  ;;  %v2458_v1 = vld [vmem:[%s3317_s1 + $0x388] ss:$16 sps:$4 sm:$0xff]   ;;  %v2466_v24 = vld [vmem:[%s3317_s1 + $0x36c] ss:$16 sps:$4 sm:$0xff]   ;;  %v2503_v23 = vld [vmem:[%s3319_s3 + $0xf0] sm:$0xff]  }
  0x85   :  { %1616 = vmatprep.subr.bf16.mxu0 %v2439_v21  ;;  %v2486_v2 = vld [vmem:[%s3319_s3 + $0x38] sm:$0xff]   ;;  %v2497_v19 = vld [vmem:[%s3319_s3 + $0x48] sm:$0xff]   ;;  %v2504_v25 = vld [vmem:[%s3319_s3 + $0xb0] sm:$0xff]  }
  0x86   :  { %v2464_v6 = vld [vmem:[%s3317_s1 + $0x368] ss:$16 sps:$4 sm:$0xff]   ;;  %v2472_v4 = vld [vmem:[%s3317_s1 + $0x34c] ss:$16 sps:$4 sm:$0xff]  }
  0x87   :  { %1650 = vmatpush1.bf16.msra.mxu1 %v2410_v26  ;;  %v2470_v7 = vld [vmem:[%s3317_s1 + $0x348] ss:$16 sps:$4 sm:$0xff]   ;;  %v2478_v8 = vld [vmem:[%s3317_s1 + $0x32c] ss:$16 sps:$4 sm:$0xff]  }
  0x88   :  { %1617 = vmatpush2.bf16.msra.mxu0 %v2437_v27  ;;  %1651 = vmatprep.subr.bf16.mxu1 %v2418_v28  ;;  %v2476_v11 = vld [vmem:[%s3317_s1 + $0x328] ss:$16 sps:$4 sm:$0xff]   ;;  %v2484_v10 = vld [vmem:[%s3317_s1 + $0x30c] ss:$16 sps:$4 sm:$0xff]   ;;  %v2507_v27 = vld [vmem:[%s3319_s3 + $0xe0] sm:$0xff]  }
  0x89   :  { %1618 = vmatprep.subr.bf16.mxu0 %v2445_v29  ;;  %v2482_v13 = vld [vmem:[%s3317_s1 + $0x308] ss:$16 sps:$4 sm:$0xff]   ;;  %v2508_v28 = vld [vmem:[%s3319_s3 + $0xa0] sm:$0xff]  }
  0x8a   :  { %v2493_v14 = vld [vmem:[%s3319_s3 + $0x58] sm:$0xff]   ;;  %v2505_v21 = vld [vmem:[%s3319_s3 + $0xe8] sm:$0xff]  }
  0x8b   :  { %1652 = vmatpush1.bf16.msra.mxu1 %v2416_v30  ;;  %v2494_v15 = vld [vmem:[%s3319_s3 + $0x18] sm:$0xff]   ;;  %v2506_v26 = vld [vmem:[%s3319_s3 + $0xa8] sm:$0xff]  }
  0x8c   :  { %1619 = vmatpush2.bf16.msra.mxu0 %v2443_v31  ;;  %1653 = vmatprep.subr.bf16.mxu1 %v2424_v32  ;;  %v2501_v16 = vld [vmem:[%s3319_s3 + $0xf8] sm:$0xff]   ;;  %v2511_v31 = vld [vmem:[%s3319_s3 + $0xd0] sm:$0xff]  }
  0x8d   :  { %1620 = vmatprep.subr.bf16.mxu0 %v2451_v34  ;;  %v2502_v44 = vld [vmem:[%s3319_s3 + $0xb8] sm:$0xff]   ;;  %v2512_v32 = vld [vmem:[%s3319_s3 + $0x90] sm:$0xff]   ;;  %v2513_v34 = vld [vmem:[%s3319_s3 + $0xc8] sm:$0xff]  }
  0x8e   :  { %v2509_v29 = vld [vmem:[%s3319_s3 + $0xd8] sm:$0xff]  }
  0x8f   :  { %1654 = vmatpush1.bf16.msra.mxu1 %v2422_v35  ;;  %v2510_v30 = vld [vmem:[%s3319_s3 + $0x98] sm:$0xff]   ;;  %v2514_v35 = vld [vmem:[%s3319_s3 + $0x88] sm:$0xff]  }
  0x90   :  { %1621 = vmatpush2.bf16.msra.mxu0 %v2449_v36  ;;  %1655 = vmatprep.subr.bf16.mxu1 %v2430_v37  ;;  %v2515_v36 = vld [vmem:[%s3319_s3 + $0xc0] sm:$0xff]  }
  0x91   :  { %1622 = vmatprep.subr.bf16.mxu0 %v2457_v38  ;;  %v2516_v37 = vld [vmem:[%s3319_s3 + $0x80] sm:$0xff]  }
  0x93   :  { %1656 = vmatpush1.bf16.msra.mxu1 %v2428_v40 }
  0x94   :  { %1623 = vmatpush2.bf16.msra.mxu0 %v2455_v33  ;;  %1657 = vmatprep.subr.bf16.mxu1 %v2436_v41  ;;  %v605_v33 = vsub.s32 1, %v2682_v46  ;;  %v597_v41 = vld [vmem:[%s3320_s2] sm:$0xf] }
  0x95   :  { %1624 = vmatprep.subr.bf16.mxu0 %v2463_v42 }
  0x97   :  { %1658 = vmatpush1.bf16.msra.mxu1 %v2434_v43  ;;  %v606_v43 = vrot.slane %v597_v41, %v605_v33 }
  0x98   :  { %1625 = vmatpush2.bf16.msra.mxu0 %v2461_v45  ;;  %1659 = vmatprep.subr.bf16.mxu1 %v2442_v47  ;;  %v602_v45 = vrot.slane %v597_v41, %v2817_v39 }
  0x99   :  { %1626 = vmatprep.subr.bf16.mxu0 %v2469_v48 }
  0x9b   :  { %1660 = vmatpush2.bf16.msra.mxu1 %v2440_v49 }
  0x9c   :  { %1627 = vmatpush2.bf16.msra.mxu0 %v2467_v53  ;;  %1661 = vmatprep.subr.bf16.mxu1 %v2448_v50 }
  0x9d   :  { %1628 = vmatprep.subr.bf16.mxu0 %v2475_v52 }
  0x9f   :  { %1662 = vmatpush2.bf16.msra.mxu1 %v2446_v57 }
  0xa0   :  { %1629 = vmatpush2.bf16.msra.mxu0 %v2473_v58  ;;  %1663 = vmatprep.subr.bf16.mxu1 %v2454_v54 }
  0xa1   :  { %1630 = vmatprep.subr.bf16.mxu0 %v2481_v59 }
  0xa3   :  { %1664 = vmatpush2.bf16.msra.mxu1 %v2452_v0 }
  0xa4   :  { %1631 = vmatpush2.bf16.msra.mxu0 %v2479_v55  ;;  %1665 = vmatprep.subr.bf16.mxu1 %v2460_v51 }
  0xa5   :  { %2249 = vmatprep.subr.bf16.mxu0 %v2485_v56 }
  0xa7   :  { %1633 = vmatmul.mubr.bf16.vlgmr.msra.gmra.mxu0 %v2989_v60  ;;  %1666 = vmatpush2.bf16.msra.mxu1 %v2458_v1  ;;  %v2489_v60 = vld [vmem:[%s3319_s3 + $0x68] sm:$0xff]  }
  0xa8   :  { %2250 = vmatpush3.bf16.msra.mxu0 %v2486_v2  ;;  %1667 = vmatprep.subr.bf16.mxu1 %v2466_v24 }
  0xa9   :  { %2251 = vmatprep.subr.bf16.mxu0 %v2487_v3 }
  0xab   :  { %1668 = vmatpush2.bf16.msra.mxu1 %v2464_v6 }
  0xac   :  { %2252 = vmatpush3.bf16.msra.mxu0 %v2488_v61  ;;  %1669 = vmatprep.subr.bf16.mxu1 %v2472_v4  ;;  %v613_v4 = vsub.s32 3, %v2682_v46 }
  0xad   :  { %2253 = vmatprep.subr.bf16.mxu0 %v2489_v60 }
  0xaf   :  { %1670 = vmatpush2.bf16.msra.mxu1 %v2470_v7  ;;  %v614_v7 = vrot.slane %v597_v41, %v613_v4 }
  0xb0   :  { %2254 = vmatpush3.bf16.msra.mxu0 %v2490_v5  ;;  %1671 = vmatprep.subr.bf16.mxu1 %v2478_v8  ;;  %v610_v5 = vrot.slane %v597_v41, %v2729_v63 }
  0xb1   :  { %2255 = vmatprep.subr.bf16.mxu0 %v2491_v9 }
  0xb3   :  { %1672 = vmatpush2.bf16.msra.mxu1 %v2476_v11 }
  0xb4   :  { %2256 = vmatpush3.bf16.msra.mxu0 %v2492_v12  ;;  %1673 = vmatprep.subr.bf16.mxu1 %v2484_v10 }
  0xb5   :  { %2257 = vmatprep.subr.bf16.mxu0 %v2493_v14 }
  0xb7   :  { %1674 = vmatpush2.bf16.msra.mxu1 %v2482_v13 }
  0xb8   :  { %2258 = vmatpush3.bf16.msra.mxu0 %v2494_v15  ;;  %2271 = vmatprep.subr.bf16.mxu1 %v2501_v16 }
  0xb9   :  { %2259 = vmatprep.subr.bf16.mxu0 %v2495_v17 }
  0xba   :  { %1676 = vmatmul.mubr.bf16.vlgmr.msra.gmra.mxu1 %v3049_v62  ;;  %v2498_v62 = vld [vmem:[%s3319_s3 + $0x8] sm:$0xff]  }
  0xbb   :  { %2272 = vmatpush3.bf16.msra.mxu1 %v2502_v44 }
  0xbc   :  { %2260 = vmatpush3.bf16.msra.mxu0 %v2496_v18  ;;  %2273 = vmatprep.subr.bf16.mxu1 %v2503_v23 }
  0xbd   :  { %2261 = vmatprep.subr.bf16.mxu0 %v2497_v19 }
  0xbf   :  { %2274 = vmatpush3.bf16.msra.mxu1 %v2504_v25 }
  0xc0   :  { %2262 = vmatpush3.bf16.msra.mxu0 %v2498_v62  ;;  %2275 = vmatprep.subr.bf16.mxu1 %v2505_v21 }
  0xc1   :  { %2263 = vmatprep.subr.bf16.mxu0 %v2499_v20 }
  0xc3   :  { %2276 = vmatpush3.bf16.msra.mxu1 %v2506_v26 }
  0xc4   :  { %2264 = vmatpush3.bf16.msra.mxu0 %v2500_v22  ;;  %2277 = vmatprep.subr.bf16.mxu1 %v2507_v27 }
  0xc7   :  { %2278 = vmatpush3.bf16.msra.mxu1 %v2508_v28  ;;  %v2177_v28 = vld [vmem:[%s3321_s4] ss:$0 sm:$0xff] }
  0xc8   :  { %2279 = vmatprep.subr.bf16.mxu1 %v2509_v29 }
  0xcb   :  { %2280 = vmatpush3.bf16.msra.mxu1 %v2510_v30 }
  0xcc   :  { %2281 = vmatprep.subr.bf16.mxu1 %v2511_v31 }
  0xcf   :  { %2282 = vmatpush3.bf16.msra.mxu1 %v2512_v32 }
  0xd0   :  { %2283 = vmatprep.subr.bf16.mxu1 %v2513_v34 }
  0xd3   :  { %2284 = vmatpush3.bf16.msra.mxu1 %v2514_v35 }
  0xd4   :  { %2285 = vmatprep.subr.bf16.mxu1 %v2515_v36 }
  0xd7   :  { %2286 = vmatpush3.bf16.msra.mxu1 %v2516_v37 }
 0x127   :  { %v1548_v38 = vpop.f32.mrf.mxu0 }
 0x128   :  { %v1549_v50 = vadd.f32 %v1548_v38, %v602_v45 }
 0x129   :  { %v1550_v40 = vpop.f32.mrf.mxu0 }
 0x12a   :  { %v1551_v49 = vadd.f32 %v1550_v40, %v606_v43 }
 0x12b   :  { %v1552_v42 = vpop.f32.mrf.mxu0 }
 0x12c   :  { %v1553_v53 = vadd.f32 %v1552_v42, %v602_v45 }
 0x12d   :  { %v1554_v48 = vpop.f32.mrf.mxu0 }
 0x12e   :  { %v1555_v57 = vadd.f32 %v1554_v48, %v606_v43 }
 0x13a   :  { %v1591_v47 = vpop.f32.mrf.mxu1 }
 0x13b   :  { %v1592_v0 = vadd.f32 %v1591_v47, %v1549_v50 }
 0x13c   :  { %v1593_v52 = vpop.f32.mrf.mxu1 }
 0x13d   :  { %v1594_v54 = vadd.f32 %v1593_v52, %v1551_v49  ;;  %v1686_v24 = vmax.f32 %v1592_v0, 0.0 }
 0x13e   :  { %v1595_v58 = vpop.f32.mrf.mxu1 }
 0x13f   :  { %v1596_v59 = vadd.f32 %v1595_v58, %v1553_v53  ;;  %v1687_v1 = vmax.f32 %v1594_v54, 0.0 }
 0x140   :  { %v1597_v55 = vpop.f32.mrf.mxu1 }
 0x141   :  { %v1598_v51 = vadd.f32 %v1597_v55, %v1555_v57  ;;  %v1690_v56 = vmax.f32 %v1596_v59, 0.0 }
 0x143   :  { %v1691_v2 = vmax.f32 %v1598_v51, 0.0  ;;  %v1694_v6 = vpack.c.bf16 %v1690_v56, %v1686_v24 }
 0x145   :  { %v1695_v3 = vpack.c.bf16 %v1691_v2, %v1687_v1 }
 0x147   :  { %1993 = vmatprep.mubr.bf16.mxu0 %v1695_v3 }
 0x148   :  { %1994 = vmatmul.mubr.bf16.vlgmr.msra.gmra.mxu0 %v1694_v6 }
 0x167   :  { %v1634_v39 = vpop.f32.mrf.mxu0 }
 0x168   :  { %v1635_v10 = vadd.f32 %v1634_v39, %v610_v5 }
 0x169   :  { %v1636_v61 = vpop.f32.mrf.mxu0 }
 0x16a   :  { %v1637_v11 = vadd.f32 %v1636_v61, %v614_v7 }
 0x16b   :  { %v1638_v60 = vpop.f32.mrf.mxu0 }
 0x16c   :  { %v1639_v12 = vadd.f32 %v1638_v60, %v610_v5 }
 0x16d   :  { %v1640_v9 = vpop.f32.mrf.mxu0 }
 0x16e   :  { %v1641_v14 = vadd.f32 %v1640_v9, %v614_v7 }
 0x17a   :  { %v1677_v8 = vpop.f32.mrf.mxu1 }
 0x17b   :  { %v1678_v19 = vadd.f32 %v1677_v8, %v1635_v10 }
 0x17c   :  { %v1679_v13 = vpop.f32.mrf.mxu1 }
 0x17d   :  { %v1680_v17 = vadd.f32 %v1679_v13, %v1637_v11  ;;  %v1688_v44 = vmax.f32 %v1678_v19, 0.0 }
 0x17e   :  { %v1681_v15 = vpop.f32.mrf.mxu1 }
 0x17f   :  { %v1682_v18 = vadd.f32 %v1681_v15, %v1639_v12  ;;  %v1689_v16 = vmax.f32 %v1680_v17, 0.0 }
 0x180   :  { %v1683_v62 = vpop.f32.mrf.mxu1 }
 0x181   :  { %v1684_v20 = vadd.f32 %v1683_v62, %v1641_v14  ;;  %v1692_v22 = vmax.f32 %v1682_v18, 0.0 }
 0x183   :  { %v1693_v46 = vmax.f32 %v1684_v20, 0.0  ;;  %v1696_v25 = vpack.c.bf16 %v1692_v22, %v1688_v44 }
 0x185   :  { %v1697_v23 = vpack.c.bf16 %v1693_v46, %v1689_v16 }
 0x187   :  { %2034 = vmatprep.mubr.bf16.mxu1 %v1697_v23 }
 0x188   :  { %2035 = vmatmul.mubr.bf16.vlgmr.msra.gmra.mxu1 %v1696_v25 }
 0x208   :  { %v2265_v63 = vpop.f32.mrf.mxu0 }
 0x20a   :  { %v2266_v21 = vpop.f32.mrf.mxu0 }
 0x20b   :  { %v2267_v27 = vadd.f32 %v2266_v21, %v2265_v63 }
 0x20c   :  { %v2268_v26 = vpop.f32.mrf.mxu0 }
 0x20d   :  { %v1996_v32 = vadd.f32 %v2267_v27, %v2177_v28 }
 0x20e   :  { %v2269_v29 = vpop.f32.mrf.mxu0 }
 0x20f   :  { %v2270_v34 = vadd.f32 %v2269_v29, %v2268_v26 }
 0x211   :  { %v1999_v40 = vadd.f32 %v2270_v34, %v2177_v28 }
 0x248   :  { %v2287_v30 = vpop.f32.mrf.mxu1 }
 0x24a   :  { %v2288_v31 = vpop.f32.mrf.mxu1 }
 0x24b   :  { %v2289_v35 = vadd.f32 %v2288_v31, %v2287_v30 }
 0x24c   :  { %v2290_v36 = vpop.f32.mrf.mxu1 }
 0x24d   :  { %v2037_v37 = vadd.f32 %v2289_v35, %v1996_v32 }
 0x24e   :  { %v2291_v38 = vpop.f32.mrf.mxu1 }
 0x24f   :  { %2043 = vst [vmem:[%s3322_s5] sm:$0xff] %v2037_v37  ;;  %v2292_v33 = vadd.f32 %v2291_v38, %v2290_v36 }
 0x251   :  { %v2040_v41 = vadd.f32 %v2292_v33, %v1999_v40 }
 0x253   :  { %2044 = vst [vmem:[%s3322_s5 + $0x8] sm:$0xff] %v2040_v41 }

</bundles_post_ra>
